<compile_context>
chip_gen: v5e
topology: v5e:2x2
jax: 0.10.0
libtpu: 0.0.40
codegen_flags: <defaults>
</compile_context>

<pallas_src>
import functools

import jax
import jax.numpy as jnp
from jax.experimental import pallas as pl
from jax.experimental.pallas import tpu as pltpu


def _news_encoder_kernel(num_heads,
                         v_ref, wq_ref, bq_ref, wk_ref, bk_ref, wv_ref, bv_ref,
                         wo_ref, bo_ref, w1_ref, b1_ref, w2_ref, out_ref):
    TB, S, H = v_ref.shape
    hd = H // num_heads
    A = b1_ref.shape[-1]

    # ---- merged (TB*S, H) bf16 activation slab (V already arrives as bf16) --
    x = v_ref[...].reshape(TB * S, H)

    # ---- nn.MultiheadAttention in-projections (1/sqrt(hd) folded into wq/bq)
    q = jnp.dot(x, wq_ref[...], preferred_element_type=jnp.float32) + bq_ref[...]
    k = jnp.dot(x, wk_ref[...], preferred_element_type=jnp.float32) + bk_ref[...]
    v = jnp.dot(x, wv_ref[...], preferred_element_type=jnp.float32) + bv_ref[...]

    # Single bf16 cast (removes 3*num_heads per-head casts; halves live slabs).
    q3 = q.astype(jnp.bfloat16).reshape(TB, S, H)
    k3 = k.astype(jnp.bfloat16).reshape(TB, S, H)
    v3 = v.astype(jnp.bfloat16).reshape(TB, S, H)

    wo_t = wo_ref[...]                                   # (H, H) bf16, pre-transposed
    attn_acc = jnp.zeros((TB * S, H), jnp.float32)

    # TODO(synk): hd (8..64 for the configs of interest) is not a 128-lane
    # multiple, so the per-head lane slices below still relayout; the fully
    # batched multi-head einsum alternative needs a 2-batch-dim dot_general that
    # Mosaic does not reliably lower, so the per-head accumulate form is kept
    # (the review sanctions it for non-vreg-aligned head widths).
    for h in range(num_heads):                           # static, fully unrolled
        sl = slice(h * hd, (h + 1) * hd)
        qh = q3[:, :, sl]
        kh = k3[:, :, sl]
        vh = v3[:, :, sl]

        scores = jnp.einsum('bqd,bkd->bqk', qh, kh,
                            preferred_element_type=jnp.float32)      # (TB, S, S)
        scores = scores - jnp.max(scores, axis=-1, keepdims=True)
        p = jnp.exp(scores)
        # Approx reciprocal (EUP slot) is fine here: the row-normalization error
        # is tiny and the inner softmax does not directly scale the output.
        p = p * pl.reciprocal(jnp.sum(p, axis=-1, keepdims=True), approx=True)

        ctx = jnp.einsum('bqk,bkd->bqd', p.astype(jnp.bfloat16), vh,
                         preferred_element_type=jnp.float32)         # (TB, S, hd)

        # Per-head accumulation into the output projection (no lane concat).
        attn_acc = attn_acc + jnp.dot(
            ctx.reshape(TB * S, hd).astype(jnp.bfloat16), wo_t[sl, :],
            preferred_element_type=jnp.float32)

    attn_out = attn_acc + bo_ref[...]                    # (TB*S, H) f32

    # ---- AdditiveAttention, lane-dense: scores are (TB, S) with S on lanes ---
    t = jnp.tanh(jnp.dot(attn_out.astype(jnp.bfloat16), w1_ref[...],
                         preferred_element_type=jnp.float32) + b1_ref[...])  # (TB*S, A)
    t3 = t.reshape(TB, S, A)
    sc = jnp.sum(t3 * w2_ref[...], axis=-1)              # == t @ w2.T -> (TB, S)
    sc = sc - jnp.max(sc, axis=-1, keepdims=True)
    alpha = jnp.exp(sc)
    # Exact reciprocal for the additive softmax: it directly scales the output.
    alpha = alpha / jnp.sum(alpha, axis=-1, keepdims=True)           # (TB, S)

    # ---- torch.sum(additive_attn_output, dim=1) as a batched matmul ----------
    attn_out3 = attn_out.reshape(TB, S, H)
    pooled = jnp.einsum('bqs,bsh->bqh', alpha.reshape(TB, 1, S), attn_out3,
                        preferred_element_type=jnp.float32)          # (TB, 1, H)
    out_ref[...] = pooled.reshape(TB, H).astype(out_ref.dtype)       # lane-dense store


def _encoder_call(V, weight_args, num_heads, tb, vmem_limit_bytes,
                  single_buffer_weights):
    B, S, H = V.shape

    def const_spec(a):
        nd = a.ndim
        idx_map = lambda b, _n=nd: (0,) * _n             # constant across the grid
        if single_buffer_weights:
            # Weights never change across grid steps -> a second pipeline buffer
            # would be pure VMEM waste (most valuable on v7x's 64 MiB VMEM).
            return pl.BlockSpec(a.shape, idx_map, pipeline_mode=pl.Buffered(1))
        return pl.BlockSpec(a.shape, idx_map)

    grid_spec = pltpu.PrefetchScalarGridSpec(
        num_scalar_prefetch=0,
        grid=(B // tb,),
        # On v6e, if a profile shows exposed DMA on the V stream at production
        # shapes, raise its buffering (pipeline_mode=pl.Buffered(3)); NOT on v7x.
        in_specs=[pl.BlockSpec((tb, S, H), lambda b: (b, 0, 0))]
                 + [const_spec(a) for a in weight_args],
        out_specs=pl.BlockSpec((tb, H), lambda b: (b, 0)),
    )
    return pl.pallas_call(
        functools.partial(_news_encoder_kernel, num_heads),
        out_shape=jax.ShapeDtypeStruct((B, H), jnp.float32),
        grid_spec=grid_spec,
        compiler_params=pltpu.CompilerParams(
            dimension_semantics=("parallel",),
            vmem_limit_bytes=vmem_limit_bytes),
    )(V, *weight_args)


def plm_based_news_encoder(token_ids, params, num_heads, batch_tile=8,
                           vmem_limit_bytes=32 * 1024 * 1024):
    # PLM stand-in (glue): deterministic embedding lookup -> (B, S, H).
    # Cast to bf16 in the wrapper so the V stream DMAs at half the bytes — the
    # kernel consumes bf16 at first use anyway (prioritized for v5e).
    V = jnp.take(params["emb"], token_ids, axis=0).astype(jnp.bfloat16)
    B, S, H = V.shape
    # Keep the grid length >= 2 when possible so ("parallel",) can shard the
    # batch axis across both v7x TensorCores; at production shapes pick the
    # largest tb whose (TB*S, H) slabs fit the per-generation VMEM budget.
    tb = batch_tile if (batch_tile is not None and B % batch_tile == 0) else B
    hd = H // num_heads
    scale = 1.0 / (hd ** 0.5)

    bf16 = jnp.bfloat16
    # Pre-transposed weights (lane-contiguous contraction), scale folded into Wq/bq.
    weight_args = [
        (params["wq"].T * scale).astype(bf16), (params["bq"] * scale).astype(jnp.float32),
        params["wk"].T.astype(bf16), params["bk"].astype(jnp.float32),
        params["wv"].T.astype(bf16), params["bv"].astype(jnp.float32),
        params["wo"].T.astype(bf16), params["bo"].astype(jnp.float32),
        params["w1"].T.astype(bf16), params["b1"].astype(jnp.float32),
        params["w2"].astype(jnp.float32),        # (1, A): applied on the VPU
    ]

    try:
        return _encoder_call(V, weight_args, num_heads, tb, vmem_limit_bytes,
                             single_buffer_weights=True)
    except Exception:
        # Portability guard: fall back to default double-buffered weights if
        # this jax/libtpu build rejects pipeline_mode=pl.Buffered(1).
        return _encoder_call(V, weight_args, num_heads, tb, vmem_limit_bytes,
                             single_buffer_weights=False)


def reference_forward(token_ids, params, num_heads):
    """Pure-JAX f32 reference matching PyTorch semantics."""
    V = jnp.take(params["emb"], token_ids, axis=0)
    B, S, H = V.shape
    hd = H // num_heads
    q = V @ params["wq"].T + params["bq"]
    k = V @ params["wk"].T + params["bk"]
    v = V @ params["wv"].T + params["bv"]
    qh = q.reshape(B, S, num_heads, hd).transpose(0, 2, 1, 3)
    kh = k.reshape(B, S, num_heads, hd).transpose(0, 2, 1, 3)
    vh = v.reshape(B, S, num_heads, hd).transpose(0, 2, 1, 3)
    s = jnp.einsum("bhqd,bhkd->bhqk", qh, kh) / jnp.sqrt(jnp.float32(hd))
    p = jax.nn.softmax(s, axis=-1)
    ctx = jnp.einsum("bhqk,bhkd->bhqd", p, vh).transpose(0, 2, 1, 3).reshape(B, S, H)
    attn_out = ctx @ params["wo"].T + params["bo"]
    t = jnp.tanh(attn_out @ params["w1"].T + params["b1"])
    sc = t @ params["w2"].T                          # (B, S, 1)
    alpha = jax.nn.softmax(sc, axis=1)
    return jnp.sum(attn_out * alpha, axis=1)         # (B, H)


if __name__ == "__main__":
    # Small but lane-friendly smoke-test shapes: H and A multiples of 128
    # (lane-dense weights/activations and an (8,128) output block), S a
    # multiple of 16 (free bf16 (TB,S,H)->(TB*S,H) merges), TB*S = 128 MXU
    # rows per grid step, grid = B//TB = 2 (keeps both v7x TCs busy).
    B, S, H, NH, A, VOCAB = 16, 16, 128, 4, 128, 512
    TB = 8

    key = jax.random.PRNGKey(0)
    keys = jax.random.split(key, 13)

    def init(k, shape, scale=0.1):
        return scale * jax.random.normal(k, shape, dtype=jnp.float32)

    params = {
        "emb": init(keys[0], (VOCAB, H), 1.0),
        "wq": init(keys[1], (H, H)), "bq": init(keys[2], (1, H)),
        "wk": init(keys[3], (H, H)), "bk": init(keys[4], (1, H)),
        "wv": init(keys[5], (H, H)), "bv": init(keys[6], (1, H)),
        "wo": init(keys[7], (H, H)), "bo": init(keys[8], (1, H)),
        "w1": init(keys[9], (A, H)), "b1": init(keys[10], (1, A)),
        "w2": init(keys[11], (1, A)),   # Linear(A, 1, bias=False)
    }

    token_ids = jax.random.randint(keys[12], (B, S), 0, VOCAB, dtype=jnp.int32)

    out = plm_based_news_encoder(token_ids, params, NH, batch_tile=TB)
    out = jax.block_until_ready(out)

    ref = reference_forward(token_ids, params, NH)
    assert out.shape == (B, H), out.shape
    # bf16 V / bf16 MXU inputs (f32 accumulation) + approx inner-softmax
    # reciprocal -> slightly looser tolerance than pure f32.
    assert jnp.allclose(out, ref, atol=4e-2, rtol=4e-2), \
        float(jnp.max(jnp.abs(out - ref)))

    print("KERNEL_OK")
</pallas_src>

<mosaic_0001>
module attributes {stable_mosaic.version = 11 : i64} {
  func.func @_news_encoder_kernel(%arg0: i32, %arg1: memref<8x16x128xbf16, #tpu.memory_space<vmem>>, %arg2: memref<128x128xbf16, #tpu.memory_space<vmem>>, %arg3: memref<1x128xf32, #tpu.memory_space<vmem>>, %arg4: memref<128x128xbf16, #tpu.memory_space<vmem>>, %arg5: memref<1x128xf32, #tpu.memory_space<vmem>>, %arg6: memref<128x128xbf16, #tpu.memory_space<vmem>>, %arg7: memref<1x128xf32, #tpu.memory_space<vmem>>, %arg8: memref<128x128xbf16, #tpu.memory_space<vmem>>, %arg9: memref<1x128xf32, #tpu.memory_space<vmem>>, %arg10: memref<128x128xbf16, #tpu.memory_space<vmem>>, %arg11: memref<1x128xf32, #tpu.memory_space<vmem>>, %arg12: memref<1x128xf32, #tpu.memory_space<vmem>>, %arg13: memref<8x128xf32, #tpu.memory_space<vmem>>) attributes {dimension_semantics = [#tpu.dimension_semantics<parallel>], iteration_bounds = array<i64: 2>, scalar_prefetch = 0 : i64, scratch_operands = 0 : i64, tpu.core_type = #tpu.core_type<tc>, window_params = [{transform_indices = @transform_0, window_bounds = array<i64: 8, 16, 128>}, {pipeline_mode = #tpu.pipeline_mode<synchronous>, transform_indices = @transform_1, window_bounds = array<i64: 128, 128>}, {pipeline_mode = #tpu.pipeline_mode<synchronous>, transform_indices = @transform_2, window_bounds = array<i64: 1, 128>}, {pipeline_mode = #tpu.pipeline_mode<synchronous>, transform_indices = @transform_3, window_bounds = array<i64: 128, 128>}, {pipeline_mode = #tpu.pipeline_mode<synchronous>, transform_indices = @transform_4, window_bounds = array<i64: 1, 128>}, {pipeline_mode = #tpu.pipeline_mode<synchronous>, transform_indices = @transform_5, window_bounds = array<i64: 128, 128>}, {pipeline_mode = #tpu.pipeline_mode<synchronous>, transform_indices = @transform_6, window_bounds = array<i64: 1, 128>}, {pipeline_mode = #tpu.pipeline_mode<synchronous>, transform_indices = @transform_7, window_bounds = array<i64: 128, 128>}, {pipeline_mode = #tpu.pipeline_mode<synchronous>, transform_indices = @transform_8, window_bounds = array<i64: 1, 128>}, {pipeline_mode = #tpu.pipeline_mode<synchronous>, transform_indices = @transform_9, window_bounds = array<i64: 128, 128>}, {pipeline_mode = #tpu.pipeline_mode<synchronous>, transform_indices = @transform_10, window_bounds = array<i64: 1, 128>}, {pipeline_mode = #tpu.pipeline_mode<synchronous>, transform_indices = @transform_11, window_bounds = array<i64: 1, 128>}, {transform_indices = @transform_12, window_bounds = array<i64: 8, 128>}]} {
    %c0 = arith.constant 0 : index
    %c0_0 = arith.constant 0 : index
    %c0_1 = arith.constant 0 : index
    %0 = vector.load %arg1[%c0, %c0_0, %c0_1] : memref<8x16x128xbf16, #tpu.memory_space<vmem>>, vector<8x16x128xbf16>
    %1 = vector.shape_cast %0 : vector<8x16x128xbf16> to vector<128x128xbf16>
    %c0_2 = arith.constant 0 : index
    %c0_3 = arith.constant 0 : index
    %2 = vector.load %arg2[%c0_2, %c0_3] : memref<128x128xbf16, #tpu.memory_space<vmem>>, vector<128x128xbf16>
    %cst = arith.constant dense<0.000000e+00> : vector<128x128xf32>
    %3 = tpu.matmul %1, %2, %cst {dimension_numbers = #tpu.dot_dimension_numbers<[1], [0], [0], [1], [0, 0, 1, 1], [], []>} : vector<128x128xbf16>, vector<128x128xbf16>, vector<128x128xf32> -> vector<128x128xf32>
    %c0_4 = arith.constant 0 : index
    %c0_5 = arith.constant 0 : index
    %4 = vector.load %arg3[%c0_4, %c0_5] : memref<1x128xf32, #tpu.memory_space<vmem>>, vector<1x128xf32>
    %5 = vector.broadcast %4 : vector<1x128xf32> to vector<128x128xf32>
    %6 = arith.addf %3, %5 : vector<128x128xf32>
    %c0_6 = arith.constant 0 : index
    %c0_7 = arith.constant 0 : index
    %7 = vector.load %arg4[%c0_6, %c0_7] : memref<128x128xbf16, #tpu.memory_space<vmem>>, vector<128x128xbf16>
    %cst_8 = arith.constant dense<0.000000e+00> : vector<128x128xf32>
    %8 = tpu.matmul %1, %7, %cst_8 {dimension_numbers = #tpu.dot_dimension_numbers<[1], [0], [0], [1], [0, 0, 1, 1], [], []>} : vector<128x128xbf16>, vector<128x128xbf16>, vector<128x128xf32> -> vector<128x128xf32>
    %c0_9 = arith.constant 0 : index
    %c0_10 = arith.constant 0 : index
    %9 = vector.load %arg5[%c0_9, %c0_10] : memref<1x128xf32, #tpu.memory_space<vmem>>, vector<1x128xf32>
    %10 = vector.broadcast %9 : vector<1x128xf32> to vector<128x128xf32>
    %11 = arith.addf %8, %10 : vector<128x128xf32>
    %c0_11 = arith.constant 0 : index
    %c0_12 = arith.constant 0 : index
    %12 = vector.load %arg6[%c0_11, %c0_12] : memref<128x128xbf16, #tpu.memory_space<vmem>>, vector<128x128xbf16>
    %cst_13 = arith.constant dense<0.000000e+00> : vector<128x128xf32>
    %13 = tpu.matmul %1, %12, %cst_13 {dimension_numbers = #tpu.dot_dimension_numbers<[1], [0], [0], [1], [0, 0, 1, 1], [], []>} : vector<128x128xbf16>, vector<128x128xbf16>, vector<128x128xf32> -> vector<128x128xf32>
    %c0_14 = arith.constant 0 : index
    %c0_15 = arith.constant 0 : index
    %14 = vector.load %arg7[%c0_14, %c0_15] : memref<1x128xf32, #tpu.memory_space<vmem>>, vector<1x128xf32>
    %15 = vector.broadcast %14 : vector<1x128xf32> to vector<128x128xf32>
    %16 = arith.addf %13, %15 : vector<128x128xf32>
    %17 = arith.truncf %6 : vector<128x128xf32> to vector<128x128xbf16>
    %18 = vector.shape_cast %17 : vector<128x128xbf16> to vector<8x16x128xbf16>
    %19 = arith.truncf %11 : vector<128x128xf32> to vector<128x128xbf16>
    %20 = vector.shape_cast %19 : vector<128x128xbf16> to vector<8x16x128xbf16>
    %21 = arith.truncf %16 : vector<128x128xf32> to vector<128x128xbf16>
    %22 = vector.shape_cast %21 : vector<128x128xbf16> to vector<8x16x128xbf16>
    %c0_16 = arith.constant 0 : index
    %c0_17 = arith.constant 0 : index
    %23 = vector.load %arg8[%c0_16, %c0_17] : memref<128x128xbf16, #tpu.memory_space<vmem>>, vector<128x128xbf16>
    %cst_18 = arith.constant 0.000000e+00 : f32
    %24 = vector.broadcast %cst_18 : f32 to vector<128x128xf32>
    %25 = vector.extract_strided_slice %18 {offsets = [0, 0, 0], sizes = [8, 16, 32], strides = [1, 1, 1]} : vector<8x16x128xbf16> to vector<8x16x32xbf16>
    %26 = vector.extract_strided_slice %20 {offsets = [0, 0, 0], sizes = [8, 16, 32], strides = [1, 1, 1]} : vector<8x16x128xbf16> to vector<8x16x32xbf16>
    %27 = vector.extract_strided_slice %22 {offsets = [0, 0, 0], sizes = [8, 16, 32], strides = [1, 1, 1]} : vector<8x16x128xbf16> to vector<8x16x32xbf16>
    "tpu.trace_start"() <{level = 10 : i32, message = "bqd,bkd->bqk"}> : () -> ()
    %cst_19 = arith.constant dense<0.000000e+00> : vector<8x16x16xf32>
    %28 = tpu.matmul %25, %26, %cst_19 {dimension_numbers = #tpu.dot_dimension_numbers<[2], [2], [1], [1], [0, 0, 0, 1, 1, 1], [0], [0]>} : vector<8x16x32xbf16>, vector<8x16x32xbf16>, vector<8x16x16xf32> -> vector<8x16x16xf32>
    "tpu.trace_stop"() : () -> ()
    %cst_20 = arith.constant dense<0xFF800000> : vector<8x16xf32>
    %29 = vector.multi_reduction <maximumf>, %28, %cst_20 [2] : vector<8x16x16xf32> to vector<8x16xf32>
    %30 = vector.shape_cast %29 : vector<8x16xf32> to vector<8x16x1xf32>
    %31 = vector.broadcast %30 : vector<8x16x1xf32> to vector<8x16x16xf32>
    %32 = arith.subf %28, %31 : vector<8x16x16xf32>
    %33 = math.exp %32 : vector<8x16x16xf32>
    %cst_21 = arith.constant dense<0.000000e+00> : vector<8x16xf32>
    %34 = vector.multi_reduction <add>, %33, %cst_21 [2] : vector<8x16x16xf32> to vector<8x16xf32>
    %35 = vector.shape_cast %34 : vector<8x16xf32> to vector<8x16x1xf32>
    %36 = tpu.reciprocal %35 {approx = true} : vector<8x16x1xf32> -> vector<8x16x1xf32>
    %37 = vector.broadcast %36 : vector<8x16x1xf32> to vector<8x16x16xf32>
    %38 = arith.mulf %33, %37 : vector<8x16x16xf32>
    %39 = arith.truncf %38 : vector<8x16x16xf32> to vector<8x16x16xbf16>
    "tpu.trace_start"() <{level = 10 : i32, message = "bqk,bkd->bqd"}> : () -> ()
    %cst_22 = arith.constant dense<0.000000e+00> : vector<8x16x32xf32>
    %40 = tpu.matmul %39, %27, %cst_22 {dimension_numbers = #tpu.dot_dimension_numbers<[2], [1], [1], [2], [0, 0, 0, 1, 1, 2], [0], [0]>} : vector<8x16x16xbf16>, vector<8x16x32xbf16>, vector<8x16x32xf32> -> vector<8x16x32xf32>
    "tpu.trace_stop"() : () -> ()
    %41 = vector.shape_cast %40 : vector<8x16x32xf32> to vector<128x32xf32>
    %42 = arith.truncf %41 : vector<128x32xf32> to vector<128x32xbf16>
    %43 = vector.extract_strided_slice %23 {offsets = [0, 0], sizes = [32, 128], strides = [1, 1]} : vector<128x128xbf16> to vector<32x128xbf16>
    %cst_23 = arith.constant dense<0.000000e+00> : vector<128x128xf32>
    %44 = tpu.matmul %42, %43, %cst_23 {dimension_numbers = #tpu.dot_dimension_numbers<[1], [0], [0], [1], [0, 0, 1, 1], [], []>} : vector<128x32xbf16>, vector<32x128xbf16>, vector<128x128xf32> -> vector<128x128xf32>
    %45 = arith.addf %24, %44 : vector<128x128xf32>
    %46 = vector.extract_strided_slice %18 {offsets = [0, 0, 32], sizes = [8, 16, 32], strides = [1, 1, 1]} : vector<8x16x128xbf16> to vector<8x16x32xbf16>
    %47 = vector.extract_strided_slice %20 {offsets = [0, 0, 32], sizes = [8, 16, 32], strides = [1, 1, 1]} : vector<8x16x128xbf16> to vector<8x16x32xbf16>
    %48 = vector.extract_strided_slice %22 {offsets = [0, 0, 32], sizes = [8, 16, 32], strides = [1, 1, 1]} : vector<8x16x128xbf16> to vector<8x16x32xbf16>
    "tpu.trace_start"() <{level = 10 : i32, message = "bqd,bkd->bqk"}> : () -> ()
    %cst_24 = arith.constant dense<0.000000e+00> : vector<8x16x16xf32>
    %49 = tpu.matmul %46, %47, %cst_24 {dimension_numbers = #tpu.dot_dimension_numbers<[2], [2], [1], [1], [0, 0, 0, 1, 1, 1], [0], [0]>} : vector<8x16x32xbf16>, vector<8x16x32xbf16>, vector<8x16x16xf32> -> vector<8x16x16xf32>
    "tpu.trace_stop"() : () -> ()
    %cst_25 = arith.constant dense<0xFF800000> : vector<8x16xf32>
    %50 = vector.multi_reduction <maximumf>, %49, %cst_25 [2] : vector<8x16x16xf32> to vector<8x16xf32>
    %51 = vector.shape_cast %50 : vector<8x16xf32> to vector<8x16x1xf32>
    %52 = vector.broadcast %51 : vector<8x16x1xf32> to vector<8x16x16xf32>
    %53 = arith.subf %49, %52 : vector<8x16x16xf32>
    %54 = math.exp %53 : vector<8x16x16xf32>
    %cst_26 = arith.constant dense<0.000000e+00> : vector<8x16xf32>
    %55 = vector.multi_reduction <add>, %54, %cst_26 [2] : vector<8x16x16xf32> to vector<8x16xf32>
    %56 = vector.shape_cast %55 : vector<8x16xf32> to vector<8x16x1xf32>
    %57 = tpu.reciprocal %56 {approx = true} : vector<8x16x1xf32> -> vector<8x16x1xf32>
    %58 = vector.broadcast %57 : vector<8x16x1xf32> to vector<8x16x16xf32>
    %59 = arith.mulf %54, %58 : vector<8x16x16xf32>
    %60 = arith.truncf %59 : vector<8x16x16xf32> to vector<8x16x16xbf16>
    "tpu.trace_start"() <{level = 10 : i32, message = "bqk,bkd->bqd"}> : () -> ()
    %cst_27 = arith.constant dense<0.000000e+00> : vector<8x16x32xf32>
    %61 = tpu.matmul %60, %48, %cst_27 {dimension_numbers = #tpu.dot_dimension_numbers<[2], [1], [1], [2], [0, 0, 0, 1, 1, 2], [0], [0]>} : vector<8x16x16xbf16>, vector<8x16x32xbf16>, vector<8x16x32xf32> -> vector<8x16x32xf32>
    "tpu.trace_stop"() : () -> ()
    %62 = vector.shape_cast %61 : vector<8x16x32xf32> to vector<128x32xf32>
    %63 = arith.truncf %62 : vector<128x32xf32> to vector<128x32xbf16>
    %64 = vector.extract_strided_slice %23 {offsets = [32, 0], sizes = [32, 128], strides = [1, 1]} : vector<128x128xbf16> to vector<32x128xbf16>
    %cst_28 = arith.constant dense<0.000000e+00> : vector<128x128xf32>
    %65 = tpu.matmul %63, %64, %cst_28 {dimension_numbers = #tpu.dot_dimension_numbers<[1], [0], [0], [1], [0, 0, 1, 1], [], []>} : vector<128x32xbf16>, vector<32x128xbf16>, vector<128x128xf32> -> vector<128x128xf32>
    %66 = arith.addf %45, %65 : vector<128x128xf32>
    %67 = vector.extract_strided_slice %18 {offsets = [0, 0, 64], sizes = [8, 16, 32], strides = [1, 1, 1]} : vector<8x16x128xbf16> to vector<8x16x32xbf16>
    %68 = vector.extract_strided_slice %20 {offsets = [0, 0, 64], sizes = [8, 16, 32], strides = [1, 1, 1]} : vector<8x16x128xbf16> to vector<8x16x32xbf16>
    %69 = vector.extract_strided_slice %22 {offsets = [0, 0, 64], sizes = [8, 16, 32], strides = [1, 1, 1]} : vector<8x16x128xbf16> to vector<8x16x32xbf16>
    "tpu.trace_start"() <{level = 10 : i32, message = "bqd,bkd->bqk"}> : () -> ()
    %cst_29 = arith.constant dense<0.000000e+00> : vector<8x16x16xf32>
    %70 = tpu.matmul %67, %68, %cst_29 {dimension_numbers = #tpu.dot_dimension_numbers<[2], [2], [1], [1], [0, 0, 0, 1, 1, 1], [0], [0]>} : vector<8x16x32xbf16>, vector<8x16x32xbf16>, vector<8x16x16xf32> -> vector<8x16x16xf32>
    "tpu.trace_stop"() : () -> ()
    %cst_30 = arith.constant dense<0xFF800000> : vector<8x16xf32>
    %71 = vector.multi_reduction <maximumf>, %70, %cst_30 [2] : vector<8x16x16xf32> to vector<8x16xf32>
    %72 = vector.shape_cast %71 : vector<8x16xf32> to vector<8x16x1xf32>
    %73 = vector.broadcast %72 : vector<8x16x1xf32> to vector<8x16x16xf32>
    %74 = arith.subf %70, %73 : vector<8x16x16xf32>
    %75 = math.exp %74 : vector<8x16x16xf32>
    %cst_31 = arith.constant dense<0.000000e+00> : vector<8x16xf32>
    %76 = vector.multi_reduction <add>, %75, %cst_31 [2] : vector<8x16x16xf32> to vector<8x16xf32>
    %77 = vector.shape_cast %76 : vector<8x16xf32> to vector<8x16x1xf32>
    %78 = tpu.reciprocal %77 {approx = true} : vector<8x16x1xf32> -> vector<8x16x1xf32>
    %79 = vector.broadcast %78 : vector<8x16x1xf32> to vector<8x16x16xf32>
    %80 = arith.mulf %75, %79 : vector<8x16x16xf32>
    %81 = arith.truncf %80 : vector<8x16x16xf32> to vector<8x16x16xbf16>
    "tpu.trace_start"() <{level = 10 : i32, message = "bqk,bkd->bqd"}> : () -> ()
    %cst_32 = arith.constant dense<0.000000e+00> : vector<8x16x32xf32>
    %82 = tpu.matmul %81, %69, %cst_32 {dimension_numbers = #tpu.dot_dimension_numbers<[2], [1], [1], [2], [0, 0, 0, 1, 1, 2], [0], [0]>} : vector<8x16x16xbf16>, vector<8x16x32xbf16>, vector<8x16x32xf32> -> vector<8x16x32xf32>
    "tpu.trace_stop"() : () -> ()
    %83 = vector.shape_cast %82 : vector<8x16x32xf32> to vector<128x32xf32>
    %84 = arith.truncf %83 : vector<128x32xf32> to vector<128x32xbf16>
    %85 = vector.extract_strided_slice %23 {offsets = [64, 0], sizes = [32, 128], strides = [1, 1]} : vector<128x128xbf16> to vector<32x128xbf16>
    %cst_33 = arith.constant dense<0.000000e+00> : vector<128x128xf32>
    %86 = tpu.matmul %84, %85, %cst_33 {dimension_numbers = #tpu.dot_dimension_numbers<[1], [0], [0], [1], [0, 0, 1, 1], [], []>} : vector<128x32xbf16>, vector<32x128xbf16>, vector<128x128xf32> -> vector<128x128xf32>
    %87 = arith.addf %66, %86 : vector<128x128xf32>
    %88 = vector.extract_strided_slice %18 {offsets = [0, 0, 96], sizes = [8, 16, 32], strides = [1, 1, 1]} : vector<8x16x128xbf16> to vector<8x16x32xbf16>
    %89 = vector.extract_strided_slice %20 {offsets = [0, 0, 96], sizes = [8, 16, 32], strides = [1, 1, 1]} : vector<8x16x128xbf16> to vector<8x16x32xbf16>
    %90 = vector.extract_strided_slice %22 {offsets = [0, 0, 96], sizes = [8, 16, 32], strides = [1, 1, 1]} : vector<8x16x128xbf16> to vector<8x16x32xbf16>
    "tpu.trace_start"() <{level = 10 : i32, message = "bqd,bkd->bqk"}> : () -> ()
    %cst_34 = arith.constant dense<0.000000e+00> : vector<8x16x16xf32>
    %91 = tpu.matmul %88, %89, %cst_34 {dimension_numbers = #tpu.dot_dimension_numbers<[2], [2], [1], [1], [0, 0, 0, 1, 1, 1], [0], [0]>} : vector<8x16x32xbf16>, vector<8x16x32xbf16>, vector<8x16x16xf32> -> vector<8x16x16xf32>
    "tpu.trace_stop"() : () -> ()
    %cst_35 = arith.constant dense<0xFF800000> : vector<8x16xf32>
    %92 = vector.multi_reduction <maximumf>, %91, %cst_35 [2] : vector<8x16x16xf32> to vector<8x16xf32>
    %93 = vector.shape_cast %92 : vector<8x16xf32> to vector<8x16x1xf32>
    %94 = vector.broadcast %93 : vector<8x16x1xf32> to vector<8x16x16xf32>
    %95 = arith.subf %91, %94 : vector<8x16x16xf32>
    %96 = math.exp %95 : vector<8x16x16xf32>
    %cst_36 = arith.constant dense<0.000000e+00> : vector<8x16xf32>
    %97 = vector.multi_reduction <add>, %96, %cst_36 [2] : vector<8x16x16xf32> to vector<8x16xf32>
    %98 = vector.shape_cast %97 : vector<8x16xf32> to vector<8x16x1xf32>
    %99 = tpu.reciprocal %98 {approx = true} : vector<8x16x1xf32> -> vector<8x16x1xf32>
    %100 = vector.broadcast %99 : vector<8x16x1xf32> to vector<8x16x16xf32>
    %101 = arith.mulf %96, %100 : vector<8x16x16xf32>
    %102 = arith.truncf %101 : vector<8x16x16xf32> to vector<8x16x16xbf16>
    "tpu.trace_start"() <{level = 10 : i32, message = "bqk,bkd->bqd"}> : () -> ()
    %cst_37 = arith.constant dense<0.000000e+00> : vector<8x16x32xf32>
    %103 = tpu.matmul %102, %90, %cst_37 {dimension_numbers = #tpu.dot_dimension_numbers<[2], [1], [1], [2], [0, 0, 0, 1, 1, 2], [0], [0]>} : vector<8x16x16xbf16>, vector<8x16x32xbf16>, vector<8x16x32xf32> -> vector<8x16x32xf32>
    "tpu.trace_stop"() : () -> ()
    %104 = vector.shape_cast %103 : vector<8x16x32xf32> to vector<128x32xf32>
    %105 = arith.truncf %104 : vector<128x32xf32> to vector<128x32xbf16>
    %106 = vector.extract_strided_slice %23 {offsets = [96, 0], sizes = [32, 128], strides = [1, 1]} : vector<128x128xbf16> to vector<32x128xbf16>
    %cst_38 = arith.constant dense<0.000000e+00> : vector<128x128xf32>
    %107 = tpu.matmul %105, %106, %cst_38 {dimension_numbers = #tpu.dot_dimension_numbers<[1], [0], [0], [1], [0, 0, 1, 1], [], []>} : vector<128x32xbf16>, vector<32x128xbf16>, vector<128x128xf32> -> vector<128x128xf32>
    %108 = arith.addf %87, %107 : vector<128x128xf32>
    %c0_39 = arith.constant 0 : index
    %c0_40 = arith.constant 0 : index
    %109 = vector.load %arg9[%c0_39, %c0_40] : memref<1x128xf32, #tpu.memory_space<vmem>>, vector<1x128xf32>
    %110 = vector.broadcast %109 : vector<1x128xf32> to vector<128x128xf32>
    %111 = arith.addf %108, %110 : vector<128x128xf32>
    %112 = arith.truncf %111 : vector<128x128xf32> to vector<128x128xbf16>
    %c0_41 = arith.constant 0 : index
    %c0_42 = arith.constant 0 : index
    %113 = vector.load %arg10[%c0_41, %c0_42] : memref<128x128xbf16, #tpu.memory_space<vmem>>, vector<128x128xbf16>
    %cst_43 = arith.constant dense<0.000000e+00> : vector<128x128xf32>
    %114 = tpu.matmul %112, %113, %cst_43 {dimension_numbers = #tpu.dot_dimension_numbers<[1], [0], [0], [1], [0, 0, 1, 1], [], []>} : vector<128x128xbf16>, vector<128x128xbf16>, vector<128x128xf32> -> vector<128x128xf32>
    %c0_44 = arith.constant 0 : index
    %c0_45 = arith.constant 0 : index
    %115 = vector.load %arg11[%c0_44, %c0_45] : memref<1x128xf32, #tpu.memory_space<vmem>>, vector<1x128xf32>
    %116 = vector.broadcast %115 : vector<1x128xf32> to vector<128x128xf32>
    %117 = arith.addf %114, %116 : vector<128x128xf32>
    %118 = math.tanh %117 : vector<128x128xf32>
    %119 = vector.shape_cast %118 : vector<128x128xf32> to vector<8x16x128xf32>
    %c0_46 = arith.constant 0 : index
    %c0_47 = arith.constant 0 : index
    %120 = vector.load %arg12[%c0_46, %c0_47] : memref<1x128xf32, #tpu.memory_space<vmem>>, vector<1x128xf32>
    %121 = vector.shape_cast %120 : vector<1x128xf32> to vector<1x1x128xf32>
    %122 = vector.broadcast %121 : vector<1x1x128xf32> to vector<8x16x128xf32>
    %123 = arith.mulf %119, %122 : vector<8x16x128xf32>
    %cst_48 = arith.constant dense<0.000000e+00> : vector<8x16xf32>
    %124 = vector.multi_reduction <add>, %123, %cst_48 [2] : vector<8x16x128xf32> to vector<8x16xf32>
    %cst_49 = arith.constant dense<0xFF800000> : vector<8xf32>
    %125 = vector.multi_reduction <maximumf>, %124, %cst_49 [1] : vector<8x16xf32> to vector<8xf32>
    %126 = vector.shape_cast %125 : vector<8xf32> to vector<8x1xf32>
    %127 = vector.broadcast %126 : vector<8x1xf32> to vector<8x16xf32>
    %128 = arith.subf %124, %127 : vector<8x16xf32>
    %129 = math.exp %128 : vector<8x16xf32>
    %cst_50 = arith.constant dense<0.000000e+00> : vector<8xf32>
    %130 = vector.multi_reduction <add>, %129, %cst_50 [1] : vector<8x16xf32> to vector<8xf32>
    %131 = vector.shape_cast %130 : vector<8xf32> to vector<8x1xf32>
    %132 = vector.broadcast %131 : vector<8x1xf32> to vector<8x16xf32>
    %133 = arith.divf %129, %132 : vector<8x16xf32>
    %134 = vector.shape_cast %111 : vector<128x128xf32> to vector<8x16x128xf32>
    %135 = vector.shape_cast %133 : vector<8x16xf32> to vector<8x1x16xf32>
    "tpu.trace_start"() <{level = 10 : i32, message = "bqs,bsh->bqh"}> : () -> ()
    %cst_51 = arith.constant dense<0.000000e+00> : vector<8x1x128xf32>
    %136 = tpu.matmul %135, %134, %cst_51 {dimension_numbers = #tpu.dot_dimension_numbers<[2], [1], [1], [2], [0, 0, 0, 1, 1, 2], [0], [0]>} : vector<8x1x16xf32>, vector<8x16x128xf32>, vector<8x1x128xf32> -> vector<8x1x128xf32>
    "tpu.trace_stop"() : () -> ()
    %137 = vector.shape_cast %136 : vector<8x1x128xf32> to vector<8x128xf32>
    %c0_52 = arith.constant 0 : index
    %c0_53 = arith.constant 0 : index
    %138 = vector.load %arg13[%c0_52, %c0_53] : memref<8x128xf32, #tpu.memory_space<vmem>>, vector<8x128xf32>
    tpu.vector_store %arg13[%c0_52, %c0_53], %137 {strides = array<i32>} : memref<8x128xf32, #tpu.memory_space<vmem>>, vector<8x128xf32>,
    return
  }
  func.func @transform_0(%arg0: i32) -> (i32, i32, i32) {
    %c0_i32 = arith.constant 0 : i32
    %c0_i32_0 = arith.constant 0 : i32
    %c0_i32_1 = arith.constant 0 : i32
    return %arg0, %c0_i32, %c0_i32_0 : i32, i32, i32
  }
  func.func @transform_1(%arg0: i32) -> (i32, i32) {
    %c0_i32 = arith.constant 0 : i32
    %c0_i32_0 = arith.constant 0 : i32
    %c0_i32_1 = arith.constant 0 : i32
    return %c0_i32, %c0_i32_0 : i32, i32
  }
  func.func @transform_2(%arg0: i32) -> (i32, i32) {
    %c0_i32 = arith.constant 0 : i32
    %c0_i32_0 = arith.constant 0 : i32
    %c0_i32_1 = arith.constant 0 : i32
    return %c0_i32, %c0_i32_0 : i32, i32
  }
  func.func @transform_3(%arg0: i32) -> (i32, i32) {
    %c0_i32 = arith.constant 0 : i32
    %c0_i32_0 = arith.constant 0 : i32
    %c0_i32_1 = arith.constant 0 : i32
    return %c0_i32, %c0_i32_0 : i32, i32
  }
  func.func @transform_4(%arg0: i32) -> (i32, i32) {
    %c0_i32 = arith.constant 0 : i32
    %c0_i32_0 = arith.constant 0 : i32
    %c0_i32_1 = arith.constant 0 : i32
    return %c0_i32, %c0_i32_0 : i32, i32
  }
  func.func @transform_5(%arg0: i32) -> (i32, i32) {
    %c0_i32 = arith.constant 0 : i32
    %c0_i32_0 = arith.constant 0 : i32
    %c0_i32_1 = arith.constant 0 : i32
    return %c0_i32, %c0_i32_0 : i32, i32
  }
  func.func @transform_6(%arg0: i32) -> (i32, i32) {
    %c0_i32 = arith.constant 0 : i32
    %c0_i32_0 = arith.constant 0 : i32
    %c0_i32_1 = arith.constant 0 : i32
    return %c0_i32, %c0_i32_0 : i32, i32
  }
  func.func @transform_7(%arg0: i32) -> (i32, i32) {
    %c0_i32 = arith.constant 0 : i32
    %c0_i32_0 = arith.constant 0 : i32
    %c0_i32_1 = arith.constant 0 : i32
    return %c0_i32, %c0_i32_0 : i32, i32
  }
  func.func @transform_8(%arg0: i32) -> (i32, i32) {
    %c0_i32 = arith.constant 0 : i32
    %c0_i32_0 = arith.constant 0 : i32
    %c0_i32_1 = arith.constant 0 : i32
    return %c0_i32, %c0_i32_0 : i32, i32
  }
  func.func @transform_9(%arg0: i32) -> (i32, i32) {
    %c0_i32 = arith.constant 0 : i32
    %c0_i32_0 = arith.constant 0 : i32
    %c0_i32_1 = arith.constant 0 : i32
    return %c0_i32, %c0_i32_0 : i32, i32
  }
  func.func @transform_10(%arg0: i32) -> (i32, i32) {
    %c0_i32 = arith.constant 0 : i32
    %c0_i32_0 = arith.constant 0 : i32
    %c0_i32_1 = arith.constant 0 : i32
    return %c0_i32, %c0_i32_0 : i32, i32
  }
  func.func @transform_11(%arg0: i32) -> (i32, i32) {
    %c0_i32 = arith.constant 0 : i32
    %c0_i32_0 = arith.constant 0 : i32
    %c0_i32_1 = arith.constant 0 : i32
    return %c0_i32, %c0_i32_0 : i32, i32
  }
  func.func @transform_12(%arg0: i32) -> (i32, i32) {
    %c0_i32 = arith.constant 0 : i32
    %c0_i32_0 = arith.constant 0 : i32
    return %arg0, %c0_i32 : i32, i32
  }
}

module attributes {stable_mosaic.version = 11 : i64} {
  func.func @_news_encoder_kernel(%arg0: i32, %arg1: memref<8x16x128xbf16, #tpu.memory_space<vmem>>, %arg2: memref<128x128xbf16, #tpu.memory_space<vmem>>, %arg3: memref<1x128xf32, #tpu.memory_space<vmem>>, %arg4: memref<128x128xbf16, #tpu.memory_space<vmem>>, %arg5: memref<1x128xf32, #tpu.memory_space<vmem>>, %arg6: memref<128x128xbf16, #tpu.memory_space<vmem>>, %arg7: memref<1x128xf32, #tpu.memory_space<vmem>>, %arg8: memref<128x128xbf16, #tpu.memory_space<vmem>>, %arg9: memref<1x128xf32, #tpu.memory_space<vmem>>, %arg10: memref<128x128xbf16, #tpu.memory_space<vmem>>, %arg11: memref<1x128xf32, #tpu.memory_space<vmem>>, %arg12: memref<1x128xf32, #tpu.memory_space<vmem>>, %arg13: memref<8x128xf32, #tpu.memory_space<vmem>>) attributes {dimension_semantics = [#tpu.dimension_semantics<parallel>], iteration_bounds = array<i64: 2>, scalar_prefetch = 0 : i64, scratch_operands = 0 : i64, tpu.core_type = #tpu.core_type<tc>, window_params = [{transform_indices = @transform_0, window_bounds = array<i64: 8, 16, 128>}, {pipeline_mode = #tpu.pipeline_mode<synchronous>, transform_indices = @transform_1, window_bounds = array<i64: 128, 128>}, {pipeline_mode = #tpu.pipeline_mode<synchronous>, transform_indices = @transform_2, window_bounds = array<i64: 1, 128>}, {pipeline_mode = #tpu.pipeline_mode<synchronous>, transform_indices = @transform_3, window_bounds = array<i64: 128, 128>}, {pipeline_mode = #tpu.pipeline_mode<synchronous>, transform_indices = @transform_4, window_bounds = array<i64: 1, 128>}, {pipeline_mode = #tpu.pipeline_mode<synchronous>, transform_indices = @transform_5, window_bounds = array<i64: 128, 128>}, {pipeline_mode = #tpu.pipeline_mode<synchronous>, transform_indices = @transform_6, window_bounds = array<i64: 1, 128>}, {pipeline_mode = #tpu.pipeline_mode<synchronous>, transform_indices = @transform_7, window_bounds = array<i64: 128, 128>}, {pipeline_mode = #tpu.pipeline_mode<synchronous>, transform_indices = @transform_8, window_bounds = array<i64: 1, 128>}, {pipeline_mode = #tpu.pipeline_mode<synchronous>, transform_indices = @transform_9, window_bounds = array<i64: 128, 128>}, {pipeline_mode = #tpu.pipeline_mode<synchronous>, transform_indices = @transform_10, window_bounds = array<i64: 1, 128>}, {pipeline_mode = #tpu.pipeline_mode<synchronous>, transform_indices = @transform_11, window_bounds = array<i64: 1, 128>}, {transform_indices = @transform_12, window_bounds = array<i64: 8, 128>}]} {
    %c0 = arith.constant 0 : index
    %c0_0 = arith.constant 0 : index
    %c0_1 = arith.constant 0 : index
    %0 = vector.load %arg1[%c0, %c0_0, %c0_1] : memref<8x16x128xbf16, #tpu.memory_space<vmem>>, vector<8x16x128xbf16>
    %1 = vector.shape_cast %0 : vector<8x16x128xbf16> to vector<128x128xbf16>
    %c0_2 = arith.constant 0 : index
    %c0_3 = arith.constant 0 : index
    %2 = vector.load %arg2[%c0_2, %c0_3] : memref<128x128xbf16, #tpu.memory_space<vmem>>, vector<128x128xbf16>
    %cst = arith.constant dense<0.000000e+00> : vector<128x128xf32>
    %3 = tpu.matmul %1, %2, %cst {dimension_numbers = #tpu.dot_dimension_numbers<[1], [0], [0], [1], [0, 0, 1, 1], [], []>} : vector<128x128xbf16>, vector<128x128xbf16>, vector<128x128xf32> -> vector<128x128xf32>
    %c0_4 = arith.constant 0 : index
    %c0_5 = arith.constant 0 : index
    %4 = vector.load %arg3[%c0_4, %c0_5] : memref<1x128xf32, #tpu.memory_space<vmem>>, vector<1x128xf32>
    %5 = vector.broadcast %4 : vector<1x128xf32> to vector<128x128xf32>
    %6 = arith.addf %3, %5 : vector<128x128xf32>
    %c0_6 = arith.constant 0 : index
    %c0_7 = arith.constant 0 : index
    %7 = vector.load %arg4[%c0_6, %c0_7] : memref<128x128xbf16, #tpu.memory_space<vmem>>, vector<128x128xbf16>
    %cst_8 = arith.constant dense<0.000000e+00> : vector<128x128xf32>
    %8 = tpu.matmul %1, %7, %cst_8 {dimension_numbers = #tpu.dot_dimension_numbers<[1], [0], [0], [1], [0, 0, 1, 1], [], []>} : vector<128x128xbf16>, vector<128x128xbf16>, vector<128x128xf32> -> vector<128x128xf32>
    %c0_9 = arith.constant 0 : index
    %c0_10 = arith.constant 0 : index
    %9 = vector.load %arg5[%c0_9, %c0_10] : memref<1x128xf32, #tpu.memory_space<vmem>>, vector<1x128xf32>
    %10 = vector.broadcast %9 : vector<1x128xf32> to vector<128x128xf32>
    %11 = arith.addf %8, %10 : vector<128x128xf32>
    %c0_11 = arith.constant 0 : index
    %c0_12 = arith.constant 0 : index
    %12 = vector.load %arg6[%c0_11, %c0_12] : memref<128x128xbf16, #tpu.memory_space<vmem>>, vector<128x128xbf16>
    %cst_13 = arith.constant dense<0.000000e+00> : vector<128x128xf32>
    %13 = tpu.matmul %1, %12, %cst_13 {dimension_numbers = #tpu.dot_dimension_numbers<[1], [0], [0], [1], [0, 0, 1, 1], [], []>} : vector<128x128xbf16>, vector<128x128xbf16>, vector<128x128xf32> -> vector<128x128xf32>
    %c0_14 = arith.constant 0 : index
    %c0_15 = arith.constant 0 : index
    %14 = vector.load %arg7[%c0_14, %c0_15] : memref<1x128xf32, #tpu.memory_space<vmem>>, vector<1x128xf32>
    %15 = vector.broadcast %14 : vector<1x128xf32> to vector<128x128xf32>
    %16 = arith.addf %13, %15 : vector<128x128xf32>
    %17 = arith.truncf %6 : vector<128x128xf32> to vector<128x128xbf16>
    %18 = vector.shape_cast %17 : vector<128x128xbf16> to vector<8x16x128xbf16>
    %19 = arith.truncf %11 : vector<128x128xf32> to vector<128x128xbf16>
    %20 = vector.shape_cast %19 : vector<128x128xbf16> to vector<8x16x128xbf16>
    %21 = arith.truncf %16 : vector<128x128xf32> to vector<128x128xbf16>
    %22 = vector.shape_cast %21 : vector<128x128xbf16> to vector<8x16x128xbf16>
    %c0_16 = arith.constant 0 : index
    %c0_17 = arith.constant 0 : index
    %23 = vector.load %arg8[%c0_16, %c0_17] : memref<128x128xbf16, #tpu.memory_space<vmem>>, vector<128x128xbf16>
    %cst_18 = arith.constant 0.000000e+00 : f32
    %24 = vector.broadcast %cst_18 : f32 to vector<128x128xf32>
    %25 = vector.extract_strided_slice %18 {offsets = [0, 0, 0], sizes = [8, 16, 32], strides = [1, 1, 1]} : vector<8x16x128xbf16> to vector<8x16x32xbf16>
    %26 = vector.extract_strided_slice %20 {offsets = [0, 0, 0], sizes = [8, 16, 32], strides = [1, 1, 1]} : vector<8x16x128xbf16> to vector<8x16x32xbf16>
    %27 = vector.extract_strided_slice %22 {offsets = [0, 0, 0], sizes = [8, 16, 32], strides = [1, 1, 1]} : vector<8x16x128xbf16> to vector<8x16x32xbf16>
    "tpu.trace_start"() <{level = 10 : i32, message = "bqd,bkd->bqk"}> : () -> ()
    %cst_19 = arith.constant dense<0.000000e+00> : vector<8x16x16xf32>
    %28 = tpu.matmul %25, %26, %cst_19 {dimension_numbers = #tpu.dot_dimension_numbers<[2], [2], [1], [1], [0, 0, 0, 1, 1, 1], [0], [0]>} : vector<8x16x32xbf16>, vector<8x16x32xbf16>, vector<8x16x16xf32> -> vector<8x16x16xf32>
    "tpu.trace_stop"() : () -> ()
    %cst_20 = arith.constant dense<0xFF800000> : vector<8x16xf32>
    %29 = vector.multi_reduction <maximumf>, %28, %cst_20 [2] : vector<8x16x16xf32> to vector<8x16xf32>
    %30 = vector.shape_cast %29 : vector<8x16xf32> to vector<8x16x1xf32>
    %31 = vector.broadcast %30 : vector<8x16x1xf32> to vector<8x16x16xf32>
    %32 = arith.subf %28, %31 : vector<8x16x16xf32>
    %33 = math.exp %32 : vector<8x16x16xf32>
    %cst_21 = arith.constant dense<0.000000e+00> : vector<8x16xf32>
    %34 = vector.multi_reduction <add>, %33, %cst_21 [2] : vector<8x16x16xf32> to vector<8x16xf32>
    %35 = vector.shape_cast %34 : vector<8x16xf32> to vector<8x16x1xf32>
    %36 = tpu.reciprocal %35 {approx = true} : vector<8x16x1xf32> -> vector<8x16x1xf32>
    %37 = vector.broadcast %36 : vector<8x16x1xf32> to vector<8x16x16xf32>
    %38 = arith.mulf %33, %37 : vector<8x16x16xf32>
    %39 = arith.truncf %38 : vector<8x16x16xf32> to vector<8x16x16xbf16>
    "tpu.trace_start"() <{level = 10 : i32, message = "bqk,bkd->bqd"}> : () -> ()
    %cst_22 = arith.constant dense<0.000000e+00> : vector<8x16x32xf32>
    %40 = tpu.matmul %39, %27, %cst_22 {dimension_numbers = #tpu.dot_dimension_numbers<[2], [1], [1], [2], [0, 0, 0, 1, 1, 2], [0], [0]>} : vector<8x16x16xbf16>, vector<8x16x32xbf16>, vector<8x16x32xf32> -> vector<8x16x32xf32>
    "tpu.trace_stop"() : () -> ()
    %41 = vector.shape_cast %40 : vector<8x16x32xf32> to vector<128x32xf32>
    %42 = arith.truncf %41 : vector<128x32xf32> to vector<128x32xbf16>
    %43 = vector.extract_strided_slice %23 {offsets = [0, 0], sizes = [32, 128], strides = [1, 1]} : vector<128x128xbf16> to vector<32x128xbf16>
    %cst_23 = arith.constant dense<0.000000e+00> : vector<128x128xf32>
    %44 = tpu.matmul %42, %43, %cst_23 {dimension_numbers = #tpu.dot_dimension_numbers<[1], [0], [0], [1], [0, 0, 1, 1], [], []>} : vector<128x32xbf16>, vector<32x128xbf16>, vector<128x128xf32> -> vector<128x128xf32>
    %45 = arith.addf %24, %44 : vector<128x128xf32>
    %46 = vector.extract_strided_slice %18 {offsets = [0, 0, 32], sizes = [8, 16, 32], strides = [1, 1, 1]} : vector<8x16x128xbf16> to vector<8x16x32xbf16>
    %47 = vector.extract_strided_slice %20 {offsets = [0, 0, 32], sizes = [8, 16, 32], strides = [1, 1, 1]} : vector<8x16x128xbf16> to vector<8x16x32xbf16>
    %48 = vector.extract_strided_slice %22 {offsets = [0, 0, 32], sizes = [8, 16, 32], strides = [1, 1, 1]} : vector<8x16x128xbf16> to vector<8x16x32xbf16>
    "tpu.trace_start"() <{level = 10 : i32, message = "bqd,bkd->bqk"}> : () -> ()
    %cst_24 = arith.constant dense<0.000000e+00> : vector<8x16x16xf32>
    %49 = tpu.matmul %46, %47, %cst_24 {dimension_numbers = #tpu.dot_dimension_numbers<[2], [2], [1], [1], [0, 0, 0, 1, 1, 1], [0], [0]>} : vector<8x16x32xbf16>, vector<8x16x32xbf16>, vector<8x16x16xf32> -> vector<8x16x16xf32>
    "tpu.trace_stop"() : () -> ()
    %cst_25 = arith.constant dense<0xFF800000> : vector<8x16xf32>
    %50 = vector.multi_reduction <maximumf>, %49, %cst_25 [2] : vector<8x16x16xf32> to vector<8x16xf32>
    %51 = vector.shape_cast %50 : vector<8x16xf32> to vector<8x16x1xf32>
    %52 = vector.broadcast %51 : vector<8x16x1xf32> to vector<8x16x16xf32>
    %53 = arith.subf %49, %52 : vector<8x16x16xf32>
    %54 = math.exp %53 : vector<8x16x16xf32>
    %cst_26 = arith.constant dense<0.000000e+00> : vector<8x16xf32>
    %55 = vector.multi_reduction <add>, %54, %cst_26 [2] : vector<8x16x16xf32> to vector<8x16xf32>
    %56 = vector.shape_cast %55 : vector<8x16xf32> to vector<8x16x1xf32>
    %57 = tpu.reciprocal %56 {approx = true} : vector<8x16x1xf32> -> vector<8x16x1xf32>
    %58 = vector.broadcast %57 : vector<8x16x1xf32> to vector<8x16x16xf32>
    %59 = arith.mulf %54, %58 : vector<8x16x16xf32>
    %60 = arith.truncf %59 : vector<8x16x16xf32> to vector<8x16x16xbf16>
    "tpu.trace_start"() <{level = 10 : i32, message = "bqk,bkd->bqd"}> : () -> ()
    %cst_27 = arith.constant dense<0.000000e+00> : vector<8x16x32xf32>
    %61 = tpu.matmul %60, %48, %cst_27 {dimension_numbers = #tpu.dot_dimension_numbers<[2], [1], [1], [2], [0, 0, 0, 1, 1, 2], [0], [0]>} : vector<8x16x16xbf16>, vector<8x16x32xbf16>, vector<8x16x32xf32> -> vector<8x16x32xf32>
    "tpu.trace_stop"() : () -> ()
    %62 = vector.shape_cast %61 : vector<8x16x32xf32> to vector<128x32xf32>
    %63 = arith.truncf %62 : vector<128x32xf32> to vector<128x32xbf16>
    %64 = vector.extract_strided_slice %23 {offsets = [32, 0], sizes = [32, 128], strides = [1, 1]} : vector<128x128xbf16> to vector<32x128xbf16>
    %cst_28 = arith.constant dense<0.000000e+00> : vector<128x128xf32>
    %65 = tpu.matmul %63, %64, %cst_28 {dimension_numbers = #tpu.dot_dimension_numbers<[1], [0], [0], [1], [0, 0, 1, 1], [], []>} : vector<128x32xbf16>, vector<32x128xbf16>, vector<128x128xf32> -> vector<128x128xf32>
    %66 = arith.addf %45, %65 : vector<128x128xf32>
    %67 = vector.extract_strided_slice %18 {offsets = [0, 0, 64], sizes = [8, 16, 32], strides = [1, 1, 1]} : vector<8x16x128xbf16> to vector<8x16x32xbf16>
    %68 = vector.extract_strided_slice %20 {offsets = [0, 0, 64], sizes = [8, 16, 32], strides = [1, 1, 1]} : vector<8x16x128xbf16> to vector<8x16x32xbf16>
    %69 = vector.extract_strided_slice %22 {offsets = [0, 0, 64], sizes = [8, 16, 32], strides = [1, 1, 1]} : vector<8x16x128xbf16> to vector<8x16x32xbf16>
    "tpu.trace_start"() <{level = 10 : i32, message = "bqd,bkd->bqk"}> : () -> ()
    %cst_29 = arith.constant dense<0.000000e+00> : vector<8x16x16xf32>
    %70 = tpu.matmul %67, %68, %cst_29 {dimension_numbers = #tpu.dot_dimension_numbers<[2], [2], [1], [1], [0, 0, 0, 1, 1, 1], [0], [0]>} : vector<8x16x32xbf16>, vector<8x16x32xbf16>, vector<8x16x16xf32> -> vector<8x16x16xf32>
    "tpu.trace_stop"() : () -> ()
    %cst_30 = arith.constant dense<0xFF800000> : vector<8x16xf32>
    %71 = vector.multi_reduction <maximumf>, %70, %cst_30 [2] : vector<8x16x16xf32> to vector<8x16xf32>
    %72 = vector.shape_cast %71 : vector<8x16xf32> to vector<8x16x1xf32>
    %73 = vector.broadcast %72 : vector<8x16x1xf32> to vector<8x16x16xf32>
    %74 = arith.subf %70, %73 : vector<8x16x16xf32>
    %75 = math.exp %74 : vector<8x16x16xf32>
    %cst_31 = arith.constant dense<0.000000e+00> : vector<8x16xf32>
    %76 = vector.multi_reduction <add>, %75, %cst_31 [2] : vector<8x16x16xf32> to vector<8x16xf32>
    %77 = vector.shape_cast %76 : vector<8x16xf32> to vector<8x16x1xf32>
    %78 = tpu.reciprocal %77 {approx = true} : vector<8x16x1xf32> -> vector<8x16x1xf32>
    %79 = vector.broadcast %78 : vector<8x16x1xf32> to vector<8x16x16xf32>
    %80 = arith.mulf %75, %79 : vector<8x16x16xf32>
    %81 = arith.truncf %80 : vector<8x16x16xf32> to vector<8x16x16xbf16>
    "tpu.trace_start"() <{level = 10 : i32, message = "bqk,bkd->bqd"}> : () -> ()
    %cst_32 = arith.constant dense<0.000000e+00> : vector<8x16x32xf32>
    %82 = tpu.matmul %81, %69, %cst_32 {dimension_numbers = #tpu.dot_dimension_numbers<[2], [1], [1], [2], [0, 0, 0, 1, 1, 2], [0], [0]>} : vector<8x16x16xbf16>, vector<8x16x32xbf16>, vector<8x16x32xf32> -> vector<8x16x32xf32>
    "tpu.trace_stop"() : () -> ()
    %83 = vector.shape_cast %82 : vector<8x16x32xf32> to vector<128x32xf32>
    %84 = arith.truncf %83 : vector<128x32xf32> to vector<128x32xbf16>
    %85 = vector.extract_strided_slice %23 {offsets = [64, 0], sizes = [32, 128], strides = [1, 1]} : vector<128x128xbf16> to vector<32x128xbf16>
    %cst_33 = arith.constant dense<0.000000e+00> : vector<128x128xf32>
    %86 = tpu.matmul %84, %85, %cst_33 {dimension_numbers = #tpu.dot_dimension_numbers<[1], [0], [0], [1], [0, 0, 1, 1], [], []>} : vector<128x32xbf16>, vector<32x128xbf16>, vector<128x128xf32> -> vector<128x128xf32>
    %87 = arith.addf %66, %86 : vector<128x128xf32>
    %88 = vector.extract_strided_slice %18 {offsets = [0, 0, 96], sizes = [8, 16, 32], strides = [1, 1, 1]} : vector<8x16x128xbf16> to vector<8x16x32xbf16>
    %89 = vector.extract_strided_slice %20 {offsets = [0, 0, 96], sizes = [8, 16, 32], strides = [1, 1, 1]} : vector<8x16x128xbf16> to vector<8x16x32xbf16>
    %90 = vector.extract_strided_slice %22 {offsets = [0, 0, 96], sizes = [8, 16, 32], strides = [1, 1, 1]} : vector<8x16x128xbf16> to vector<8x16x32xbf16>
    "tpu.trace_start"() <{level = 10 : i32, message = "bqd,bkd->bqk"}> : () -> ()
    %cst_34 = arith.constant dense<0.000000e+00> : vector<8x16x16xf32>
    %91 = tpu.matmul %88, %89, %cst_34 {dimension_numbers = #tpu.dot_dimension_numbers<[2], [2], [1], [1], [0, 0, 0, 1, 1, 1], [0], [0]>} : vector<8x16x32xbf16>, vector<8x16x32xbf16>, vector<8x16x16xf32> -> vector<8x16x16xf32>
    "tpu.trace_stop"() : () -> ()
    %cst_35 = arith.constant dense<0xFF800000> : vector<8x16xf32>
    %92 = vector.multi_reduction <maximumf>, %91, %cst_35 [2] : vector<8x16x16xf32> to vector<8x16xf32>
    %93 = vector.shape_cast %92 : vector<8x16xf32> to vector<8x16x1xf32>
    %94 = vector.broadcast %93 : vector<8x16x1xf32> to vector<8x16x16xf32>
    %95 = arith.subf %91, %94 : vector<8x16x16xf32>
    %96 = math.exp %95 : vector<8x16x16xf32>
    %cst_36 = arith.constant dense<0.000000e+00> : vector<8x16xf32>
    %97 = vector.multi_reduction <add>, %96, %cst_36 [2] : vector<8x16x16xf32> to vector<8x16xf32>
    %98 = vector.shape_cast %97 : vector<8x16xf32> to vector<8x16x1xf32>
    %99 = tpu.reciprocal %98 {approx = true} : vector<8x16x1xf32> -> vector<8x16x1xf32>
    %100 = vector.broadcast %99 : vector<8x16x1xf32> to vector<8x16x16xf32>
    %101 = arith.mulf %96, %100 : vector<8x16x16xf32>
    %102 = arith.truncf %101 : vector<8x16x16xf32> to vector<8x16x16xbf16>
    "tpu.trace_start"() <{level = 10 : i32, message = "bqk,bkd->bqd"}> : () -> ()
    %cst_37 = arith.constant dense<0.000000e+00> : vector<8x16x32xf32>
    %103 = tpu.matmul %102, %90, %cst_37 {dimension_numbers = #tpu.dot_dimension_numbers<[2], [1], [1], [2], [0, 0, 0, 1, 1, 2], [0], [0]>} : vector<8x16x16xbf16>, vector<8x16x32xbf16>, vector<8x16x32xf32> -> vector<8x16x32xf32>
    "tpu.trace_stop"() : () -> ()
    %104 = vector.shape_cast %103 : vector<8x16x32xf32> to vector<128x32xf32>
    %105 = arith.truncf %104 : vector<128x32xf32> to vector<128x32xbf16>
    %106 = vector.extract_strided_slice %23 {offsets = [96, 0], sizes = [32, 128], strides = [1, 1]} : vector<128x128xbf16> to vector<32x128xbf16>
    %cst_38 = arith.constant dense<0.000000e+00> : vector<128x128xf32>
    %107 = tpu.matmul %105, %106, %cst_38 {dimension_numbers = #tpu.dot_dimension_numbers<[1], [0], [0], [1], [0, 0, 1, 1], [], []>} : vector<128x32xbf16>, vector<32x128xbf16>, vector<128x128xf32> -> vector<128x128xf32>
    %108 = arith.addf %87, %107 : vector<128x128xf32>
    %c0_39 = arith.constant 0 : index
    %c0_40 = arith.constant 0 : index
    %109 = vector.load %arg9[%c0_39, %c0_40] : memref<1x128xf32, #tpu.memory_space<vmem>>, vector<1x128xf32>
    %110 = vector.broadcast %109 : vector<1x128xf32> to vector<128x128xf32>
    %111 = arith.addf %108, %110 : vector<128x128xf32>
    %112 = arith.truncf %111 : vector<128x128xf32> to vector<128x128xbf16>
    %c0_41 = arith.constant 0 : index
    %c0_42 = arith.constant 0 : index
    %113 = vector.load %arg10[%c0_41, %c0_42] : memref<128x128xbf16, #tpu.memory_space<vmem>>, vector<128x128xbf16>
    %cst_43 = arith.constant dense<0.000000e+00> : vector<128x128xf32>
    %114 = tpu.matmul %112, %113, %cst_43 {dimension_numbers = #tpu.dot_dimension_numbers<[1], [0], [0], [1], [0, 0, 1, 1], [], []>} : vector<128x128xbf16>, vector<128x128xbf16>, vector<128x128xf32> -> vector<128x128xf32>
    %c0_44 = arith.constant 0 : index
    %c0_45 = arith.constant 0 : index
    %115 = vector.load %arg11[%c0_44, %c0_45] : memref<1x128xf32, #tpu.memory_space<vmem>>, vector<1x128xf32>
    %116 = vector.broadcast %115 : vector<1x128xf32> to vector<128x128xf32>
    %117 = arith.addf %114, %116 : vector<128x128xf32>
    %118 = math.tanh %117 : vector<128x128xf32>
    %119 = vector.shape_cast %118 : vector<128x128xf32> to vector<8x16x128xf32>
    %c0_46 = arith.constant 0 : index
    %c0_47 = arith.constant 0 : index
    %120 = vector.load %arg12[%c0_46, %c0_47] : memref<1x128xf32, #tpu.memory_space<vmem>>, vector<1x128xf32>
    %121 = vector.shape_cast %120 : vector<1x128xf32> to vector<1x1x128xf32>
    %122 = vector.broadcast %121 : vector<1x1x128xf32> to vector<8x16x128xf32>
    %123 = arith.mulf %119, %122 : vector<8x16x128xf32>
    %cst_48 = arith.constant dense<0.000000e+00> : vector<8x16xf32>
    %124 = vector.multi_reduction <add>, %123, %cst_48 [2] : vector<8x16x128xf32> to vector<8x16xf32>
    %cst_49 = arith.constant dense<0xFF800000> : vector<8xf32>
    %125 = vector.multi_reduction <maximumf>, %124, %cst_49 [1] : vector<8x16xf32> to vector<8xf32>
    %126 = vector.shape_cast %125 : vector<8xf32> to vector<8x1xf32>
    %127 = vector.broadcast %126 : vector<8x1xf32> to vector<8x16xf32>
    %128 = arith.subf %124, %127 : vector<8x16xf32>
    %129 = math.exp %128 : vector<8x16xf32>
    %cst_50 = arith.constant dense<0.000000e+00> : vector<8xf32>
    %130 = vector.multi_reduction <add>, %129, %cst_50 [1] : vector<8x16xf32> to vector<8xf32>
    %131 = vector.shape_cast %130 : vector<8xf32> to vector<8x1xf32>
    %132 = vector.broadcast %131 : vector<8x1xf32> to vector<8x16xf32>
    %133 = arith.divf %129, %132 : vector<8x16xf32>
    %134 = vector.shape_cast %111 : vector<128x128xf32> to vector<8x16x128xf32>
    %135 = vector.shape_cast %133 : vector<8x16xf32> to vector<8x1x16xf32>
    "tpu.trace_start"() <{level = 10 : i32, message = "bqs,bsh->bqh"}> : () -> ()
    %cst_51 = arith.constant dense<0.000000e+00> : vector<8x1x128xf32>
    %136 = tpu.matmul %135, %134, %cst_51 {dimension_numbers = #tpu.dot_dimension_numbers<[2], [1], [1], [2], [0, 0, 0, 1, 1, 2], [0], [0]>} : vector<8x1x16xf32>, vector<8x16x128xf32>, vector<8x1x128xf32> -> vector<8x1x128xf32>
    "tpu.trace_stop"() : () -> ()
    %137 = vector.shape_cast %136 : vector<8x1x128xf32> to vector<8x128xf32>
    %c0_52 = arith.constant 0 : index
    %c0_53 = arith.constant 0 : index
    %138 = vector.load %arg13[%c0_52, %c0_53] : memref<8x128xf32, #tpu.memory_space<vmem>>, vector<8x128xf32>
    tpu.vector_store %arg13[%c0_52, %c0_53], %137 {strides = array<i32>} : memref<8x128xf32, #tpu.memory_space<vmem>>, vector<8x128xf32>,
    return
  }
  func.func @transform_0(%arg0: i32) -> (i32, i32, i32) {
    %c0_i32 = arith.constant 0 : i32
    %c0_i32_0 = arith.constant 0 : i32
    %c0_i32_1 = arith.constant 0 : i32
    return %arg0, %c0_i32, %c0_i32_0 : i32, i32, i32
  }
  func.func @transform_1(%arg0: i32) -> (i32, i32) {
    %c0_i32 = arith.constant 0 : i32
    %c0_i32_0 = arith.constant 0 : i32
    %c0_i32_1 = arith.constant 0 : i32
    return %c0_i32, %c0_i32_0 : i32, i32
  }
  func.func @transform_2(%arg0: i32) -> (i32, i32) {
    %c0_i32 = arith.constant 0 : i32
    %c0_i32_0 = arith.constant 0 : i32
    %c0_i32_1 = arith.constant 0 : i32
    return %c0_i32, %c0_i32_0 : i32, i32
  }
  func.func @transform_3(%arg0: i32) -> (i32, i32) {
    %c0_i32 = arith.constant 0 : i32
    %c0_i32_0 = arith.constant 0 : i32
    %c0_i32_1 = arith.constant 0 : i32
    return %c0_i32, %c0_i32_0 : i32, i32
  }
  func.func @transform_4(%arg0: i32) -> (i32, i32) {
    %c0_i32 = arith.constant 0 : i32
    %c0_i32_0 = arith.constant 0 : i32
    %c0_i32_1 = arith.constant 0 : i32
    return %c0_i32, %c0_i32_0 : i32, i32
  }
  func.func @transform_5(%arg0: i32) -> (i32, i32) {
    %c0_i32 = arith.constant 0 : i32
    %c0_i32_0 = arith.constant 0 : i32
    %c0_i32_1 = arith.constant 0 : i32
    return %c0_i32, %c0_i32_0 : i32, i32
  }
  func.func @transform_6(%arg0: i32) -> (i32, i32) {
    %c0_i32 = arith.constant 0 : i32
    %c0_i32_0 = arith.constant 0 : i32
    %c0_i32_1 = arith.constant 0 : i32
    return %c0_i32, %c0_i32_0 : i32, i32
  }
  func.func @transform_7(%arg0: i32) -> (i32, i32) {
    %c0_i32 = arith.constant 0 : i32
    %c0_i32_0 = arith.constant 0 : i32
    %c0_i32_1 = arith.constant 0 : i32
    return %c0_i32, %c0_i32_0 : i32, i32
  }
  func.func @transform_8(%arg0: i32) -> (i32, i32) {
    %c0_i32 = arith.constant 0 : i32
    %c0_i32_0 = arith.constant 0 : i32
    %c0_i32_1 = arith.constant 0 : i32
    return %c0_i32, %c0_i32_0 : i32, i32
  }
  func.func @transform_9(%arg0: i32) -> (i32, i32) {
    %c0_i32 = arith.constant 0 : i32
    %c0_i32_0 = arith.constant 0 : i32
    %c0_i32_1 = arith.constant 0 : i32
    return %c0_i32, %c0_i32_0 : i32, i32
  }
  func.func @transform_10(%arg0: i32) -> (i32, i32) {
    %c0_i32 = arith.constant 0 : i32
    %c0_i32_0 = arith.constant 0 : i32
    %c0_i32_1 = arith.constant 0 : i32
    return %c0_i32, %c0_i32_0 : i32, i32
  }
  func.func @transform_11(%arg0: i32) -> (i32, i32) {
    %c0_i32 = arith.constant 0 : i32
    %c0_i32_0 = arith.constant 0 : i32
    %c0_i32_1 = arith.constant 0 : i32
    return %c0_i32, %c0_i32_0 : i32, i32
  }
  func.func @transform_12(%arg0: i32) -> (i32, i32) {
    %c0_i32 = arith.constant 0 : i32
    %c0_i32_0 = arith.constant 0 : i32
    return %arg0, %c0_i32 : i32, i32
  }
}

</mosaic_0001>

<bundles_post_ra>
// kernel: tpu_custom_call.1
= control target key start
LH: loop header
LB: loop body
LE: loop exit
PB: predicated region body
PF: predicated region fallthrough
CT: control target
= control target key end

     0   :  { %s7965_s0 = inlined_call_operand.hbm [shape: bf16[16,16,128], index: 0, kind: input, shape index: {}]   ;;  %s7966_s1 = inlined_call_operand.hbm [shape: bf16[128,128], index: 1, kind: input, shape index: {}]   ;;  %s7967_s2 = inlined_call_operand.vmem [shape: f32[1,128], index: 2, kind: input, shape index: {}]   ;;  %s7968_s3 = inlined_call_operand.hbm [shape: bf16[128,128], index: 3, kind: input, shape index: {}]   ;;  %s7969_s4 = inlined_call_operand.vmem [shape: f32[1,128], index: 4, kind: input, shape index: {}]   ;;  %s7970_s5 = inlined_call_operand.hbm [shape: bf16[128,128], index: 5, kind: input, shape index: {}]   ;;  %s7971_s6 = inlined_call_operand.vmem [shape: f32[1,128], index: 6, kind: input, shape index: {}]   ;;  %s7972_s7 = inlined_call_operand.hbm [shape: bf16[128,128], index: 7, kind: input, shape index: {}]   ;;  %s7973_s8 = inlined_call_operand.vmem [shape: f32[1,128], index: 8, kind: input, shape index: {}]   ;;  %s7974_s9 = inlined_call_operand.hbm [shape: bf16[128,128], index: 9, kind: input, shape index: {}]   ;;  %s7975_s10 = inlined_call_operand.vmem [shape: f32[1,128], index: 10, kind: input, shape index: {}]   ;;  %s7976_s11 = inlined_call_operand.vmem [shape: f32[1,128], index: 11, kind: input, shape index: {}]   ;;  %s7977_s12 = inlined_call_operand.hbm [shape: f32[16,128], index: 12, kind: output, shape index: {}]  }
   0x1   :  { %8000 = sst [smem:[#allocation37_spill]] %s7966_s1 }
   0x2   :  { %8001 = sst [smem:[#allocation38_spill]] %s7968_s3 }
   0x3   :  { %8002 = sst [smem:[#allocation39_spill]] %s7970_s5 }
   0x4   :  { %8003 = sst [smem:[#allocation40_spill]] %s7972_s7 }
   0x5   :  { %8004 = sst [smem:[#allocation41_spill]] %s7974_s9 }
   0x6   :  { %17 = vsyncpa [#allocation3], 0 }
   0x7   :  { %19 = vsyncpa [#allocation3 + $0x1], 0 }
   0x8   :  { %20 = vsyncpa [#allocation6], 0 }
   0x9   :  { %21 = vsyncpa [#allocation9], 0 }
   0xa   :  { %22 = vsyncpa [#allocation12], 0 }
   0xb   :  { %23 = vsyncpa [#allocation4], 0 }
   0xc   :  { %25 = vsyncpa [#allocation4 + $0x1], 0  ;;  %s5981_s21 = smov 0   ;;  %s5983_s22 = smov 0  }
   0xd   :  { %s5985_s23 = smov 0   ;;  %s5987_s24 = smov 0  }
   0xe LB: > { %s8005_s1 = sld [smem:[#allocation37_spill]]  ;;  %s6005_s28 = sadd.s32 4294967295, %s5903_s24   ;;  %s5903_s24 = sphi %s5987_s24, %s8086_s24   ;;  %s5899_s23 = sphi %s5985_s23, %s8085_s23   ;;  %s5895_s22 = sphi %s5983_s22, %s8084_s22   ;;  %s5891_s21 = sphi %s5981_s21, %s8083_s21  }
   0xf   : > { %p4820_p0 = scmp.ge.s32.totalorder %s5903_s24, 1  ;;  %p52_p1 = scmp.eq.s32.totalorder %s6005_s28, 0 }
  0x10   : > { %p319_p2 = scmp.lt.s32.totalorder %s5903_s24, 3  ;;  %s5905_s30 = smov [#allocation5]  }
  0x11   : > { %s332_s13 = sshll.u32 %s5905_s30, 4  ;;  %s8007_s5 = sld [smem:[#allocation39_spill]]  ;;  %s333_s13 = int_to_ptr.vmem [resolvable:$true] %s332_s13 }
  0x12   : > { %p6010_p3 = pnand %p4820_p0, %p319_p2  ;;  %s8009_s3 = sld [smem:[#allocation38_spill]] }
  0x13   : > { %s5906_s25 = smov [#allocation8]   ;;  %s7978_s30 = smov 64  }
  0x14   : > { %s330_s27 = sshll.u32 %s8005_s1, 4  ;;  %p5221_p4 = pneg %p6010_p3  ;;  %s331_s27 = int_to_ptr.hbm [resolvable:$true] %s330_s27 }
  0x15   : > { %s366_s26 = sshll.u32 %s5906_s25, 4  ;;  %s7979_s1 = smov 4   ;;  %s367_s26 = int_to_ptr.vmem [resolvable:$true] %s366_s26 }
  0x16   : > { %p6022_p6 = pnand %p5221_p4, %p52_p1  ;;  %s8010_s7 = sld [smem:[#allocation40_spill]] }
  0x17   : > { %s364_s16 = sshll.u32 %s8007_s5, 4  ;;  %s5909_s19 = smov [#allocation7]   ;;  %s365_s16 = int_to_ptr.hbm [resolvable:$true] %s364_s16 }
  0x18   : > { %s347_s20 = sshll.u32 %s8009_s3, 4  ;;  %s349_s25 = sshll.u32 %s5909_s19, 4  ;;  %s348_s20 = int_to_ptr.hbm [resolvable:$true] %s347_s20  ;;  %s350_s25 = int_to_ptr.vmem [resolvable:$true] %s349_s25 }
  0x19   : > { %5224 = dma.hbm_to_vmem [thread:$0]  (!%p6022_p6), %s331_s27, 1024, %s333_s13, [#allocation6], %s7978_s30, %s7978_s30, %s7979_s1  }
  0x1a   : > { %5230 = dma.hbm_to_vmem [thread:$0]  (!%p6022_p6), %s365_s16, 1024, %s367_s26, [#allocation9], %s7978_s30, %s7978_s30, %s7979_s1  }
  0x1b   : > { %5227 = dma.hbm_to_vmem [thread:$0]  (!%p6022_p6), %s348_s20, 1024, %s350_s25, [#allocation6], %s7978_s30, %s7978_s30, %s7979_s1  }
  0x1c   : > { %s381_s18 = sshll.u32 %s8010_s7, 4  ;;  %s5910_s27 = smov [#allocation10]   ;;  %s382_s18 = int_to_ptr.hbm [resolvable:$true] %s381_s18 }
  0x1d   : > { %s383_s13 = sshll.u32 %s5910_s27, 4  ;;  %s8011_s9 = sld [smem:[#allocation41_spill]]  ;;  %s384_s13 = int_to_ptr.vmem [resolvable:$true] %s383_s13 }
  0x1e   : > { %5233 = dma.hbm_to_vmem [thread:$0]  (!%p6022_p6), %s382_s18, 1024, %s384_s13, [#allocation9], %s7978_s30, %s7978_s30, %s7979_s1  }
  0x1f   : > { %s5911_s20 = smov [#allocation11]   ;;  %s4819_s19 = sadd.s32 4294967294, %s5903_s24  }
  0x20   : > { %s400_s15 = sshll.u32 %s5911_s20, 4  ;;  %s6062_s25 = sadd.s32 1, %s5903_s24   ;;  %s401_s15 = int_to_ptr.vmem [resolvable:$true] %s400_s15 }
  0x21   : > { %s38_s27 = sadd.s32 1, %s5899_s23  ;;  %s35_s16 = ssub.s32 %s5903_s24, %s6062_s25 }
  0x22   : > { %p45_p7 = scmp.ne.s32.totalorder %s5899_s23, %s5895_s22  ;;  %p36_p8 = scmp.eq.s32.totalorder %s35_s16, 0 }
  0x23   : > { %s398_s14 = sshll.u32 %s8011_s9, 4  ;;  %p46_p9 = scmp.eq.s32.totalorder %s5903_s24, 0  ;;  %s399_s14 = int_to_ptr.hbm [resolvable:$true] %s398_s14 }
  0x24   : > { %5236 = dma.hbm_to_vmem [thread:$0]  (!%p6022_p6), %s399_s14, 1024, %s401_s15, [#allocation12], %s7978_s30, %s7978_s30, %s7979_s1  }
  0x25   : > { %p51_p10 = scmp.ne.s32.totalorder %s5895_s22, %s5891_s21  ;;  %p306_p11 = scmp.eq.s32.totalorder %s6005_s28, 1 }
  0x26   : > { %s6074_s18 = scalar_select %p36_p8, %s5899_s23, %s38_s27  }
  0x27   : > { %p6078_p12 = por %p52_p1, %p51_p10  ;;  %p6082_p13 = por %p306_p11, %p45_p7 }
  0x28   : > { %8012 = sst [smem:[#allocation19_spill]] %s6074_s18  ;;  %p312_p0 = scmp.eq.s32.totalorder %s4819_s19, 1 }
  0x29   : > { %p47_p2 = por %p46_p9, %p45_p7  ;;  %s420_s26 = sand.u32 1, %s5899_s23  }
  0x2a   : > { %p6087_p4 = por %p312_p0, %p51_p10  ;;  %p5250_p6 = scmp.lt.s32.totalorder %s5903_s24, 2 }
  0x2b   : > { %s4827_s20 = sshll.u32 %s420_s26, 6  ;;  %s5140_s15 = sshll.u32 %s5903_s24, 6 }
  0x2c   : > { %s430_s30 = scalar_lea.hbm %s7965_s0, %s5140_s15  ;;  %s424_s3 = scalar_lea.vmem [#allocation2], %s4827_s20 }
  0x2d   : > { %s431_s1 = sshll.u32 %s430_s30, 4  ;;  %s433_s5 = sshll.u32 %s424_s3, 4  ;;  %s432_s1 = int_to_ptr.hbm [resolvable:$true] %s431_s1  ;;  %s434_s5 = int_to_ptr.vmem [resolvable:$true] %s433_s5 }
  0x2e   : > { %p6096_p8 = pnand %p5250_p6, %p47_p2  ;;  %s421_s7 = scalar_lea.sflag [#allocation3], %s420_s26 }
  0x2f   : > { %s5795_s9 = sshra.s32 %s432_s1, 4  ;;  %s5802_s3 = scalar_lea.hbm %s7965_s0, 128  ;;  %s5796_s9 = int_to_ptr.hbm [resolvable:$true] %s5795_s9 }
  0x30   : > { %s5797_s18 = scalar_lea.hbm %s5796_s9, 64  ;;  %p5799_p9 = pneg %p6096_p8 }
  0x31   : > { %p5798_p7 = scmp.ne.s32.totalorder %s5796_s9, %s5797_s18  ;;  %p5803_p0 = scmp.lt.s32.totalorder %s5796_s9, %s7965_s0 }
  0x32   : > { %p5804_p2 = scmp.lt.s32.totalorder %s5802_s3, %s5797_s18 }
  0x33   : > { %p5800_p10 = pnand %p5799_p9, %p5798_p7 }
  0x34   : > { %p5805_p6 = por %p5804_p2, %p5803_p0 }
  0x35   : > { %p5801_p11 = pneg %p5800_p10 }
  0x37   : > { %p5806_p5 = pnand %p5805_p6, %p5801_p11 }
  0x39   : > { %5809 = shalt.err (!%p5806_p5)
}
  0x3a   : > { %s8017_s26 = smov 4   ;;  %s8018_s16 = smov 64  }
  0x3b   : > { %5240 = dma.hbm_to_vmem [thread:$0]  (!%p6096_p8), %s432_s1, 1024, %s434_s5, %s421_s7, %s8018_s16, %s8018_s16, %s8017_s26  }
  0x3c   : > { %445 = sbr.rel (%p6010_p3) target bundleno = 3725 (0xe8d), region = 68 }
  0x41   : > { %s6116_s15 = sand.u32 1, %s5895_s22  }
  0x42   : > { %s4832_s9 = sshll.u32 %s6116_s15, 6  ;;  %s448_s18 = scalar_lea.sflag [#allocation3], %s6116_s15 }
  0x43   : > { %s6120_s30 = scalar_lea.vmem [#allocation2], %s4832_s9 }
  0x44   : > { %5870 = dma.done.wait (%p6078_p12), %s448_s18, 1024  }
  0x45   : > { %5872 = vsyncadd (%p6078_p12), %s448_s18, 4294966272 }
  0x46   : > { %5874 = dma.done.wait (%p52_p1), [#allocation6], 2048  }
  0x47   : > { %5876 = vsyncadd (%p52_p1), [#allocation6], 4294965248 }
  0x48   : > { %5878 = dma.done.wait (%p52_p1), [#allocation9], 2048  }
  0x49   : > { %5880 = vsyncadd (%p52_p1), [#allocation9], 4294965248 }
  0x4a   : > { %5882 = dma.done.wait (%p52_p1), [#allocation12], 1024  }
  0x4b   : > { %5884 = vsyncadd (%p52_p1), [#allocation12], 4294966272  ;;  %v5156_v0 = vld [vmem:[#allocation5 + $0x38] sm:$0xff]  ;;  %v5155_v3 = vld [vmem:[#allocation5 + $0x30] sm:$0xff]  ;;  %vm1009_vm0 = vcmask 261120   ;;  %s5912_s17 = smov 64  }
  0x4c   : > { %v5164_v1 = vld [vmem:[#allocation7 + $0x38] sm:$0xff]  ;;  %652 = vmatpush.bf16.msra.mxu0 %v5156_v0  ;;  %v5163_v4 = vld [vmem:[#allocation7 + $0x30] sm:$0xff]  ;;  %v5154_v6 = vld [vmem:[#allocation5 + $0x28] sm:$0xff]  ;;  %s5913_s19 = smov 96   ;;  %vm1240_vm1 = vcmask 130048   ;;  %s5914_s27 = smov 32  }
  0x4d   : > { %v5172_v2 = vld [vmem:[#allocation8 + $0x38] sm:$0xff]  ;;  %769 = vmatpush.bf16.msra.mxu1 %v5164_v1  ;;  %5189 = vmatpush.bf16.msra.mxu3 %v5164_v1  ;;  %v5171_v5 = vld [vmem:[#allocation8 + $0x30] sm:$0xff]  ;;  %v5162_v7 = vld [vmem:[#allocation7 + $0x28] sm:$0xff]  ;;  %vm4047_vm2 = vcmask 130112   ;;  %vm4070_vm3 = vcmask 1041409   ;;  %vm4072_vm4 = vcmask 1042434  }
  0x4e   : > { %886 = vmatpush.bf16.msra.mxu2 %v5172_v2  ;;  %v5170_v8 = vld [vmem:[#allocation8 + $0x28] sm:$0xff]  ;;  %v5153_v9 = vld [vmem:[#allocation5 + $0x20] sm:$0xff]  ;;  %v5152_v12 = vld [vmem:[#allocation5 + $0x18] sm:$0xff]  ;;  %vm4074_vm5 = vcmask 1043459   ;;  %vm4076_vm6 = vcmask 1044484   ;;  %vm4078_vm7 = vcmask 1045509  }
  0x4f   : > { %v5161_v10 = vld [vmem:[#allocation7 + $0x20] sm:$0xff]  ;;  %v5160_v13 = vld [vmem:[#allocation7 + $0x18] sm:$0xff]  ;;  %v5151_v15 = vld [vmem:[#allocation5 + $0x10] sm:$0xff]  ;;  %vm4080_vm8 = vcmask 1046534   ;;  %vm4082_vm9 = vcmask 1047559   ;;  %s4838_s5 = sshll.u32 %s6116_s15, 3 }
  0x50   : > { %653 = vmatpush.bf16.msra.mxu0 %v5155_v3  ;;  %v5169_v11 = vld [vmem:[#allocation8 + $0x20] sm:$0xff]  ;;  %v5168_v14 = vld [vmem:[#allocation8 + $0x18] sm:$0xff]  ;;  %v5159_v16 = vld [vmem:[#allocation7 + $0x10] sm:$0xff]  ;;  %s5136_s7 = sshll.u32 %s6005_s28, 3  ;;  %s517_s3 = scalar_lea.vmem [#allocation13], %s4838_s5 }
  0x51   : > { %770 = vmatpush.bf16.msra.mxu1 %v5163_v4  ;;  %5190 = vmatpush.bf16.msra.mxu3 %v5163_v4  ;;  %v5167_v17 = vld [vmem:[#allocation8 + $0x10] sm:$0xff]  ;;  %v5150_v18 = vld [vmem:[#allocation5 + $0x8] sm:$0xff]  ;;  %v5149_v21 = vld [vmem:[#allocation5] sm:$0xff]  ;;  %s4698_s28 = sshll.u32 %s517_s3, 4  ;;  %s4699_s28 = int_to_ptr.vmem [resolvable:$true] %s4698_s28 }
  0x52   : > { %887 = vmatpush.bf16.msra.mxu2 %v5171_v5  ;;  %v5158_v19 = vld [vmem:[#allocation7 + $0x8] sm:$0xff]  ;;  %v5157_v22 = vld [vmem:[#allocation7] sm:$0xff]  ;;  %v5147_v25 = vld [vmem:[%s6120_s30 + $0x30] sm:$0xff] }
  0x53   : > { %v5166_v20 = vld [vmem:[#allocation8 + $0x8] sm:$0xff]  ;;  %v5165_v23 = vld [vmem:[#allocation8] sm:$0xff]  ;;  %v5148_v27 = vld [vmem:[%s6120_s30 + $0x38] sm:$0xff] }
  0x54   : > { %654 = vmatpush.bf16.msra.mxu0 %v5154_v6  ;;  %v5141_v24 = vld [vmem:[%s6120_s30] sm:$0xff]  ;;  %v5142_v26 = vld [vmem:[%s6120_s30 + $0x8] sm:$0xff]  ;;  %v5143_v28 = vld [vmem:[%s6120_s30 + $0x10] sm:$0xff] }
  0x55   : > { %771 = vmatpush.bf16.msra.mxu1 %v5162_v7  ;;  %5191 = vmatpush.bf16.msra.mxu3 %v5162_v7  ;;  %v5144_v29 = vld [vmem:[%s6120_s30 + $0x18] sm:$0xff]  ;;  %v5145_v30 = vld [vmem:[%s6120_s30 + $0x20] sm:$0xff]  ;;  %v5146_v31 = vld [vmem:[%s6120_s30 + $0x28] sm:$0xff]  ;;  %s5845_s30 = scalar_lea.hbm %s7977_s12, 16 }
  0x56   : > { %888 = vmatpush.bf16.msra.mxu2 %v5170_v8  ;;  %v6149_v34 = vld [vmem:[%s7969_s4] ss:$0 sm:$0xff] }
  0x57   : > { %v6155_v36 = vld [vmem:[%s7967_s2] ss:$0 sm:$0xff] }
  0x58   : > { %655 = vmatpush.bf16.msra.mxu0 %v5153_v9 }
  0x59   : > { %772 = vmatpush.bf16.msra.mxu1 %v5161_v10  ;;  %5192 = vmatpush.bf16.msra.mxu3 %v5161_v10 }
  0x5a   : > { %889 = vmatpush.bf16.msra.mxu2 %v5169_v11 }
  0x5c   : > { %656 = vmatpush.bf16.msra.mxu0 %v5152_v12 }
  0x5d   : > { %773 = vmatpush.bf16.msra.mxu1 %v5160_v13  ;;  %5193 = vmatpush.bf16.msra.mxu3 %v5160_v13 }
  0x5e   : > { %890 = vmatpush.bf16.msra.mxu2 %v5168_v14 }
  0x60   : > { %657 = vmatpush.bf16.msra.mxu0 %v5151_v15 }
  0x61   : > { %774 = vmatpush.bf16.msra.mxu1 %v5159_v16  ;;  %5194 = vmatpush.bf16.msra.mxu3 %v5159_v16 }
  0x62   : > { %891 = vmatpush.bf16.msra.mxu2 %v5167_v17 }
  0x64   : > { %658 = vmatpush.bf16.msra.mxu0 %v5150_v18 }
  0x65   : > { %775 = vmatpush.bf16.msra.mxu1 %v5158_v19  ;;  %5195 = vmatpush.bf16.msra.mxu3 %v5158_v19 }
  0x66   : > { %892 = vmatpush.bf16.msra.mxu2 %v5166_v20 }
  0x68   : > { %659 = vmatpush.bf16.msra.mxu0 %v5149_v21 }
  0x69   : > { %776 = vmatpush.bf16.msra.mxu1 %v5157_v22  ;;  %5196 = vmatpush.bf16.msra.mxu3 %v5157_v22 }
  0x6a   : > { %893 = vmatpush.bf16.msra.mxu2 %v5165_v23 }
  0x6b   : > { %660 = vmatmul.bf16.vlgmr.msra.gmra.mxu0 %v5141_v24 }
  0x6c   : > { %777 = vmatmul.bf16.vlgmr.msra.gmra.mxu1 %v5141_v24  ;;  %807 = vmatmul.bf16.vlgmr.msra.gmra.mxu3 %v5147_v25 }
  0x6d   : > { %894 = vmatmul.bf16.vlgmr.msra.gmra.mxu2 %v5141_v24 }
  0x7b   : > { %665 = vmatmul.bf16.gmra.mxu0 %v5142_v26 }
  0x7c   : > { %782 = vmatmul.bf16.gmra.mxu1 %v5142_v26  ;;  %812 = vmatmul.bf16.gmra.mxu3 %v5148_v27 }
  0x7d   : > { %899 = vmatmul.bf16.gmra.mxu2 %v5142_v26 }
  0x8b   : > { %670 = vmatmul.bf16.gmra.mxu0 %v5143_v28 }
  0x8c   : > { %787 = vmatmul.bf16.gmra.mxu1 %v5143_v28 }
  0x8d   : > { %904 = vmatmul.bf16.gmra.mxu2 %v5143_v28 }
  0x9b   : > { %675 = vmatmul.bf16.gmra.mxu0 %v5144_v29 }
  0x9c   : > { %792 = vmatmul.bf16.gmra.mxu1 %v5144_v29 }
  0x9d   : > { %909 = vmatmul.bf16.gmra.mxu2 %v5144_v29 }
  0xab   : > { %680 = vmatmul.bf16.gmra.mxu0 %v5145_v30 }
  0xac   : > { %797 = vmatmul.bf16.gmra.mxu1 %v5145_v30 }
  0xad   : > { %914 = vmatmul.bf16.gmra.mxu2 %v5145_v30 }
  0xbb   : > { %685 = vmatmul.bf16.gmra.mxu0 %v5146_v31 }
  0xbc   : > { %802 = vmatmul.bf16.gmra.mxu1 %v5146_v31 }
  0xbd   : > { %919 = vmatmul.bf16.gmra.mxu2 %v5146_v31 }
  0xcb   : > { %690 = vmatmul.bf16.gmra.mxu0 %v5147_v25 }
  0xcd   : > { %924 = vmatmul.bf16.gmra.mxu2 %v5147_v25 }
  0xdb   : > { %695 = vmatmul.bf16.gmra.mxu0 %v5148_v27 }
  0xdd   : > { %929 = vmatmul.bf16.gmra.mxu2 %v5148_v27 }
  0xe8   : > { %v661_v32 = vpop.f32.mrf.mxu0 }
  0xe9   : > { %v778_v33 = vpop.f32.mrf.mxu1  ;;  %v662_v44 = vadd.f32 %v6155_v36, %v661_v32  ;;  %v6206_v32 = vld [vmem:[%s7971_s6] ss:$0 sm:$0xff] }
  0xea   : > { %v779_v35 = vadd.f32 %v6149_v34, %v778_v33 }
  0xeb   : > { %v935_v50 = vpack.c.bf16 %v662_v44, %v662_v44 }
  0xec   : > { %v951_v41 = vpack.c.bf16 %v779_v35, %v779_v35 }
  0xed   : > { %v1001_v61 = vunpack.c.l.b16 %v935_v50 }
  0xee   : > { %v1006_v47 = vunpack.c.l.b16 %v951_v41 }
  0xef   : > { %v808_v37 = vpop.f32.mrf.mxu3 }
  0xf0   : > { %v6157_v38 = vpop.f32.mrf.mxu2  ;;  %v663_v39 = vpop.f32.mrf.mxu0  ;;  %v809_v43 = vadd.f32 %v6149_v34, %v808_v37 }
  0xf1   : > { %v780_v40 = vpop.f32.mrf.mxu1  ;;  %v664_v45 = vadd.f32 %v6155_v36, %v663_v39 }
  0xf2   : > { %v781_v42 = vadd.f32 %v6149_v34, %v780_v40  ;;  %v963_v49 = vpack.c.bf16 %v809_v43, %v809_v43 }
  0xf3   : > { %v936_v51 = vpack.c.bf16 %v664_v45, %v664_v45 }
  0xf4   : > { %v952_v46 = vpack.c.bf16 %v781_v42, %v781_v42  ;;  %v1187_v59 = vunpack.c.l.b16 %v963_v49 }
  0xf5   : > { %v1002_v62 = vunpack.c.l.b16 %v936_v51 }
  0xf6   : > { %v1007_v48 = vunpack.c.l.b16 %v952_v46 }
  0xf7   : > { %v810_v53 = vpop.f32.mrf.mxu3  ;;  %v6176_v3 = vpack.c.b16 %v1002_v62, %v1001_v61 }
  0xf8   : > { %v6163_v52 = vpack.c.b16 %v1007_v48, %v1006_v47  ;;  %v6165_v54 = vpop.f32.mrf.mxu2  ;;  %v811_v55 = vadd.f32 %v6149_v34, %v810_v53  ;;  %v666_v56 = vpop.f32.mrf.mxu0 }
  0xf9   : > { %v783_v57 = vpop.f32.mrf.mxu1  ;;  %v667_v63 = vadd.f32 %v6155_v36, %v666_v56 }
  0xfa   : > { %8019 = vst [vmem:[#allocation20_spill] sm:$0xff] %v6163_v52  ;;  %2429 = vrot.lane.b32.xlu1 %v6163_v52, %s5912_s17  ;;  %v1014_v58 = vsel %vm1009_vm0, %v6163_v52, 0  ;;  %v964_v60 = vpack.c.bf16 %v811_v55, %v811_v55  ;;  %v784_v1 = vadd.f32 %v6149_v34, %v783_v57 }
  0xfb   : > { %1023 = vmatpush.bf16.xpose.msrb.mxu3 %v1014_v58  ;;  %v937_v4 = vpack.c.bf16 %v667_v63, %v667_v63 }
  0xfc   : > { %v1188_v0 = vunpack.c.l.b16 %v964_v60  ;;  %v953_v9 = vpack.c.bf16 %v784_v1, %v784_v1 }
  0xfd   : > { %v1032_v13 = vunpack.c.l.b16 %v937_v4 }
  0xfe   : > { %v6174_v2 = vpack.c.b16 %v1188_v0, %v1187_v59  ;;  %v1037_v16 = vunpack.c.l.b16 %v953_v9 }
  0xff   : > { %v813_v5 = vpop.f32.mrf.mxu3 }
 0x100   : > { %8020 = vst [vmem:[#allocation21_spill] sm:$0xff] %v6174_v2  ;;  %v6178_v6 = vpop.f32.mrf.mxu2  ;;  %1811 = vrot.lane.b32.xlu0 %v6174_v2, %s5913_s19  ;;  %v668_v7 = vpop.f32.mrf.mxu0  ;;  %v814_v12 = vadd.f32 %v6149_v34, %v813_v5 }
 0x101   : > { %v785_v8 = vpop.f32.mrf.mxu1  ;;  %v669_v10 = vadd.f32 %v6155_v36, %v668_v7 }
 0x102   : > { %v786_v11 = vadd.f32 %v6149_v34, %v785_v8  ;;  %4967 = vmatmul.msk.bf16.vlgmr.msrb.gmra.mxu3 %vm1009_vm0, %v6176_v3  ;;  %2427 = vrot.lane.b32.xlu1 %v6176_v3, %s5912_s17  ;;  %v965_v19 = vpack.c.bf16 %v814_v12, %v814_v12 }
 0x103   : > { %v938_v14 = vpack.c.bf16 %v669_v10, %v669_v10 }
 0x104   : > { %v954_v15 = vpack.c.bf16 %v786_v11, %v786_v11  ;;  %v1217_v28 = vunpack.c.l.b16 %v965_v19 }
 0x105   : > { %v1033_v17 = vunpack.c.l.b16 %v938_v14 }
 0x106   : > { %v1038_v18 = vunpack.c.l.b16 %v954_v15 }
 0x107   : > { %v6189_v20 = vpack.c.b16 %v1033_v17, %v1032_v13  ;;  %v815_v22 = vpop.f32.mrf.mxu3 }
 0x108   : > { %v6191_v21 = vpack.c.b16 %v1038_v18, %v1037_v16  ;;  %v6193_v23 = vpop.f32.mrf.mxu2  ;;  %v816_v24 = vadd.f32 %v6149_v34, %v815_v22  ;;  %v671_v25 = vpop.f32.mrf.mxu0 }
 0x109   : > { %8021 = vst [vmem:[#allocation22_spill] sm:$0xff] %v6189_v20  ;;  %v788_v26 = vpop.f32.mrf.mxu1  ;;  %v672_v43 = vadd.f32 %v6155_v36, %v671_v25 }
 0x10a   : > { %1691 = vrot.lane.b32.xlu2 %v6191_v21, %s5913_s19  ;;  %v1044_v27 = vsel %vm1009_vm0, %v6191_v21, 0  ;;  %1689 = vrot.lane.b32.xlu1 %v6189_v20, %s5913_s19  ;;  %v966_v29 = vpack.c.bf16 %v816_v24, %v816_v24  ;;  %v789_v31 = vadd.f32 %v6149_v34, %v788_v26 }
 0x10b   : > { %1053 = vmatpush.bf16.xpose.msra.mxu3 %v1044_v27  ;;  %v939_v49 = vpack.c.bf16 %v672_v43, %v672_v43 }
 0x10c   : > { %v1218_v30 = vunpack.c.l.b16 %v966_v29  ;;  %v955_v40 = vpack.c.bf16 %v789_v31, %v789_v31 }
 0x10d   : > { %v1062_v61 = vunpack.c.l.b16 %v939_v49 }
 0x10e   : > { %v6208_v33 = vpack.c.b16 %v1218_v30, %v1217_v28  ;;  %v1067_v46 = vunpack.c.l.b16 %v955_v40 }
 0x110   : > { %8022 = vst [vmem:[#allocation23_spill] sm:$0xff] %v6208_v33  ;;  %v905_v35 = vpop.f32.mrf.mxu2  ;;  %v673_v37 = vpop.f32.mrf.mxu0 }
 0x111   : > { %v790_v39 = vpop.f32.mrf.mxu1  ;;  %v906_v42 = vadd.f32 %v6206_v32, %v905_v35  ;;  %v674_v44 = vadd.f32 %v6155_v36, %v673_v37 }
 0x112   : > { %v791_v41 = vadd.f32 %v6149_v34, %v790_v39  ;;  %1835 = vrot.lane.b32.xlu2 %v6208_v33, %s5913_s19  ;;  %4968 = vmatmul.msk.bf16.vlgmr.msra.gmra.mxu3 %vm1009_vm0, %v6189_v20 }
 0x113   : > { %v971_v48 = vpack.c.bf16 %v906_v42, %v906_v42  ;;  %v940_v50 = vpack.c.bf16 %v674_v44, %v674_v44 }
 0x114   : > { %v956_v45 = vpack.c.bf16 %v791_v41, %v791_v41 }
 0x115   : > { %v1496_v59 = vunpack.c.l.b16 %v971_v48  ;;  %v1063_v62 = vunpack.c.l.b16 %v940_v50 }
 0x116   : > { %v1068_v47 = vunpack.c.l.b16 %v956_v45 }
 0x117   : > { %v6229_v5 = vpack.c.b16 %v1063_v62, %v1062_v61 }
 0x118   : > { %v6218_v51 = vpack.c.b16 %v1068_v47, %v1067_v46  ;;  %v907_v53 = vpop.f32.mrf.mxu2  ;;  %v676_v56 = vpop.f32.mrf.mxu0 }
 0x119   : > { %v908_v55 = vadd.f32 %v6206_v32, %v907_v53  ;;  %v793_v57 = vpop.f32.mrf.mxu1  ;;  %v677_v63 = vadd.f32 %v6155_v36, %v676_v56  ;;  %8025 = vst [vmem:[#allocation26_spill] sm:$0xff] %v6229_v5 }
 0x11a   : > { %8023 = vst [vmem:[#allocation24_spill] sm:$0xff] %v6218_v51  ;;  %1715 = vrot.lane.b32.xlu2 %v6218_v51, %s5913_s19  ;;  %v1074_v58 = vsel %vm1009_vm0, %v6218_v51, 0  ;;  %v794_v1 = vadd.f32 %v6149_v34, %v793_v57 }
 0x11b   : > { %v972_v60 = vpack.c.bf16 %v908_v55, %v908_v55  ;;  %1083 = vmatpush.bf16.xpose.msrb.mxu3 %v1074_v58  ;;  %v941_v7 = vpack.c.bf16 %v677_v63, %v677_v63 }
 0x11c   : > { %v957_v11 = vpack.c.bf16 %v794_v1, %v794_v1 }
 0x11d   : > { %v1497_v0 = vunpack.c.l.b16 %v972_v60  ;;  %v1092_v15 = vunpack.c.l.b16 %v941_v7 }
 0x11e   : > { %v1097_v18 = vunpack.c.l.b16 %v957_v11 }
 0x11f   : > { %v6227_v4 = vpack.c.b16 %v1497_v0, %v1496_v59 }
 0x120   : > { %v910_v8 = vpop.f32.mrf.mxu2  ;;  %v678_v9 = vpop.f32.mrf.mxu0 }
 0x121   : > { %8024 = vst [vmem:[#allocation25_spill] sm:$0xff] %v6227_v4  ;;  %v795_v10 = vpop.f32.mrf.mxu1  ;;  %2104 = vrot.lane.b32.xlu1 %v6227_v4, %s5913_s19  ;;  %1510 = vmatpush.bf16.msrb.mxu2 %v6227_v4  ;;  %v679_v12 = vadd.f32 %v6155_v36, %v678_v9  ;;  %v911_v14 = vadd.f32 %v6206_v32, %v910_v8 }
 0x122   : > { %v796_v13 = vadd.f32 %v6149_v34, %v795_v10  ;;  %4969 = vmatmul.msk.bf16.vlgmr.msrb.gmra.mxu3 %vm1009_vm0, %v6229_v5  ;;  %1713 = vrot.lane.b32.xlu2 %v6229_v5, %s5913_s19 }
 0x123   : > { %v942_v16 = vpack.c.bf16 %v679_v12, %v679_v12  ;;  %v973_v24 = vpack.c.bf16 %v911_v14, %v911_v14 }
 0x124   : > { %v958_v17 = vpack.c.bf16 %v796_v13, %v796_v13 }
 0x125   : > { %v1093_v19 = vunpack.c.l.b16 %v942_v16  ;;  %v1524_v35 = vunpack.c.l.b16 %v973_v24 }
 0x126   : > { %v1098_v22 = vunpack.c.l.b16 %v958_v17 }
 0x127   : > { %v6241_v25 = vpack.c.b16 %v1093_v19, %v1092_v15 }
 0x128   : > { %v6243_v26 = vpack.c.b16 %v1098_v22, %v1097_v18  ;;  %v912_v27 = vpop.f32.mrf.mxu2  ;;  %v681_v29 = vpop.f32.mrf.mxu0 }
 0x129   : > { %8026 = vst [vmem:[#allocation27_spill] sm:$0xff] %v6241_v25  ;;  %v913_v28 = vadd.f32 %v6206_v32, %v912_v27  ;;  %v798_v30 = vpop.f32.mrf.mxu1  ;;  %v682_v47 = vadd.f32 %v6155_v36, %v681_v29 }
 0x12a   : > { %8027 = vst [vmem:[#allocation28_spill] sm:$0xff] %v6243_v26  ;;  %v1104_v31 = vsel %vm1009_vm0, %v6243_v26, 0  ;;  %1739 = vrot.lane.b32.xlu1 %v6243_v26, %s5913_s19  ;;  %1737 = vrot.lane.b32.xlu2 %v6241_v25, %s5913_s19  ;;  %v799_v40 = vadd.f32 %v6149_v34, %v798_v30 }
 0x12b   : > { %v974_v37 = vpack.c.bf16 %v913_v28, %v913_v28  ;;  %1113 = vmatpush.bf16.xpose.msra.mxu3 %v1104_v31  ;;  %v943_v55 = vpack.c.bf16 %v682_v47, %v682_v47  ;;  %v896_v47 = vadd.f32 %v6206_v32, %v6157_v38 }
 0x12c   : > { %v959_v45 = vpack.c.bf16 %v799_v40, %v799_v40 }
 0x12d   : > { %v1525_v39 = vunpack.c.l.b16 %v974_v37  ;;  %v1122_v62 = vunpack.c.l.b16 %v943_v55 }
 0x12e   : > { %v1127_v50 = vunpack.c.l.b16 %v959_v45 }
 0x12f   : > { %v6253_v41 = vpack.c.b16 %v1525_v39, %v1524_v35  ;;  %v1224_v39 = vsel %vm1009_vm0, %v6208_v33, 0 }
 0x130   : > { %v6255_v42 = vpop.f32.mrf.mxu2  ;;  %v683_v43 = vpop.f32.mrf.mxu0 }
 0x131   : > { %8028 = vst [vmem:[#allocation29_spill] sm:$0xff] %v6253_v41  ;;  %v800_v44 = vpop.f32.mrf.mxu1  ;;  %2129 = vrot.lane.b32.xlu0 %v6253_v41, %s5913_s19  ;;  %1538 = vmatpush.bf16.msra.mxu2 %v6253_v41  ;;  %v684_v48 = vadd.f32 %v6155_v36, %v683_v43 }
 0x132   : > { %v801_v46 = vadd.f32 %v6149_v34, %v800_v44  ;;  %4970 = vmatmul.msk.bf16.vlgmr.msra.gmra.mxu3 %vm1009_vm0, %v6241_v25 }
 0x133   : > { %v944_v56 = vpack.c.bf16 %v684_v48, %v684_v48  ;;  %v898_v48 = vadd.f32 %v6206_v32, %v6165_v54 }
 0x134   : > { %v960_v49 = vpack.c.bf16 %v801_v46, %v801_v46 }
 0x135   : > { %v1123_v63 = vunpack.c.l.b16 %v944_v56  ;;  %v967_v56 = vpack.c.bf16 %v896_v47, %v896_v47 }
 0x136   : > { %v1128_v53 = vunpack.c.l.b16 %v960_v49 }
 0x137   : > { %v6273_v7 = vpack.c.b16 %v1123_v63, %v1122_v62 }
 0x138   : > { %v6265_v57 = vpack.c.b16 %v1128_v53, %v1127_v50  ;;  %v6267_v58 = vpop.f32.mrf.mxu2  ;;  %v686_v59 = vpop.f32.mrf.mxu0 }
 0x139   : > { %v803_v60 = vpop.f32.mrf.mxu1  ;;  %v687_v0 = vadd.f32 %v6155_v36, %v686_v59  ;;  %v968_v59 = vpack.c.bf16 %v898_v48, %v898_v48 }
 0x13a   : > { %8029 = vst [vmem:[#allocation30_spill] sm:$0xff] %v6265_v57  ;;  %v1134_v61 = vsel %vm1009_vm0, %v6265_v57, 0  ;;  %v804_v1 = vadd.f32 %v6149_v34, %v803_v60 }
 0x13b   : > { %1143 = vmatpush.bf16.xpose.msrb.mxu3 %v1134_v61  ;;  %v945_v8 = vpack.c.bf16 %v687_v0, %v687_v0  ;;  %v1440_v0 = vunpack.c.l.b16 %v967_v56 }
 0x13c   : > { %v961_v12 = vpack.c.bf16 %v804_v1, %v804_v1  ;;  %v1441_v1 = vunpack.c.l.b16 %v968_v59 }
 0x13d   : > { %v1152_v15 = vunpack.c.l.b16 %v945_v8 }
 0x13e   : > { %v1157_v18 = vunpack.c.l.b16 %v961_v12  ;;  %v6314_v12 = vpack.c.b16 %v1441_v1, %v1440_v0 }
 0x140   : > { %v6275_v9 = vpop.f32.mrf.mxu2  ;;  %v688_v10 = vpop.f32.mrf.mxu0  ;;  %8030 = vst [vmem:[#allocation31_spill] sm:$0xff] %v6314_v12 }
 0x141   : > { %v805_v11 = vpop.f32.mrf.mxu1  ;;  %v689_v13 = vadd.f32 %v6155_v36, %v688_v10 }
 0x142   : > { %v806_v14 = vadd.f32 %v6149_v34, %v805_v11  ;;  %4971 = vmatmul.msk.bf16.vlgmr.msrb.gmra.mxu3 %vm1009_vm0, %v6273_v7  ;;  %v1194_v34 = vsel %vm1009_vm0, %v6174_v2, 0 }
 0x143   : > { %v946_v16 = vpack.c.bf16 %v689_v13, %v689_v13 }
 0x144   : > { %v962_v17 = vpack.c.bf16 %v806_v14, %v806_v14 }
 0x145   : > { %v1153_v19 = vunpack.c.l.b16 %v946_v16 }
 0x146   : > { %v1158_v22 = vunpack.c.l.b16 %v962_v17 }
 0x147   : > { %v6281_v24 = vpack.c.b16 %v1153_v19, %v1152_v15  ;;  %v901_v19 = vadd.f32 %v6206_v32, %v6178_v6 }
 0x148   : > { %v6283_v27 = vpack.c.b16 %v1158_v22, %v1157_v18  ;;  %v6285_v28 = vpop.f32.mrf.mxu2  ;;  %v691_v29 = vpop.f32.mrf.mxu0  ;;  %v903_v22 = vadd.f32 %v6206_v32, %v6193_v23 }
 0x149   : > { %1785 = vrot.lane.b32.xlu2 %v6281_v24, %s5913_s19  ;;  %v692_v31 = vadd.f32 %v6155_v36, %v691_v29 }
 0x14a   : > { %v1164_v30 = vsel %vm1009_vm0, %v6283_v27, 0  ;;  %1787 = vrot.lane.b32.xlu0 %v6283_v27, %s5913_s19 }
 0x14b   : > { %1173 = vmatpush.bf16.xpose.msra.mxu3 %v1164_v30  ;;  %v947_v35 = vpack.c.bf16 %v692_v31, %v692_v31  ;;  %v969_v31 = vpack.c.bf16 %v901_v19, %v901_v19 }
 0x14d   : > { %v1182_v45 = vunpack.c.l.b16 %v947_v35  ;;  %v970_v35 = vpack.c.bf16 %v903_v22, %v903_v22  ;;  %v1468_v6 = vunpack.c.l.b16 %v969_v31 }
 0x150   : > { %v925_v37 = vpop.f32.mrf.mxu2  ;;  %v693_v40 = vpop.f32.mrf.mxu0 }
 0x151   : > { %v694_v43 = vadd.f32 %v6155_v36, %v693_v40  ;;  %v926_v44 = vadd.f32 %v6206_v32, %v925_v37 }
 0x152   : > { %4972 = vmatmul.msk.bf16.vlgmr.msra.gmra.mxu3 %vm1009_vm0, %v6281_v24 }
 0x153   : > { %1203 = vmatpush.bf16.xpose.msrb.mxu3 %v1194_v34  ;;  %v948_v46 = vpack.c.bf16 %v694_v43, %v694_v43  ;;  %v979_v50 = vpack.c.bf16 %v926_v44, %v926_v44  ;;  %v1469_v44 = vunpack.c.l.b16 %v970_v35 }
 0x155   : > { %v1183_v49 = vunpack.c.l.b16 %v948_v46  ;;  %v1608_v62 = vunpack.c.l.b16 %v979_v50  ;;  %v6338_v46 = vpack.c.b16 %v1469_v44, %v1468_v6 }
 0x157   : > { %v6306_v53 = vpack.c.b16 %v1183_v49, %v1182_v45 }
 0x158   : > { %v927_v55 = vpop.f32.mrf.mxu2  ;;  %v696_v61 = vpop.f32.mrf.mxu0 }
 0x159   : > { %v928_v60 = vadd.f32 %v6206_v32, %v927_v55  ;;  %1809 = vrot.lane.b32.xlu2 %v6306_v53, %s5913_s19  ;;  %v697_v38 = vadd.f32 %v6155_v36, %v696_v61 }
 0x15b   : > { %1233 = vmatpush.bf16.xpose.msra.mxu3 %v1224_v39  ;;  %v980_v63 = vpack.c.bf16 %v928_v60, %v928_v60  ;;  %v949_v10 = vpack.c.bf16 %v697_v38, %v697_v38 }
 0x15d   : > { %v1609_v54 = vunpack.c.l.b16 %v980_v63  ;;  %v1212_v16 = vunpack.c.l.b16 %v949_v10 }
 0x15f   : > { %v6312_v8 = vpack.c.b16 %v1609_v54, %v1608_v62 }
 0x160   : > { %v930_v11 = vpop.f32.mrf.mxu2  ;;  %v698_v13 = vpop.f32.mrf.mxu0 }
 0x161   : > { %v699_v14 = vadd.f32 %v6155_v36, %v698_v13  ;;  %2204 = vrot.lane.b32.xlu2 %v6312_v8, %s5913_s19  ;;  %v931_v15 = vadd.f32 %v6206_v32, %v930_v11 }
 0x162   : > { %4973 = vmatmul.msk.bf16.vlgmr.msrb.gmra.mxu3 %vm1009_vm0, %v6306_v53 }
 0x163   : > { %1454 = vmatpush.bf16.msrb.mxu3 %v6314_v12  ;;  %v950_v18 = vpack.c.bf16 %v699_v14, %v699_v14  ;;  %v981_v30 = vpack.c.bf16 %v931_v15, %v931_v15 }
 0x164   : > { %v6323_v17 = vpop.permute.xlu2 %1691 }
 0x165   : > { %v1213_v29 = vunpack.c.l.b16 %v950_v18  ;;  %v1636_v39 = vunpack.c.l.b16 %v981_v30 }
 0x167   : > { %v6329_v36 = vpack.c.b16 %v1213_v29, %v1212_v16 }
 0x168   : > { %v932_v34 = vpop.f32.mrf.mxu2 }
 0x169   : > { %8031 = vst [vmem:[#allocation32_spill] sm:$0xff] %v6329_v36  ;;  %v933_v37 = vadd.f32 %v6206_v32, %v932_v34  ;;  %1833 = vrot.lane.b32.xlu0 %v6329_v36, %s5913_s19 }
 0x16b   : > { %v982_v40 = vpack.c.bf16 %v933_v37, %v933_v37 }
 0x16c   : > { %v6334_v43 = vpop.permute.xlu2 %1835  ;;  %v6348_v55 = vpop.permute.xlu1 %2429 }
 0x16d   : > { %v1637_v45 = vunpack.c.l.b16 %v982_v40 }
 0x16f   : > { %v6336_v23 = vpack.c.b16 %v1637_v45, %v1636_v39 }
 0x171   : > { %8032 = vst [vmem:[#allocation33_spill] sm:$0xff] %v6336_v23  ;;  %2229 = vrot.lane.b32.xlu2 %v6336_v23, %s5913_s19  ;;  %1650 = vmatpush.bf16.msrb.mxu1 %v6336_v23 }
 0x172   : > { %4974 = vmatmul.msk.bf16.vlgmr.msra.gmra.mxu3 %vm1009_vm0, %v6329_v36  ;;  %v1812_v47 = vpop.permute.xlu0 %1811 }
 0x173   : > { %1482 = vmatpush.bf16.msra.mxu3 %v6338_v46  ;;  %v1817_v48 = vsel %vm1009_vm0, %v1812_v47, 0 }
 0x174   : > { %v1716_v49 = vpop.permute.xlu2 %1715  ;;  %v6351_v59 = vpop.permute.xlu1 %2427 }
 0x175   : > { %v1721_v50 = vsel %vm1009_vm0, %v1716_v49, 0 }
 0x176   : > { %1730 = vmatpush.bf16.xpose.msrb.mxu0 %v1721_v50 }
 0x17c   : > { %v1714_v56 = vpop.permute.xlu2 %1713  ;;  %v6355_v61 = vpop.permute.xlu1 %1689 }
 0x17d   : > { %4985 = vmatmul.msk.bf16.vlgmr.msrb.gmra.mxu0 %vm1009_vm0, %v1714_v56 }
 0x17e   : > { %1826 = vmatpush.bf16.xpose.msra.mxu0 %v1817_v48 }
 0x184   : > { %v6366_v15 = vpop.permute.xlu2 %1737 }
 0x185   : > { %v6353_v60 = vpop.f32.mrf.mxu3 }
 0x186   : > { %v1241_v54 = vsel %vm1240_vm1, %v6353_v60, -inf }
 0x18d   : > { %v1027_v62 = vpop.f32.mrf.mxu3 }
 0x18e   : > { %v1244_v63 = vsel %vm1240_vm1, %v1027_v62, -inf }
 0x18f   : > { %1245 = vmax.xlane.f32.xlu1 %v1244_v63 }
 0x193   : > { %v2105_v38 = vpop.permute.xlu1 %2104 }
 0x194   : > { %2117 = vmatpush.bf16.msrb.mxu0 %v2105_v38 }
 0x195   : > { %v6358_v0 = vpop.f32.mrf.mxu3 }
 0x196   : > { %v1247_v1 = vsel %vm1240_vm1, %v6358_v0, -inf }
 0x197   : > { %1248 = vmax.xlane.f32.xlu0 %v1247_v1 }
 0x19a   : > { %1242 = vmax.xlane.f32.xlu2 %v1241_v54 }
 0x19c   : > { %v1740_v10 = vpop.permute.xlu1 %1739 }
 0x19d   : > { %v1057_v11 = vpop.f32.mrf.mxu3  ;;  %v1745_v13 = vsel %vm1009_vm0, %v1740_v10, 0 }
 0x19e   : > { %1754 = vmatpush.bf16.xpose.msra.mxu1 %v1745_v13  ;;  %v1250_v14 = vsel %vm1240_vm1, %v1057_v11, -inf }
 0x1a2   : > { %1251 = vmax.xlane.f32.xlu2 %v1250_v14 }
 0x1a3   : > { %v6372_v19 = vpop.permute.xlu2 %1785 }
 0x1a5   : > { %v6368_v16 = vpop.f32.mrf.mxu3 }
 0x1a6   : > { %v1253_v18 = vsel %vm1240_vm1, %v6368_v16, -inf }
 0x1a7   : > { %1254 = vmax.xlane.f32.xlu0 %v1253_v18 }
 0x1ad   : > { %v6374_v22 = vpop.f32.mrf.mxu3 }
 0x1ae   : > { %v1256_v29 = vsel %vm1240_vm1, %v6374_v22, -inf }
 0x1af   : > { %1257 = vmax.xlane.f32.xlu1 %v1256_v29 }
 0x1b3   : > { %v1810_v30 = vpop.permute.xlu2 %1809 }
 0x1b4   : > { %4989 = vmatmul.msk.bf16.vlgmr.msra.gmra.mxu0 %vm1009_vm0, %v1810_v30 }
 0x1b5   : > { %v6378_v34 = vpop.f32.mrf.mxu3 }
 0x1b6   : > { %v1259_v31 = vsel %vm1240_vm1, %v6378_v34, -inf }
 0x1b7   : > { %1260 = vmax.xlane.f32.xlu2 %v1259_v31 }
 0x1bb   : > { %v2205_v40 = vpop.permute.xlu2 %2204 }
 0x1bc   : > { %2217 = vmatpush.bf16.msra.mxu0 %v2205_v40 }
 0x1bd   : > { %v6383_v35 = vpop.f32.mrf.mxu3 }
 0x1be   : > { %v1262_v37 = vsel %vm1240_vm1, %v6383_v35, -inf }
 0x1bf   : > { %1263 = vmax.xlane.f32.xlu0 %v1262_v37 }
 0x1c5   : > { %v6387_v39 = vpop.f32.mrf.mxu3 }
 0x1cb   : > { %v6411_v14 = vpop.permute.xlu2 %2229 }
 0x1cd   : > { %v6389_v6 = vpop.f32.mrf.mxu3 }
 0x1d5   : > { %v6391_v44 = vpop.f32.mrf.mxu3 }
 0x1d6   : > { %v1271_v45 = vsel %vm1240_vm1, %v6391_v44, -inf }
 0x1d7   : > { %1272 = vmax.xlane.f32.xlu1 %v1271_v45 }
 0x1dd   : > { %v6395_v47 = vpop.f32.mrf.mxu3 }
 0x1de   : > { %v1274_v48 = vsel %vm1240_vm1, %v6395_v47, -inf }
 0x1df   : > { %1275 = vmax.xlane.f32.xlu0 %v1274_v48  ;;  %v6424_v48 = vpop.permute.xlu0 %2129 }
 0x1e5   : > { %v6399_v49 = vpop.f32.mrf.mxu3 }
 0x1ed   : > { %v6401_v50 = vpop.f32.mrf.mxu3 }
 0x1f5   : > { %v6403_v56 = vpop.f32.mrf.mxu3 }
 0x1f6   : > { %v1283_v63 = vsel %vm1240_vm1, %v6403_v56, -inf }
 0x1f7   : > { %1284 = vmax.xlane.f32.xlu0 %v1283_v63 }
 0x1fa   : > { %v6413_v18 = vpop.f32.mrf.mxu0 }
 0x1fd   : > { %v6407_v38 = vpop.f32.mrf.mxu3 }
 0x1fe   : > { %v1286_v1 = vsel %vm1240_vm1, %v6407_v38, -inf }
 0x1ff   : > { %1287 = vmax.xlane.f32.xlu0 %v1286_v1 }
 0x202   : > { %v1246_v54 = vpop.xlane.xlu1 %1245  ;;  %v6420_v45 = vpop.f32.mrf.mxu0 }
 0x203   : > { %v1290_v10 = vsub.f32 %v1027_v62, %v1246_v54  ;;  %v1872_v1 = vsel %vm1240_vm1, %v6420_v45, -inf }
 0x205   : > { %v1307_v13 = vmul.f32 1.442695, %v1290_v10 }
 0x207   : > { %5309 = vpow2.f32 %v1307_v13 }
 0x20d   : > { %v6415_v29 = vpop.eup %5309  ;;  %v1243_v30 = vpop.xlane.xlu2 %1242 }
 0x20e   : > { %v1289_v31 = vsub.f32 %v6353_v60, %v1243_v30  ;;  %v1340_v37 = vsel %vm1240_vm1, %v6415_v29, 0.0  ;;  %v6434_v30 = vpop.permute.xlu0 %1787 }
 0x20f   : > { %1341 = vadd.xlane.f32.xlu1 %v1340_v37 }
 0x210   : > { %v1305_v40 = vmul.f32 1.442695, %v1289_v31 }
 0x212   : > { %5311 = vpow2.f32 %v1305_v40 }
 0x213   : > { %2477 = vrot.lane.b32.xlu0 %v6218_v51, %s5912_s17  ;;  %v1869_v51 = vsel %vm1240_vm1, %v6413_v18, -inf }
 0x215   : > { %v1252_v62 = vpop.xlane.xlu2 %1251 }
 0x216   : > { %v1292_v63 = vsub.f32 %v1057_v11, %v1252_v62  ;;  %v6438_v11 = vpop.permute.xlu0 %1833 }
 0x217   : > { %1873 = vmax.xlane.f32.xlu1 %v1872_v1 }
 0x218   : > { %v6428_v60 = vpop.eup %5311  ;;  %v1311_v54 = vmul.f32 1.442695, %v1292_v63 }
 0x219   : > { %v1337_v10 = vsel %vm1240_vm1, %v6428_v60, 0.0 }
 0x21a   : > { %5313 = vpow2.f32 %v1311_v54  ;;  %1338 = vadd.xlane.f32.xlu2 %v1337_v10 }
 0x21e   : > { %v1249_v40 = vpop.xlane.xlu0 %1248 }
 0x21f   : > { %v1291_v1 = vsub.f32 %v6358_v0, %v1249_v40 }
 0x220   : > { %v6432_v13 = vpop.eup %5313 }
 0x221   : > { %v1346_v31 = vsel %vm1240_vm1, %v6432_v13, 0.0  ;;  %v1309_v23 = vmul.f32 1.442695, %v1291_v1 }
 0x222   : > { %1347 = vadd.xlane.f32.xlu2 %v1346_v31  ;;  %v1258_v37 = vpop.xlane.xlu1 %1257  ;;  %v1268_v31 = vsel %vm1240_vm1, %v6389_v6, -inf }
 0x223   : > { %v1294_v62 = vsub.f32 %v6374_v22, %v1258_v37 }
 0x225   : > { %v1315_v10 = vmul.f32 1.442695, %v1294_v62 }
 0x226   : > { %v6454_v0 = vpop.xlane.xlu0 %1254 }
 0x227   : > { %5315 = vpow2.f32 %v1315_v10 }
 0x228   : > { %5317 = vpow2.f32 %v1309_v23 }
 0x22d   : > { %v6450_v22 = vpop.eup %5315 }
 0x22e   : > { %v6452_v37 = vpop.eup %5317  ;;  %v1352_v40 = vsel %vm1240_vm1, %v6450_v22, 0.0 }
 0x22f   : > { %v1343_v23 = vsel %vm1240_vm1, %v6452_v37, 0.0 }
 0x231   : > { %v6441_v63 = vpop.f32.mrf.mxu0 }
 0x232   : > { %v1893_v54 = vsel %vm1240_vm1, %v6441_v63, -inf  ;;  %v1264_v1 = vpop.xlane.xlu0 %1263 }
 0x233   : > { %1894 = vmax.xlane.f32.xlu2 %v1893_v54 }
 0x239   : > { %v6460_v62 = vpop.f32.mrf.mxu0 }
 0x23a   : > { %v1896_v10 = vsel %vm1240_vm1, %v6460_v62, -inf }
 0x23b   : > { %1269 = vmax.xlane.f32.xlu2 %v1268_v31 }
 0x23d   : > { %1870 = vmax.xlane.f32.xlu0 %v1869_v51 }
 0x243   : > { %1353 = vadd.xlane.f32.xlu2 %v1352_v40 }
 0x245   : > { %1344 = vadd.xlane.f32.xlu0 %v1343_v23 }
 0x24a   : > { %v1273_v54 = vpop.xlane.xlu1 %1272 }
 0x24b   : > { %v1299_v51 = vsub.f32 %v6391_v44, %v1273_v54 }
 0x24d   : > { %v1325_v31 = vmul.f32 1.442695, %v1299_v51  ;;  %1897 = vmax.xlane.f32.xlu0 %v1896_v10 }
 0x24f   : > { %5319 = vpow2.f32 %v1325_v31 }
 0x252   : > { %v1276_v41 = vpop.xlane.xlu0 %1275 }
 0x253   : > { %v1300_v12 = vsub.f32 %v6395_v47, %v1276_v41 }
 0x255   : > { %v6466_v40 = vpop.eup %5319  ;;  %v1327_v4 = vmul.f32 1.442695, %v1300_v12 }
 0x256   : > { %v1367_v23 = vsel %vm1240_vm1, %v6466_v40, 0.0 }
 0x257   : > { %5321 = vpow2.f32 %v1327_v4  ;;  %1368 = vadd.xlane.f32.xlu1 %v1367_v23 }
 0x25b   : > { %2499 = vrot.lane.b32.xlu2 %v6241_v25, %s5912_s17 }
 0x25d   : > { %v6472_v44 = vpop.eup %5321 }
 0x25e   : > { %v1370_v54 = vsel %vm1240_vm1, %v6472_v44, 0.0 }
 0x25f   : > { %1371 = vadd.xlane.f32.xlu0 %v1370_v54  ;;  %v1296_v54 = vsub.f32 %v6383_v35, %v1264_v1 }
 0x26a   : > { %v1285_v51 = vpop.xlane.xlu0 %1284 }
 0x26b   : > { %v1303_v41 = vsub.f32 %v6403_v56, %v1285_v51  ;;  %v1319_v51 = vmul.f32 1.442695, %v1296_v54  ;;  %v923_v54 = vadd.f32 %v6206_v32, %v6285_v28  ;;  %v1293_v28 = vsub.f32 %v6368_v16, %v6454_v0 }
 0x26d   : > { %v1333_v47 = vmul.f32 1.442695, %v1303_v41  ;;  %v1277_v41 = vsel %vm1240_vm1, %v6399_v49, -inf }
 0x26f   : > { %5323 = vpow2.f32 %v1333_v47  ;;  %v6495_v47 = vpop.xlane.xlu2 %1260 }
 0x272   : > { %v1288_v12 = vpop.xlane.xlu0 %1287 }
 0x273   : > { %v1304_v10 = vsub.f32 %v6407_v38, %v1288_v12  ;;  %2475 = vrot.lane.b32.xlu0 %v6229_v5, %s5912_s17 }
 0x275   : > { %v6480_v4 = vpop.eup %5323  ;;  %v1335_v31 = vmul.f32 1.442695, %v1304_v10 }
 0x276   : > { %v1379_v23 = vsel %vm1240_vm1, %v6480_v4, 0.0 }
 0x277   : > { %5325 = vpow2.f32 %v1335_v31  ;;  %1380 = vadd.xlane.f32.xlu1 %v1379_v23  ;;  %v921_v23 = vadd.f32 %v6206_v32, %v6275_v9 }
 0x278   : > { %5327 = vpow2.f32 %v1319_v51 }
 0x27b   : > { %2451 = vrot.lane.b32.xlu0 %v6189_v20, %s5912_s17 }
 0x27d   : > { %v6487_v56 = vpop.eup %5325 }
 0x27e   : > { %v1382_v38 = vsel %vm1240_vm1, %v6487_v56, 0.0  ;;  %v6497_v1 = vpop.eup %5327 }
 0x27f   : > { %1383 = vadd.xlane.f32.xlu1 %v1382_v38  ;;  %v1358_v12 = vsel %vm1240_vm1, %v6497_v1, 0.0 }
 0x282   : > { %v1342_v35 = vpop.xlane.xlu1 %1341 }
 0x283   : > { %2525 = vrot.lane.b32.xlu0 %v6265_v57, %s5912_s17  ;;  %5329 = vrcp.f32 %v1342_v35  ;;  %v978_v35 = vpack.c.bf16 %v923_v54, %v923_v54 }
 0x284   : > { %1278 = vmax.xlane.f32.xlu2 %v1277_v41  ;;  %v977_v41 = vpack.c.bf16 %v921_v23, %v921_v23 }
 0x285   : > { %v1581_v57 = vunpack.c.l.b16 %v978_v35  ;;  %v1265_v35 = vsel %vm1240_vm1, %v6387_v39, -inf }
 0x286   : > { %v1580_v20 = vunpack.c.l.b16 %v977_v41 }
 0x288   : > { %v6511_v52 = vpack.c.b16 %v1581_v57, %v1580_v20 }
 0x289   : > { %v5330_v31 = vpop.eup %5329 }
 0x28a   : > { %v1402_v38 = vmul.f32 %v5330_v31, %v6415_v29  ;;  %v6519_v29 = vpop.permute.xlu0 %2477 }
 0x28b   : > { %2501 = vrot.lane.b32.xlu0 %v6243_v26, %s5912_s17 }
 0x28c   : > { %1359 = vadd.xlane.f32.xlu2 %v1358_v12  ;;  %v1418_v25 = vpack.c.bf16 %v1402_v38, %v1402_v38 }
 0x28d   : > { %v1339_v10 = vpop.xlane.xlu2 %1338 }
 0x28e   : > { %5331 = vrcp.f32 %v1339_v10  ;;  %v1436_v12 = vunpack.c.l.b16 %v1418_v25 }
 0x294   : > { %v5332_v51 = vpop.eup %5331 }
 0x295   : > { %v1401_v26 = vmul.f32 %v5332_v51, %v6428_v60  ;;  %v1348_v60 = vpop.xlane.xlu2 %1347 }
 0x297   : > { %v1417_v5 = vpack.c.bf16 %v1401_v26, %v1401_v26  ;;  %v1313_v26 = vmul.f32 1.442695, %v1293_v28 }
 0x298   : > { %2453 = vrot.lane.b32.xlu1 %v6191_v21, %s5912_s17 }
 0x299   : > { %v1435_v10 = vunpack.c.l.b16 %v1417_v5  ;;  %5333 = vpow2.f32 %v1313_v26 }
 0x29a   : > { %5335 = vrcp.f32 %v1348_v60 }
 0x29b   : > { %v1437_v9 = vpack.c.b16 %v1436_v12, %v1435_v10  ;;  %v6530_v12 = vpop.xlane.xlu1 %1873 }
 0x29d   : > { %4975 = vmatmul.msk.bf16.vlgmr.msrb.gmra.mxu3 %vm1240_vm1, %v1437_v9 }
 0x29e   : > { %1594 = vmatpush.bf16.msrb.mxu3 %v6511_v52 }
 0x29f   : > { %v6521_v5 = vpop.eup %5333 }
 0x2a0   : > { %v1349_v20 = vsel %vm1240_vm1, %v6521_v5, 0.0  ;;  %v5336_v31 = vpop.eup %5335 }
 0x2a1   : > { %v1404_v16 = vmul.f32 %v5336_v31, %v6432_v13 }
 0x2a3   : > { %v1420_v54 = vpack.c.bf16 %v1404_v16, %v1404_v16 }
 0x2a4   : > { %2597 = vrot.lane.b32.xlu2 %v6208_v33, %s5912_s17 }
 0x2a5   : > { %v1464_v9 = vunpack.c.l.b16 %v1420_v54 }
 0x2a6   : > { %v1895_v41 = vpop.xlane.xlu2 %1894 }
 0x2a7   : > { %v1917_v28 = vsub.f32 %v6441_v63, %v1895_v41 }
 0x2a9   : > { %v1945_v60 = vmul.f32 1.442695, %v1917_v28  ;;  %v1793_v28 = vsel %vm1009_vm0, %v6434_v30, 0 }
 0x2b0   : > { %v1871_v25 = vpop.xlane.xlu0 %1870 }
 0x2b1   : > { %v1909_v0 = vsub.f32 %v6413_v18, %v1871_v25  ;;  %v1697_v18 = vsel %vm1009_vm0, %v6323_v17, 0 }
 0x2b3   : > { %v1929_v38 = vmul.f32 1.442695, %v1909_v0 }
 0x2b5   : > { %1350 = vadd.xlane.f32.xlu0 %v1349_v20 }
 0x2b8   : > { %v1345_v57 = vpop.xlane.xlu0 %1344 }
 0x2b9   : > { %5337 = vrcp.f32 %v1345_v57 }
 0x2ba   : > { %5339 = vpow2.f32 %v1929_v38 }
 0x2bb   : > { %5341 = vpow2.f32 %v1945_v60 }
 0x2bf   : > { %v5338_v23 = vpop.eup %5337 }
 0x2c0   : > { %v1403_v51 = vmul.f32 %v5338_v23, %v6452_v37  ;;  %v6538_v37 = vpop.eup %5339  ;;  %v6540_v25 = vpop.xlane.xlu0 %1897 }
 0x2c1   : > { %v1965_v63 = vsel %vm1240_vm1, %v6538_v37, 0.0  ;;  %v6544_v57 = vpop.eup %5341 }
 0x2c2   : > { %v1419_v10 = vpack.c.bf16 %v1403_v51, %v1403_v51  ;;  %1266 = vmax.xlane.f32.xlu1 %v1265_v35  ;;  %v1989_v16 = vsel %vm1240_vm1, %v6544_v57, 0.0 }
 0x2c4   : > { %v1463_v13 = vunpack.c.l.b16 %v1419_v10 }
 0x2c6   : > { %v1465_v26 = vpack.c.b16 %v1464_v9, %v1463_v13  ;;  %v1295_v9 = vsub.f32 %v6378_v34, %v6495_v47 }
 0x2c8   : > { %4976 = vmatmul.msk.bf16.vlgmr.msra.gmra.mxu3 %vm1240_vm1, %v1465_v26 }
 0x2c9   : > { %1706 = vmatpush.bf16.xpose.msra.mxu3 %v1697_v18  ;;  %2571 = vrot.lane.b32.xlu0 %v6306_v53, %s5912_s17 }
 0x2ca   : > { %v1369_v20 = vpop.xlane.xlu1 %1368 }
 0x2cb   : > { %5343 = vrcp.f32 %v1369_v20 }
 0x2cd   : > { %1966 = vadd.xlane.f32.xlu2 %v1965_v63 }
 0x2d1   : > { %v5344_v31 = vpop.eup %5343 }
 0x2d2   : > { %v1372_v17 = vpop.xlane.xlu0 %1371  ;;  %v1411_v0 = vmul.f32 %v5344_v31, %v6466_v40  ;;  %v1317_v40 = vmul.f32 1.442695, %v1295_v9 }
 0x2d3   : > { %5345 = vrcp.f32 %v1372_v17 }
 0x2d4   : > { %v1427_v54 = vpack.c.bf16 %v1411_v0, %v1411_v0  ;;  %5347 = vpow2.f32 %v1317_v40  ;;  %v1841_v0 = vsel %vm1009_vm0, %v6334_v43, 0  ;;  %v1270_v43 = vpop.xlane.xlu2 %1269 }
 0x2d5   : > { %1990 = vadd.xlane.f32.xlu2 %v1989_v16 }
 0x2d6   : > { %v1575_v41 = vunpack.c.l.b16 %v1427_v54 }
 0x2d9   : > { %v5346_v23 = vpop.eup %5345 }
 0x2da   : > { %v1412_v38 = vmul.f32 %v5346_v23, %v6472_v44  ;;  %v6561_v13 = vpop.eup %5347 }
 0x2db   : > { %2523 = vrot.lane.b32.xlu1 %v6273_v7, %s5912_s17  ;;  %v1355_v34 = vsel %vm1240_vm1, %v6561_v13, 0.0 }
 0x2dc   : > { %v1428_v51 = vpack.c.bf16 %v1412_v38, %v1412_v38  ;;  %v1354_v54 = vpop.xlane.xlu2 %1353 }
 0x2de   : > { %v1576_v35 = vunpack.c.l.b16 %v1428_v51  ;;  %v918_v51 = vadd.f32 %v6206_v32, %v6267_v58 }
 0x2e0   : > { %v1577_v10 = vpack.c.b16 %v1576_v35, %v1575_v41  ;;  %v976_v9 = vpack.c.bf16 %v918_v51, %v918_v51 }
 0x2e2   : > { %4980 = vmatmul.msk.bf16.vlgmr.msrb.gmra.mxu3 %vm1240_vm1, %v1577_v10 }
 0x2e3   : > { %1802 = vmatpush.bf16.xpose.msrb.mxu3 %v1793_v28  ;;  %2573 = vrot.lane.b32.xlu1 %v6174_v2, %s5912_s17 }
 0x2ea   : > { %v1381_v44 = vpop.xlane.xlu1 %1380 }
 0x2eb   : > { %2549 = vrot.lane.b32.xlu1 %v6283_v27, %s5912_s17  ;;  %5349 = vrcp.f32 %v1381_v44 }
 0x2f1   : > { %v5350_v30 = vpop.eup %5349 }
 0x2f2   : > { %v1384_v26 = vpop.xlane.xlu1 %1383  ;;  %4984 = vmatmul.msk.bf16.vlgmr.msra.gmra.mxu3 %vm1009_vm0, %v6355_v61  ;;  %v1415_v47 = vmul.f32 %v5350_v30, %v6480_v4  ;;  %v6571_v61 = vpop.permute.xlu0 %2475 }
 0x2f3   : > { %5351 = vrcp.f32 %v1384_v26  ;;  %1356 = vadd.xlane.f32.xlu0 %v1355_v34  ;;  %v1553_v26 = vunpack.c.l.b16 %v976_v9 }
 0x2f4   : > { %v1431_v60 = vpack.c.bf16 %v1415_v47, %v1415_v47  ;;  %5353 = vrcp.f32 %v1354_v54  ;;  %v1910_v47 = vsub.f32 %v6420_v45, %v6530_v12 }
 0x2f6   : > { %v1631_v17 = vunpack.c.l.b16 %v1431_v60 }
 0x2f9   : > { %v5352_v18 = vpop.eup %5351 }
 0x2fa   : > { %v1416_v20 = vmul.f32 %v5352_v18, %v6487_v56  ;;  %v6576_v4 = vpop.permute.xlu0 %2451  ;;  %v1280_v56 = vsel %vm1240_vm1, %v6401_v50, -inf }
 0x2fc   : > { %v1432_v63 = vpack.c.bf16 %v1416_v20, %v1416_v20  ;;  %v1918_v20 = vsub.f32 %v6460_v62, %v6540_v25  ;;  %v6622_v62 = vpop.permute.xlu2 %2499 }
 0x2fe   : > { %v1632_v31 = vunpack.c.l.b16 %v1432_v63  ;;  %v1947_v45 = vmul.f32 1.442695, %v1918_v20 }
 0x300   : > { %v1633_v16 = vpack.c.b16 %v1632_v31, %v1631_v17  ;;  %v1298_v17 = vsub.f32 %v6389_v6, %v1270_v43 }
 0x302   : > { %4982 = vmatmul.msk.bf16.vlgmr.msrb.gmra.mxu1 %vm1240_vm1, %v1633_v16  ;;  %4988 = vmatmul.msk.bf16.vlgmr.msrb.gmra.mxu3 %vm1009_vm0, %v6372_v19  ;;  %v6583_v23 = vpop.permute.xlu0 %2525  ;;  %v1323_v16 = vmul.f32 1.442695, %v1298_v17 }
 0x303   : > { %1850 = vmatpush.bf16.xpose.msrb.mxu1 %v1841_v0 }
 0x304   : > { %v1279_v43 = vpop.xlane.xlu2 %1278 }
 0x30a   : > { %v6585_v38 = vpop.permute.xlu0 %2501  ;;  %v6595_v35 = vpop.permute.xlu1 %2453 }
 0x312   : > { %4986 = vmatmul.msk.bf16.vlgmr.msra.gmra.mxu1 %vm1009_vm0, %v6366_v15  ;;  %v5354_v15 = vpop.eup %5353 }
 0x313   : > { %2142 = vmatpush.bf16.msra.mxu1 %v6424_v48  ;;  %v916_v48 = vadd.f32 %v6206_v32, %v6255_v42  ;;  %v1406_v41 = vmul.f32 %v5354_v15, %v6450_v22 }
 0x315   : > { %1281 = vmax.xlane.f32.xlu1 %v1280_v56  ;;  %v975_v10 = vpack.c.bf16 %v916_v48, %v916_v48  ;;  %v1360_v48 = vpop.xlane.xlu2 %1359 }
 0x317   : > { %v1552_v44 = vunpack.c.l.b16 %v975_v10 }
 0x319   : > { %v6601_v22 = vpack.c.b16 %v1553_v26, %v1552_v44 }
 0x322   : > { %4990 = vmatmul.msk.bf16.vlgmr.msrb.gmra.mxu1 %vm1009_vm0, %v6438_v11 }
 0x323   : > { %2242 = vmatpush.bf16.msrb.mxu1 %v6411_v14  ;;  %v1422_v14 = vpack.c.bf16 %v1406_v41, %v1406_v41 }
 0x325   : > { %v1492_v34 = vunpack.c.l.b16 %v1422_v14 }
 0x328   : > { %v1351_v19 = vpop.xlane.xlu0 %1350 }
 0x329   : > { %5355 = vrcp.f32 %v1351_v19 }
 0x32e   : > { %2547 = vrot.lane.b32.xlu1 %v6281_v24, %s5912_s17 }
 0x32f   : > { %v5356_v11 = vpop.eup %5355 }
 0x330   : > { %v1405_v28 = vmul.f32 %v5356_v11, %v6521_v5  ;;  %v1931_v5 = vmul.f32 1.442695, %v1910_v47 }
 0x332   : > { %v1421_v40 = vpack.c.bf16 %v1405_v28, %v1405_v28 }
 0x334   : > { %v1491_v42 = vunpack.c.l.b16 %v1421_v40 }
 0x335   : > { %v1267_v30 = vpop.xlane.xlu1 %1266 }
 0x336   : > { %v1297_v32 = vsub.f32 %v6387_v39, %v1267_v30  ;;  %v1493_v58 = vpack.c.b16 %v1492_v34, %v1491_v42  ;;  %v6611_v39 = vpop.f32.mrf.mxu3 }
 0x338   : > { %v1321_v18 = vmul.f32 1.442695, %v1297_v32  ;;  %4977 = vmatmul.msk.bf16.vlgmr.msrb.gmra.mxu2 %vm1240_vm1, %v1493_v58 }
 0x339   : > { %1566 = vmatpush.bf16.msrb.mxu2 %v6601_v22 }
 0x33a   : > { %5357 = vpow2.f32 %v1321_v18 }
 0x33b   : > { %5359 = vpow2.f32 %v1931_v5  ;;  %v6636_v51 = vpop.permute.xlu0 %2571 }
 0x33c   : > { %5361 = vpow2.f32 %v1947_v45 }
 0x33d   : > { %5363 = vpow2.f32 %v1323_v16 }
 0x33e   : > { %v6620_v0 = vpop.f32.mrf.mxu3  ;;  %5365 = vrcp.f32 %v1360_v48 }
 0x340   : > { %v6607_v60 = vpop.eup %5357 }
 0x341   : > { %v1361_v63 = vsel %vm1240_vm1, %v6607_v60, 0.0  ;;  %v6615_v12 = vpop.eup %5359 }
 0x342   : > { %1362 = vadd.xlane.f32.xlu0 %v1361_v63  ;;  %v1968_v31 = vsel %vm1240_vm1, %v6615_v12, 0.0  ;;  %v6624_v25 = vpop.eup %5361 }
 0x343   : > { %v1992_v56 = vsel %vm1240_vm1, %v6624_v25, 0.0  ;;  %v6630_v6 = vpop.eup %5363 }
 0x344   : > { %v1364_v19 = vsel %vm1240_vm1, %v6630_v6, 0.0  ;;  %v5366_v10 = vpop.eup %5365 }
 0x345   : > { %v1408_v9 = vmul.f32 %v5366_v10, %v6497_v1 }
 0x347   : > { %v1424_v40 = vpack.c.bf16 %v1408_v9, %v1408_v9 }
 0x349   : > { %v1520_v42 = vunpack.c.l.b16 %v1424_v40 }
 0x34a   : > { %1969 = vadd.xlane.f32.xlu0 %v1968_v31 }
 0x34b   : > { %v6628_v54 = vpop.f32.mrf.mxu3 }
 0x34d   : > { %v6658_v5 = vpop.permute.xlu1 %2523 }
 0x352   : > { %1993 = vadd.xlane.f32.xlu0 %v1992_v56 }
 0x353   : > { %v6634_v15 = vpop.f32.mrf.mxu3 }
 0x355   : > { %v6664_v45 = vpop.permute.xlu1 %2573 }
 0x358   : > { %1365 = vadd.xlane.f32.xlu1 %v1364_v19  ;;  %v1301_v19 = vsub.f32 %v6399_v49, %v1279_v43 }
 0x35a   : > { %v1329_v9 = vmul.f32 1.442695, %v1301_v19 }
 0x35d   : > { %v6670_v16 = vpop.permute.xlu1 %2549 }
 0x365   : > { %v6638_v41 = vpop.f32.mrf.mxu3 }
 0x366   : > { %v1357_v11 = vpop.xlane.xlu0 %1356 }
 0x367   : > { %5367 = vrcp.f32 %v1357_v11 }
 0x368   : > { %5369 = vpow2.f32 %v1329_v9 }
 0x36d   : > { %v5368_v14 = vpop.eup %5367  ;;  %v6641_v28 = vpop.f32.mrf.mxu3 }
 0x36e   : > { %v1407_v44 = vmul.f32 %v5368_v14, %v6561_v13 }
 0x370   : > { %v1423_v26 = vpack.c.bf16 %v1407_v44, %v1407_v44 }
 0x372   : > { %v1519_v34 = vunpack.c.l.b16 %v1423_v26  ;;  %v6686_v26 = vpop.eup %5369 }
 0x374   : > { %v1521_v30 = vpack.c.b16 %v1520_v42, %v1519_v34  ;;  %v6688_v42 = vpop.permute.xlu2 %2597  ;;  %v1373_v34 = vsel %vm1240_vm1, %v6686_v26, 0.0 }
 0x375   : > { %v6644_v32 = vpop.f32.mrf.mxu3 }
 0x376   : > { %4978 = vmatmul.msk.bf16.vlgmr.msra.gmra.mxu2 %vm1240_vm1, %v1521_v30  ;;  %v1863_v58 = vsel %vm1240_vm1, %v6644_v32, -inf }
 0x377   : > { %1622 = vmatpush.bf16.msra.mxu2 %v6312_v8  ;;  %1864 = vmax.xlane.f32.xlu2 %v1863_v58 }
 0x37c   : > { %v1967_v58 = vpop.xlane.xlu2 %1966 }
 0x37d   : > { %v6650_v1 = vpop.f32.mrf.mxu3 }
 0x37e   : > { %v1866_v47 = vsel %vm1240_vm1, %v6650_v1, -inf }
 0x37f   : > { %v6654_v13 = vpop.f32.mrf.mxu1  ;;  %1867 = vmax.xlane.f32.xlu2 %v1866_v47 }
 0x385   : > { %v6672_v56 = vpop.f32.mrf.mxu3 }
 0x386   : > { %v1887_v10 = vsel %vm1240_vm1, %v6672_v56, -inf }
 0x387   : > { %v6656_v18 = vpop.f32.mrf.mxu1 }
 0x388   : > { %v1282_v14 = vpop.xlane.xlu1 %1281 }
 0x389   : > { %v1302_v40 = vsub.f32 %v6401_v50, %v1282_v14  ;;  %v1991_v14 = vpop.xlane.xlu2 %1990 }
 0x38b   : > { %v1331_v43 = vmul.f32 1.442695, %v1302_v40 }
 0x38d   : > { %5371 = vpow2.f32 %v1331_v43 }
 0x38e   : > { %5373 = vrcp.f32 %v1967_v58 }
 0x38f   : > { %v6660_v20 = vpop.f32.mrf.mxu1 }
 0x390   : > { %v1875_v63 = vsel %vm1240_vm1, %v6660_v20, -inf }
 0x391   : > { %1876 = vmax.xlane.f32.xlu1 %v1875_v63 }
 0x393   : > { %v6692_v30 = vpop.eup %5371 }
 0x394   : > { %v1376_v47 = vsel %vm1240_vm1, %v6692_v30, 0.0 }
 0x397   : > { %v6666_v17 = vpop.f32.mrf.mxu1 }
 0x398   : > { %v1878_v31 = vsel %vm1240_vm1, %v6666_v17, -inf }
 0x399   : > { %1879 = vmax.xlane.f32.xlu2 %v1878_v31  ;;  %v5374_v31 = vpop.eup %5373 }
 0x39a   : > { %v2021_v19 = vmul.f32 %v5374_v31, %v6538_v37  ;;  %v2435_v37 = vsel %vm1009_vm0, %v6348_v55, 0 }
 0x39c   : > { %v2037_v9 = vpack.c.bf16 %v2021_v19, %v2021_v19 }
 0x39f   : > { %v6675_v48 = vpop.f32.mrf.mxu1 }
 0x3a0   : > { %v1899_v11 = vsel %vm1240_vm1, %v6675_v48, -inf }
 0x3a1   : > { %1900 = vmax.xlane.f32.xlu0 %v1899_v11  ;;  %1888 = vmax.xlane.f32.xlu2 %v1887_v10  ;;  %v6699_v11 = vpop.permute.xlu1 %2547 }
 0x3a7   : > { %v6682_v44 = vpop.f32.mrf.mxu1 }
 0x3a8   : > { %v1902_v49 = vsel %vm1240_vm1, %v6682_v44, -inf }
 0x3a9   : > { %1903 = vmax.xlane.f32.xlu1 %v1902_v49 }
 0x3b1   : > { %1374 = vadd.xlane.f32.xlu1 %v1373_v34  ;;  %v2101_v34 = vunpack.c.l.b16 %v2037_v9 }
 0x3b5   : > { %2595 = vrot.lane.b32.xlu0 %v6329_v36, %s5912_s17  ;;  %v1363_v50 = vpop.xlane.xlu0 %1362 }
 0x3b9   : > { %1377 = vadd.xlane.f32.xlu1 %v1376_v47 }
 0x3bd   : > { %v1970_v63 = vpop.xlane.xlu0 %1969 }
 0x3be   : > { %5375 = vrcp.f32 %v1970_v63 }
 0x3bf   : > { %5377 = vrcp.f32 %v1363_v50 }
 0x3c4   : > { %v5376_v10 = vpop.eup %5375 }
 0x3c5   : > { %v2022_v40 = vmul.f32 %v5376_v10, %v6615_v12  ;;  %v1994_v49 = vpop.xlane.xlu0 %1993  ;;  %v5378_v47 = vpop.eup %5377 }
 0x3c6   : > { %5379 = vrcp.f32 %v1994_v49  ;;  %v1409_v12 = vmul.f32 %v5378_v47, %v6607_v60  ;;  %v2483_v60 = vsel %vm1009_vm0, %v6519_v29, 0 }
 0x3c7   : > { %v2038_v43 = vpack.c.bf16 %v2022_v40, %v2022_v40  ;;  %5381 = vrcp.f32 %v1991_v14 }
 0x3c8   : > { %v1425_v9 = vpack.c.bf16 %v1409_v12, %v1409_v12 }
 0x3c9   : > { %v2102_v58 = vunpack.c.l.b16 %v2038_v43 }
 0x3ca   : > { %v1547_v43 = vunpack.c.l.b16 %v1425_v9 }
 0x3cb   : > { %v2103_v33 = vpack.c.b16 %v2102_v58, %v2101_v34  ;;  %v1366_v36 = vpop.xlane.xlu1 %1365 }
 0x3cc   : > { %v5380_v63 = vpop.eup %5379  ;;  %5383 = vrcp.f32 %v1366_v36 }
 0x3cd   : > { %4993 = vmatmul.msk.bf16.vlgmr.msrb.gmra.mxu0 %vm1240_vm1, %v2103_v33  ;;  %v5382_v31 = vpop.eup %5381  ;;  %v2030_v50 = vmul.f32 %v5380_v63, %v6624_v25 }
 0x3ce   : > { %2444 = vmatpush.bf16.xpose.msrb.mxu0 %v2435_v37  ;;  %v2029_v19 = vmul.f32 %v5382_v31, %v6544_v57 }
 0x3cf   : > { %v2046_v14 = vpack.c.bf16 %v2030_v50, %v2030_v50 }
 0x3d0   : > { %v2045_v49 = vpack.c.bf16 %v2029_v19, %v2029_v19 }
 0x3d1   : > { %v2202_v34 = vunpack.c.l.b16 %v2046_v14 }
 0x3d2   : > { %v5384_v10 = vpop.eup %5383  ;;  %v2201_v58 = vunpack.c.l.b16 %v2045_v49 }
 0x3d3   : > { %v1410_v40 = vmul.f32 %v5384_v10, %v6630_v6  ;;  %v2531_v6 = vsel %vm1009_vm0, %v6583_v23, 0 }
 0x3d4   : > { %v2203_v2 = vpack.c.b16 %v2202_v34, %v2201_v58 }
 0x3d5   : > { %v1426_v36 = vpack.c.bf16 %v1410_v40, %v1410_v40 }
 0x3d7   : > { %v1548_v55 = vunpack.c.l.b16 %v1426_v36 }
 0x3d9   : > { %v1549_v33 = vpack.c.b16 %v1548_v55, %v1547_v43  ;;  %v6748_v43 = vpop.f32.mrf.mxu3 }
 0x3db   : > { %4979 = vmatmul.msk.bf16.vlgmr.msrb.gmra.mxu2 %vm1240_vm1, %v1549_v33  ;;  %v1890_v33 = vsel %vm1240_vm1, %v6748_v43, -inf }
 0x3dd   : > { %4997 = vmatmul.msk.bf16.vlgmr.msra.gmra.mxu0 %vm1240_vm1, %v2203_v2  ;;  %v2579_v2 = vsel %vm1009_vm0, %v6664_v45, 0 }
 0x3de   : > { %2492 = vmatpush.bf16.xpose.msra.mxu0 %v2483_v60 }
 0x3ea   : > { %v1865_v57 = vpop.xlane.xlu2 %1864 }
 0x3eb   : > { %v1907_v25 = vsub.f32 %v6644_v32, %v1865_v57 }
 0x3ed   : > { %v1925_v47 = vmul.f32 1.442695, %v1907_v25  ;;  %5031 = vmatmul.msk.bf16.vlgmr.msrb.gmra.mxu0 %vm1009_vm0, %v6351_v59 }
 0x3ee   : > { %2540 = vmatpush.bf16.xpose.msrb.mxu0 %v2531_v6 }
 0x3ef   : > { %5385 = vpow2.f32 %v1925_v47 }
 0x3f2   : > { %v1868_v23 = vpop.xlane.xlu2 %1867 }
 0x3f3   : > { %v1908_v59 = vsub.f32 %v6650_v1, %v1868_v23 }
 0x3f5   : > { %v6718_v63 = vpop.eup %5385  ;;  %v1927_v12 = vmul.f32 1.442695, %v1908_v59 }
 0x3f6   : > { %v1959_v29 = vsel %vm1240_vm1, %v6718_v63, 0.0 }
 0x3f7   : > { %1960 = vadd.xlane.f32.xlu1 %v1959_v29 }
 0x3fd   : > { %5033 = vmatmul.msk.bf16.vlgmr.msra.gmra.mxu0 %vm1009_vm0, %v6571_v61 }
 0x3fe   : > { %2588 = vmatpush.bf16.xpose.msra.mxu0 %v2579_v2 }
 0x404   : > { %v1877_v32 = vpop.xlane.xlu1 %1876 }
 0x405   : > { %v1911_v37 = vsub.f32 %v6660_v20, %v1877_v32 }
 0x407   : > { %v1933_v31 = vmul.f32 1.442695, %v1911_v37 }
 0x409   : > { %5387 = vpow2.f32 %v1933_v31 }
 0x40a   : > { %5389 = vpow2.f32 %v1927_v12 }
 0x40c   : > { %v1880_v50 = vpop.xlane.xlu2 %1879 }
 0x40d   : > { %v1912_v19 = vsub.f32 %v6666_v17, %v1880_v50  ;;  %5035 = vmatmul.msk.bf16.vlgmr.msrb.gmra.mxu0 %vm1009_vm0, %v6658_v5 }
 0x40f   : > { %v6731_v45 = vpop.eup %5387  ;;  %v1935_v61 = vmul.f32 1.442695, %v1912_v19  ;;  %v8033_v19 = vld [vmem:[#allocation20_spill] sm:$0xff] }
 0x410   : > { %2079 = vrot.lane.b32.xlu1 %v6338_v46, %s5913_s19  ;;  %v1971_v20 = vsel %vm1240_vm1, %v6731_v45, 0.0  ;;  %v6737_v10 = vpop.eup %5389 }
 0x411   : > { %5391 = vpow2.f32 %v1935_v61  ;;  %1972 = vadd.xlane.f32.xlu2 %v1971_v20  ;;  %v1962_v40 = vsel %vm1240_vm1, %v6737_v10, 0.0 }
 0x414   : > { %v1901_v1 = vpop.xlane.xlu0 %1900  ;;  %v1889_v49 = vpop.xlane.xlu2 %1888 }
 0x415   : > { %v1919_v17 = vsub.f32 %v6675_v48, %v1901_v1  ;;  %v1915_v34 = vsub.f32 %v6672_v56, %v1889_v49 }
 0x417   : > { %v6740_v9 = vpop.eup %5391  ;;  %v1949_v5 = vmul.f32 1.442695, %v1919_v17  ;;  %v1941_v57 = vmul.f32 1.442695, %v1915_v34 }
 0x418   : > { %1665 = vrot.lane.b32.xlu1 %v6176_v3, %s5913_s19  ;;  %v1974_v14 = vsel %vm1240_vm1, %v6740_v9, 0.0 }
 0x419   : > { %1975 = vadd.xlane.f32.xlu0 %v1974_v14  ;;  %1963 = vadd.xlane.f32.xlu2 %v1962_v40  ;;  %5393 = vpow2.f32 %v1949_v5 }
 0x41c   : > { %v1904_v36 = vpop.xlane.xlu1 %1903 }
 0x41d   : > { %v1920_v48 = vsub.f32 %v6682_v44, %v1904_v36  ;;  %5037 = vmatmul.msk.bf16.vlgmr.msra.gmra.mxu0 %vm1009_vm0, %v6636_v51 }
 0x41f   : > { %v1951_v55 = vmul.f32 1.442695, %v1920_v48  ;;  %v6754_v58 = vpop.eup %5393 }
 0x420   : > { %v1995_v60 = vsel %vm1240_vm1, %v6754_v58, 0.0 }
 0x421   : > { %5395 = vpow2.f32 %v1951_v55  ;;  %1891 = vmax.xlane.f32.xlu0 %v1890_v33  ;;  %1996 = vadd.xlane.f32.xlu2 %v1995_v60 }
 0x422   : > { %5397 = vpow2.f32 %v1941_v57 }
 0x424   : > { %v1375_v25 = vpop.xlane.xlu1 %1374 }
 0x425   : > { %5399 = vrcp.f32 %v1375_v25 }
 0x427   : > { %v6760_v44 = vpop.eup %5395  ;;  %v6795_v55 = vpop.permute.xlu0 %2595 }
 0x428   : > { %v1998_v51 = vsel %vm1240_vm1, %v6760_v44, 0.0  ;;  %v6764_v56 = vpop.eup %5397 }
 0x429   : > { %1999 = vadd.xlane.f32.xlu0 %v1998_v51  ;;  %v1983_v2 = vsel %vm1240_vm1, %v6764_v56, 0.0 }
 0x42b   : > { %v5400_v47 = vpop.eup %5399 }
 0x42c   : > { %v1378_v6 = vpop.xlane.xlu1 %1377  ;;  %v1413_v29 = vmul.f32 %v5400_v47, %v6686_v26 }
 0x42d   : > { %5401 = vrcp.f32 %v1378_v6 }
 0x42e   : > { %v1429_v32 = vpack.c.bf16 %v1413_v29, %v1413_v29 }
 0x430   : > { %v1603_v31 = vunpack.c.l.b16 %v1429_v32 }
 0x431   : > { %1984 = vadd.xlane.f32.xlu0 %v1983_v2 }
 0x433   : > { %v5402_v23 = vpop.eup %5401 }
 0x434   : > { %v1414_v37 = vmul.f32 %v5402_v23, %v6692_v30 }
 0x436   : > { %v1430_v59 = vpack.c.bf16 %v1414_v37, %v1414_v37 }
 0x438   : > { %v1604_v12 = vunpack.c.l.b16 %v1430_v59 }
 0x43a   : > { %v1605_v50 = vpack.c.b16 %v1604_v12, %v1603_v31 }
 0x43c   : > { %4981 = vmatmul.msk.bf16.vlgmr.msra.gmra.mxu2 %vm1240_vm1, %v1605_v50 }
 0x445   : > { %1667 = vrot.lane.b32.xlu0 %v8033_v19, %s5913_s19 }
 0x44a   : > { %v6773_v61 = vpop.f32.mrf.mxu0 }
 0x452   : > { %v6775_v26 = vpop.f32.mrf.mxu0 }
 0x45a   : > { %v6777_v20 = vpop.f32.mrf.mxu0 }
 0x462   : > { %v6779_v1 = vpop.f32.mrf.mxu0 }
 0x46a   : > { %v6781_v17 = vpop.f32.mrf.mxu0  ;;  %v1961_v40 = vpop.xlane.xlu1 %1960 }
 0x46b   : > { %v2619_v30 = vsel %vm1240_vm1, %v6781_v17, -inf  ;;  %5403 = vrcp.f32 %v1961_v40 }
 0x46f   : > { %2620 = vmax.xlane.f32.xlu0 %v2619_v30 }
 0x471   : > { %v5404_v6 = vpop.eup %5403 }
 0x472   : > { %v6785_v5 = vpop.f32.mrf.mxu0  ;;  %v2019_v29 = vmul.f32 %v5404_v6, %v6718_v63 }
 0x473   : > { %v2622_v14 = vsel %vm1240_vm1, %v6785_v5, -inf }
 0x474   : > { %2623 = vmax.xlane.f32.xlu1 %v2622_v14  ;;  %v2035_v37 = vpack.c.bf16 %v2019_v29, %v2019_v29 }
 0x47a   : > { %v6789_v49 = vpop.f32.mrf.mxu0 }
 0x482   : > { %v2080_v36 = vpop.permute.xlu1 %2079  ;;  %v6791_v48 = vpop.f32.mrf.mxu0 }
 0x483   : > { %2092 = vmatpush.bf16.msra.mxu3 %v2080_v36  ;;  %v2634_v34 = vsel %vm1240_vm1, %v6791_v48, -inf }
 0x484   : > { %v1973_v33 = vpop.xlane.xlu2 %1972  ;;  %2635 = vmax.xlane.f32.xlu0 %v2634_v34 }
 0x485   : > { %5405 = vrcp.f32 %v1973_v33  ;;  %v2076_v33 = vunpack.c.l.b16 %v2035_v37 }
 0x48a   : > { %v6797_v60 = vpop.f32.mrf.mxu0 }
 0x48b   : > { %v2643_v57 = vsel %vm1240_vm1, %v6797_v60, -inf  ;;  %v5406_v47 = vpop.eup %5405 }
 0x48c   : > { %v1964_v25 = vpop.xlane.xlu2 %1963  ;;  %2644 = vmax.xlane.f32.xlu1 %v2643_v57  ;;  %v1976_v51 = vpop.xlane.xlu0 %1975  ;;  %v2023_v2 = vmul.f32 %v5406_v47, %v6731_v45  ;;  %v8034_v45 = vld [vmem:[#allocation30_spill] sm:$0xff] }
 0x48d   : > { %5407 = vrcp.f32 %v1964_v25 }
 0x48e   : > { %5409 = vrcp.f32 %v1976_v51  ;;  %v2039_v12 = vpack.c.bf16 %v2023_v2, %v2023_v2 }
 0x490   : > { %v2126_v57 = vunpack.c.l.b16 %v2039_v12  ;;  %v2507_v12 = vsel %vm1009_vm0, %v6585_v38, 0  ;;  %v2555_v38 = vsel %vm1009_vm0, %v6670_v16, 0 }
 0x492   : > { %v6853_v16 = vpop.f32.mrf.mxu0 }
 0x493   : > { %v5408_v23 = vpop.eup %5407 }
 0x494   : > { %v5410_v32 = vpop.eup %5409  ;;  %v2020_v59 = vmul.f32 %v5408_v23, %v6737_v10  ;;  %v1892_v31 = vpop.xlane.xlu0 %1891 }
 0x495   : > { %v2024_v50 = vmul.f32 %v5410_v32, %v6740_v9  ;;  %v1997_v30 = vpop.xlane.xlu2 %1996  ;;  %v1916_v14 = vsub.f32 %v6748_v43, %v1892_v31  ;;  %v2459_v43 = vsel %vm1009_vm0, %v6595_v35, 0 }
 0x496   : > { %v2036_v40 = vpack.c.bf16 %v2020_v59, %v2020_v59  ;;  %5411 = vrcp.f32 %v1997_v30 }
 0x497   : > { %v2040_v36 = vpack.c.bf16 %v2024_v50, %v2024_v50  ;;  %v1943_v34 = vmul.f32 1.442695, %v1916_v14  ;;  %v8035_v50 = vld [vmem:[#allocation25_spill] sm:$0xff] }
 0x498   : > { %v2077_v63 = vunpack.c.l.b16 %v2036_v40  ;;  %1763 = vrot.lane.b32.xlu0 %v8034_v45, %s5913_s19  ;;  %v1666_v40 = vpop.permute.xlu1 %1665 }
 0x499   : > { %v2127_v25 = vunpack.c.l.b16 %v2040_v36  ;;  %5413 = vpow2.f32 %v1943_v34  ;;  %v8036_v36 = vld [vmem:[#allocation22_spill] sm:$0xff] }
 0x49a   : > { %v2078_v10 = vpack.c.b16 %v2077_v63, %v2076_v33 }
 0x49b   : > { %v2128_v51 = vpack.c.b16 %v2127_v25, %v2126_v57 }
 0x49c   : > { %4992 = vmatmul.msk.bf16.vlgmr.msra.gmra.mxu3 %vm1240_vm1, %v2078_v10  ;;  %v2000_v9 = vpop.xlane.xlu0 %1999  ;;  %v5412_v6 = vpop.eup %5411 }
 0x49d   : > { %4994 = vmatmul.msk.bf16.vlgmr.msra.gmra.mxu1 %vm1240_vm1, %v2128_v51  ;;  %5415 = vrcp.f32 %v2000_v9  ;;  %v2031_v29 = vmul.f32 %v5412_v6, %v6754_v58 }
 0x49e   : > { %2468 = vmatpush.bf16.xpose.msra.mxu1 %v2459_v43 }
 0x49f   : > { %v6812_v47 = vpop.eup %5413  ;;  %v2047_v32 = vpack.c.bf16 %v2031_v29, %v2031_v29  ;;  %v8037_v29 = vld [vmem:[#allocation31_spill] sm:$0xff] }
 0x4a0   : > { %2841 = vrot.lane.b32.xlu0 %v6338_v46, %s5912_s17  ;;  %v1986_v2 = vsel %vm1240_vm1, %v6812_v47, 0.0 }
 0x4a1   : > { %1987 = vadd.xlane.f32.xlu2 %v1986_v2  ;;  %v2226_v59 = vunpack.c.l.b16 %v2047_v32 }
 0x4a3   : > { %v5416_v23 = vpop.eup %5415 }
 0x4a4   : > { %v2032_v37 = vmul.f32 %v5416_v23, %v6760_v44  ;;  %v1985_v44 = vpop.xlane.xlu0 %1984 }
 0x4a5   : > { %1761 = vrot.lane.b32.xlu1 %v6273_v7, %s5913_s19 }
 0x4a6   : > { %v2048_v35 = vpack.c.bf16 %v2032_v37, %v2032_v37 }
 0x4a8   : > { %v2227_v31 = vunpack.c.l.b16 %v2048_v35  ;;  %2916 = vrot.lane.b32.xlu0 %v6601_v22, %s5912_s17 }
 0x4aa   : > { %v2228_v58 = vpack.c.b16 %v2227_v31, %v2226_v59  ;;  %v8038_v31 = vld [vmem:[#allocation29_spill] sm:$0xff] }
 0x4ad   : > { %4998 = vmatmul.msk.bf16.vlgmr.msrb.gmra.mxu1 %vm1240_vm1, %v2228_v58  ;;  %2866 = vrot.lane.b32.xlu1 %v8035_v50, %s5912_s17  ;;  %v5174_v58 = vld [vmem:[#allocation10 + $0x8] sm:$0xff] }
 0x4ae   : > { %2516 = vmatpush.bf16.xpose.msrb.mxu1 %v2507_v12 }
 0x4b0   : > { %2941 = vrot.lane.b32.xlu0 %v6511_v52, %s5912_s17 }
 0x4b5   : > { %2966 = vrot.lane.b32.xlu1 %v6312_v8, %s5912_s17 }
 0x4b7   : > { %v1668_v30 = vpop.permute.xlu0 %1667 }
 0x4b8   : > { %v1673_v14 = vsel %vm1009_vm0, %v1668_v30, 0  ;;  %3146 = vrot.lane.b32.xlu0 %v6191_v21, %s5914_s27  ;;  %v2603_v21 = vsel %vm1009_vm0, %v6688_v42, 0  ;;  %v2646_v42 = vsel %vm1240_vm1, %v6853_v16, -inf }
 0x4b9   : > { %2179 = vrot.lane.b32.xlu2 %v6511_v52, %s5913_s19  ;;  %1682 = vmatpush.bf16.xpose.msrb.mxu2 %v1673_v14 }
 0x4bd   : > { %5032 = vmatmul.msk.bf16.vlgmr.msra.gmra.mxu1 %vm1009_vm0, %v6576_v4  ;;  %v2631_v4 = vsel %vm1240_vm1, %v6789_v49, -inf }
 0x4be   : > { %2564 = vmatpush.bf16.xpose.msra.mxu1 %v2555_v38 }
 0x4c0   : > { %3144 = vrot.lane.b32.xlu0 %v8036_v36, %s5914_s27  ;;  %4983 = vmatmul.msk.bf16.vlgmr.msrb.gmra.mxu2 %vm1009_vm0, %v1666_v40  ;;  %v5173_v40 = vld [vmem:[#allocation10] sm:$0xff] }
 0x4cd   : > { %5034 = vmatmul.msk.bf16.vlgmr.msrb.gmra.mxu1 %vm1009_vm0, %v6622_v62  ;;  %v6858_v62 = vpop.f32.mrf.mxu0 }
 0x4ce   : > { %2612 = vmatpush.bf16.xpose.msrb.mxu1 %v2603_v21 }
 0x4d5   : > { %v6868_v25 = vpop.f32.mrf.mxu0 }
 0x4d6   : > { %v2658_v10 = vsel %vm1240_vm1, %v6868_v25, -inf }
 0x4dd   : > { %5036 = vmatmul.msk.bf16.vlgmr.msra.gmra.mxu1 %vm1009_vm0, %v6699_v11 }
 0x4e2   : > { %2632 = vmax.xlane.f32.xlu2 %v2631_v4  ;;  %v2621_v34 = vpop.xlane.xlu0 %2620 }
 0x4e3   : > { %v2667_v33 = vsub.f32 %v6781_v17, %v2621_v34  ;;  %v2655_v17 = vsel %vm1240_vm1, %v6858_v62, -inf  ;;  %v1512_v34 = vpop.f32.mrf.mxu2 }
 0x4e5   : > { %v2683_v63 = vmul.f32 1.442695, %v2667_v33 }
 0x4e7   : > { %5417 = vpow2.f32 %v2683_v63  ;;  %v2624_v9 = vpop.xlane.xlu1 %2623  ;;  %v1657_v63 = vpack.c.bf16 %v6620_v0, %v6611_v39 }
 0x4e8   : > { %5419 = vrcp.f32 %v1985_v44 }
 0x4ea   : > { %2647 = vmax.xlane.f32.xlu2 %v2646_v42 }
 0x4ed   : > { %v6860_v57 = vpop.eup %5417  ;;  %5038 = vmatmul.msk.bf16.vlgmr.msrb.gmra.mxu1 %vm1009_vm0, %v6795_v55 }
 0x4ee   : > { %v2715_v11 = vsel %vm1240_vm1, %v6860_v57, 0.0  ;;  %v5420_v32 = vpop.eup %5419 }
 0x4ef   : > { %2716 = vadd.xlane.f32.xlu1 %v2715_v11  ;;  %v2027_v35 = vmul.f32 %v5420_v32, %v6764_v56 }
 0x4f1   : > { %v2043_v44 = vpack.c.bf16 %v2027_v35, %v2027_v35 }
 0x4f2   : > { %2656 = vmax.xlane.f32.xlu2 %v2655_v17 }
 0x4f3   : > { %v2176_v36 = vunpack.c.l.b16 %v2043_v44 }
 0x4f7   : > { %v6872_v51 = vpop.xlane.xlu0 %2635 }
 0x4f8   : > { %v2672_v35 = vsub.f32 %v6791_v48, %v6872_v51 }
 0x4fa   : > { %2659 = vmax.xlane.f32.xlu2 %v2658_v10  ;;  %v2668_v10 = vsub.f32 %v6785_v5, %v2624_v9 }
 0x4fc   : > { %v2685_v39 = vmul.f32 1.442695, %v2668_v10 }
 0x4ff   : > { %v6875_v43 = vpop.xlane.xlu1 %2644 }
 0x50a   : > { %v1764_v6 = vpop.permute.xlu0 %1763 }
 0x50b   : > { %v1769_v55 = vsel %vm1009_vm0, %v1764_v6, 0 }
 0x50c   : > { %1778 = vmatpush.bf16.xpose.msra.mxu2 %v1769_v55 }
 0x512   : > { %2816 = vrot.lane.b32.xlu2 %v8037_v29, %s5912_s17  ;;  %v2842_v2 = vpop.permute.xlu0 %2841 }
 0x513   : > { %2854 = vmatpush.bf16.msra.mxu1 %v2842_v2 }
 0x514   : > { %v1988_v23 = vpop.xlane.xlu2 %1987 }
 0x515   : > { %5421 = vrcp.f32 %v1988_v23 }
 0x516   : > { %5423 = vpow2.f32 %v2685_v39 }
 0x517   : > { %v1762_v37 = vpop.permute.xlu1 %1761 }
 0x518   : > { %4987 = vmatmul.msk.bf16.vlgmr.msra.gmra.mxu2 %vm1009_vm0, %v1762_v37 }
 0x51a   : > { %v6881_v59 = vpop.f32.mrf.mxu1  ;;  %2891 = vrot.lane.b32.xlu2 %v8038_v31, %s5912_s17 }
 0x51b   : > { %v5422_v12 = vpop.eup %5421 }
 0x51c   : > { %v2028_v30 = vmul.f32 %v5422_v12, %v6812_v47  ;;  %v2180_v14 = vpop.permute.xlu2 %2179  ;;  %v1514_v47 = vpop.f32.mrf.mxu2 }
 0x51d   : > { %2192 = vmatpush.bf16.msrb.mxu3 %v2180_v14  ;;  %v6912_v23 = vpop.eup %5423  ;;  %v1659_v32 = vpack.c.bf16 %v1514_v47, %v1512_v34 }
 0x51e   : > { %v2044_v38 = vpack.c.bf16 %v2028_v30, %v2028_v30  ;;  %v2718_v5 = vsel %vm1240_vm1, %v6912_v23, 0.0  ;;  %v2693_v30 = vmul.f32 1.442695, %v2672_v35 }
 0x520   : > { %v2177_v21 = vunpack.c.l.b16 %v2044_v38 }
 0x521   : > { %2384 = vmatpush.bf16.msra.mxu3 %v5174_v58 }
 0x522   : > { %v2178_v56 = vpack.c.b16 %v2177_v21, %v2176_v36  ;;  %v6886_v4 = vpop.f32.mrf.mxu1  ;;  %3122 = vrot.lane.b32.xlu2 %v8033_v19, %s5914_s27 }
 0x524   : > { %4996 = vmatmul.msk.bf16.vlgmr.msrb.gmra.mxu3 %vm1240_vm1, %v2178_v56  ;;  %v1540_v11 = vpop.f32.mrf.mxu2 }
 0x525   : > { %2385 = vmatpush.bf16.msra.mxu3 %v5173_v40  ;;  %v2675_v40 = vsub.f32 %v6797_v60, %v6875_v43 }
 0x527   : > { %v2699_v48 = vmul.f32 1.442695, %v2675_v40 }
 0x52a   : > { %v6891_v33 = vpop.f32.mrf.mxu1  ;;  %3120 = vrot.lane.b32.xlu2 %v6176_v3, %s5914_s27  ;;  %v1658_v3 = vpack.c.bf16 %v6634_v15, %v6628_v54 }
 0x52c   : > { %v1542_v6 = vpop.f32.mrf.mxu2 }
 0x52d   : > { %v1660_v36 = vpack.c.bf16 %v1542_v6, %v1540_v11 }
 0x532   : > { %v6897_v42 = vpop.f32.mrf.mxu1 }
 0x534   : > { %5023 = vmatmul.msk.bf16.vlgmr.msra.gmra.mxu3 %vm1009_vm0, %v1657_v63  ;;  %v1568_v0 = vpop.f32.mrf.mxu2 }
 0x53a   : > { %v6900_v17 = vpop.f32.mrf.mxu1 }
 0x53b   : > { %v2625_v19 = vsel %vm1240_vm1, %v6900_v17, -inf }
 0x53c   : > { %2626 = vmax.xlane.f32.xlu1 %v2625_v19  ;;  %v1570_v54 = vpop.f32.mrf.mxu2 }
 0x542   : > { %v6907_v55 = vpop.f32.mrf.mxu1 }
 0x544   : > { %5024 = vmatmul.msk.bf16.gmra.mxu3 %vm1009_vm0, %v1658_v3  ;;  %v6924_v44 = vpop.f32.mrf.mxu2 }
 0x54a   : > { %v6910_v2 = vpop.f32.mrf.mxu1 }
 0x54c   : > { %v1626_v34 = vpop.f32.mrf.mxu2 }
 0x552   : > { %v6914_v37 = vpop.f32.mrf.mxu1 }
 0x553   : > { %2719 = vadd.xlane.f32.xlu2 %v2718_v5  ;;  %v1661_v5 = vpack.c.bf16 %v1570_v54, %v1568_v0  ;;  %v2628_v0 = vsel %vm1240_vm1, %v6907_v55, -inf }
 0x554   : > { %5025 = vmatmul.msk.bf16.gmra.mxu3 %vm1009_vm0, %v1659_v32  ;;  %v6945_v6 = vpop.f32.mrf.mxu2 }
 0x555   : > { %v2633_v15 = vpop.xlane.xlu2 %2632 }
 0x556   : > { %v2671_v9 = vsub.f32 %v6789_v49, %v2633_v15 }
 0x558   : > { %v2691_v58 = vmul.f32 1.442695, %v2671_v9 }
 0x55a   : > { %5425 = vpow2.f32 %v2691_v58  ;;  %v6922_v12 = vpop.f32.mrf.mxu1 }
 0x55b   : > { %5427 = vpow2.f32 %v2693_v30  ;;  %v2867_v30 = vpop.permute.xlu1 %2866 }
 0x55c   : > { %5429 = vpow2.f32 %v2699_v48  ;;  %v2637_v48 = vsel %vm1240_vm1, %v6910_v2, -inf }
 0x55d   : > { %v2648_v14 = vpop.xlane.xlu2 %2647 }
 0x55e   : > { %v2676_v63 = vsub.f32 %v6853_v16, %v2648_v14  ;;  %v6961_v14 = vpop.f32.mrf.mxu2 }
 0x55f   : > { %v1860_v40 = vsel %vm1240_vm1, %v6961_v14, -inf }
 0x560   : > { %v6926_v38 = vpop.eup %5425  ;;  %v2701_v19 = vmul.f32 1.442695, %v2676_v63 }
 0x561   : > { %v2727_v49 = vsel %vm1240_vm1, %v6926_v38, 0.0  ;;  %v6935_v56 = vpop.eup %5427 }
 0x562   : > { %v6932_v21 = vpop.f32.mrf.mxu1  ;;  %2728 = vadd.xlane.f32.xlu0 %v2727_v49  ;;  %v2730_v43 = vsel %vm1240_vm1, %v6935_v56, 0.0  ;;  %v6943_v3 = vpop.eup %5429 }
 0x563   : > { %v2739_v32 = vsel %vm1240_vm1, %v6943_v3, 0.0 }
 0x564   : > { %5026 = vmatmul.msk.bf16.gmra.mxu3 %vm1009_vm0, %v1660_v36 }
 0x565   : > { %v2657_v51 = vpop.xlane.xlu2 %2656 }
 0x566   : > { %v2679_v47 = vsub.f32 %v6858_v62, %v2657_v51 }
 0x568   : > { %v2707_v60 = vmul.f32 1.442695, %v2679_v47  ;;  %v1662_v47 = vpack.c.bf16 %v6641_v28, %v6638_v41  ;;  %v1663_v28 = vpack.c.bf16 %v1626_v34, %v6924_v44 }
 0x56a   : > { %5431 = vpow2.f32 %v2707_v60  ;;  %v6941_v11 = vpop.f32.mrf.mxu1  ;;  %2731 = vadd.xlane.f32.xlu0 %v2730_v43  ;;  %v2649_v43 = vsel %vm1240_vm1, %v6922_v12, -inf }
 0x56b   : > { %5433 = vpow2.f32 %v2701_v19  ;;  %v2640_v19 = vsel %vm1240_vm1, %v6914_v37, -inf  ;;  %v2661_v41 = vsel %vm1240_vm1, %v6941_v11, -inf }
 0x56d   : > { %v2660_v10 = vpop.xlane.xlu2 %2659 }
 0x56e   : > { %v2680_v62 = vsub.f32 %v6868_v25, %v2660_v10  ;;  %v2652_v10 = vsel %vm1240_vm1, %v6932_v21, -inf }
 0x570   : > { %v6947_v39 = vpop.eup %5431  ;;  %v2709_v35 = vmul.f32 1.442695, %v2680_v62  ;;  %v8039_v62 = vld [vmem:[#allocation26_spill] sm:$0xff] }
 0x571   : > { %v2751_v16 = vsel %vm1240_vm1, %v6947_v39, 0.0  ;;  %v6959_v25 = vpop.eup %5433 }
 0x572   : > { %v6954_v15 = vpop.f32.mrf.mxu1  ;;  %2752 = vadd.xlane.f32.xlu2 %v2751_v16  ;;  %2740 = vadd.xlane.f32.xlu0 %v2739_v32  ;;  %5435 = vpow2.f32 %v2709_v35  ;;  %v2742_v54 = vsel %vm1240_vm1, %v6959_v25, 0.0  ;;  %v2967_v16 = vpop.permute.xlu1 %2966  ;;  %v1664_v32 = vpack.c.bf16 %v6656_v18, %v6654_v13 }
 0x573   : > { %v2664_v9 = vsel %vm1240_vm1, %v6954_v15, -inf }
 0x574   : > { %2665 = vmax.xlane.f32.xlu1 %v2664_v9  ;;  %5027 = vmatmul.msk.bf16.gmra.mxu3 %vm1009_vm0, %v1661_v5  ;;  %v2917_v9 = vpop.permute.xlu0 %2916 }
 0x575   : > { %v2817_v58 = vpop.permute.xlu2 %2816 }
 0x576   : > { %2829 = vmatpush.bf16.msrb.mxu0 %v2817_v58 }
 0x578   : > { %v6969_v36 = vpop.eup %5435 }
 0x579   : > { %v2754_v51 = vsel %vm1240_vm1, %v6969_v36, 0.0 }
 0x57a   : > { %2879 = vmatpush.bf16.msra.mxu0 %v2867_v30  ;;  %2629 = vmax.xlane.f32.xlu2 %v2628_v0  ;;  %v2717_v5 = vpop.xlane.xlu1 %2716 }
 0x57b   : > { %2743 = vadd.xlane.f32.xlu0 %v2742_v54 }
 0x57c   : > { %1861 = vmax.xlane.f32.xlu1 %v1860_v40  ;;  %v6996_v34 = vpop.permute.xlu0 %2941 }
 0x57d   : > { %v2892_v49 = vpop.permute.xlu2 %2891 }
 0x57e   : > { %2904 = vmatpush.bf16.msrb.mxu1 %v2892_v49 }
 0x582   : > { %2638 = vmax.xlane.f32.xlu2 %v2637_v48 }
 0x583   : > { %2755 = vadd.xlane.f32.xlu0 %v2754_v51 }
 0x584   : > { %5028 = vmatmul.msk.bf16.gmra.mxu3 %vm1009_vm0, %v1662_v47  ;;  %v7002_v13 = vpop.permute.xlu0 %3146 }
 0x585   : > { %v3123_v63 = vpop.permute.xlu2 %3122 }
 0x586   : > { %v3128_v60 = vsel %vm1009_vm0, %v3123_v63, 0 }
 0x587   : > { %3137 = vmatpush.bf16.xpose.msrb.mxu3 %v3128_v60 }
 0x58a   : > { %2650 = vmax.xlane.f32.xlu2 %v2649_v43 }
 0x58b   : > { %2641 = vmax.xlane.f32.xlu0 %v2640_v19 }
 0x58c   : > { %v7005_v48 = vpop.permute.xlu0 %3144 }
 0x58d   : > { %v3121_v44 = vpop.permute.xlu2 %3120 }
 0x592   : > { %2653 = vmax.xlane.f32.xlu2 %v2652_v10  ;;  %v8040_v10 = vld [vmem:[#allocation24_spill] sm:$0xff] }
 0x593   : > { %2662 = vmax.xlane.f32.xlu0 %v2661_v41 }
 0x594   : > { %5029 = vmatmul.msk.bf16.gmra.mxu3 %vm1009_vm0, %v1663_v28 }
 0x595   : > { %3168 = vrot.lane.b32.xlu1 %v8039_v62, %s5914_s27 }
 0x5a4   : > { %5030 = vmatmul.msk.bf16.gmra.mxu3 %vm1009_vm0, %v1664_v32 }
 0x5af   : > { %v2627_v35 = vpop.xlane.xlu1 %2626 }
 0x5b0   : > { %v2669_v58 = vsub.f32 %v6900_v17, %v2627_v35 }
 0x5b2   : > { %v2687_v30 = vmul.f32 1.442695, %v2669_v58 }
 0x5b4   : > { %5437 = vpow2.f32 %v2687_v30  ;;  %5063 = vmatmul.msk.bf16.vlgmr.msrb.gmra.mxu3 %vm1009_vm0, %v3121_v44 }
 0x5b5   : > { %5439 = vrcp.f32 %v2717_v5  ;;  %v8042_v5 = vld [vmem:[#allocation27_spill] sm:$0xff] }
 0x5ba   : > { %v6998_v0 = vpop.eup %5437 }
 0x5bb   : > { %v2721_v54 = vsel %vm1240_vm1, %v6998_v0, 0.0  ;;  %v5440_v40 = vpop.eup %5439 }
 0x5bc   : > { %2722 = vadd.xlane.f32.xlu2 %v2721_v54  ;;  %v2779_v17 = vmul.f32 %v5440_v40, %v6860_v57  ;;  %v8041_v57 = vld [vmem:[#allocation28_spill] sm:$0xff] }
 0x5be   : > { %v2795_v51 = vpack.c.bf16 %v2779_v17, %v2779_v17 }
 0x5c0   : > { %v2813_v60 = vunpack.c.l.b16 %v2795_v51 }
 0x5c6   : > { %v2720_v18 = vpop.xlane.xlu2 %2719 }
 0x5c7   : > { %5441 = vrcp.f32 %v2720_v18 }
 0x5cd   : > { %v5442_v49 = vpop.eup %5441 }
 0x5ce   : > { %v2780_v47 = vmul.f32 %v5442_v49, %v6912_v23 }
 0x5d0   : > { %v2796_v63 = vpack.c.bf16 %v2780_v47, %v2780_v47 }
 0x5d2   : > { %v2814_v43 = vunpack.c.l.b16 %v2796_v63 }
 0x5d4   : > { %v2815_v19 = vpack.c.b16 %v2814_v43, %v2813_v60  ;;  %3170 = vrot.lane.b32.xlu2 %v8040_v10, %s5914_s27 }
 0x5d5   : > { %v2729_v41 = vpop.xlane.xlu0 %2728 }
 0x5d6   : > { %5039 = vmatmul.msk.bf16.vlgmr.msrb.gmra.mxu0 %vm1240_vm1, %v2815_v19  ;;  %5443 = vrcp.f32 %v2729_v41 }
 0x5d7   : > { %2929 = vmatpush.bf16.msrb.mxu0 %v2917_v9 }
 0x5dc   : > { %3194 = vrot.lane.b32.xlu2 %v8041_v57, %s5914_s27  ;;  %v5444_v62 = vpop.eup %5443 }
 0x5dd   : > { %v2732_v28 = vpop.xlane.xlu0 %2731  ;;  %v2783_v23 = vmul.f32 %v5444_v62, %v6926_v38 }
 0x5de   : > { %5445 = vrcp.f32 %v2732_v28 }
 0x5df   : > { %v2799_v35 = vpack.c.bf16 %v2783_v23, %v2783_v23  ;;  %v7026_v23 = vpop.f32.mrf.mxu3 }
 0x5e1   : > { %v2863_v9 = vunpack.c.l.b16 %v2799_v35 }
 0x5e4   : > { %v5446_v32 = vpop.eup %5445  ;;  %3192 = vrot.lane.b32.xlu2 %v8042_v5, %s5914_s27 }
 0x5e5   : > { %v2784_v58 = vmul.f32 %v5446_v32, %v6935_v56  ;;  %v2753_v30 = vpop.xlane.xlu2 %2752  ;;  %v2741_v44 = vpop.xlane.xlu0 %2740 }
 0x5e6   : > { %5447 = vrcp.f32 %v2741_v44 }
 0x5e7   : > { %v2800_v54 = vpack.c.bf16 %v2784_v58, %v2784_v58 }
 0x5e9   : > { %v2864_v18 = vunpack.c.l.b16 %v2800_v54 }
 0x5eb   : > { %v2865_v40 = vpack.c.b16 %v2864_v18, %v2863_v9 }
 0x5ec   : > { %v5448_v51 = vpop.eup %5447 }
 0x5ed   : > { %v2630_v17 = vpop.xlane.xlu2 %2629  ;;  %5041 = vmatmul.msk.bf16.vlgmr.msra.gmra.mxu0 %vm1240_vm1, %v2865_v40  ;;  %v2787_v63 = vmul.f32 %v5448_v51, %v6943_v3 }
 0x5ee   : > { %v2744_v49 = vpop.xlane.xlu0 %2743  ;;  %v2670_v38 = vsub.f32 %v6907_v55, %v2630_v17  ;;  %2979 = vmatpush.bf16.msra.mxu0 %v2967_v16 }
 0x5ef   : > { %5449 = vrcp.f32 %v2744_v49  ;;  %v2803_v60 = vpack.c.bf16 %v2787_v63, %v2787_v63 }
 0x5f0   : > { %v2689_v47 = vmul.f32 1.442695, %v2670_v38 }
 0x5f1   : > { %v2913_v16 = vunpack.c.l.b16 %v2803_v60 }
 0x5f2   : > { %5451 = vpow2.f32 %v2689_v47 }
 0x5f5   : > { %v5450_v56 = vpop.eup %5449  ;;  %v2639_v19 = vpop.xlane.xlu2 %2638 }
 0x5f6   : > { %v2788_v43 = vmul.f32 %v5450_v56, %v6959_v25  ;;  %v2756_v10 = vpop.xlane.xlu0 %2755  ;;  %v2673_v41 = vsub.f32 %v6910_v2, %v2639_v19  ;;  %v3152_v2 = vsel %vm1009_vm0, %v7002_v13, 0  ;;  %v7038_v13 = vpop.f32.mrf.mxu3 }
 0x5f7   : > { %5453 = vrcp.f32 %v2756_v10 }
 0x5f8   : > { %v2804_v57 = vpack.c.bf16 %v2788_v43, %v2788_v43  ;;  %v7022_v28 = vpop.eup %5451  ;;  %5455 = vrcp.f32 %v2753_v30  ;;  %v2695_v55 = vmul.f32 1.442695, %v2673_v41 }
 0x5f9   : > { %v2724_v3 = vsel %vm1240_vm1, %v7022_v28, 0.0 }
 0x5fa   : > { %v2914_v62 = vunpack.c.l.b16 %v2804_v57  ;;  %5457 = vpow2.f32 %v2695_v55  ;;  %2725 = vadd.xlane.f32.xlu0 %v2724_v3 }
 0x5fc   : > { %v2915_v25 = vpack.c.b16 %v2914_v62, %v2913_v16 }
 0x5fd   : > { %v5454_v32 = vpop.eup %5453  ;;  %v2651_v56 = vpop.xlane.xlu2 %2650 }
 0x5fe   : > { %5043 = vmatmul.msk.bf16.vlgmr.msrb.gmra.mxu0 %vm1240_vm1, %v2915_v25  ;;  %v2642_v5 = vpop.xlane.xlu0 %2641  ;;  %v5456_v35 = vpop.eup %5455  ;;  %v2792_v30 = vmul.f32 %v5454_v32, %v6969_v36  ;;  %v2677_v41 = vsub.f32 %v6922_v12, %v2651_v56 }
 0x5ff   : > { %3161 = vmatpush.bf16.xpose.msrb.mxu0 %v3152_v2  ;;  %v2674_v58 = vsub.f32 %v6914_v37, %v2642_v5  ;;  %v2791_v9 = vmul.f32 %v5456_v35, %v6947_v39  ;;  %v7042_v36 = vpop.f32.mrf.mxu3  ;;  %v8043_v39 = vld [vmem:[#allocation33_spill] sm:$0xff]  ;;  %v2666_v12 = vpop.xlane.xlu1 %2665 }
 0x600   : > { %v7033_v44 = vpop.eup %5457  ;;  %v2808_v40 = vpack.c.bf16 %v2792_v30, %v2792_v30  ;;  %v2703_v55 = vmul.f32 1.442695, %v2677_v41  ;;  %v8052_v41 = vld [vmem:[#allocation21_spill] sm:$0xff] }
 0x601   : > { %v2697_v54 = vmul.f32 1.442695, %v2674_v58  ;;  %v2733_v18 = vsel %vm1240_vm1, %v7033_v44, 0.0  ;;  %v2807_v17 = vpack.c.bf16 %v2791_v9, %v2791_v9  ;;  %v2682_v58 = vsub.f32 %v6954_v15, %v2666_v12  ;;  %v7113_v12 = vpop.f32.mrf.mxu2 }
 0x602   : > { %2734 = vadd.xlane.f32.xlu1 %v2733_v18  ;;  %v2964_v49 = vunpack.c.l.b16 %v2808_v40 }
 0x603   : > { %5459 = vpow2.f32 %v2697_v54  ;;  %v2963_v37 = vunpack.c.l.b16 %v2807_v17 }
 0x604   : > { %5461 = vpow2.f32 %v2703_v55 }
 0x605   : > { %v2965_v38 = vpack.c.b16 %v2964_v49, %v2963_v37  ;;  %v2654_v43 = vpop.xlane.xlu2 %2653 }
 0x606   : > { %v2678_v62 = vsub.f32 %v6932_v21, %v2654_v43 }
 0x607   : > { %v7049_v63 = vpop.f32.mrf.mxu3 }
 0x608   : > { %v2705_v25 = vmul.f32 1.442695, %v2678_v62 }
 0x609   : > { %v7040_v51 = vpop.eup %5459 }
 0x60a   : > { %v2736_v47 = vsel %vm1240_vm1, %v7040_v51, 0.0  ;;  %v7073_v35 = vpop.eup %5461  ;;  %5463 = vpow2.f32 %v2705_v25 }
 0x60b   : > { %v2745_v21 = vsel %vm1240_vm1, %v7073_v35, 0.0 }
 0x60d   : > { %2737 = vadd.xlane.f32.xlu2 %v2736_v47  ;;  %v1862_v47 = vpop.xlane.xlu1 %1861 }
 0x60e   : > { %5045 = vmatmul.msk.bf16.vlgmr.msra.gmra.mxu0 %vm1240_vm1, %v2965_v38  ;;  %2991 = vrot.lane.b32.xlu0 %v8043_v39, %s5912_s17 }
 0x60f   : > { %v7055_v60 = vpop.f32.mrf.mxu3 }
 0x610   : > { %8044 = vst [vmem:[#allocation20_spill] sm:$0xff] %v7055_v60  ;;  %v7081_v9 = vpop.eup %5463 }
 0x611   : > { %v2748_v15 = vsel %vm1240_vm1, %v7081_v9, 0.0 }
 0x615   : > { %v7109_v55 = vpop.permute.xlu1 %3168 }
 0x617   : > { %v7059_v19 = vpop.f32.mrf.mxu3 }
 0x618   : > { %8045 = vst [vmem:[#allocation30_spill] sm:$0xff] %v7059_v19 }
 0x61b   : > { %3242 = vrot.lane.b32.xlu1 %v6283_v27, %s5914_s27  ;;  %v1857_v27 = vsel %vm1240_vm1, %v6945_v6, -inf }
 0x61e   : > { %5064 = vmatmul.msk.bf16.vlgmr.msrb.gmra.mxu0 %vm1009_vm0, %v7005_v48  ;;  %v2663_v48 = vpop.xlane.xlu0 %2662 }
 0x61f   : > { %v7062_v57 = vpop.f32.mrf.mxu3 }
 0x620   : > { %8046 = vst [vmem:[#allocation25_spill] sm:$0xff] %v7062_v57 }
 0x625   : > { %3218 = vrot.lane.b32.xlu2 %v8034_v45, %s5914_s27  ;;  %v2681_v45 = vsub.f32 %v6941_v11, %v2663_v48  ;;  %v2713_v11 = vmul.f32 1.442695, %v2682_v58  ;;  %v1881_v58 = vsel %vm1240_vm1, %v7113_v12, -inf }
 0x627   : > { %v7070_v3 = vpop.f32.mrf.mxu3  ;;  %v2711_v2 = vmul.f32 1.442695, %v2681_v45 }
 0x628   : > { %8047 = vst [vmem:[#allocation22_spill] sm:$0xff] %v7070_v3 }
 0x629   : > { %5465 = vpow2.f32 %v2711_v2 }
 0x62a   : > { %5467 = vpow2.f32 %v2713_v11 }
 0x62f   : > { %v2723_v10 = vpop.xlane.xlu2 %2722  ;;  %v7078_v54 = vpop.f32.mrf.mxu3 }
 0x630   : > { %8048 = vst [vmem:[#allocation31_spill] sm:$0xff] %v7078_v54  ;;  %v7083_v18 = vpop.eup %5465  ;;  %5469 = vrcp.f32 %v2723_v10 }
 0x631   : > { %v2757_v40 = vsel %vm1240_vm1, %v7083_v18, 0.0  ;;  %v7091_v17 = vpop.eup %5467 }
 0x632   : > { %v2760_v37 = vsel %vm1240_vm1, %v7091_v17, 0.0 }
 0x636   : > { %v5470_v43 = vpop.eup %5469 }
 0x637   : > { %v7064_v16 = vpop.permute.xlu2 %3170  ;;  %v7093_v49 = vpop.f32.mrf.mxu3 }
 0x638   : > { %1858 = vmax.xlane.f32.xlu0 %v1857_v27  ;;  %8049 = vst [vmem:[#allocation29_spill] sm:$0xff] %v7093_v49  ;;  %v2781_v27 = vmul.f32 %v5470_v43, %v6998_v0 }
 0x63a   : > { %v2797_v62 = vpack.c.bf16 %v2781_v27, %v2781_v27 }
 0x63f   : > { %v3195_v32 = vpop.permute.xlu2 %3194 }
 0x640   : > { %v3200_v5 = vsel %vm1009_vm0, %v3195_v32, 0  ;;  %v2838_v32 = vunpack.c.l.b16 %v2797_v62 }
 0x641   : > { %3209 = vmatpush.bf16.xpose.msra.mxu3 %v3200_v5 }
 0x645   : > { %2746 = vadd.xlane.f32.xlu1 %v2745_v21 }
 0x647   : > { %v3193_v30 = vpop.permute.xlu2 %3192 }
 0x648   : > { %5066 = vmatmul.msk.bf16.vlgmr.msra.gmra.mxu3 %vm1009_vm0, %v3193_v30  ;;  %v1906_v30 = vsub.f32 %v6961_v14, %v1862_v47  ;;  %v8057_v14 = vld [vmem:[#allocation32_spill] sm:$0xff] }
 0x64c   : > { %3216 = vrot.lane.b32.xlu0 %v6273_v7, %s5914_s27  ;;  %v7099_v7 = vpop.f32.mrf.mxu3 }
 0x64d   : > { %2749 = vadd.xlane.f32.xlu1 %v2748_v15  ;;  %8050 = vst [vmem:[#allocation26_spill] sm:$0xff] %v7099_v7 }
 0x64e   : > { %2758 = vadd.xlane.f32.xlu2 %v2757_v40 }
 0x654   : > { %3264 = vrot.lane.b32.xlu0 %v6306_v53, %s5914_s27  ;;  %v7101_v38 = vpop.f32.mrf.mxu3 }
 0x655   : > { %2761 = vadd.xlane.f32.xlu1 %v2760_v37  ;;  %8051 = vst [vmem:[#allocation24_spill] sm:$0xff] %v7101_v38 }
 0x65c   : > { %v7107_v53 = vpop.f32.mrf.mxu3 }
 0x65d   : > { %8053 = vst [vmem:[#allocation28_spill] sm:$0xff] %v7107_v53 }
 0x664   : > { %v7115_v2 = vpop.f32.mrf.mxu3 }
 0x665   : > { %8054 = vst [vmem:[#allocation27_spill] sm:$0xff] %v7115_v2 }
 0x666   : > { %3240 = vrot.lane.b32.xlu2 %v6281_v24, %s5914_s27 }
 0x66c   : > { %v7121_v21 = vpop.f32.mrf.mxu3 }
 0x66d   : > { %v2726_v56 = vpop.xlane.xlu0 %2725  ;;  %8055 = vst [vmem:[#allocation33_spill] sm:$0xff] %v7121_v21 }
 0x66e   : > { %5471 = vrcp.f32 %v2726_v56  ;;  %3266 = vrot.lane.b32.xlu1 %v8052_v41, %s5914_s27  ;;  %v1923_v41 = vmul.f32 1.442695, %v1906_v30 }
 0x674   : > { %v5472_v48 = vpop.eup %5471  ;;  %v7127_v62 = vpop.f32.mrf.mxu3 }
 0x675   : > { %v2782_v45 = vmul.f32 %v5472_v48, %v7022_v28  ;;  %v2735_v24 = vpop.xlane.xlu1 %2734  ;;  %8056 = vst [vmem:[#allocation21_spill] sm:$0xff] %v7127_v62 }
 0x676   : > { %5473 = vrcp.f32 %v2735_v24 }
 0x677   : > { %v2798_v25 = vpack.c.bf16 %v2782_v45, %v2782_v45 }
 0x679   : > { %v2839_v10 = vunpack.c.l.b16 %v2798_v25 }
 0x67b   : > { %v2840_v5 = vpack.c.b16 %v2839_v10, %v2838_v32 }
 0x67c   : > { %v5474_v28 = vpop.eup %5473  ;;  %v7136_v47 = vpop.f32.mrf.mxu3 }
 0x67d   : > { %5040 = vmatmul.msk.bf16.vlgmr.msra.gmra.mxu1 %vm1240_vm1, %v2840_v5  ;;  %v2785_v11 = vmul.f32 %v5474_v28, %v7033_v44  ;;  %8058 = vst [vmem:[#allocation32_spill] sm:$0xff] %v7136_v47  ;;  %v7147_v28 = vpop.f32.mrf.mxu0 }
 0x67e   : > { %2954 = vmatpush.bf16.msra.mxu1 %v6996_v34  ;;  %1882 = vmax.xlane.f32.xlu0 %v1881_v58 }
 0x67f   : > { %v2801_v40 = vpack.c.bf16 %v2785_v11, %v2785_v11 }
 0x680   : > { %v2738_v0 = vpop.xlane.xlu2 %2737  ;;  %v2992_v25 = vpop.permute.xlu0 %2991 }
 0x681   : > { %5475 = vrcp.f32 %v2738_v0  ;;  %v2888_v34 = vunpack.c.l.b16 %v2801_v40 }
 0x682   : > { %5477 = vpow2.f32 %v1923_v41 }
 0x684   : > { %v7140_v24 = vpop.f32.mrf.mxu3 }
 0x685   : > { %8059 = vst [vmem:[#allocation34_spill] sm:$0xff] %v7140_v24 }
 0x687   : > { %v5476_v15 = vpop.eup %5475 }
 0x688   : > { %v2786_v37 = vmul.f32 %v5476_v15, %v7040_v51  ;;  %v3219_v56 = vpop.permute.xlu2 %3218  ;;  %v7132_v44 = vpop.eup %5477 }
 0x689   : > { %v3224_v43 = vsel %vm1009_vm0, %v3219_v56, 0  ;;  %v1956_v51 = vsel %vm1240_vm1, %v7132_v44, 0.0 }
 0x68a   : > { %v2802_v27 = vpack.c.bf16 %v2786_v37, %v2786_v37  ;;  %3233 = vmatpush.bf16.xpose.msra.mxu0 %v3224_v43  ;;  %v7155_v37 = vpop.f32.mrf.mxu2 }
 0x68b   : > { %v1884_v43 = vsel %vm1240_vm1, %v7155_v37, -inf }
 0x68c   : > { %v2889_v48 = vunpack.c.l.b16 %v2802_v27  ;;  %v7142_v10 = vpop.f32.mrf.mxu3 }
 0x68d   : > { %8060 = vst [vmem:[#allocation35_spill] sm:$0xff] %v7142_v10  ;;  %v3243_v0 = vpop.permute.xlu1 %3242 }
 0x68e   : > { %v2890_v45 = vpack.c.b16 %v2889_v48, %v2888_v34 }
 0x690   : > { %5042 = vmatmul.msk.bf16.vlgmr.msrb.gmra.mxu1 %vm1240_vm1, %v2890_v45 }
 0x691   : > { %3004 = vmatpush.bf16.msrb.mxu1 %v2992_v25 }
 0x692   : > { %3288 = vrot.lane.b32.xlu0 %v8057_v14, %s5914_s27 }
 0x694   : > { %v7151_v30 = vpop.f32.mrf.mxu3 }
 0x695   : > { %8061 = vst [vmem:[#allocation36_spill] sm:$0xff] %v7151_v30  ;;  %v3176_v30 = vsel %vm1009_vm0, %v7064_v16, 0 }
 0x698   : > { %1957 = vadd.xlane.f32.xlu1 %v1956_v51 }
 0x69a   : > { %2154 = vrot.lane.b32.xlu0 %v6601_v22, %s5913_s19 }
 0x69c   : > { %v7162_v41 = vpop.f32.mrf.mxu3 }
 0x69d   : > { %v3312_v48 = vsel %vm1240_vm1, %v7162_v41, -inf }
 0x6ab   : > { %v1859_v32 = vpop.xlane.xlu0 %1858 }
 0x6ac   : > { %v1905_v5 = vsub.f32 %v6945_v6, %v1859_v32  ;;  %v7157_v6 = vpop.f32.mrf.mxu0 }
 0x6ae   : > { %v1921_v58 = vmul.f32 1.442695, %v1905_v5 }
 0x6b0   : > { %5479 = vpow2.f32 %v1921_v58 }
 0x6b1   : > { %2054 = vrot.lane.b32.xlu1 %v8037_v29, %s5913_s19  ;;  %s4696_s19 = scalar_lea.hbm %s7977_s12, %s5136_s7 }
 0x6b2   : > { %s4700_s20 = sshll.u32 %s4696_s19, 4  ;;  %s4701_s20 = int_to_ptr.hbm [resolvable:$true] %s4700_s20 }
 0x6b3   : > { %s5839_s26 = sshra.s32 %s4701_s20, 4  ;;  %s5840_s26 = int_to_ptr.hbm [resolvable:$true] %s5839_s26 }
 0x6b4   : > { %v7167_v25 = vpop.f32.mrf.mxu0  ;;  %s5841_s16 = scalar_lea.hbm %s5840_s26, 8  ;;  %p5846_p12 = scmp.lt.s32.totalorder %s5840_s26, %s7977_s12 }
 0x6b5   : > { %p5842_p1 = scmp.ne.s32.totalorder %s5840_s26, %s5841_s16  ;;  %p5847_p8 = scmp.lt.s32.totalorder %s5845_s30, %s5841_s16 }
 0x6b6   : > { %v7149_v11 = vpop.eup %5479 }
 0x6b7   : > { %v1953_v15 = vsel %vm1240_vm1, %v7149_v11, 0.0  ;;  %p5843_p3 = pnand %p5842_p1, %p6082_p13  ;;  %p5848_p7 = por %p5847_p8, %p5846_p12 }
 0x6b8   : > { %v2747_v40 = vpop.xlane.xlu1 %2746  ;;  %1954 = vadd.xlane.f32.xlu2 %v1953_v15 }
 0x6b9   : > { %5481 = vrcp.f32 %v2747_v40  ;;  %p5844_p5 = pneg %p5843_p3 }
 0x6bb   : > { %p5849_p9 = pnand %p5848_p7, %p5844_p5 }
 0x6be   : > { %v3217_v56 = vpop.permute.xlu0 %3216 }
 0x6bf   : > { %5067 = vmatmul.msk.bf16.vlgmr.msra.gmra.mxu0 %vm1009_vm0, %v3217_v56  ;;  %v5482_v34 = vpop.eup %5481 }
 0x6c0   : > { %v2750_v27 = vpop.xlane.xlu1 %2749  ;;  %1885 = vmax.xlane.f32.xlu2 %v1884_v43  ;;  %v2789_v45 = vmul.f32 %v5482_v34, %v7073_v35  ;;  %v7172_v35 = vpop.f32.mrf.mxu0 }
 0x6c1   : > { %5483 = vrcp.f32 %v2750_v27  ;;  %v2759_v5 = vpop.xlane.xlu2 %2758 }
 0x6c2   : > { %v2805_v51 = vpack.c.bf16 %v2789_v45, %v2789_v45 }
 0x6c4   : > { %3313 = vmax.xlane.f32.xlu0 %v3312_v48  ;;  %v2938_v40 = vunpack.c.l.b16 %v2805_v51  ;;  %v8062_v51 = vld [vmem:[#allocation23_spill] sm:$0xff] }
 0x6c7   : > { %v5484_v14 = vpop.eup %5483 }
 0x6c8   : > { %v2790_v32 = vmul.f32 %v5484_v14, %v7081_v9  ;;  %v2762_v58 = vpop.xlane.xlu1 %2761 }
 0x6c9   : > { %5485 = vrcp.f32 %v2762_v58 }
 0x6ca   : > { %v2806_v15 = vpack.c.bf16 %v2790_v32, %v2790_v32  ;;  %5487 = vrcp.f32 %v2759_v5  ;;  %v7179_v32 = vpop.f32.mrf.mxu0 }
 0x6cc   : > { %v2939_v56 = vunpack.c.l.b16 %v2806_v15  ;;  %v3248_v15 = vsel %vm1009_vm0, %v3243_v0, 0 }
 0x6ce   : > { %v2940_v43 = vpack.c.b16 %v2939_v56, %v2938_v40 }
 0x6cf   : > { %v5486_v27 = vpop.eup %5485 }
 0x6d0   : > { %5044 = vmatmul.msk.bf16.vlgmr.msra.gmra.mxu1 %vm1240_vm1, %v2940_v43  ;;  %v5488_v34 = vpop.eup %5487  ;;  %v2794_v9 = vmul.f32 %v5486_v27, %v7091_v17  ;;  %v3265_v17 = vpop.permute.xlu0 %3264 }
 0x6d1   : > { %3185 = vmatpush.bf16.xpose.msra.mxu1 %v3176_v30  ;;  %v2793_v48 = vmul.f32 %v5488_v34, %v7083_v18  ;;  %v7192_v34 = vpop.f32.mrf.mxu3 }
 0x6d2   : > { %v2810_v45 = vpack.c.bf16 %v2794_v9, %v2794_v9  ;;  %v7184_v18 = vpop.f32.mrf.mxu0 }
 0x6d3   : > { %v2809_v14 = vpack.c.bf16 %v2793_v48, %v2793_v48 }
 0x6d4   : > { %v2989_v5 = vunpack.c.l.b16 %v2810_v45 }
 0x6d5   : > { %v2988_v58 = vunpack.c.l.b16 %v2809_v14  ;;  %v3241_v14 = vpop.permute.xlu2 %3240 }
 0x6d7   : > { %v2990_v16 = vpack.c.b16 %v2989_v5, %v2988_v58 }
 0x6d8   : > { %3290 = vrot.lane.b32.xlu2 %v8062_v51, %s5914_s27 }
 0x6d9   : > { %v7200_v51 = vpop.f32.mrf.mxu3 }
 0x6da   : > { %v7187_v56 = vpop.f32.mrf.mxu0 }
 0x6e0   : > { %v3267_v40 = vpop.permute.xlu1 %3266  ;;  %5046 = vmatmul.msk.bf16.vlgmr.msrb.gmra.mxu1 %vm1240_vm1, %v2990_v16 }
 0x6e1   : > { %v3272_v30 = vsel %vm1009_vm0, %v3267_v40, 0  ;;  %3257 = vmatpush.bf16.xpose.msrb.mxu1 %v3248_v15  ;;  %v7207_v5 = vpop.f32.mrf.mxu3 }
 0x6e2   : > { %3281 = vmatpush.bf16.xpose.msrb.mxu3 %v3272_v30  ;;  %v7194_v9 = vpop.f32.mrf.mxu0  ;;  %v3333_v58 = vsel %vm1240_vm1, %v7207_v5, -inf }
 0x6e9   : > { %5069 = vmatmul.msk.bf16.vlgmr.msrb.gmra.mxu3 %vm1009_vm0, %v3265_v17 }
 0x6f0   : > { %5065 = vmatmul.msk.bf16.vlgmr.msra.gmra.mxu1 %vm1009_vm0, %v7109_v55  ;;  %v7203_v55 = vpop.f32.mrf.mxu0 }
 0x6f1   : > { %v1883_v43 = vpop.xlane.xlu0 %1882 }
 0x6f2   : > { %v1913_v0 = vsub.f32 %v7113_v12, %v1883_v43  ;;  %v3318_v12 = vsel %vm1240_vm1, %v7203_v55, -inf }
 0x6f4   : > { %v1937_v27 = vmul.f32 1.442695, %v1913_v0 }
 0x6f6   : > { %5489 = vpow2.f32 %v1937_v27 }
 0x6f8   : > { %v7217_v24 = vpop.f32.mrf.mxu0 }
 0x6fa   : > { %v7211_v17 = vpop.f32.mrf.mxu1 }
 0x6fc   : > { %v7196_v48 = vpop.eup %5489 }
 0x6fd   : > { %v1977_v45 = vsel %vm1240_vm1, %v7196_v48, 0.0 }
 0x6fe   : > { %1978 = vadd.xlane.f32.xlu1 %v1977_v45 }
 0x700   : > { %5068 = vmatmul.msk.bf16.vlgmr.msrb.gmra.mxu1 %vm1009_vm0, %v3241_v14 }
 0x702   : > { %v7214_v14 = vpop.f32.mrf.mxu1 }
 0x704   : > { %v3289_v16 = vpop.permute.xlu0 %3288 }
 0x706   : > { %3319 = vmax.xlane.f32.xlu1 %v3318_v12 }
 0x70b   : > { %v1958_v15 = vpop.xlane.xlu1 %1957 }
 0x70c   : > { %v2155_v30 = vpop.permute.xlu0 %2154  ;;  %5491 = vrcp.f32 %v1958_v15 }
 0x70d   : > { %v7220_v2 = vpop.f32.mrf.mxu1 }
 0x70e   : > { %3334 = vmax.xlane.f32.xlu1 %v3333_v58 }
 0x712   : > { %v5492_v0 = vpop.eup %5491 }
 0x713   : > { %v2018_v27 = vmul.f32 %v5492_v0, %v7132_v44 }
 0x715   : > { %v2034_v12 = vpack.c.bf16 %v2018_v27, %v2018_v27 }
 0x717   : > { %v2052_v47 = vunpack.c.l.b16 %v2034_v12  ;;  %v3315_v12 = vsel %vm1240_vm1, %v7192_v34, -inf }
 0x723   : > { %v2055_v40 = vpop.permute.xlu1 %2054 }
 0x724   : > { %2067 = vmatpush.bf16.msrb.mxu2 %v2055_v40 }
 0x728   : > { %2167 = vmatpush.bf16.msra.mxu2 %v2155_v30 }
 0x72b   : > { %v1955_v43 = vpop.xlane.xlu2 %1954 }
 0x72c   : > { %5493 = vrcp.f32 %v1955_v43 }
 0x732   : > { %v5494_v45 = vpop.eup %5493 }
 0x733   : > { %v2017_v58 = vmul.f32 %v5494_v45, %v7149_v11  ;;  %v1886_v10 = vpop.xlane.xlu2 %1885 }
 0x734   : > { %v1914_v40 = vsub.f32 %v7155_v37, %v1886_v10 }
 0x735   : > { %v2033_v30 = vpack.c.bf16 %v2017_v58, %v2017_v58 }
 0x736   : > { %v1939_v15 = vmul.f32 1.442695, %v1914_v40 }
 0x737   : > { %v2051_v62 = vunpack.c.l.b16 %v2033_v30  ;;  %v3314_v43 = vpop.xlane.xlu0 %3313 }
 0x738   : > { %5495 = vpow2.f32 %v1939_v15  ;;  %v3360_v0 = vsub.f32 %v7162_v41, %v3314_v43  ;;  %v3330_v43 = vsel %vm1240_vm1, %v7200_v51, -inf }
 0x739   : > { %v2053_v21 = vpack.c.b16 %v2052_v47, %v2051_v62 }
 0x73a   : > { %v3376_v47 = vmul.f32 1.442695, %v3360_v0 }
 0x73b   : > { %4991 = vmatmul.msk.bf16.vlgmr.msrb.gmra.mxu2 %vm1240_vm1, %v2053_v21  ;;  %v3291_v44 = vpop.permute.xlu2 %3290  ;;  %v7233_v21 = vpop.f32.mrf.mxu1 }
 0x73c   : > { %v3296_v11 = vsel %vm1009_vm0, %v3291_v44, 0  ;;  %v7225_v27 = vpop.f32.mrf.mxu0  ;;  %5497 = vpow2.f32 %v3376_v47 }
 0x73d   : > { %3305 = vmatpush.bf16.xpose.msrb.mxu0 %v3296_v11  ;;  %v3336_v10 = vsel %vm1240_vm1, %v7225_v27, -inf }
 0x73e   : > { %v5496_v37 = vpop.eup %5495  ;;  %3337 = vmax.xlane.f32.xlu1 %v3336_v10 }
 0x73f   : > { %v1980_v62 = vsel %vm1240_vm1, %v5496_v37, 0.0 }
 0x740   : > { %1981 = vadd.xlane.f32.xlu2 %v1980_v62 }
 0x742   : > { %v7239_v58 = vpop.eup %5497 }
 0x743   : > { %v3408_v30 = vsel %vm1240_vm1, %v7239_v58, 0.0 }
 0x744   : > { %v7230_v45 = vpop.f32.mrf.mxu0  ;;  %5070 = vmatmul.msk.bf16.vlgmr.msrb.gmra.mxu0 %vm1009_vm0, %v3289_v16  ;;  %v3321_v16 = vsel %vm1240_vm1, %v7217_v24, -inf }
 0x745   : > { %v3339_v41 = vsel %vm1240_vm1, %v7230_v45, -inf }
 0x746   : > { %3340 = vmax.xlane.f32.xlu0 %v3339_v41  ;;  %v5176_v41 = vld [vmem:[#allocation10 + $0x18] sm:$0xff] }
 0x747   : > { %2299 = vmatpush.bf16.msrb.mxu2 %v5176_v41 }
 0x748   : > { %3316 = vmax.xlane.f32.xlu2 %v3315_v12  ;;  %v5175_v12 = vld [vmem:[#allocation10 + $0x10] sm:$0xff] }
 0x74b   : > { %2300 = vmatpush.bf16.msrb.mxu2 %v5175_v12 }
 0x74d   : > { %v7241_v40 = vpop.f32.mrf.mxu1 }
 0x74e   : > { %3409 = vadd.xlane.f32.xlu0 %v3408_v30 }
 0x750   : > { %3322 = vmax.xlane.f32.xlu2 %v3321_v16 }
 0x755   : > { %v7247_v15 = vpop.f32.mrf.mxu1 }
 0x758   : > { %3331 = vmax.xlane.f32.xlu2 %v3330_v43 }
 0x75d   : > { %v7251_v44 = vpop.f32.mrf.mxu1 }
 0x765   : > { %v7253_v0 = vpop.f32.mrf.mxu1 }
 0x76d   : > { %v7255_v11 = vpop.f32.mrf.mxu1 }
 0x771   : > { %v1979_v47 = vpop.xlane.xlu1 %1978 }
 0x772   : > { %5499 = vrcp.f32 %v1979_v47 }
 0x775   : > { %v7257_v10 = vpop.f32.mrf.mxu1 }
 0x776   : > { %v3327_v62 = vsel %vm1240_vm1, %v7257_v10, -inf }
 0x777   : > { %3328 = vmax.xlane.f32.xlu0 %v3327_v62 }
 0x778   : > { %v5500_v16 = vpop.eup %5499 }
 0x779   : > { %v2025_v43 = vmul.f32 %v5500_v16, %v7196_v48  ;;  %v3320_v7 = vpop.xlane.xlu1 %3319 }
 0x77b   : > { %v2041_v38 = vpack.c.bf16 %v2025_v43, %v2025_v43 }
 0x77d   : > { %v2151_v47 = vunpack.c.l.b16 %v2041_v38  ;;  %v7280_v38 = vpop.f32.mrf.mxu3 }
 0x78b   : > { %3509 = vrot.lane.b32.xlu0 %v8037_v29, %s5914_s27  ;;  %v3362_v29 = vsub.f32 %v7203_v55, %v3320_v7 }
 0x78d   : > { %v3380_v19 = vmul.f32 1.442695, %v3362_v29  ;;  %v2251_v29 = vpack.c.bf16 %v6775_v26, %v6773_v61  ;;  %v3348_v61 = vsel %vm1240_vm1, %v7280_v38, -inf }
 0x7b3   : > { %v1982_v30 = vpop.xlane.xlu2 %1981 }
 0x7b4   : > { %5501 = vrcp.f32 %v1982_v30 }
 0x7b9   : > { %v7291_v43 = vpop.xlane.xlu0 %3340 }
 0x7ba   : > { %v5502_v53 = vpop.eup %5501 }
 0x7bb   : > { %v2026_v49 = vmul.f32 %v5502_v53, %v5496_v37  ;;  %v3317_v54 = vpop.xlane.xlu2 %3316  ;;  %v2250_v37 = vpack.c.bf16 %v7038_v13, %v7026_v23  ;;  %v2252_v23 = vpack.c.bf16 %v6886_v4, %v6881_v59  ;;  %v7304_v13 = vpop.xlane.xlu1 %3334 }
 0x7bc   : > { %v3361_v62 = vsub.f32 %v7192_v34, %v3317_v54  ;;  %v7285_v34 = vpop.f32.mrf.mxu3  ;;  %v7315_v4 = vpop.f32.mrf.mxu1 }
 0x7bd   : > { %v2042_v3 = vpack.c.bf16 %v2026_v49, %v2026_v49  ;;  %v3351_v55 = vsel %vm1240_vm1, %v7285_v34, -inf }
 0x7be   : > { %v3378_v57 = vmul.f32 1.442695, %v3361_v62  ;;  %v2069_v48 = vpop.f32.mrf.mxu2 }
 0x7bf   : > { %v2152_v41 = vunpack.c.l.b16 %v2042_v3 }
 0x7c0   : > { %5503 = vpow2.f32 %v3378_v57 }
 0x7c1   : > { %v2153_v12 = vpack.c.b16 %v2152_v41, %v2151_v47  ;;  %5505 = vpow2.f32 %v3380_v19  ;;  %v3410_v62 = vpop.xlane.xlu0 %3409 }
 0x7c3   : > { %v3323_v60 = vpop.xlane.xlu2 %3322  ;;  %4995 = vmatmul.msk.bf16.vlgmr.msra.gmra.mxu2 %vm1240_vm1, %v2153_v12 }
 0x7c4   : > { %v3363_v30 = vsub.f32 %v7217_v24, %v3323_v60  ;;  %v3324_v24 = vsel %vm1240_vm1, %v7255_v11, -inf }
 0x7c6   : > { %v7268_v16 = vpop.eup %5503  ;;  %v3382_v53 = vmul.f32 1.442695, %v3363_v30  ;;  %v2071_v3 = vpop.f32.mrf.mxu2 }
 0x7c7   : > { %v3411_v54 = vsel %vm1240_vm1, %v7268_v16, 0.0  ;;  %v7272_v49 = vpop.eup %5505  ;;  %v2249_v19 = vpack.c.bf16 %v2071_v3, %v2069_v48  ;;  %v7309_v48 = vpop.f32.mrf.mxu0 }
 0x7c8   : > { %5507 = vpow2.f32 %v3382_v53  ;;  %3412 = vadd.xlane.f32.xlu2 %v3411_v54  ;;  %v3414_v60 = vsel %vm1240_vm1, %v7272_v49, 0.0  ;;  %v3342_v53 = vsel %vm1240_vm1, %v7315_v4, -inf }
 0x7cb   : > { %v3332_v3 = vpop.xlane.xlu2 %3331 }
 0x7ce   : > { %v7274_v57 = vpop.eup %5507 }
 0x7cf   : > { %v3417_v7 = vsel %vm1240_vm1, %v7274_v57, 0.0 }
 0x7d0   : > { %3418 = vadd.xlane.f32.xlu1 %v3417_v7  ;;  %3415 = vadd.xlane.f32.xlu2 %v3414_v60  ;;  %v7322_v7 = vpop.f32.mrf.mxu1  ;;  %v3366_v60 = vsub.f32 %v7200_v51, %v3332_v3 }
 0x7d3   : > { %5007 = vmatmul.msk.bf16.vlgmr.msrb.gmra.mxu2 %vm1009_vm0, %v2249_v19  ;;  %v3345_v19 = vsel %vm1240_vm1, %v7322_v7, -inf }
 0x7d8   : > { %3325 = vmax.xlane.f32.xlu1 %v3324_v24  ;;  %v3388_v24 = vmul.f32 1.442695, %v3366_v60 }
 0x7e0   : > { %3352 = vmax.xlane.f32.xlu1 %v3351_v55 }
 0x7e3   : > { %5008 = vmatmul.msk.bf16.gmra.mxu2 %vm1009_vm0, %v2250_v37 }
 0x7e8   : > { %3534 = vrot.lane.b32.xlu2 %v6338_v46, %s5914_s27  ;;  %v3338_v46 = vpop.xlane.xlu1 %3337 }
 0x7e9   : > { %v3368_v12 = vsub.f32 %v7225_v27, %v3338_v46 }
 0x7ea   : > { %v3329_v47 = vpop.xlane.xlu0 %3328 }
 0x7eb   : > { %v3392_v26 = vmul.f32 1.442695, %v3368_v12  ;;  %v3365_v27 = vsub.f32 %v7257_v10, %v3329_v47 }
 0x7ed   : > { %5509 = vpow2.f32 %v3392_v26  ;;  %v3386_v54 = vmul.f32 1.442695, %v3365_v27 }
 0x7ef   : > { %5511 = vpow2.f32 %v3386_v54 }
 0x7f0   : > { %5513 = vpow2.f32 %v3388_v24  ;;  %v3367_v24 = vsub.f32 %v7207_v5, %v7304_v13 }
 0x7f1   : > { %5515 = vrcp.f32 %v3410_v62 }
 0x7f3   : > { %5009 = vmatmul.msk.bf16.gmra.mxu2 %vm1009_vm0, %v2251_v29  ;;  %v7313_v59 = vpop.eup %5509 }
 0x7f4   : > { %v3432_v30 = vsel %vm1240_vm1, %v7313_v59, 0.0 }
 0x7f5   : > { %v7327_v55 = vpop.eup %5511 }
 0x7f6   : > { %v3423_v10 = vsel %vm1240_vm1, %v7327_v55, 0.0  ;;  %v7331_v37 = vpop.eup %5513 }
 0x7f7   : > { %v3426_v51 = vsel %vm1240_vm1, %v7331_v37, 0.0  ;;  %v5516_v47 = vpop.eup %5515 }
 0x7f9   : > { %3559 = vrot.lane.b32.xlu1 %v8035_v50, %s5914_s27  ;;  %v3354_v50 = vsel %vm1240_vm1, %v7309_v48, -inf }
 0x7fd   : > { %v3510_v41 = vpop.permute.xlu0 %3509 }
 0x7fe   : > { %3522 = vmatpush.bf16.msra.mxu1 %v3510_v41  ;;  %v3472_v41 = vmul.f32 %v5516_v47, %v7239_v58 }
 0x800   : > { %v3488_v46 = vpack.c.bf16 %v3472_v41, %v3472_v41 }
 0x803   : > { %5010 = vmatmul.msk.bf16.gmra.mxu2 %vm1009_vm0, %v2252_v23 }
 0x811   : > { %3349 = vmax.xlane.f32.xlu2 %v3348_v61 }
 0x819   : > { %3355 = vmax.xlane.f32.xlu2 %v3354_v50  ;;  %v3506_v50 = vunpack.c.l.b16 %v3488_v46 }
 0x821   : > { %3433 = vadd.xlane.f32.xlu2 %v3432_v30 }
 0x823   : > { %3343 = vmax.xlane.f32.xlu1 %v3342_v53 }
 0x82b   : > { %3346 = vmax.xlane.f32.xlu1 %v3345_v19 }
 0x833   : > { %3424 = vadd.xlane.f32.xlu1 %v3423_v10 }
 0x839   : > { %3584 = vrot.lane.b32.xlu2 %v8038_v31, %s5914_s27 }
 0x83b   : > { %v3413_v29 = vpop.xlane.xlu2 %3412  ;;  %3427 = vadd.xlane.f32.xlu1 %v3426_v51 }
 0x83c   : > { %5517 = vrcp.f32 %v3413_v29 }
 0x841   : > { %3634 = vrot.lane.b32.xlu2 %v6511_v52, %s5914_s27 }
 0x842   : > { %v5518_v23 = vpop.eup %5517 }
 0x843   : > { %v3473_v62 = vmul.f32 %v5518_v23, %v7268_v16  ;;  %v3416_v12 = vpop.xlane.xlu2 %3415  ;;  %v3419_v61 = vpop.xlane.xlu1 %3418 }
 0x844   : > { %5519 = vrcp.f32 %v3416_v12 }
 0x845   : > { %v3489_v31 = vpack.c.bf16 %v3473_v62, %v3473_v62  ;;  %5521 = vrcp.f32 %v3419_v61  ;;  %v3369_v61 = vsub.f32 %v7230_v45, %v7291_v43 }
 0x846   : > { %v2169_v26 = vpop.f32.mrf.mxu2 }
 0x847   : > { %v3507_v30 = vunpack.c.l.b16 %v3489_v31  ;;  %v2254_v31 = vpack.c.bf16 %v7049_v63, %v7042_v36  ;;  %v5178_v63 = vld [vmem:[#allocation10 + $0x28] sm:$0xff] }
 0x848   : > { %3061 = vmatpush.bf16.msra.mxu2 %v5178_v63 }
 0x849   : > { %v3508_v27 = vpack.c.b16 %v3507_v30, %v3506_v50  ;;  %v3394_v50 = vmul.f32 1.442695, %v3369_v61  ;;  %v7363_v30 = vpop.f32.mrf.mxu0 }
 0x84a   : > { %v5520_v53 = vpop.eup %5519 }
 0x84b   : > { %v5522_v54 = vpop.eup %5521  ;;  %v3474_v58 = vmul.f32 %v5520_v53, %v7272_v49  ;;  %v3535_v3 = vpop.permute.xlu2 %3534  ;;  %5071 = vmatmul.msk.bf16.vlgmr.msra.gmra.mxu1 %vm1240_vm1, %v3508_v27  ;;  %v3390_v49 = vmul.f32 1.442695, %v3367_v24  ;;  %v3357_v27 = vsel %vm1240_vm1, %v7363_v30, -inf  ;;  %v5177_v53 = vld [vmem:[#allocation10 + $0x20] sm:$0xff]  ;;  %v3011_v24 = vpack.c.bf16 %v7157_v6, %v7147_v28 }
 0x84c   : > { %v3326_v60 = vpop.xlane.xlu1 %3325  ;;  %v3475_v52 = vmul.f32 %v5522_v54, %v7274_v57  ;;  %3547 = vmatpush.bf16.msra.mxu3 %v3535_v3  ;;  %v2255_v54 = vpack.c.bf16 %v6779_v1, %v6777_v20  ;;  %3062 = vmatpush.bf16.msra.mxu2 %v5177_v53  ;;  %v2256_v3 = vpack.c.bf16 %v6897_v42, %v6891_v33 }
 0x84d   : > { %v3364_v16 = vsub.f32 %v7255_v11, %v3326_v60  ;;  %v3490_v19 = vpack.c.bf16 %v3474_v58, %v3474_v58  ;;  %v3012_v6 = vpack.c.bf16 %v7214_v14, %v7211_v17  ;;  %v3014_v14 = vpack.c.bf16 %v7233_v21, %v7220_v2 }
 0x84e   : > { %v3491_v10 = vpack.c.bf16 %v3475_v52, %v3475_v52  ;;  %v2171_v29 = vpop.f32.mrf.mxu2 }
 0x84f   : > { %v3384_v51 = vmul.f32 1.442695, %v3364_v16  ;;  %v3531_v47 = vunpack.c.l.b16 %v3490_v19  ;;  %v2253_v41 = vpack.c.bf16 %v2171_v29, %v2169_v26 }
 0x850   : > { %v3532_v23 = vunpack.c.l.b16 %v3491_v10 }
 0x851   : > { %5523 = vpow2.f32 %v3384_v51  ;;  %5011 = vmatmul.msk.bf16.gmra.mxu2 %vm1009_vm0, %v2253_v41 }
 0x852   : > { %v3533_v46 = vpack.c.b16 %v3532_v23, %v3531_v47  ;;  %5525 = vpow2.f32 %v3390_v49 }
 0x854   : > { %5072 = vmatmul.msk.bf16.vlgmr.msra.gmra.mxu3 %vm1240_vm1, %v3533_v46  ;;  %v3353_v57 = vpop.xlane.xlu1 %3352  ;;  %v3013_v46 = vpack.c.bf16 %v7172_v35, %v7167_v25  ;;  %v3015_v25 = vpack.c.bf16 %v7184_v18, %v7179_v32 }
 0x855   : > { %v3373_v13 = vsub.f32 %v7285_v34, %v3353_v57 }
 0x856   : > { %v7409_v17 = vpop.f32.mrf.mxu2 }
 0x857   : > { %v7349_v11 = vpop.eup %5523  ;;  %v3402_v12 = vmul.f32 1.442695, %v3373_v13 }
 0x858   : > { %v3420_v5 = vsel %vm1240_vm1, %v7349_v11, 0.0  ;;  %v7354_v62 = vpop.eup %5525 }
 0x859   : > { %3421 = vadd.xlane.f32.xlu0 %v3420_v5  ;;  %v3429_v26 = vsel %vm1240_vm1, %v7354_v62, 0.0  ;;  %5527 = vpow2.f32 %v3402_v12 }
 0x85a   : > { %5529 = vpow2.f32 %v3394_v50 }
 0x85e   : > { %v7416_v57 = vpop.f32.mrf.mxu2 }
 0x85f   : > { %v7365_v34 = vpop.eup %5527 }
 0x860   : > { %v3447_v36 = vsel %vm1240_vm1, %v7365_v34, 0.0  ;;  %v7371_v43 = vpop.eup %5529 }
 0x861   : > { %3430 = vadd.xlane.f32.xlu0 %v3429_v26  ;;  %5012 = vmatmul.msk.bf16.gmra.mxu2 %vm1009_vm0, %v2254_v31  ;;  %v3435_v58 = vsel %vm1240_vm1, %v7371_v43, 0.0 }
 0x866   : > { %v7420_v35 = vpop.f32.mrf.mxu2 }
 0x869   : > { %3358 = vmax.xlane.f32.xlu0 %v3357_v27 }
 0x86a   : > { %3448 = vadd.xlane.f32.xlu2 %v3447_v36 }
 0x86b   : > { %v3560_v45 = vpop.permute.xlu1 %3559 }
 0x86c   : > { %3572 = vmatpush.bf16.msra.mxu0 %v3560_v45 }
 0x86e   : > { %v7426_v45 = vpop.f32.mrf.mxu2 }
 0x871   : > { %3436 = vadd.xlane.f32.xlu0 %v3435_v58  ;;  %5013 = vmatmul.msk.bf16.gmra.mxu2 %vm1009_vm0, %v2255_v54 }
 0x881   : > { %5014 = vmatmul.msk.bf16.gmra.mxu2 %vm1009_vm0, %v2256_v3 }
 0x884   : > { %v3350_v60 = vpop.xlane.xlu2 %3349 }
 0x885   : > { %3609 = vrot.lane.b32.xlu0 %v6601_v22, %s5914_s27  ;;  %v3372_v52 = vsub.f32 %v7280_v38, %v3350_v60 }
 0x887   : > { %v3400_v16 = vmul.f32 1.442695, %v3372_v52 }
 0x889   : > { %5531 = vpow2.f32 %v3400_v16 }
 0x88c   : > { %v3356_v20 = vpop.xlane.xlu2 %3355 }
 0x88d   : > { %v3374_v1 = vsub.f32 %v7309_v48, %v3356_v20 }
 0x88f   : > { %v7385_v19 = vpop.eup %5531  ;;  %v3404_v10 = vmul.f32 1.442695, %v3374_v1 }
 0x890   : > { %v3444_v33 = vsel %vm1240_vm1, %v7385_v19, 0.0 }
 0x891   : > { %5533 = vpow2.f32 %v3404_v10  ;;  %5055 = vmatmul.msk.bf16.vlgmr.msra.gmra.mxu2 %vm1009_vm0, %v3011_v24  ;;  %3445 = vadd.xlane.f32.xlu1 %v3444_v33 }
 0x894   : > { %v7392_v22 = vpop.xlane.xlu2 %3433 }
 0x896   : > { %v3344_v42 = vpop.xlane.xlu1 %3343 }
 0x897   : > { %v7394_v38 = vpop.eup %5533  ;;  %v3370_v3 = vsub.f32 %v7315_v4, %v3344_v42 }
 0x898   : > { %v3450_v48 = vsel %vm1240_vm1, %v7394_v38, 0.0 }
 0x899   : > { %3451 = vadd.xlane.f32.xlu1 %v3450_v48  ;;  %v3396_v1 = vmul.f32 1.442695, %v3370_v3 }
 0x89c   : > { %v3585_v51 = vpop.permute.xlu2 %3584 }
 0x89d   : > { %3597 = vmatpush.bf16.msrb.mxu1 %v3585_v51  ;;  %v3017_v51 = vpack.c.bf16 %v7194_v9, %v7187_v56 }
 0x89e   : > { %v3347_v28 = vpop.xlane.xlu1 %3346 }
 0x89f   : > { %v3371_v29 = vsub.f32 %v7322_v7, %v3347_v28 }
 0x8a1   : > { %v3398_v47 = vmul.f32 1.442695, %v3371_v29  ;;  %5056 = vmatmul.msk.bf16.gmra.mxu2 %vm1009_vm0, %v3012_v6 }
 0x8a3   : > { %5535 = vpow2.f32 %v3398_v47 }
 0x8a4   : > { %v3635_v41 = vpop.permute.xlu2 %3634 }
 0x8a5   : > { %3647 = vmatpush.bf16.msrb.mxu0 %v3635_v41 }
 0x8a6   : > { %v3425_v7 = vpop.xlane.xlu1 %3424 }
 0x8a7   : > { %5537 = vrcp.f32 %v3425_v7 }
 0x8a9   : > { %v7402_v23 = vpop.eup %5535 }
 0x8aa   : > { %v3441_v49 = vsel %vm1240_vm1, %v7402_v23, 0.0 }
 0x8ad   : > { %v5538_v12 = vpop.eup %5537 }
 0x8ae   : > { %v3428_v5 = vpop.xlane.xlu1 %3427  ;;  %v3477_v2 = vmul.f32 %v5538_v12, %v7327_v55  ;;  %v5180_v12 = vld [vmem:[#allocation10 + $0x38] sm:$0xff] }
 0x8af   : > { %3442 = vadd.xlane.f32.xlu0 %v3441_v49 }
 0x8b0   : > { %v3493_v61 = vpack.c.bf16 %v3477_v2, %v3477_v2 }
 0x8b1   : > { %5057 = vmatmul.msk.bf16.gmra.mxu2 %vm1009_vm0, %v3013_v46 }
 0x8b2   : > { %v3557_v27 = vunpack.c.l.b16 %v3493_v61 }
 0x8c1   : > { %5058 = vmatmul.msk.bf16.gmra.mxu2 %vm1009_vm0, %v3014_v14 }
 0x8c3   : > { %3684 = vrot.lane.b32.xlu0 %v8043_v39, %s5914_s27 }
 0x8cc   : > { %v3422_v13 = vpop.xlane.xlu0 %3421 }
 0x8cd   : > { %5539 = vrcp.f32 %v3422_v13 }
 0x8ce   : > { %5541 = vrcp.f32 %v3428_v5 }
 0x8d1   : > { %5059 = vmatmul.msk.bf16.gmra.mxu2 %vm1009_vm0, %v3015_v25 }
 0x8d3   : > { %v5540_v21 = vpop.eup %5539 }
 0x8d4   : > { %v3476_v39 = vmul.f32 %v5540_v21, %v7349_v11  ;;  %v3431_v31 = vpop.xlane.xlu0 %3430  ;;  %v5542_v26 = vpop.eup %5541 }
 0x8d5   : > { %5543 = vrcp.f32 %v3431_v31  ;;  %v3478_v36 = vmul.f32 %v5542_v26, %v7331_v37  ;;  %v3016_v37 = vpack.c.bf16 %v7247_v15, %v7241_v40 }
 0x8d6   : > { %v3492_v50 = vpack.c.bf16 %v3476_v39, %v3476_v39 }
 0x8d7   : > { %v3494_v53 = vpack.c.bf16 %v3478_v36, %v3478_v36 }
 0x8d8   : > { %v3556_v63 = vunpack.c.l.b16 %v3492_v50 }
 0x8d9   : > { %v3581_v52 = vunpack.c.l.b16 %v3494_v53 }
 0x8da   : > { %v3558_v32 = vpack.c.b16 %v3557_v27, %v3556_v63 }
 0x8db   : > { %v5544_v18 = vpop.eup %5543 }
 0x8dc   : > { %v3479_v55 = vmul.f32 %v5544_v18, %v7354_v62  ;;  %5073 = vmatmul.msk.bf16.vlgmr.msra.gmra.mxu0 %vm1240_vm1, %v3558_v32  ;;  %v3359_v54 = vpop.xlane.xlu0 %3358  ;;  %v7435_v62 = vpop.f32.mrf.mxu2 }
 0x8dd   : > { %v3375_v11 = vsub.f32 %v7363_v30, %v3359_v54  ;;  %3754 = vmatpush.bf16.msra.mxu0 %v5180_v12  ;;  %v3449_v31 = vpop.xlane.xlu2 %3448  ;;  %v5185_v12 = vld [vmem:[#allocation11 + $0x20] sm:$0xff] }
 0x8de   : > { %v3495_v58 = vpack.c.bf16 %v3479_v55, %v3479_v55 }
 0x8df   : > { %v3406_v60 = vmul.f32 1.442695, %v3375_v11 }
 0x8e0   : > { %v3582_v16 = vunpack.c.l.b16 %v3495_v58 }
 0x8e1   : > { %5545 = vpow2.f32 %v3406_v60  ;;  %5060 = vmatmul.msk.bf16.gmra.mxu2 %vm1009_vm0, %v3016_v37 }
 0x8e2   : > { %v3583_v20 = vpack.c.b16 %v3582_v16, %v3581_v52 }
 0x8e4   : > { %5074 = vmatmul.msk.bf16.vlgmr.msrb.gmra.mxu1 %vm1240_vm1, %v3583_v20  ;;  %v3437_v24 = vpop.xlane.xlu0 %3436  ;;  %v7441_v42 = vpop.f32.mrf.mxu2 }
 0x8e5   : > { %5547 = vrcp.f32 %v3437_v24 }
 0x8e6   : > { %5549 = vrcp.f32 %v7392_v22 }
 0x8e7   : > { %v5546_v4 = vpop.eup %5545  ;;  %5551 = vpow2.f32 %v3396_v1 }
 0x8e8   : > { %v3453_v30 = vsel %vm1240_vm1, %v5546_v4, 0.0 }
 0x8e9   : > { %3454 = vadd.xlane.f32.xlu1 %v3453_v30 }
 0x8eb   : > { %v5548_v40 = vpop.eup %5547 }
 0x8ec   : > { %v5550_v15 = vpop.eup %5549  ;;  %v3481_v33 = vmul.f32 %v5548_v40, %v7371_v43  ;;  %v7448_v49 = vpop.f32.mrf.mxu2 }
 0x8ed   : > { %v5552_v10 = vpop.eup %5551  ;;  %v3480_v48 = vmul.f32 %v5550_v15, %v7313_v59  ;;  %v3018_v59 = vpack.c.bf16 %v7253_v0, %v7251_v44  ;;  %v5179_v0 = vld [vmem:[#allocation10 + $0x30] sm:$0xff] }
 0x8ee   : > { %v3438_v28 = vsel %vm1240_vm1, %v5552_v10, 0.0  ;;  %v3497_v22 = vpack.c.bf16 %v3481_v33, %v3481_v33  ;;  %3755 = vmatpush.bf16.msra.mxu0 %v5179_v0  ;;  %v5184_v0 = vld [vmem:[#allocation11 + $0x18] sm:$0xff] }
 0x8ef   : > { %v3496_v6 = vpack.c.bf16 %v3480_v48, %v3480_v48 }
 0x8f0   : > { %v3607_v29 = vunpack.c.l.b16 %v3497_v22 }
 0x8f1   : > { %3439 = vadd.xlane.f32.xlu1 %v3438_v28  ;;  %5061 = vmatmul.msk.bf16.gmra.mxu2 %vm1009_vm0, %v3017_v51  ;;  %v3606_v47 = vunpack.c.l.b16 %v3496_v6 }
 0x8f3   : > { %v3608_v43 = vpack.c.b16 %v3607_v29, %v3606_v47 }
 0x8f4   : > { %v7453_v56 = vpop.f32.mrf.mxu2 }
 0x8f7   : > { %v3610_v41 = vpop.permute.xlu0 %3609 }
 0x8f8   : > { %3622 = vmatpush.bf16.msrb.mxu3 %v3610_v41 }
 0x8fb   : > { %5075 = vmatmul.msk.bf16.vlgmr.msrb.gmra.mxu3 %vm1240_vm1, %v3608_v43 }
 0x901   : > { %5062 = vmatmul.msk.bf16.gmra.mxu2 %vm1009_vm0, %v3018_v59 }
 0x904   : > { %v3446_v14 = vpop.xlane.xlu1 %3445 }
 0x90a   : > { %3659 = vrot.lane.b32.xlu1 %v6312_v8, %s5914_s27  ;;  %s4686_s27 = scalar_lea.sflag [#allocation4], %s6116_s15 }
 0x90c   : > { %v3452_v7 = vpop.xlane.xlu1 %3451 }
 0x90d   : > { %5553 = vrcp.f32 %v3452_v7  ;;  %v5187_v7 = vld [vmem:[#allocation11 + $0x30] sm:$0xff] }
 0x913   : > { %v5554_v13 = vpop.eup %5553 }
 0x914   : > { %v3486_v44 = vmul.f32 %v5554_v13, %v7394_v38  ;;  %v5186_v13 = vld [vmem:[#allocation11 + $0x28] sm:$0xff] }
 0x916   : > { %v3502_v2 = vpack.c.bf16 %v3486_v44, %v3486_v44 }
 0x918   : > { %v3681_v26 = vunpack.c.l.b16 %v3502_v2  ;;  %v5182_v2 = vld [vmem:[#allocation11 + $0x8] sm:$0xff] }
 0x922   : > { %v3443_v9 = vpop.xlane.xlu0 %3442 }
 0x935   : > { %v3685_v46 = vpop.permute.xlu0 %3684 }
 0x936   : > { %3697 = vmatpush.bf16.msra.mxu3 %v3685_v46 }
 0x95c   : > { %v3455_v5 = vpop.xlane.xlu1 %3454 }
 0x95d   : > { %5555 = vrcp.f32 %v3455_v5 }
 0x95e   : > { %5557 = vrcp.f32 %v3443_v9 }
 0x963   : > { %v5556_v25 = vpop.eup %5555 }
 0x964   : > { %v3487_v21 = vmul.f32 %v5556_v25, %v5546_v4  ;;  %v3440_v8 = vpop.xlane.xlu1 %3439  ;;  %v5558_v61 = vpop.eup %5557  ;;  %v5183_v25 = vld [vmem:[#allocation11 + $0x10] sm:$0xff] }
 0x965   : > { %5559 = vrcp.f32 %v3440_v8  ;;  %v3483_v50 = vmul.f32 %v5558_v61, %v7402_v23  ;;  %v3524_v23 = vpop.f32.mrf.mxu1  ;;  %v5181_v8 = vld [vmem:[#allocation11] sm:$0xff] }
 0x966   : > { %v3503_v39 = vpack.c.bf16 %v3487_v21, %v3487_v21  ;;  %5561 = vrcp.f32 %v3446_v14  ;;  %v5188_v14 = vld [vmem:[#allocation11 + $0x38] sm:$0xff] }
 0x967   : > { %5563 = vrcp.f32 %v3449_v31  ;;  %v3499_v32 = vpack.c.bf16 %v3483_v50, %v3483_v50 }
 0x968   : > { %v3682_v27 = vunpack.c.l.b16 %v3503_v39 }
 0x969   : > { %v3632_v55 = vunpack.c.l.b16 %v3499_v32 }
 0x96a   : > { %v3683_v36 = vpack.c.b16 %v3682_v27, %v3681_v26 }
 0x96b   : > { %v5560_v63 = vpop.eup %5559 }
 0x96c   : > { %v3482_v38 = vmul.f32 %v5560_v63, %v5552_v10  ;;  %5078 = vmatmul.msk.bf16.vlgmr.msra.gmra.mxu3 %vm1240_vm1, %v3683_v36  ;;  %v5562_v53 = vpop.eup %5561  ;;  %v7467_v10 = vpop.f32.mrf.mxu2  ;;  %v8063_v63 = vld [vmem:[#allocation20_spill] sm:$0xff] }
 0x96d   : > { %v5564_v11 = vpop.eup %5563  ;;  %v3484_v58 = vmul.f32 %v5562_v53, %v7385_v19  ;;  %v3526_v4 = vpop.f32.mrf.mxu1  ;;  %v2388_v32 = vadd.f32 %v8063_v63, %v7409_v17 }
 0x96e   : > { %v3498_v18 = vpack.c.bf16 %v3482_v38, %v3482_v38  ;;  %v3485_v60 = vmul.f32 %v5564_v11, %v7365_v34  ;;  %v3704_v30 = vpack.c.bf16 %v3526_v4, %v3524_v23  ;;  %v3549_v19 = vpop.f32.mrf.mxu3  ;;  %v3574_v34 = vpop.f32.mrf.mxu0  ;;  %v8064_v38 = vld [vmem:[#allocation30_spill] sm:$0xff] }
 0x96f   : > { %v3500_v37 = vpack.c.bf16 %v3484_v58, %v3484_v58  ;;  %v7494_v58 = vld [vmem:[%s7973_s8] ss:$0 sm:$0xff] }
 0x970   : > { %v3631_v54 = vunpack.c.l.b16 %v3498_v18  ;;  %v3501_v52 = vpack.c.bf16 %v3485_v60, %v3485_v60  ;;  %v2390_v18 = vadd.f32 %v8064_v38, %v7416_v57 }
 0x971   : > { %v3656_v16 = vunpack.c.l.b16 %v3500_v37 }
 0x972   : > { %v3633_v3 = vpack.c.b16 %v3632_v55, %v3631_v54  ;;  %v3657_v20 = vunpack.c.l.b16 %v3501_v52 }
 0x974   : > { %5076 = vmatmul.msk.bf16.vlgmr.msrb.gmra.mxu0 %vm1240_vm1, %v3633_v3  ;;  %v3658_v24 = vpack.c.b16 %v3657_v20, %v3656_v16  ;;  %v7470_v51 = vpop.f32.mrf.mxu2 }
 0x975   : > { %v3599_v28 = vpop.f32.mrf.mxu1 }
 0x976   : > { %v3551_v40 = vpop.f32.mrf.mxu3  ;;  %v3576_v33 = vpop.f32.mrf.mxu0 }
 0x977   : > { %v3705_v15 = vpack.c.bf16 %v3551_v40, %v3549_v19  ;;  %v3706_v48 = vpack.c.bf16 %v3576_v33, %v3574_v34 }
 0x97c   : > { %v3660_v1 = vpop.permute.xlu1 %3659  ;;  %v7472_v22 = vpop.f32.mrf.mxu2 }
 0x97d   : > { %3672 = vmatpush.bf16.msra.mxu1 %v3660_v1  ;;  %v3601_v6 = vpop.f32.mrf.mxu1 }
 0x97e   : > { %v3707_v29 = vpack.c.bf16 %v3601_v6, %v3599_v28  ;;  %v3624_v47 = vpop.f32.mrf.mxu3 }
 0x980   : > { %5077 = vmatmul.msk.bf16.vlgmr.msra.gmra.mxu1 %vm1240_vm1, %v3658_v24  ;;  %v8065_v24 = vld [vmem:[#allocation25_spill] sm:$0xff] }
 0x981   : > { %3909 = vmatpush.bf16.msrb.mxu1 %v5188_v14  ;;  %v2393_v4 = vadd.f32 %v8065_v24, %v7420_v35 }
 0x984   : > { %5087 = vmatmul.msk.bf16.vlgmr.msra.gmra.mxu0 %vm1009_vm0, %v3704_v30  ;;  %v7475_v41 = vpop.f32.mrf.mxu2  ;;  %v8066_v30 = vld [vmem:[#allocation22_spill] sm:$0xff] }
 0x985   : > { %3910 = vmatpush.bf16.msrb.mxu1 %v5187_v7  ;;  %v2395_v19 = vadd.f32 %v8066_v30, %v7426_v45  ;;  %v8067_v45 = vld [vmem:[#allocation31_spill] sm:$0xff]  ;;  %v8068_v7 = vld [vmem:[#allocation29_spill] sm:$0xff] }
 0x986   : > { %v3626_v43 = vpop.f32.mrf.mxu3  ;;  %v2398_v14 = vadd.f32 %v8067_v45, %v7435_v62 }
 0x987   : > { %v3708_v59 = vpack.c.bf16 %v3626_v43, %v3624_v47 }
 0x989   : > { %3911 = vmatpush.bf16.msrb.mxu1 %v5186_v13  ;;  %v2400_v13 = vadd.f32 %v8068_v7, %v7441_v42  ;;  %v8069_v42 = vld [vmem:[#allocation26_spill] sm:$0xff] }
 0x98c   : > { %v7477_v9 = vpop.f32.mrf.mxu2 }
 0x98d   : > { %3912 = vmatpush.bf16.msrb.mxu1 %v5185_v12 }
 0x991   : > { %3913 = vmatpush.bf16.msrb.mxu1 %v5184_v0 }
 0x994   : > { %5088 = vmatmul.msk.bf16.gmra.mxu0 %vm1009_vm0, %v3705_v15  ;;  %v7480_v46 = vpop.f32.mrf.mxu2 }
 0x995   : > { %3914 = vmatpush.bf16.msrb.mxu1 %v5183_v25 }
 0x999   : > { %3915 = vmatpush.bf16.msrb.mxu1 %v5182_v2 }
 0x99c   : > { %v7482_v5 = vpop.f32.mrf.mxu2 }
 0x99d   : > { %3916 = vmatpush.bf16.msrb.mxu1 %v5181_v8 }
 0x9a4   : > { %5089 = vmatmul.msk.bf16.gmra.mxu0 %vm1009_vm0, %v3706_v48  ;;  %v7484_v44 = vpop.f32.mrf.mxu2 }
 0x9ac   : > { %v3064_v21 = vpop.f32.mrf.mxu2 }
 0x9ad   : > { %v3104_v53 = vadd.f32 %v3064_v21, %v2388_v32 }
 0x9b4   : > { %5090 = vmatmul.msk.bf16.gmra.mxu0 %vm1009_vm0, %v3707_v29  ;;  %v3066_v39 = vpop.f32.mrf.mxu2 }
 0x9b5   : > { %v3105_v54 = vadd.f32 %v3066_v39, %v2390_v18 }
 0x9bc   : > { %v3069_v27 = vpop.f32.mrf.mxu2 }
 0x9bd   : > { %v3106_v40 = vadd.f32 %v3069_v27, %v2393_v4  ;;  %v8070_v27 = vld [vmem:[#allocation24_spill] sm:$0xff] }
 0x9c4   : > { %5091 = vmatmul.msk.bf16.gmra.mxu0 %vm1009_vm0, %v3708_v59  ;;  %v3071_v3 = vpop.f32.mrf.mxu2 }
 0x9c5   : > { %v3107_v34 = vadd.f32 %v3071_v3, %v2395_v19 }
 0x9cc   : > { %v3074_v1 = vpop.f32.mrf.mxu2 }
 0x9cd   : > { %v3108_v12 = vadd.f32 %v3074_v1, %v2398_v14 }
 0x9d4   : > { %v3076_v43 = vpop.f32.mrf.mxu2 }
 0x9d5   : > { %v3109_v25 = vadd.f32 %v3076_v43, %v2400_v13 }
 0x9dc   : > { %v3079_v0 = vpop.f32.mrf.mxu2 }
 0x9e4   : > { %v3081_v62 = vpop.f32.mrf.mxu2 }
 0x9ef   : > { %v3699_v57 = vpop.f32.mrf.mxu3 }
 0x9f1   : > { %v3649_v61 = vpop.f32.mrf.mxu0 }
 0x9f7   : > { %v3701_v15 = vpop.f32.mrf.mxu3 }
 0x9f8   : > { %v3711_v28 = vpack.c.bf16 %v3701_v15, %v3699_v57 }
 0x9f9   : > { %v3651_v31 = vpop.f32.mrf.mxu0 }
 0x9fa   : > { %v3709_v26 = vpack.c.bf16 %v3651_v31, %v3649_v61 }
 0x9fc   : > { %5092 = vmatmul.msk.bf16.gmra.mxu0 %vm1009_vm0, %v3709_v26 }
 0x9fd   : > { %v3674_v50 = vpop.f32.mrf.mxu1 }
 0xa01   : > { %v3757_v36 = vpop.f32.mrf.mxu0 }
 0xa02   : > { %v3797_v11 = vadd.f32 %v3757_v36, %v3104_v53  ;;  %v2405_v36 = vadd.f32 %v8070_v27, %v7453_v56  ;;  %v8072_v56 = vld [vmem:[#allocation27_spill] sm:$0xff] }
 0xa04   : > { %v3817_v52 = vadd.f32 %v7494_v58, %v3797_v11  ;;  %v3111_v32 = vadd.f32 %v3081_v62, %v2405_v36 }
 0xa05   : > { %v3676_v55 = vpop.f32.mrf.mxu1 }
 0xa06   : > { %v3710_v23 = vpack.c.bf16 %v3676_v55, %v3674_v50  ;;  %v2403_v50 = vadd.f32 %v8069_v42, %v7448_v49  ;;  %v3084_v55 = vpop.f32.mrf.mxu2  ;;  %v8071_v49 = vld [vmem:[#allocation28_spill] sm:$0xff] }
 0xa08   : > { %v3110_v63 = vadd.f32 %v3079_v0, %v2403_v50  ;;  %v8076_v0 = vld [vmem:[#allocation34_spill] sm:$0xff] }
 0xa09   : > { %v3759_v60 = vpop.f32.mrf.mxu0  ;;  %v7555_v50 = vld [vmem:[%s7976_s11] ss:$0 sm:$0xff] }
 0xa0a   : > { %v3798_v37 = vadd.f32 %v3759_v60, %v3105_v54 }
 0xa0c   : > { %v3818_v17 = vadd.f32 %v7494_v58, %v3798_v37  ;;  %5093 = vmatmul.msk.bf16.gmra.mxu0 %vm1009_vm0, %v3710_v23  ;;  %v2408_v23 = vadd.f32 %v8071_v49, %v7467_v10 }
 0xa0e   : > { %v3833_v16 = vpack.c.bf16 %v3818_v17, %v3817_v52  ;;  %4424 = vmatpush.msrb.mxu3 %v3818_v17  ;;  %v3086_v37 = vpop.f32.mrf.mxu2  ;;  %v3112_v17 = vadd.f32 %v3084_v55, %v2408_v23 }
 0xa10   : > { %3917 = vmatmul.bf16.vlgmr.msrb.gmra.mxu1 %v3833_v16  ;;  %4425 = vmatpush.msrb.mxu3 %v3817_v52  ;;  %v2410_v52 = vadd.f32 %v8072_v56, %v7470_v51  ;;  %v8073_v51 = vld [vmem:[#allocation33_spill] sm:$0xff] }
 0xa11   : > { %v3762_v20 = vpop.f32.mrf.mxu0  ;;  %v2413_v15 = vadd.f32 %v8073_v51, %v7472_v22  ;;  %v7545_v22 = vld [vmem:[%s7975_s10] ss:$0 sm:$0xff] }
 0xa12   : > { %v3799_v33 = vadd.f32 %v3762_v20, %v3106_v40  ;;  %v3113_v57 = vadd.f32 %v3086_v37, %v2410_v52 }
 0xa14   : > { %v3819_v29 = vadd.f32 %v7494_v58, %v3799_v33 }
 0xa16   : > { %v3089_v10 = vpop.f32.mrf.mxu2 }
 0xa19   : > { %v3764_v48 = vpop.f32.mrf.mxu0 }
 0xa1a   : > { %v3800_v6 = vadd.f32 %v3764_v48, %v3107_v34  ;;  %v8074_v34 = vld [vmem:[#allocation21_spill] sm:$0xff]  ;;  %v3114_v48 = vadd.f32 %v3089_v10, %v2413_v15 }
 0xa1b   : > { %v2415_v33 = vadd.f32 %v8074_v34, %v7475_v41  ;;  %v8075_v41 = vld [vmem:[#allocation32_spill] sm:$0xff] }
 0xa1c   : > { %v3820_v47 = vadd.f32 %v7494_v58, %v3800_v6  ;;  %5094 = vmatmul.msk.bf16.gmra.mxu0 %vm1009_vm0, %v3711_v28  ;;  %v2418_v13 = vadd.f32 %v8075_v41, %v7477_v9 }
 0xa1e   : > { %4457 = vmatpush.msra.mxu3 %v3820_v47  ;;  %v3834_v59 = vpack.c.bf16 %v3820_v47, %v3819_v29  ;;  %v3091_v19 = vpop.f32.mrf.mxu2 }
 0xa1f   : > { %v3115_v6 = vadd.f32 %v3091_v19, %v2415_v33 }
 0xa20   : > { %3922 = vmatmul.bf16.gmra.mxu1 %v3834_v59  ;;  %4458 = vmatpush.msra.mxu3 %v3819_v29 }
 0xa21   : > { %v3767_v35 = vpop.f32.mrf.mxu0 }
 0xa22   : > { %v3801_v2 = vadd.f32 %v3767_v35, %v3108_v12 }
 0xa24   : > { %v7511_v61 = vadd.f32 %v7494_v58, %v3801_v2 }
 0xa26   : > { %v3094_v28 = vpop.f32.mrf.mxu2 }
 0xa27   : > { %v3116_v2 = vadd.f32 %v3094_v28, %v2418_v13 }
 0xa29   : > { %v3769_v21 = vpop.f32.mrf.mxu0 }
 0xa2a   : > { %v3802_v8 = vadd.f32 %v3769_v21, %v3109_v25  ;;  %v2420_v25 = vadd.f32 %v8076_v0, %v7480_v46 }
 0xa2c   : > { %v7514_v39 = vadd.f32 %v7494_v58, %v3802_v8 }
 0xa2e   : > { %v3835_v31 = vpack.c.bf16 %v7514_v39, %v7511_v61  ;;  %v3096_v14 = vpop.f32.mrf.mxu2 }
 0xa2f   : > { %v3117_v8 = vadd.f32 %v3096_v14, %v2420_v25 }
 0xa30   : > { %3927 = vmatmul.bf16.gmra.mxu1 %v3835_v31 }
 0xa31   : > { %v3772_v26 = vpop.f32.mrf.mxu0 }
 0xa32   : > { %v3803_v38 = vadd.f32 %v3772_v26, %v3110_v63 }
 0xa34   : > { %v3823_v54 = vadd.f32 %v7494_v58, %v3803_v38 }
 0xa36   : > { %v3099_v42 = vpop.f32.mrf.mxu2 }
 0xa39   : > { %v3774_v18 = vpop.f32.mrf.mxu0 }
 0xa3a   : > { %v3804_v53 = vadd.f32 %v3774_v18, %v3111_v32 }
 0xa3c   : > { %v3824_v11 = vadd.f32 %v7494_v58, %v3804_v53  ;;  %v8077_v53 = vld [vmem:[#allocation35_spill] sm:$0xff] }
 0xa3d   : > { %v2423_v55 = vadd.f32 %v8077_v53, %v7482_v5 }
 0xa3e   : > { %4523 = vmatpush.msrb.mxu2 %v3824_v11  ;;  %v3836_v3 = vpack.c.bf16 %v3824_v11, %v3823_v54 }
 0xa3f   : > { %v3118_v23 = vadd.f32 %v3099_v42, %v2423_v55 }
 0xa40   : > { %3932 = vmatmul.bf16.gmra.mxu1 %v3836_v3  ;;  %4524 = vmatpush.msrb.mxu2 %v3823_v54  ;;  %v3101_v54 = vpop.f32.mrf.mxu2 }
 0xa41   : > { %v3777_v60 = vpop.f32.mrf.mxu0 }
 0xa42   : > { %v3805_v16 = vadd.f32 %v3777_v60, %v3112_v17  ;;  %v8078_v60 = vld [vmem:[#allocation36_spill] sm:$0xff] }
 0xa43   : > { %v2425_v49 = vadd.f32 %v8078_v60, %v7484_v44 }
 0xa44   : > { %v7529_v24 = vadd.f32 %v7494_v58, %v3805_v16 }
 0xa45   : > { %v3119_v52 = vadd.f32 %v3101_v54, %v2425_v49 }
 0xa49   : > { %v3779_v20 = vpop.f32.mrf.mxu0 }
 0xa4a   : > { %v3806_v1 = vadd.f32 %v3779_v20, %v3113_v57 }
 0xa4c   : > { %v7532_v4 = vadd.f32 %v7494_v58, %v3806_v1 }
 0xa4e   : > { %v3837_v30 = vpack.c.bf16 %v7532_v4, %v7529_v24 }
 0xa50   : > { %3937 = vmatmul.bf16.gmra.mxu1 %v3837_v30 }
 0xa79   : > { %v3782_v40 = vpop.f32.mrf.mxu0 }
 0xa7a   : > { %v3807_v29 = vadd.f32 %v3782_v40, %v3114_v48 }
 0xa7c   : > { %v3827_v59 = vadd.f32 %v7494_v58, %v3807_v29 }
 0xa81   : > { %v3784_v47 = vpop.f32.mrf.mxu0 }
 0xa82   : > { %v3808_v43 = vadd.f32 %v3784_v47, %v3115_v6 }
 0xa84   : > { %v3828_v35 = vadd.f32 %v7494_v58, %v3808_v43 }
 0xa86   : > { %4589 = vmatpush.msra.mxu2 %v3828_v35  ;;  %v3838_v45 = vpack.c.bf16 %v3828_v35, %v3827_v59 }
 0xa88   : > { %3942 = vmatmul.bf16.gmra.mxu1 %v3838_v45  ;;  %4590 = vmatpush.msra.mxu2 %v3827_v59 }
 0xa89   : > { %v3787_v7 = vpop.f32.mrf.mxu0 }
 0xa8a   : > { %v3809_v31 = vadd.f32 %v3787_v7, %v3116_v2 }
 0xa8c   : > { %v7558_v9 = vadd.f32 %v7494_v58, %v3809_v31 }
 0xa8d   : > { %v3918_v12 = vpop.f32.mrf.mxu1 }
 0xa8e   : > { %v3919_v21 = vadd.f32 %v7545_v22, %v3918_v12 }
 0xa90   : > { %5565 = vtanh.f32 %v3919_v21 }
 0xa91   : > { %v3789_v62 = vpop.f32.mrf.mxu0 }
 0xa92   : > { %v3810_v26 = vadd.f32 %v3789_v62, %v3117_v8 }
 0xa94   : > { %v7561_v27 = vadd.f32 %v7494_v58, %v3810_v26 }
 0xa95   : > { %v3920_v46 = vpop.f32.mrf.mxu1 }
 0xa96   : > { %v5566_v36 = vpop.eup %5565  ;;  %v3921_v63 = vadd.f32 %v7545_v22, %v3920_v46  ;;  %v3839_v32 = vpack.c.bf16 %v7561_v27, %v7558_v9 }
 0xa97   : > { %v3978_v38 = vmul.f32 %v5566_v36, %v7555_v50 }
 0xa98   : > { %5567 = vtanh.f32 %v3921_v63  ;;  %3947 = vmatmul.bf16.gmra.mxu1 %v3839_v32 }
 0xa99   : > { %3994 = vadd.xlane.f32.xlu2 %v3978_v38  ;;  %v3792_v18 = vpop.f32.mrf.mxu0 }
 0xa9a   : > { %v3811_v17 = vadd.f32 %v3792_v18, %v3118_v23 }
 0xa9c   : > { %v7574_v20 = vadd.f32 %v7494_v58, %v3811_v17 }
 0xa9d   : > { %v3923_v11 = vpop.f32.mrf.mxu1 }
 0xa9e   : > { %v5568_v3 = vpop.eup %5567  ;;  %v3924_v37 = vadd.f32 %v7545_v22, %v3923_v11 }
 0xa9f   : > { %v3979_v56 = vmul.f32 %v5568_v3, %v7555_v50 }
 0xaa0   : > { %5569 = vtanh.f32 %v3924_v37 }
 0xaa1   : > { %3996 = vadd.xlane.f32.xlu1 %v3979_v56  ;;  %v3794_v57 = vpop.f32.mrf.mxu0 }
 0xaa2   : > { %v3812_v16 = vadd.f32 %v3794_v57, %v3119_v52 }
 0xaa4   : > { %v7577_v5 = vadd.f32 %v7494_v58, %v3812_v16 }
 0xaa5   : > { %v3925_v1 = vpop.f32.mrf.mxu1 }
 0xaa6   : > { %v5570_v30 = vpop.eup %5569  ;;  %v3926_v44 = vadd.f32 %v7545_v22, %v3925_v1  ;;  %v3840_v10 = vpack.c.bf16 %v7577_v5, %v7574_v20 }
 0xaa7   : > { %v3980_v19 = vmul.f32 %v5570_v30, %v7555_v50 }
 0xaa8   : > { %5571 = vtanh.f32 %v3926_v44  ;;  %3952 = vmatmul.bf16.gmra.mxu1 %v3840_v10 }
 0xaa9   : > { %3998 = vadd.xlane.f32.xlu2 %v3980_v19 }
 0xaad   : > { %v3928_v40 = vpop.f32.mrf.mxu1 }
 0xaae   : > { %v5572_v51 = vpop.eup %5571  ;;  %v3929_v15 = vadd.f32 %v7545_v22, %v3928_v40 }
 0xaaf   : > { %v3981_v34 = vmul.f32 %v5572_v51, %v7555_v50 }
 0xab0   : > { %5573 = vtanh.f32 %v3929_v15 }
 0xab1   : > { %4000 = vadd.xlane.f32.xlu0 %v3981_v34 }
 0xab5   : > { %v3930_v58 = vpop.f32.mrf.mxu1 }
 0xab6   : > { %v5574_v33 = vpop.eup %5573  ;;  %v3931_v48 = vadd.f32 %v7545_v22, %v3930_v58 }
 0xab7   : > { %v3982_v28 = vmul.f32 %v5574_v33, %v7555_v50 }
 0xab8   : > { %5575 = vtanh.f32 %v3931_v48 }
 0xab9   : > { %4002 = vadd.xlane.f32.xlu2 %v3982_v28 }
 0xabd   : > { %v3933_v6 = vpop.f32.mrf.mxu1 }
 0xabe   : > { %v5576_v29 = vpop.eup %5575  ;;  %v3934_v47 = vadd.f32 %v7545_v22, %v3933_v6 }
 0xabf   : > { %v3983_v43 = vmul.f32 %v5576_v29, %v7555_v50 }
 0xac0   : > { %5577 = vtanh.f32 %v3934_v47 }
 0xac1   : > { %4004 = vadd.xlane.f32.xlu2 %v3983_v43 }
 0xac5   : > { %v3935_v59 = vpop.f32.mrf.mxu1 }
 0xac6   : > { %v5578_v35 = vpop.eup %5577  ;;  %v3936_v45 = vadd.f32 %v7545_v22, %v3935_v59 }
 0xac7   : > { %v3984_v14 = vmul.f32 %v5578_v35, %v7555_v50 }
 0xac8   : > { %5579 = vtanh.f32 %v3936_v45 }
 0xac9   : > { %4006 = vadd.xlane.f32.xlu2 %v3984_v14 }
 0xacd   : > { %v3938_v7 = vpop.f32.mrf.mxu1 }
 0xace   : > { %v5580_v41 = vpop.eup %5579  ;;  %v3939_v13 = vadd.f32 %v7545_v22, %v3938_v7 }
 0xacf   : > { %v3985_v12 = vmul.f32 %v5580_v41, %v7555_v50 }
 0xad0   : > { %5581 = vtanh.f32 %v3939_v13 }
 0xad1   : > { %4008 = vadd.xlane.f32.xlu2 %v3985_v12 }
 0xad5   : > { %v3940_v0 = vpop.f32.mrf.mxu1 }
 0xad6   : > { %v5582_v25 = vpop.eup %5581  ;;  %v3941_v2 = vadd.f32 %v7545_v22, %v3940_v0 }
 0xad7   : > { %v3986_v21 = vmul.f32 %v5582_v25, %v7555_v50 }
 0xad8   : > { %5583 = vtanh.f32 %v3941_v2 }
 0xad9   : > { %4010 = vadd.xlane.f32.xlu1 %v3986_v21 }
 0xade   : > { %v5584_v8 = vpop.eup %5583 }
 0xadf   : > { %v3987_v31 = vmul.f32 %v5584_v8, %v7555_v50 }
 0xae1   : > { %4012 = vadd.xlane.f32.xlu2 %v3987_v31 }
 0xb05   : > { %v3943_v62 = vpop.f32.mrf.mxu1 }
 0xb06   : > { %v3944_v26 = vadd.f32 %v7545_v22, %v3943_v62 }
 0xb08   : > { %5585 = vtanh.f32 %v3944_v26 }
 0xb0c   : > { %v7608_v30 = vpop.xlane.xlu2 %3994 }
 0xb0d   : > { %v3945_v42 = vpop.f32.mrf.mxu1 }
 0xb0e   : > { %v5586_v46 = vpop.eup %5585  ;;  %v3946_v36 = vadd.f32 %v7545_v22, %v3945_v42 }
 0xb0f   : > { %v3988_v63 = vmul.f32 %v5586_v46, %v7555_v50 }
 0xb10   : > { %5587 = vtanh.f32 %v3946_v36 }
 0xb11   : > { %4014 = vadd.xlane.f32.xlu0 %v3988_v63 }
 0xb14   : > { %v7618_v51 = vpop.xlane.xlu1 %3996 }
 0xb15   : > { %v3948_v32 = vpop.f32.mrf.mxu1 }
 0xb16   : > { %v5588_v38 = vpop.eup %5587  ;;  %v3949_v18 = vadd.f32 %v7545_v22, %v3948_v32 }
 0xb17   : > { %v3989_v53 = vmul.f32 %v5588_v38, %v7555_v50 }
 0xb18   : > { %5589 = vtanh.f32 %v3949_v18 }
 0xb19   : > { %4016 = vadd.xlane.f32.xlu1 %v3989_v53 }
 0xb1c   : > { %v7610_v44 = vpop.xlane.xlu2 %3998 }
 0xb1d   : > { %v3950_v55 = vpop.f32.mrf.mxu1 }
 0xb1e   : > { %v5590_v54 = vpop.eup %5589  ;;  %v3951_v11 = vadd.f32 %v7545_v22, %v3950_v55 }
 0xb1f   : > { %v3990_v3 = vmul.f32 %v5590_v54, %v7555_v50 }
 0xb20   : > { %5591 = vtanh.f32 %v3951_v11 }
 0xb21   : > { %4018 = vadd.xlane.f32.xlu2 %v3990_v3 }
 0xb24   : > { %v7622_v15 = vpop.xlane.xlu0 %4000 }
 0xb25   : > { %v3953_v60 = vpop.f32.mrf.mxu1 }
 0xb26   : > { %v5592_v49 = vpop.eup %5591  ;;  %v3954_v23 = vadd.f32 %v7545_v22, %v3953_v60 }
 0xb27   : > { %v3991_v37 = vmul.f32 %v5592_v49, %v7555_v50 }
 0xb28   : > { %5593 = vtanh.f32 %v3954_v23 }
 0xb29   : > { %4020 = vadd.xlane.f32.xlu0 %v3991_v37 }
 0xb2c   : > { %v7612_v10 = vpop.xlane.xlu2 %4002 }
 0xb2d   : > { %v3955_v56 = vpop.f32.mrf.mxu1 }
 0xb2e   : > { %v5594_v52 = vpop.eup %5593  ;;  %v3956_v17 = vadd.f32 %v7545_v22, %v3955_v56 }
 0xb2f   : > { %v3992_v57 = vmul.f32 %v5594_v52, %v7555_v50  ;;  %v5915_v52 = vmov 0  }
 0xb30   : > { %5595 = vtanh.f32 %v3956_v17  ;;  %5302 = vset.pattern.permute.xlu0 %v5915_v52  ;;  %5301 = vset.pattern.permute.xlu2 %v5915_v52 }
 0xb31   : > { %4022 = vadd.xlane.f32.xlu1 %v3992_v57 }
 0xb32   : > { %5300 = vset.pattern.permute.xlu1 %v5915_v52 }
 0xb34   : > { %v7614_v19 = vpop.xlane.xlu2 %4004 }
 0xb36   : > { %v5596_v16 = vpop.eup %5595 }
 0xb37   : > { %v3993_v1 = vmul.f32 %v5596_v16, %v7555_v50  ;;  %v4042_v50 = vlaneseq }
 0xb39   : > { %4024 = vadd.xlane.f32.xlu2 %v3993_v1  ;;  %v7630_v48 = vand.u32 127, %v4042_v50 }
 0xb3b   : > { %v7633_v28 = vadd.s32 4294967288, %v7630_v48  ;;  %v4049_v35 = vperm.slane %v7610_v44, %v7630_v48  ;;  %v4052_v7 = vperm.slane %v7612_v10, %v7630_v48  ;;  %v4044_v13 = vperm.slane %v7608_v30, %v7630_v48 }
 0xb3c   : > { %v7616_v40 = vpop.xlane.xlu2 %4006 }
 0xb3d   : > { %v4050_v29 = vperm.slane %v7622_v15, %v7633_v28  ;;  %v4053_v47 = vperm.slane %v7614_v19, %v7633_v28  ;;  %v4046_v59 = vperm.slane %v7618_v51, %v7633_v28  ;;  %v4055_v0 = vperm.slane %v7616_v40, %v7630_v48 }
 0xb3f   : > { %v4051_v12 = vsel %vm4047_vm2, %v4050_v29, %v4049_v35  ;;  %v4054_v2 = vsel %vm4047_vm2, %v4053_v47, %v4052_v7  ;;  %v4048_v31 = vsel %vm4047_vm2, %v4046_v59, %v4044_v13 }
 0xb40   : > { %v4071_v42 = vsel %vm4070_vm3, %v4051_v12, %v4048_v31 }
 0xb41   : > { %v4073_v32 = vsel %vm4072_vm4, %v4054_v2, %v4071_v42 }
 0xb44   : > { %v7620_v22 = vpop.xlane.xlu2 %4008 }
 0xb45   : > { %v4056_v45 = vperm.slane %v7620_v22, %v7633_v28 }
 0xb47   : > { %v4057_v62 = vsel %vm4047_vm2, %v4056_v45, %v4055_v0 }
 0xb48   : > { %v4075_v18 = vsel %vm4074_vm5, %v4057_v62, %v4073_v32 }
 0xb4c   : > { %v7624_v34 = vpop.xlane.xlu1 %4010 }
 0xb4d   : > { %v4058_v21 = vperm.slane %v7624_v34, %v7630_v48 }
 0xb54   : > { %v7626_v58 = vpop.xlane.xlu2 %4012 }
 0xb55   : > { %v4059_v41 = vperm.slane %v7626_v58, %v7633_v28 }
 0xb57   : > { %v4060_v46 = vsel %vm4047_vm2, %v4059_v41, %v4058_v21 }
 0xb58   : > { %v4077_v54 = vsel %vm4076_vm6, %v4060_v46, %v4075_v18 }
 0xb84   : > { %v7628_v33 = vpop.xlane.xlu0 %4014 }
 0xb85   : > { %v4061_v26 = vperm.slane %v7628_v33, %v7630_v48 }
 0xb8c   : > { %v7635_v6 = vpop.xlane.xlu1 %4016 }
 0xb8d   : > { %v4062_v25 = vperm.slane %v7635_v6, %v7633_v28 }
 0xb8f   : > { %v4063_v38 = vsel %vm4047_vm2, %v4062_v25, %v4061_v26 }
 0xb90   : > { %v4079_v60 = vsel %vm4078_vm7, %v4063_v38, %v4077_v54 }
 0xb94   : > { %v7641_v43 = vpop.xlane.xlu2 %4018 }
 0xb95   : > { %v4064_v36 = vperm.slane %v7641_v43, %v7630_v48 }
 0xb9c   : > { %v7649_v14 = vpop.xlane.xlu0 %4020 }
 0xb9d   : > { %v4065_v8 = vperm.slane %v7649_v14, %v7633_v28 }
 0xb9f   : > { %v4066_v53 = vsel %vm4047_vm2, %v4065_v8, %v4064_v36 }
 0xba0   : > { %v4081_v23 = vsel %vm4080_vm8, %v4066_v53, %v4079_v60 }
 0xba4   : > { %v7675_v63 = vpop.xlane.xlu1 %4022 }
 0xba5   : > { %v4067_v11 = vperm.slane %v7675_v63, %v7630_v48 }
 0xbac   : > { %v7681_v55 = vpop.xlane.xlu2 %4024 }
 0xbad   : > { %v4068_v3 = vperm.slane %v7681_v55, %v7633_v28 }
 0xbaf   : > { %v4069_v49 = vsel %vm4047_vm2, %v4068_v3, %v4067_v11 }
 0xbb0   : > { %v4083_v37 = vsel %vm4082_vm9, %v4069_v49, %v4081_v23 }
 0xbb1   : > { %v4085_v56 = vsel %vm1240_vm1, %v4083_v37, -inf }
 0xbb2   : > { %4086 = vmax.xlane.f32.xlu0 %v4085_v56 }
 0xc25   : > { %v7693_v17 = vpop.xlane.xlu0 %4086 }
 0xc26   : > { %v4089_v57 = vperm.slane %v7693_v17, 0  ;;  %v4090_v16 = vperm.slane %v7693_v17, 1  ;;  %v4091_v47 = vperm.slane %v7693_v17, 2  ;;  %v4093_v59 = vperm.slane %v7693_v17, 4 }
 0xc27   : > { %v4095_v25 = vperm.slane %v7693_v17, 6  ;;  %v4096_v42 = vperm.slane %v7693_v17, 7  ;;  %v4094_v38 = vperm.slane %v7693_v17, 5 }
 0xc28   : > { %v4105_v1 = vsub.f32 %v7608_v30, %v4089_v57  ;;  %v4106_v50 = vsub.f32 %v7618_v51, %v4089_v57  ;;  %v4107_v29 = vsub.f32 %v7610_v44, %v4090_v16  ;;  %v4108_v41 = vsub.f32 %v7622_v15, %v4090_v16 }
 0xc29   : > { %v4109_v13 = vsub.f32 %v7612_v10, %v4091_v47  ;;  %v4114_v12 = vsub.f32 %v7626_v58, %v4093_v59  ;;  %v4092_v51 = vperm.slane %v7693_v17, 3  ;;  %v4110_v10 = vsub.f32 %v7614_v19, %v4091_v47 }
 0xc2a   : > { %v4121_v35 = vmul.f32 1.442695, %v4105_v1  ;;  %v4123_v45 = vmul.f32 1.442695, %v4106_v50  ;;  %v4125_v7 = vmul.f32 1.442695, %v4107_v29  ;;  %v4117_v8 = vsub.f32 %v7641_v43, %v4095_v25 }
 0xc2b   : > { %v4127_v30 = vmul.f32 1.442695, %v4108_v41  ;;  %v4129_v44 = vmul.f32 1.442695, %v4109_v13  ;;  %v4139_v2 = vmul.f32 1.442695, %v4114_v12  ;;  %v4111_v58 = vsub.f32 %v7616_v40, %v4092_v51 }
 0xc2c   : > { %5597 = vpow2.f32 %v4121_v35  ;;  %v4131_v31 = vmul.f32 1.442695, %v4110_v10  ;;  %v4145_v46 = vmul.f32 1.442695, %v4117_v8  ;;  %v4112_v40 = vsub.f32 %v7620_v22, %v4092_v51 }
 0xc2d   : > { %5599 = vpow2.f32 %v4123_v45  ;;  %v4133_v62 = vmul.f32 1.442695, %v4111_v58  ;;  %v4113_v43 = vsub.f32 %v7624_v34, %v4093_v59  ;;  %v4120_v32 = vsub.f32 %v7681_v55, %v4096_v42 }
 0xc2e   : > { %5601 = vpow2.f32 %v4125_v7  ;;  %v4135_v18 = vmul.f32 1.442695, %v4112_v40  ;;  %v4115_v34 = vsub.f32 %v7628_v33, %v4094_v38  ;;  %v4116_v55 = vsub.f32 %v7635_v6, %v4094_v38 }
 0xc2f   : > { %5603 = vpow2.f32 %v4127_v30  ;;  %v4137_v53 = vmul.f32 1.442695, %v4113_v43  ;;  %v4151_v11 = vmul.f32 1.442695, %v4120_v32  ;;  %v4118_v33 = vsub.f32 %v7649_v14, %v4095_v25 }
 0xc30   : > { %5605 = vpow2.f32 %v4129_v44  ;;  %v4141_v60 = vmul.f32 1.442695, %v4115_v34  ;;  %v4143_v49 = vmul.f32 1.442695, %v4116_v55  ;;  %v4119_v6 = vsub.f32 %v7675_v63, %v4096_v42 }
 0xc31   : > { %5607 = vpow2.f32 %v4139_v2  ;;  %v4147_v52 = vmul.f32 1.442695, %v4118_v33 }
 0xc32   : > { %v7706_v0 = vpop.eup %5597  ;;  %5609 = vpow2.f32 %v4131_v31  ;;  %v4149_v17 = vmul.f32 1.442695, %v4119_v6 }
 0xc33   : > { %v7709_v21 = vpop.eup %5599  ;;  %4170 = vperm.xlu1 %5300, %v7706_v0   ;;  %5611 = vpow2.f32 %v4133_v62 }
 0xc34   : > { %v7712_v15 = vpop.eup %5601  ;;  %4173 = vperm.xlu2 %5301, %v7709_v21   ;;  %5613 = vpow2.f32 %v4145_v46 }
 0xc35   : > { %4176 = vperm.xlu0 %5302, %v7712_v15   ;;  %v7719_v26 = vpop.eup %5603  ;;  %5615 = vpow2.f32 %v4135_v18 }
 0xc36   : > { %v7722_v36 = vpop.eup %5605  ;;  %5617 = vpow2.f32 %v4137_v53 }
 0xc37   : > { %v7725_v19 = vpop.eup %5607  ;;  %5619 = vpow2.f32 %v4151_v11 }
 0xc38   : > { %v7733_v54 = vpop.eup %5609  ;;  %5621 = vpow2.f32 %v4141_v60 }
 0xc39   : > { %v7735_v3 = vpop.eup %5611  ;;  %5623 = vpow2.f32 %v4143_v49 }
 0xc3a   : > { %v7738_v22 = vpop.eup %5613  ;;  %5625 = vpow2.f32 %v4147_v52 }
 0xc3b   : > { %4179 = vperm.xlu1 %5300, %v7719_v26   ;;  %v7744_v23 = vpop.eup %5615  ;;  %5627 = vpow2.f32 %v4149_v17 }
 0xc3c   : > { %4182 = vperm.xlu2 %5301, %v7722_v36   ;;  %v7746_v37 = vpop.eup %5617 }
 0xc3d   : > { %4197 = vperm.xlu0 %5302, %v7725_v19   ;;  %v7749_v56 = vpop.eup %5619 }
 0xc3e   : > { %v7755_v57 = vpop.eup %5621 }
 0xc3f   : > { %v7757_v16 = vpop.eup %5623 }
 0xc40   : > { %v7761_v14 = vpop.eup %5625 }
 0xc41   : > { %v7763_v1 = vpop.eup %5627 }
 0xc43   : > { %4185 = vperm.xlu1 %5300, %v7733_v54  }
 0xc44   : > { %4188 = vperm.xlu2 %5301, %v7735_v3  }
 0xc45   : > { %4206 = vperm.xlu0 %5302, %v7738_v22  }
 0xc4b   : > { %4191 = vperm.xlu1 %5300, %v7744_v23  }
 0xc4c   : > { %4194 = vperm.xlu2 %5301, %v7746_v37  }
 0xc4d   : > { %4215 = vperm.xlu0 %5302, %v7749_v56  }
 0xc53   : > { %4200 = vperm.xlu1 %5300, %v7755_v57  }
 0xc54   : > { %4203 = vperm.xlu2 %5301, %v7757_v16  }
 0xc5b   : > { %4209 = vperm.xlu1 %5300, %v7761_v14  }
 0xc5c   : > { %4212 = vperm.xlu2 %5301, %v7763_v1  }
 0xc8e   : > { %v4174_v63 = vpop.permute.xlu2 %4173 }
 0xc8f   : > { %v4218_v31 = vperm.slane %v4174_v63, %v7633_v28 }
 0xc96   : > { %v4183_v50 = vpop.permute.xlu2 %4182 }
 0xc97   : > { %v4223_v8 = vperm.slane %v4183_v50, %v7630_v48 }
 0xc9e   : > { %v4189_v35 = vpop.permute.xlu2 %4188 }
 0xc9f   : > { %v4226_v62 = vperm.slane %v4189_v35, %v7630_v48 }
 0xca5   : > { %v4171_v29 = vpop.permute.xlu1 %4170 }
 0xca6   : > { %v4195_v41 = vpop.permute.xlu2 %4194  ;;  %v4217_v2 = vperm.slane %v4171_v29, %v7630_v48 }
 0xca7   : > { %v4177_v47 = vpop.permute.xlu0 %4176  ;;  %v4229_v55 = vperm.slane %v4195_v41, %v7630_v48 }
 0xca8   : > { %v4220_v25 = vperm.slane %v4177_v47, %v7630_v48  ;;  %v4219_v40 = vsel %vm4047_vm2, %v4218_v31, %v4217_v2 }
 0xcad   : > { %v4180_v59 = vpop.permute.xlu1 %4179 }
 0xcae   : > { %v4204_v30 = vpop.permute.xlu2 %4203  ;;  %v4221_v51 = vperm.slane %v4180_v59, %v7633_v28 }
 0xcaf   : > { %v4198_v7 = vpop.permute.xlu0 %4197  ;;  %v4233_v11 = vperm.slane %v4204_v30, %v7633_v28 }
 0xcb0   : > { %v4222_v42 = vsel %vm4047_vm2, %v4221_v51, %v4220_v25  ;;  %v4230_v38 = vperm.slane %v4198_v7, %v7633_v28 }
 0xcb1   : > { %v4241_v18 = vsel %vm4070_vm3, %v4222_v42, %v4219_v40 }
 0xcb2   : > { %v4231_v17 = vsel %vm4047_vm2, %v4230_v38, %v4229_v55 }
 0xcb5   : > { %v4186_v45 = vpop.permute.xlu1 %4185 }
 0xcb6   : > { %v4224_v44 = vperm.slane %v4186_v45, %v7633_v28  ;;  %v4213_v60 = vpop.permute.xlu2 %4212 }
 0xcb7   : > { %v4207_v12 = vpop.permute.xlu0 %4206  ;;  %v4238_v29 = vperm.slane %v4213_v60, %v7630_v48 }
 0xcb8   : > { %v4225_v46 = vsel %vm4047_vm2, %v4224_v44, %v4223_v8  ;;  %v4235_v63 = vperm.slane %v4207_v12, %v7630_v48 }
 0xcb9   : > { %v4242_v34 = vsel %vm4072_vm4, %v4225_v46, %v4241_v18 }
 0xcbd   : > { %v4192_v13 = vpop.permute.xlu1 %4191 }
 0xcbe   : > { %v4227_v10 = vperm.slane %v4192_v13, %v7633_v28 }
 0xcbf   : > { %v4216_v53 = vpop.permute.xlu0 %4215 }
 0xcc0   : > { %v4228_v43 = vsel %vm4047_vm2, %v4227_v10, %v4226_v62  ;;  %v4239_v33 = vperm.slane %v4216_v53, %v7633_v28 }
 0xcc1   : > { %v4243_v49 = vsel %vm4074_vm5, %v4228_v43, %v4242_v34 }
 0xcc2   : > { %v4244_v47 = vsel %vm4076_vm6, %v4231_v17, %v4243_v49  ;;  %v4240_v45 = vsel %vm4047_vm2, %v4239_v33, %v4238_v29 }
 0xcc5   : > { %v4201_v58 = vpop.permute.xlu1 %4200 }
 0xcc6   : > { %v4232_v32 = vperm.slane %v4201_v58, %v7630_v48 }
 0xcc8   : > { %v4234_v6 = vsel %vm4047_vm2, %v4233_v11, %v4232_v32 }
 0xcc9   : > { %v4245_v35 = vsel %vm4078_vm7, %v4234_v6, %v4244_v47 }
 0xccd   : > { %v4210_v52 = vpop.permute.xlu1 %4209 }
 0xcce   : > { %v4236_v50 = vperm.slane %v4210_v52, %v7633_v28 }
 0xcd0   : > { %v4237_v59 = vsel %vm4047_vm2, %v4236_v50, %v4235_v63 }
 0xcd1   : > { %v4246_v7 = vsel %vm4080_vm8, %v4237_v59, %v4245_v35 }
 0xcd2   : > { %v4247_v41 = vsel %vm4082_vm9, %v4240_v45, %v4246_v7 }
 0xcd3   : > { %v4249_v13 = vsel %vm1240_vm1, %v4247_v41, 0.0 }
 0xcd4   : > { %4250 = vadd.xlane.f32.xlu1 %v4249_v13 }
 0xd47   : > { %v7799_v12 = vpop.xlane.xlu1 %4250 }
 0xd48   : > { %v4253_v30 = vperm.slane %v7799_v12, 0  ;;  %v4254_v51 = vperm.slane %v7799_v12, 1  ;;  %v7804_v44 = vperm.slane %v7799_v12, 2  ;;  %v4258_v25 = vperm.slane %v7799_v12, 5 }
 0xd49   : > { %v7809_v10 = vperm.slane %v7799_v12, 3  ;;  %v7817_v34 = vperm.slane %v7799_v12, 4 }
 0xd4a   : > { %5629 = vrcp.f32 %v4253_v30  ;;  %v4278_v46 = vand.u32 2147483647, %v4253_v30  ;;  %v4280_v40 = vand.u32 2147483648, %v4253_v30  ;;  %v4358_v55 = vand.u32 2147483647, %v4258_v25 }
 0xd4b   : > { %5631 = vrcp.f32 %v4254_v51  ;;  %vm4274_vm11 = vweird.f32 %v4253_v30  ;;  %v4360_v33 = vand.u32 2147483648, %v4258_v25  ;;  %v4296_v59 = vand.u32 2147483648, %v4254_v51 }
 0xd4c   : > { %5633 = vrcp.f32 %v7804_v44  ;;  %vm4279_vm13 = vcmp.eq.f32.partialorder %v4278_v46, 8.507059e+37  ;;  %v4281_v6 = vor.u32 1.1754944e-38, %v4280_v40  ;;  %vm4290_vm0 = vweird.f32 %v4254_v51 }
 0xd4d   : > { %5635 = vrcp.f32 %v4258_v25  ;;  %v4294_v7 = vand.u32 2147483647, %v4254_v51 }
 0xd4e   : > { %5637 = vrcp.f32 %v7809_v10 }
 0xd4f   : > { %5639 = vrcp.f32 %v7817_v34 }
 0xd50   : > { %v5630_v2 = vpop.eup %5629 }
 0xd51   : > { %v5632_v58 = vpop.eup %5631  ;;  %v4270_v8 = vmul.f32 %v5630_v2, %v4253_v30  ;;  %vm4275_vm10 = vweird.f32 %v5630_v2  ;;  %v4361_v30 = vor.u32 1.1754944e-38, %v4360_v33 }
 0xd52   : > { %v7811_v31 = vpop.eup %5633  ;;  %v4286_v62 = vmul.f32 %v5632_v58, %v4254_v51  ;;  %vm4276_vm12 = vmor %vm4274_vm11, %vm4275_vm10  ;;  %vm4291_vm14 = vweird.f32 %v5632_v58  ;;  %vm4354_vm10 = vweird.f32 %v4258_v25 }
 0xd53   : > { %v4271_v42 = vsub.f32 1.0, %v4270_v8  ;;  %v5636_v32 = vpop.eup %5635  ;;  %v4302_v18 = vmul.f32 %v7811_v31, %v7804_v44  ;;  %vm7824_vm11 = vmor %vm4290_vm0, %vm4291_vm14  ;;  %v4297_v8 = vor.u32 1.1754944e-38, %v4296_v59  ;;  %vm4295_vm14 = vcmp.eq.f32.partialorder %v4294_v7, 8.507059e+37 }
 0xd54   : > { %v4287_v43 = vsub.f32 1.0, %v4286_v62  ;;  %v4350_v53 = vmul.f32 %v5636_v32, %v4258_v25  ;;  %v7819_v50 = vpop.eup %5637  ;;  %vm4355_vm15 = vweird.f32 %v5636_v32  ;;  %v7836_v62 = vperm.slane %v7799_v12, 6 }
 0xd55   : > { %v4272_v38 = vmul.f32 %v5630_v2, %v4271_v42  ;;  %v4303_v63 = vsub.f32 1.0, %v4302_v18  ;;  %vm4306_vm0 = vweird.f32 %v7804_v44 }
 0xd56   : > { %v4288_v11 = vmul.f32 %v5632_v58, %v4287_v43  ;;  %v4351_v49 = vsub.f32 1.0, %v4350_v53  ;;  %v5640_v43 = vpop.eup %5639  ;;  %v4310_v53 = vand.u32 2147483647, %v7804_v44  ;;  %5641 = vrcp.f32 %v7836_v62 }
 0xd57   : > { %v4273_v60 = vadd.f32 %v5630_v2, %v4272_v38 }
 0xd58   : > { %v4289_v17 = vadd.f32 %v5632_v58, %v4288_v11  ;;  %v4352_v29 = vmul.f32 %v5636_v32, %v4351_v49 }
 0xd59   : > { %v4277_v52 = vsel %vm4276_vm12, %v5630_v2, %v4273_v60  ;;  %vm4356_vm12 = vmor %vm4354_vm10, %vm4355_vm15  ;;  %vm4307_vm15 = vweird.f32 %v7811_v31 }
 0xd5a   : > { %v4282_v47 = vsel %vm4279_vm13, %v4281_v6, %v4277_v52  ;;  %v4353_v41 = vadd.f32 %v5636_v32, %v4352_v29  ;;  %v4293_v2 = vsel %vm7824_vm11, %v5632_v58, %v4289_v17  ;;  %vm4359_vm13 = vcmp.eq.f32.partialorder %v4358_v55, 8.507059e+37  ;;  %vm4308_vm10 = vmor %vm4306_vm0, %vm4307_vm15 }
 0xd5b   : > { %v4284_v35 = vmul.f32 %v7709_v21, %v4282_v47  ;;  %v4283_v45 = vmul.f32 %v7706_v0, %v4282_v47  ;;  %v4304_v21 = vmul.f32 %v7811_v31, %v4303_v63  ;;  %v4318_v0 = vmul.f32 %v7819_v50, %v7809_v10 }
 0xd5c   : > { %v4357_v51 = vsel %vm4356_vm12, %v5636_v32, %v4353_v41  ;;  %v4298_v46 = vsel %vm4295_vm14, %v4297_v8, %v4293_v2  ;;  %v4312_v32 = vand.u32 2147483648, %v7804_v44  ;;  %v4334_v55 = vmul.f32 %v5640_v43, %v7817_v34  ;;  %v5642_v33 = vpop.eup %5641 }
 0xd5d   : > { %4403 = vperm.xlu0 %5302, %v4284_v35   ;;  %4400 = vperm.xlu2 %5301, %v4283_v45   ;;  %v7833_v25 = vsel %vm4359_vm13, %v4361_v30, %v4357_v51  ;;  %v4305_v58 = vadd.f32 %v7811_v31, %v4304_v21  ;;  %v4319_v40 = vsub.f32 1.0, %v4318_v0  ;;  %v4300_v38 = vmul.f32 %v7719_v26, %v4298_v46 }
 0xd5e   : > { %v4363_v42 = vmul.f32 %v7755_v57, %v7833_v25  ;;  %v4299_v18 = vmul.f32 %v7712_v15, %v4298_v46  ;;  %v4313_v60 = vor.u32 1.1754944e-38, %v4312_v32  ;;  %vm4311_vm11 = vcmp.eq.f32.partialorder %v4310_v53, 8.507059e+37 }
 0xd5f   : > { %v4309_v57 = vsel %vm4308_vm10, %v7811_v31, %v4305_v58  ;;  %v4320_v11 = vmul.f32 %v7819_v50, %v4319_v40  ;;  %v7852_v26 = vperm.slane %v7799_v12, 7  ;;  %vm4323_vm12 = vweird.f32 %v7819_v50 }
 0xd60   : > { %4565 = vperm.xlu1 %5300, %v4363_v42   ;;  %v4314_v15 = vsel %vm4311_vm11, %v4313_v60, %v4309_v57  ;;  %v4335_v44 = vsub.f32 1.0, %v4334_v55  ;;  %v4328_v6 = vand.u32 2147483648, %v7809_v10  ;;  %vm4322_vm13 = vweird.f32 %v7809_v10 }
 0xd61   : > { %v4321_v49 = vadd.f32 %v7819_v50, %v4320_v11  ;;  %v4316_v31 = vmul.f32 %v7733_v54, %v4314_v15  ;;  %v4315_v52 = vmul.f32 %v7722_v36, %v4314_v15  ;;  %v4326_v17 = vand.u32 2147483647, %v7809_v10  ;;  %vm4324_vm14 = vmor %vm4322_vm13, %vm4323_vm12 }
 0xd62   : > { %5643 = vrcp.f32 %v7852_v26  ;;  %v4336_v63 = vmul.f32 %v5640_v43, %v4335_v44  ;;  %v4366_v29 = vmul.f32 %v5642_v33, %v7836_v62  ;;  %v4329_v47 = vor.u32 1.1754944e-38, %v4328_v6 }
 0xd63   : > { %v4325_v12 = vsel %vm4324_vm14, %v7819_v50, %v4321_v49  ;;  %vm4327_vm15 = vcmp.eq.f32.partialorder %v4326_v17, 8.507059e+37  ;;  %vm4339_vm0 = vweird.f32 %v5640_v43  ;;  %v4344_v45 = vand.u32 2147483648, %v7817_v34 }
 0xd64   : > { %v4330_v59 = vsel %vm4327_vm15, %v4329_v47, %v4325_v12  ;;  %v4337_v54 = vadd.f32 %v5640_v43, %v4336_v63  ;;  %v4367_v36 = vsub.f32 1.0, %v4366_v29  ;;  %vm4338_vm10 = vweird.f32 %v7817_v34 }
 0xd65   : > { %4436 = vperm.xlu0 %5302, %v4300_v38   ;;  %4433 = vperm.xlu2 %5301, %v4299_v18   ;;  %v4332_v10 = vmul.f32 %v7744_v23, %v4330_v59  ;;  %v4331_v7 = vmul.f32 %v7735_v3, %v4330_v59  ;;  %v4342_v50 = vand.u32 2147483647, %v7817_v34  ;;  %vm4340_vm11 = vmor %vm4338_vm10, %vm4339_vm0  ;;  %v4345_v2 = vor.u32 1.1754944e-38, %v4344_v45 }
 0xd66   : > { %v4341_v41 = vsel %vm4340_vm11, %v5640_v43, %v4337_v54  ;;  %v4368_v13 = vmul.f32 %v5642_v33, %v4367_v36  ;;  %vm4371_vm13 = vweird.f32 %v5642_v33  ;;  %v4376_v23 = vand.u32 2147483648, %v7836_v62 }
 0xd67   : > { %vm4343_vm12 = vcmp.eq.f32.partialorder %v4342_v50, 8.507059e+37  ;;  %vm4370_vm14 = vweird.f32 %v7836_v62  ;;  %v4374_v34 = vand.u32 2147483647, %v7836_v62  ;;  %v4392_v32 = vand.u32 2147483648, %v7852_v26 }
 0xd68   : > { %v5644_v35 = vpop.eup %5643  ;;  %v4346_v21 = vsel %vm4343_vm12, %v4345_v2, %v4341_v41  ;;  %v4369_v0 = vadd.f32 %v5642_v33, %v4368_v13  ;;  %vm4372_vm15 = vmor %vm4370_vm14, %vm4371_vm13  ;;  %v4377_v58 = vor.u32 1.1754944e-38, %v4376_v23  ;;  %vm4386_vm11 = vweird.f32 %v7852_v26 }
 0xd69   : > { %v4382_v30 = vmul.f32 %v5644_v35, %v7852_v26  ;;  %v4348_v3 = vmul.f32 %v7725_v19, %v4346_v21  ;;  %v4347_v8 = vmul.f32 %v7746_v37, %v4346_v21  ;;  %vm4375_vm0 = vcmp.eq.f32.partialorder %v4374_v34, 8.507059e+37 }
 0xd6a   : > { %v4373_v42 = vsel %vm4372_vm15, %v5642_v33, %v4369_v0  ;;  %vm4387_vm10 = vweird.f32 %v5644_v35  ;;  %v4364_v37 = vmul.f32 %v7757_v16, %v7833_v25  ;;  %v4390_v62 = vand.u32 2147483647, %v7852_v26 }
 0xd6b   : > { %v4383_v51 = vsub.f32 1.0, %v4382_v30  ;;  %v4378_v40 = vsel %vm4375_vm0, %v4377_v58, %v4373_v42  ;;  %vm4388_vm12 = vmor %vm4386_vm11, %vm4387_vm10  ;;  %v4393_v18 = vor.u32 1.1754944e-38, %v4392_v32 }
 0xd6c   : > { %v4379_v19 = vmul.f32 %v7738_v22, %v4378_v40  ;;  %vm4391_vm13 = vcmp.eq.f32.partialorder %v4390_v62, 8.507059e+37  ;;  %v4380_v11 = vmul.f32 %v7761_v14, %v4378_v40 }
 0xd6d   : > { %4469 = vperm.xlu0 %5302, %v4316_v31   ;;  %4466 = vperm.xlu2 %5301, %v4315_v52   ;;  %v4384_v46 = vmul.f32 %v5644_v35, %v4383_v51 }
 0xd6f   : > { %v4385_v43 = vadd.f32 %v5644_v35, %v4384_v46 }
 0xd71   : > { %v4389_v38 = vsel %vm4388_vm12, %v5644_v35, %v4385_v43 }
 0xd72   : > { %v4394_v53 = vsel %vm4391_vm13, %v4393_v18, %v4389_v38 }
 0xd73   : > { %v4395_v57 = vmul.f32 %v7763_v1, %v4394_v53  ;;  %v4396_v22 = vmul.f32 %v7749_v56, %v4394_v53 }
 0xd75   : > { %4502 = vperm.xlu0 %5302, %v4332_v10   ;;  %4499 = vperm.xlu2 %5301, %v4331_v7  }
 0xd7d   : > { %4535 = vperm.xlu0 %5302, %v4348_v3   ;;  %4532 = vperm.xlu2 %5301, %v4347_v8  }
 0xd85   : > { %4598 = vperm.xlu0 %5302, %v4379_v19   ;;  %4568 = vperm.xlu2 %5301, %v4364_v37  }
 0xd8d   : > { %4631 = vperm.xlu0 %5302, %v4395_v57   ;;  %4601 = vperm.xlu2 %5301, %v4380_v11  }
 0xd95   : > { %4634 = vperm.xlu2 %5301, %v4396_v22  }
 0xdb7   : > { %v4401_v16 = vpop.permute.xlu2 %4400 }
 0xdb8   : > { %v4405_v26 = vperm.slane %v4401_v16, %v7630_v48 }
 0xdbf   : > { %v4434_v25 = vpop.permute.xlu2 %4433 }
 0xdc0   : > { %v4438_v56 = vperm.slane %v4434_v25, %v7630_v48 }
 0xdc7   : > { %v4467_v55 = vpop.permute.xlu2 %4466 }
 0xdcf   : > { %v4404_v60 = vpop.permute.xlu0 %4403  ;;  %v4500_v14 = vpop.permute.xlu2 %4499 }
 0xdd0   : > { %v4406_v15 = vperm.slane %v4404_v60, %v7633_v28  ;;  %v4504_v12 = vperm.slane %v4500_v14, %v7630_v48 }
 0xdd2   : > { %v4407_v49 = vsel %vm4047_vm2, %v4406_v15, %v4405_v26  ;;  %v4566_v29 = vpop.permute.xlu1 %4565 }
 0xdd3   : > { %5127 = vmatmul.msk.f32.vlgmr.msrb.gmra.mxu3 %vm1240_vm1, %v4407_v49 }
 0xdd4   : > { %4490 = vmatpush.msrb.mxu3 %v7514_v39  ;;  %v4471_v39 = vperm.slane %v4467_v55, %v7630_v48 }
 0xdd6   : > { %4491 = vmatpush.msrb.mxu3 %v7511_v61 }
 0xdd7   : > { %v4437_v1 = vpop.permute.xlu0 %4436  ;;  %v4533_v6 = vpop.permute.xlu2 %4532 }
 0xdd8   : > { %v4439_v44 = vperm.slane %v4437_v1, %v7633_v28  ;;  %v4537_v59 = vperm.slane %v4533_v6, %v7630_v48 }
 0xdda   : > { %v4440_v33 = vsel %vm4047_vm2, %v4439_v44, %v4438_v56 }
 0xddb   : > { %5128 = vmatmul.msk.f32.vlgmr.msra.gmra.mxu3 %vm1240_vm1, %v4440_v33 }
 0xddc   : > { %4556 = vmatpush.msra.mxu3 %v7532_v4 }
 0xdde   : > { %4557 = vmatpush.msra.mxu3 %v7529_v24 }
 0xddf   : > { %v4470_v31 = vpop.permute.xlu0 %4469  ;;  %v4569_v24 = vpop.permute.xlu2 %4568 }
 0xde0   : > { %v4472_v52 = vperm.slane %v4470_v31, %v7633_v28  ;;  %v4571_v47 = vperm.slane %v4569_v24, %v7633_v28 }
 0xde2   : > { %v4473_v61 = vsel %vm4047_vm2, %v4472_v52, %v4471_v39 }
 0xde3   : > { %5129 = vmatmul.msk.f32.vlgmr.msrb.gmra.mxu3 %vm1240_vm1, %v4473_v61 }
 0xde4   : > { %4622 = vmatpush.msrb.mxu3 %v7561_v27 }
 0xde6   : > { %4623 = vmatpush.msrb.mxu3 %v7558_v9  ;;  %v4570_v9 = vperm.slane %v4566_v29, %v7630_v48 }
 0xde7   : > { %v4503_v17 = vpop.permute.xlu0 %4502  ;;  %v4602_v45 = vpop.permute.xlu2 %4601 }
 0xde8   : > { %v4505_v4 = vperm.slane %v4503_v17, %v7633_v28  ;;  %v4572_v36 = vsel %vm4047_vm2, %v4571_v47, %v4570_v9  ;;  %v4604_v10 = vperm.slane %v4602_v45, %v7633_v28 }
 0xdea   : > { %v4506_v63 = vsel %vm4047_vm2, %v4505_v4, %v4504_v12 }
 0xdeb   : > { %5130 = vmatmul.msk.f32.vlgmr.msrb.gmra.mxu2 %vm1240_vm1, %v4506_v63 }
 0xdec   : > { %4655 = vmatpush.msrb.mxu2 %v7577_v5 }
 0xdee   : > { %4656 = vmatpush.msrb.mxu2 %v7574_v20 }
 0xdef   : > { %v4536_v27 = vpop.permute.xlu0 %4535  ;;  %v4635_v50 = vpop.permute.xlu2 %4634 }
 0xdf0   : > { %v4538_v54 = vperm.slane %v4536_v27, %v7633_v28  ;;  %v4637_v13 = vperm.slane %v4635_v50, %v7633_v28 }
 0xdf2   : > { %v4539_v35 = vsel %vm4047_vm2, %v4538_v54, %v4537_v59 }
 0xdf3   : > { %5131 = vmatmul.msk.f32.vlgmr.msra.gmra.mxu3 %vm1240_vm1, %v4539_v35  ;;  %5132 = vmatmul.msk.f32.vlgmr.msra.gmra.mxu2 %vm1240_vm1, %v4572_v36 }
 0xdf7   : > { %v4599_v5 = vpop.permute.xlu0 %4598 }
 0xdf8   : > { %v4603_v20 = vperm.slane %v4599_v5, %v7630_v48 }
 0xdfa   : > { %v4605_v7 = vsel %vm4047_vm2, %v4604_v10, %v4603_v20 }
 0xdfb   : > { %5133 = vmatmul.msk.f32.vlgmr.msrb.gmra.mxu3 %vm1240_vm1, %v4605_v7 }
 0xdff   : > { %v4632_v41 = vpop.permute.xlu0 %4631 }
 0xe00   : > { %v4636_v30 = vperm.slane %v4632_v41, %v7630_v48 }
 0xe02   : > { %v4638_v2 = vsel %vm4047_vm2, %v4637_v13, %v4636_v30 }
 0xe03   : > { %5134 = vmatmul.msk.f32.vlgmr.msrb.gmra.mxu2 %vm1240_vm1, %v4638_v2 }
 0xe56   : > { %v4427_v21 = vpop.f32.mrf.mxu3 }
 0xe5e   : > { %v4460_v0 = vpop.f32.mrf.mxu3 }
 0xe5f   : > { %v4669_v8 = vrot.slane %v4460_v0, 7 }
 0xe61   : > { %v4670_v28 = vsel %vm4070_vm3, %v4669_v8, %v4427_v21 }
 0xe66   : > { %v4493_v51 = vpop.f32.mrf.mxu3 }
 0xe67   : > { %v4671_v34 = vrot.slane %v4493_v51, 6 }
 0xe69   : > { %v4672_v48 = vsel %vm4072_vm4, %v4671_v34, %v4670_v28 }
 0xe6e   : > { %v4526_v23 = vpop.f32.mrf.mxu2 }
 0xe6f   : > { %v4673_v46 = vrot.slane %v4526_v23, 5 }
 0xe71   : > { %v4674_v43 = vsel %vm4074_vm5, %v4673_v46, %v4672_v48 }
 0xe76   : > { %v4559_v3 = vpop.f32.mrf.mxu3  ;;  %v4592_v42 = vpop.f32.mrf.mxu2 }
 0xe77   : > { %v4675_v58 = vrot.slane %v4559_v3, 4  ;;  %v4677_v32 = vrot.slane %v4592_v42, 3 }
 0xe79   : > { %v4676_v19 = vsel %vm4076_vm6, %v4675_v58, %v4674_v43 }
 0xe7a   : > { %v4678_v38 = vsel %vm4078_vm7, %v4677_v32, %v4676_v19 }
 0xe7e   : > { %v4625_v40 = vpop.f32.mrf.mxu3 }
 0xe7f   : > { %v4679_v37 = vrot.slane %v4625_v40, 2 }
 0xe81   : > { %v4680_v53 = vsel %vm4080_vm8, %v4679_v37, %v4678_v38 }
 0xe86   : > { %v4658_v62 = vpop.f32.mrf.mxu2 }
 0xe87   : > { %v4681_v18 = vrot.slane %v4658_v62, 1 }
 0xe89   : > { %v4682_v57 = vsel %vm4082_vm9, %v4681_v18, %v4680_v53 }
 0xe8a   : > { %4684 = vst [vmem:[%s517_s3] sm:$0xff] %v4682_v57 }
 0xe8b   : > { %5852 = shalt.err (!%p5849_p9)
}
 0xe8c   : > { %5219 = dma.vmem_to_hbm [thread:$0]  (%p6082_p13), %s4699_s28, 128, %s4701_s20, %s4686_s27  }
 0xe8d PF: > { %s4712_s15 = sand.u32 1, %s5891_s21   ;;  %p8081_p10 = scmp.ge.s32.totalorder %s5903_s24, 2 }
 0xe8e   : > { %s4713_s7 = scalar_lea.sflag [#allocation4], %s4712_s15 }
 0xe8f   : > { %p5242_p11 = pnand %p8081_p10, %p6087_p4 }
 0xe91   : > { %p5243_p0 = pneg %p5242_p11 }
 0xe93   : > { %5886 = dma.done.wait (%p5243_p0), %s4713_s7, 128  }
 0xe94   : > { %5888 = vsyncadd (%p5243_p0), %s4713_s7, 4294967168  ;;  %s8082_s29 = sld [smem:[#allocation19_spill]]  ;;  %p28_p2 = scmp.ge.s32.totalorder %s6062_s25, 4  }
 0xe95   : > { %s8083_s21 = smov %s5895_s22  ;;  %s8084_s22 = smov %s5899_s23 }
 0xe96   : > { %s8086_s24 = smov %s6062_s25  ;;  %30 = sbr.rel (!%p28_p2) target bundleno = 14 (0xe), region = 133 }
 0xe9a   : > { %s8085_s23 = smov %s8082_s29 }
 0xe9b   :  { %4719 = vsyncpa [#allocation3], 1 }
 0xe9c   :  { %4721 = vsyncpa [#allocation3 + $0x1], 1 }
 0xe9d   :  { %4722 = vsyncpa [#allocation6], 1 }
 0xe9e   :  { %4723 = vsyncpa [#allocation9], 1 }
 0xe9f   :  { %4724 = vsyncpa [#allocation12], 1 }
 0xea0   :  { %4725 = vsyncpa [#allocation4], 1 }
 0xea1   :  { %4727 = vsyncpa [#allocation4 + $0x1], 1 }

// kernel: tpu_custom_call.1
= control target key start
LH: loop header
LB: loop body
LE: loop exit
PB: predicated region body
PF: predicated region fallthrough
CT: control target
= control target key end

     0   :  { %s7965_s0 = inlined_call_operand.hbm [shape: bf16[16,16,128], index: 0, kind: input, shape index: {}]   ;;  %s7966_s1 = inlined_call_operand.hbm [shape: bf16[128,128], index: 1, kind: input, shape index: {}]   ;;  %s7967_s2 = inlined_call_operand.vmem [shape: f32[1,128], index: 2, kind: input, shape index: {}]   ;;  %s7968_s3 = inlined_call_operand.hbm [shape: bf16[128,128], index: 3, kind: input, shape index: {}]   ;;  %s7969_s4 = inlined_call_operand.vmem [shape: f32[1,128], index: 4, kind: input, shape index: {}]   ;;  %s7970_s5 = inlined_call_operand.hbm [shape: bf16[128,128], index: 5, kind: input, shape index: {}]   ;;  %s7971_s6 = inlined_call_operand.vmem [shape: f32[1,128], index: 6, kind: input, shape index: {}]   ;;  %s7972_s7 = inlined_call_operand.hbm [shape: bf16[128,128], index: 7, kind: input, shape index: {}]   ;;  %s7973_s8 = inlined_call_operand.vmem [shape: f32[1,128], index: 8, kind: input, shape index: {}]   ;;  %s7974_s9 = inlined_call_operand.hbm [shape: bf16[128,128], index: 9, kind: input, shape index: {}]   ;;  %s7975_s10 = inlined_call_operand.vmem [shape: f32[1,128], index: 10, kind: input, shape index: {}]   ;;  %s7976_s11 = inlined_call_operand.vmem [shape: f32[1,128], index: 11, kind: input, shape index: {}]   ;;  %s7977_s12 = inlined_call_operand.hbm [shape: f32[16,128], index: 12, kind: output, shape index: {}]  }
   0x1   :  { %8000 = sst [smem:[#allocation37_spill]] %s7966_s1 }
   0x2   :  { %8001 = sst [smem:[#allocation38_spill]] %s7968_s3 }
   0x3   :  { %8002 = sst [smem:[#allocation39_spill]] %s7970_s5 }
   0x4   :  { %8003 = sst [smem:[#allocation40_spill]] %s7972_s7 }
   0x5   :  { %8004 = sst [smem:[#allocation41_spill]] %s7974_s9 }
   0x6   :  { %17 = vsyncpa [#allocation3], 0 }
   0x7   :  { %19 = vsyncpa [#allocation3 + $0x1], 0 }
   0x8   :  { %20 = vsyncpa [#allocation6], 0 }
   0x9   :  { %21 = vsyncpa [#allocation9], 0 }
   0xa   :  { %22 = vsyncpa [#allocation12], 0 }
   0xb   :  { %23 = vsyncpa [#allocation4], 0 }
   0xc   :  { %25 = vsyncpa [#allocation4 + $0x1], 0  ;;  %s5981_s21 = smov 0   ;;  %s5983_s22 = smov 0  }
   0xd   :  { %s5985_s23 = smov 0   ;;  %s5987_s24 = smov 0  }
   0xe LB: > { %s8005_s1 = sld [smem:[#allocation37_spill]]  ;;  %s6005_s28 = sadd.s32 4294967295, %s5903_s24   ;;  %s5903_s24 = sphi %s5987_s24, %s8086_s24   ;;  %s5899_s23 = sphi %s5985_s23, %s8085_s23   ;;  %s5895_s22 = sphi %s5983_s22, %s8084_s22   ;;  %s5891_s21 = sphi %s5981_s21, %s8083_s21  }
   0xf   : > { %p4820_p0 = scmp.ge.s32.totalorder %s5903_s24, 1  ;;  %p52_p1 = scmp.eq.s32.totalorder %s6005_s28, 0 }
  0x10   : > { %p319_p2 = scmp.lt.s32.totalorder %s5903_s24, 3  ;;  %s5905_s30 = smov [#allocation5]  }
  0x11   : > { %s332_s13 = sshll.u32 %s5905_s30, 4  ;;  %s8007_s5 = sld [smem:[#allocation39_spill]]  ;;  %s333_s13 = int_to_ptr.vmem [resolvable:$true] %s332_s13 }
  0x12   : > { %p6010_p3 = pnand %p4820_p0, %p319_p2  ;;  %s8009_s3 = sld [smem:[#allocation38_spill]] }
  0x13   : > { %s5906_s25 = smov [#allocation8]   ;;  %s7978_s30 = smov 64  }
  0x14   : > { %s330_s27 = sshll.u32 %s8005_s1, 4  ;;  %p5221_p4 = pneg %p6010_p3  ;;  %s331_s27 = int_to_ptr.hbm [resolvable:$true] %s330_s27 }
  0x15   : > { %s366_s26 = sshll.u32 %s5906_s25, 4  ;;  %s7979_s1 = smov 4   ;;  %s367_s26 = int_to_ptr.vmem [resolvable:$true] %s366_s26 }
  0x16   : > { %p6022_p6 = pnand %p5221_p4, %p52_p1  ;;  %s8010_s7 = sld [smem:[#allocation40_spill]] }
  0x17   : > { %s364_s16 = sshll.u32 %s8007_s5, 4  ;;  %s5909_s19 = smov [#allocation7]   ;;  %s365_s16 = int_to_ptr.hbm [resolvable:$true] %s364_s16 }
  0x18   : > { %s347_s20 = sshll.u32 %s8009_s3, 4  ;;  %s349_s25 = sshll.u32 %s5909_s19, 4  ;;  %s348_s20 = int_to_ptr.hbm [resolvable:$true] %s347_s20  ;;  %s350_s25 = int_to_ptr.vmem [resolvable:$true] %s349_s25 }
  0x19   : > { %5224 = dma.hbm_to_vmem [thread:$0]  (!%p6022_p6), %s331_s27, 1024, %s333_s13, [#allocation6], %s7978_s30, %s7978_s30, %s7979_s1  }
  0x1a   : > { %5230 = dma.hbm_to_vmem [thread:$0]  (!%p6022_p6), %s365_s16, 1024, %s367_s26, [#allocation9], %s7978_s30, %s7978_s30, %s7979_s1  }
  0x1b   : > { %5227 = dma.hbm_to_vmem [thread:$0]  (!%p6022_p6), %s348_s20, 1024, %s350_s25, [#allocation6], %s7978_s30, %s7978_s30, %s7979_s1  }
  0x1c   : > { %s381_s18 = sshll.u32 %s8010_s7, 4  ;;  %s5910_s27 = smov [#allocation10]   ;;  %s382_s18 = int_to_ptr.hbm [resolvable:$true] %s381_s18 }
  0x1d   : > { %s383_s13 = sshll.u32 %s5910_s27, 4  ;;  %s8011_s9 = sld [smem:[#allocation41_spill]]  ;;  %s384_s13 = int_to_ptr.vmem [resolvable:$true] %s383_s13 }
  0x1e   : > { %5233 = dma.hbm_to_vmem [thread:$0]  (!%p6022_p6), %s382_s18, 1024, %s384_s13, [#allocation9], %s7978_s30, %s7978_s30, %s7979_s1  }
  0x1f   : > { %s5911_s20 = smov [#allocation11]   ;;  %s4819_s19 = sadd.s32 4294967294, %s5903_s24  }
  0x20   : > { %s400_s15 = sshll.u32 %s5911_s20, 4  ;;  %s6062_s25 = sadd.s32 1, %s5903_s24   ;;  %s401_s15 = int_to_ptr.vmem [resolvable:$true] %s400_s15 }
  0x21   : > { %s38_s27 = sadd.s32 1, %s5899_s23  ;;  %s35_s16 = ssub.s32 %s5903_s24, %s6062_s25 }
  0x22   : > { %p45_p7 = scmp.ne.s32.totalorder %s5899_s23, %s5895_s22  ;;  %p36_p8 = scmp.eq.s32.totalorder %s35_s16, 0 }
  0x23   : > { %s398_s14 = sshll.u32 %s8011_s9, 4  ;;  %p46_p9 = scmp.eq.s32.totalorder %s5903_s24, 0  ;;  %s399_s14 = int_to_ptr.hbm [resolvable:$true] %s398_s14 }
  0x24   : > { %5236 = dma.hbm_to_vmem [thread:$0]  (!%p6022_p6), %s399_s14, 1024, %s401_s15, [#allocation12], %s7978_s30, %s7978_s30, %s7979_s1  }
  0x25   : > { %p51_p10 = scmp.ne.s32.totalorder %s5895_s22, %s5891_s21  ;;  %p306_p11 = scmp.eq.s32.totalorder %s6005_s28, 1 }
  0x26   : > { %s6074_s18 = scalar_select %p36_p8, %s5899_s23, %s38_s27  }
  0x27   : > { %p6078_p12 = por %p52_p1, %p51_p10  ;;  %p6082_p13 = por %p306_p11, %p45_p7 }
  0x28   : > { %8012 = sst [smem:[#allocation19_spill]] %s6074_s18  ;;  %p312_p0 = scmp.eq.s32.totalorder %s4819_s19, 1 }
  0x29   : > { %p47_p2 = por %p46_p9, %p45_p7  ;;  %s420_s26 = sand.u32 1, %s5899_s23  }
  0x2a   : > { %p6087_p4 = por %p312_p0, %p51_p10  ;;  %p5250_p6 = scmp.lt.s32.totalorder %s5903_s24, 2 }
  0x2b   : > { %s4827_s20 = sshll.u32 %s420_s26, 6  ;;  %s5140_s15 = sshll.u32 %s5903_s24, 6 }
  0x2c   : > { %s430_s30 = scalar_lea.hbm %s7965_s0, %s5140_s15  ;;  %s424_s3 = scalar_lea.vmem [#allocation2], %s4827_s20 }
  0x2d   : > { %s431_s1 = sshll.u32 %s430_s30, 4  ;;  %s433_s5 = sshll.u32 %s424_s3, 4  ;;  %s432_s1 = int_to_ptr.hbm [resolvable:$true] %s431_s1  ;;  %s434_s5 = int_to_ptr.vmem [resolvable:$true] %s433_s5 }
  0x2e   : > { %p6096_p8 = pnand %p5250_p6, %p47_p2  ;;  %s421_s7 = scalar_lea.sflag [#allocation3], %s420_s26 }
  0x2f   : > { %s5795_s9 = sshra.s32 %s432_s1, 4  ;;  %s5802_s3 = scalar_lea.hbm %s7965_s0, 128  ;;  %s5796_s9 = int_to_ptr.hbm [resolvable:$true] %s5795_s9 }
  0x30   : > { %s5797_s18 = scalar_lea.hbm %s5796_s9, 64  ;;  %p5799_p9 = pneg %p6096_p8 }
  0x31   : > { %p5798_p7 = scmp.ne.s32.totalorder %s5796_s9, %s5797_s18  ;;  %p5803_p0 = scmp.lt.s32.totalorder %s5796_s9, %s7965_s0 }
  0x32   : > { %p5804_p2 = scmp.lt.s32.totalorder %s5802_s3, %s5797_s18 }
  0x33   : > { %p5800_p10 = pnand %p5799_p9, %p5798_p7 }
  0x34   : > { %p5805_p6 = por %p5804_p2, %p5803_p0 }
  0x35   : > { %p5801_p11 = pneg %p5800_p10 }
  0x37   : > { %p5806_p5 = pnand %p5805_p6, %p5801_p11 }
  0x39   : > { %5809 = shalt.err (!%p5806_p5)
}
  0x3a   : > { %s8017_s26 = smov 4   ;;  %s8018_s16 = smov 64  }
  0x3b   : > { %5240 = dma.hbm_to_vmem [thread:$0]  (!%p6096_p8), %s432_s1, 1024, %s434_s5, %s421_s7, %s8018_s16, %s8018_s16, %s8017_s26  }
  0x3c   : > { %445 = sbr.rel (%p6010_p3) target bundleno = 3725 (0xe8d), region = 68 }
  0x41   : > { %s6116_s15 = sand.u32 1, %s5895_s22  }
  0x42   : > { %s4832_s9 = sshll.u32 %s6116_s15, 6  ;;  %s448_s18 = scalar_lea.sflag [#allocation3], %s6116_s15 }
  0x43   : > { %s6120_s30 = scalar_lea.vmem [#allocation2], %s4832_s9 }
  0x44   : > { %5870 = dma.done.wait (%p6078_p12), %s448_s18, 1024  }
  0x45   : > { %5872 = vsyncadd (%p6078_p12), %s448_s18, 4294966272 }
  0x46   : > { %5874 = dma.done.wait (%p52_p1), [#allocation6], 2048  }
  0x47   : > { %5876 = vsyncadd (%p52_p1), [#allocation6], 4294965248 }
  0x48   : > { %5878 = dma.done.wait (%p52_p1), [#allocation9], 2048  }
  0x49   : > { %5880 = vsyncadd (%p52_p1), [#allocation9], 4294965248 }
  0x4a   : > { %5882 = dma.done.wait (%p52_p1), [#allocation12], 1024  }
  0x4b   : > { %5884 = vsyncadd (%p52_p1), [#allocation12], 4294966272  ;;  %v5156_v0 = vld [vmem:[#allocation5 + $0x38] sm:$0xff]  ;;  %v5155_v3 = vld [vmem:[#allocation5 + $0x30] sm:$0xff]  ;;  %vm1009_vm0 = vcmask 261120   ;;  %s5912_s17 = smov 64  }
  0x4c   : > { %v5164_v1 = vld [vmem:[#allocation7 + $0x38] sm:$0xff]  ;;  %652 = vmatpush.bf16.msra.mxu0 %v5156_v0  ;;  %v5163_v4 = vld [vmem:[#allocation7 + $0x30] sm:$0xff]  ;;  %v5154_v6 = vld [vmem:[#allocation5 + $0x28] sm:$0xff]  ;;  %s5913_s19 = smov 96   ;;  %vm1240_vm1 = vcmask 130048   ;;  %s5914_s27 = smov 32  }
  0x4d   : > { %v5172_v2 = vld [vmem:[#allocation8 + $0x38] sm:$0xff]  ;;  %769 = vmatpush.bf16.msra.mxu1 %v5164_v1  ;;  %5189 = vmatpush.bf16.msra.mxu3 %v5164_v1  ;;  %v5171_v5 = vld [vmem:[#allocation8 + $0x30] sm:$0xff]  ;;  %v5162_v7 = vld [vmem:[#allocation7 + $0x28] sm:$0xff]  ;;  %vm4047_vm2 = vcmask 130112   ;;  %vm4070_vm3 = vcmask 1041409   ;;  %vm4072_vm4 = vcmask 1042434  }
  0x4e   : > { %886 = vmatpush.bf16.msra.mxu2 %v5172_v2  ;;  %v5170_v8 = vld [vmem:[#allocation8 + $0x28] sm:$0xff]  ;;  %v5153_v9 = vld [vmem:[#allocation5 + $0x20] sm:$0xff]  ;;  %v5152_v12 = vld [vmem:[#allocation5 + $0x18] sm:$0xff]  ;;  %vm4074_vm5 = vcmask 1043459   ;;  %vm4076_vm6 = vcmask 1044484   ;;  %vm4078_vm7 = vcmask 1045509  }
  0x4f   : > { %v5161_v10 = vld [vmem:[#allocation7 + $0x20] sm:$0xff]  ;;  %v5160_v13 = vld [vmem:[#allocation7 + $0x18] sm:$0xff]  ;;  %v5151_v15 = vld [vmem:[#allocation5 + $0x10] sm:$0xff]  ;;  %vm4080_vm8 = vcmask 1046534   ;;  %vm4082_vm9 = vcmask 1047559   ;;  %s4838_s5 = sshll.u32 %s6116_s15, 3 }
  0x50   : > { %653 = vmatpush.bf16.msra.mxu0 %v5155_v3  ;;  %v5169_v11 = vld [vmem:[#allocation8 + $0x20] sm:$0xff]  ;;  %v5168_v14 = vld [vmem:[#allocation8 + $0x18] sm:$0xff]  ;;  %v5159_v16 = vld [vmem:[#allocation7 + $0x10] sm:$0xff]  ;;  %s5136_s7 = sshll.u32 %s6005_s28, 3  ;;  %s517_s3 = scalar_lea.vmem [#allocation13], %s4838_s5 }
  0x51   : > { %770 = vmatpush.bf16.msra.mxu1 %v5163_v4  ;;  %5190 = vmatpush.bf16.msra.mxu3 %v5163_v4  ;;  %v5167_v17 = vld [vmem:[#allocation8 + $0x10] sm:$0xff]  ;;  %v5150_v18 = vld [vmem:[#allocation5 + $0x8] sm:$0xff]  ;;  %v5149_v21 = vld [vmem:[#allocation5] sm:$0xff]  ;;  %s4698_s28 = sshll.u32 %s517_s3, 4  ;;  %s4699_s28 = int_to_ptr.vmem [resolvable:$true] %s4698_s28 }
  0x52   : > { %887 = vmatpush.bf16.msra.mxu2 %v5171_v5  ;;  %v5158_v19 = vld [vmem:[#allocation7 + $0x8] sm:$0xff]  ;;  %v5157_v22 = vld [vmem:[#allocation7] sm:$0xff]  ;;  %v5147_v25 = vld [vmem:[%s6120_s30 + $0x30] sm:$0xff] }
  0x53   : > { %v5166_v20 = vld [vmem:[#allocation8 + $0x8] sm:$0xff]  ;;  %v5165_v23 = vld [vmem:[#allocation8] sm:$0xff]  ;;  %v5148_v27 = vld [vmem:[%s6120_s30 + $0x38] sm:$0xff] }
  0x54   : > { %654 = vmatpush.bf16.msra.mxu0 %v5154_v6  ;;  %v5141_v24 = vld [vmem:[%s6120_s30] sm:$0xff]  ;;  %v5142_v26 = vld [vmem:[%s6120_s30 + $0x8] sm:$0xff]  ;;  %v5143_v28 = vld [vmem:[%s6120_s30 + $0x10] sm:$0xff] }
  0x55   : > { %771 = vmatpush.bf16.msra.mxu1 %v5162_v7  ;;  %5191 = vmatpush.bf16.msra.mxu3 %v5162_v7  ;;  %v5144_v29 = vld [vmem:[%s6120_s30 + $0x18] sm:$0xff]  ;;  %v5145_v30 = vld [vmem:[%s6120_s30 + $0x20] sm:$0xff]  ;;  %v5146_v31 = vld [vmem:[%s6120_s30 + $0x28] sm:$0xff]  ;;  %s5845_s30 = scalar_lea.hbm %s7977_s12, 16 }
  0x56   : > { %888 = vmatpush.bf16.msra.mxu2 %v5170_v8  ;;  %v6149_v34 = vld [vmem:[%s7969_s4] ss:$0 sm:$0xff] }
  0x57   : > { %v6155_v36 = vld [vmem:[%s7967_s2] ss:$0 sm:$0xff] }
  0x58   : > { %655 = vmatpush.bf16.msra.mxu0 %v5153_v9 }
  0x59   : > { %772 = vmatpush.bf16.msra.mxu1 %v5161_v10  ;;  %5192 = vmatpush.bf16.msra.mxu3 %v5161_v10 }
  0x5a   : > { %889 = vmatpush.bf16.msra.mxu2 %v5169_v11 }
  0x5c   : > { %656 = vmatpush.bf16.msra.mxu0 %v5152_v12 }
  0x5d   : > { %773 = vmatpush.bf16.msra.mxu1 %v5160_v13  ;;  %5193 = vmatpush.bf16.msra.mxu3 %v5160_v13 }
  0x5e   : > { %890 = vmatpush.bf16.msra.mxu2 %v5168_v14 }
  0x60   : > { %657 = vmatpush.bf16.msra.mxu0 %v5151_v15 }
  0x61   : > { %774 = vmatpush.bf16.msra.mxu1 %v5159_v16  ;;  %5194 = vmatpush.bf16.msra.mxu3 %v5159_v16 }
  0x62   : > { %891 = vmatpush.bf16.msra.mxu2 %v5167_v17 }
  0x64   : > { %658 = vmatpush.bf16.msra.mxu0 %v5150_v18 }
  0x65   : > { %775 = vmatpush.bf16.msra.mxu1 %v5158_v19  ;;  %5195 = vmatpush.bf16.msra.mxu3 %v5158_v19 }
  0x66   : > { %892 = vmatpush.bf16.msra.mxu2 %v5166_v20 }
  0x68   : > { %659 = vmatpush.bf16.msra.mxu0 %v5149_v21 }
  0x69   : > { %776 = vmatpush.bf16.msra.mxu1 %v5157_v22  ;;  %5196 = vmatpush.bf16.msra.mxu3 %v5157_v22 }
  0x6a   : > { %893 = vmatpush.bf16.msra.mxu2 %v5165_v23 }
  0x6b   : > { %660 = vmatmul.bf16.vlgmr.msra.gmra.mxu0 %v5141_v24 }
  0x6c   : > { %777 = vmatmul.bf16.vlgmr.msra.gmra.mxu1 %v5141_v24  ;;  %807 = vmatmul.bf16.vlgmr.msra.gmra.mxu3 %v5147_v25 }
  0x6d   : > { %894 = vmatmul.bf16.vlgmr.msra.gmra.mxu2 %v5141_v24 }
  0x7b   : > { %665 = vmatmul.bf16.gmra.mxu0 %v5142_v26 }
  0x7c   : > { %782 = vmatmul.bf16.gmra.mxu1 %v5142_v26  ;;  %812 = vmatmul.bf16.gmra.mxu3 %v5148_v27 }
  0x7d   : > { %899 = vmatmul.bf16.gmra.mxu2 %v5142_v26 }
  0x8b   : > { %670 = vmatmul.bf16.gmra.mxu0 %v5143_v28 }
  0x8c   : > { %787 = vmatmul.bf16.gmra.mxu1 %v5143_v28 }
  0x8d   : > { %904 = vmatmul.bf16.gmra.mxu2 %v5143_v28 }
  0x9b   : > { %675 = vmatmul.bf16.gmra.mxu0 %v5144_v29 }
  0x9c   : > { %792 = vmatmul.bf16.gmra.mxu1 %v5144_v29 }
  0x9d   : > { %909 = vmatmul.bf16.gmra.mxu2 %v5144_v29 }
  0xab   : > { %680 = vmatmul.bf16.gmra.mxu0 %v5145_v30 }
  0xac   : > { %797 = vmatmul.bf16.gmra.mxu1 %v5145_v30 }
  0xad   : > { %914 = vmatmul.bf16.gmra.mxu2 %v5145_v30 }
  0xbb   : > { %685 = vmatmul.bf16.gmra.mxu0 %v5146_v31 }
  0xbc   : > { %802 = vmatmul.bf16.gmra.mxu1 %v5146_v31 }
  0xbd   : > { %919 = vmatmul.bf16.gmra.mxu2 %v5146_v31 }
  0xcb   : > { %690 = vmatmul.bf16.gmra.mxu0 %v5147_v25 }
  0xcd   : > { %924 = vmatmul.bf16.gmra.mxu2 %v5147_v25 }
  0xdb   : > { %695 = vmatmul.bf16.gmra.mxu0 %v5148_v27 }
  0xdd   : > { %929 = vmatmul.bf16.gmra.mxu2 %v5148_v27 }
  0xe8   : > { %v661_v32 = vpop.f32.mrf.mxu0 }
  0xe9   : > { %v778_v33 = vpop.f32.mrf.mxu1  ;;  %v662_v44 = vadd.f32 %v6155_v36, %v661_v32  ;;  %v6206_v32 = vld [vmem:[%s7971_s6] ss:$0 sm:$0xff] }
  0xea   : > { %v779_v35 = vadd.f32 %v6149_v34, %v778_v33 }
  0xeb   : > { %v935_v50 = vpack.c.bf16 %v662_v44, %v662_v44 }
  0xec   : > { %v951_v41 = vpack.c.bf16 %v779_v35, %v779_v35 }
  0xed   : > { %v1001_v61 = vunpack.c.l.b16 %v935_v50 }
  0xee   : > { %v1006_v47 = vunpack.c.l.b16 %v951_v41 }
  0xef   : > { %v808_v37 = vpop.f32.mrf.mxu3 }
  0xf0   : > { %v6157_v38 = vpop.f32.mrf.mxu2  ;;  %v663_v39 = vpop.f32.mrf.mxu0  ;;  %v809_v43 = vadd.f32 %v6149_v34, %v808_v37 }
  0xf1   : > { %v780_v40 = vpop.f32.mrf.mxu1  ;;  %v664_v45 = vadd.f32 %v6155_v36, %v663_v39 }
  0xf2   : > { %v781_v42 = vadd.f32 %v6149_v34, %v780_v40  ;;  %v963_v49 = vpack.c.bf16 %v809_v43, %v809_v43 }
  0xf3   : > { %v936_v51 = vpack.c.bf16 %v664_v45, %v664_v45 }
  0xf4   : > { %v952_v46 = vpack.c.bf16 %v781_v42, %v781_v42  ;;  %v1187_v59 = vunpack.c.l.b16 %v963_v49 }
  0xf5   : > { %v1002_v62 = vunpack.c.l.b16 %v936_v51 }
  0xf6   : > { %v1007_v48 = vunpack.c.l.b16 %v952_v46 }
  0xf7   : > { %v810_v53 = vpop.f32.mrf.mxu3  ;;  %v6176_v3 = vpack.c.b16 %v1002_v62, %v1001_v61 }
  0xf8   : > { %v6163_v52 = vpack.c.b16 %v1007_v48, %v1006_v47  ;;  %v6165_v54 = vpop.f32.mrf.mxu2  ;;  %v811_v55 = vadd.f32 %v6149_v34, %v810_v53  ;;  %v666_v56 = vpop.f32.mrf.mxu0 }
  0xf9   : > { %v783_v57 = vpop.f32.mrf.mxu1  ;;  %v667_v63 = vadd.f32 %v6155_v36, %v666_v56 }
  0xfa   : > { %8019 = vst [vmem:[#allocation20_spill] sm:$0xff] %v6163_v52  ;;  %2429 = vrot.lane.b32.xlu1 %v6163_v52, %s5912_s17  ;;  %v1014_v58 = vsel %vm1009_vm0, %v6163_v52, 0  ;;  %v964_v60 = vpack.c.bf16 %v811_v55, %v811_v55  ;;  %v784_v1 = vadd.f32 %v6149_v34, %v783_v57 }
  0xfb   : > { %1023 = vmatpush.bf16.xpose.msrb.mxu3 %v1014_v58  ;;  %v937_v4 = vpack.c.bf16 %v667_v63, %v667_v63 }
  0xfc   : > { %v1188_v0 = vunpack.c.l.b16 %v964_v60  ;;  %v953_v9 = vpack.c.bf16 %v784_v1, %v784_v1 }
  0xfd   : > { %v1032_v13 = vunpack.c.l.b16 %v937_v4 }
  0xfe   : > { %v6174_v2 = vpack.c.b16 %v1188_v0, %v1187_v59  ;;  %v1037_v16 = vunpack.c.l.b16 %v953_v9 }
  0xff   : > { %v813_v5 = vpop.f32.mrf.mxu3 }
 0x100   : > { %8020 = vst [vmem:[#allocation21_spill] sm:$0xff] %v6174_v2  ;;  %v6178_v6 = vpop.f32.mrf.mxu2  ;;  %1811 = vrot.lane.b32.xlu0 %v6174_v2, %s5913_s19  ;;  %v668_v7 = vpop.f32.mrf.mxu0  ;;  %v814_v12 = vadd.f32 %v6149_v34, %v813_v5 }
 0x101   : > { %v785_v8 = vpop.f32.mrf.mxu1  ;;  %v669_v10 = vadd.f32 %v6155_v36, %v668_v7 }
 0x102   : > { %v786_v11 = vadd.f32 %v6149_v34, %v785_v8  ;;  %4967 = vmatmul.msk.bf16.vlgmr.msrb.gmra.mxu3 %vm1009_vm0, %v6176_v3  ;;  %2427 = vrot.lane.b32.xlu1 %v6176_v3, %s5912_s17  ;;  %v965_v19 = vpack.c.bf16 %v814_v12, %v814_v12 }
 0x103   : > { %v938_v14 = vpack.c.bf16 %v669_v10, %v669_v10 }
 0x104   : > { %v954_v15 = vpack.c.bf16 %v786_v11, %v786_v11  ;;  %v1217_v28 = vunpack.c.l.b16 %v965_v19 }
 0x105   : > { %v1033_v17 = vunpack.c.l.b16 %v938_v14 }
 0x106   : > { %v1038_v18 = vunpack.c.l.b16 %v954_v15 }
 0x107   : > { %v6189_v20 = vpack.c.b16 %v1033_v17, %v1032_v13  ;;  %v815_v22 = vpop.f32.mrf.mxu3 }
 0x108   : > { %v6191_v21 = vpack.c.b16 %v1038_v18, %v1037_v16  ;;  %v6193_v23 = vpop.f32.mrf.mxu2  ;;  %v816_v24 = vadd.f32 %v6149_v34, %v815_v22  ;;  %v671_v25 = vpop.f32.mrf.mxu0 }
 0x109   : > { %8021 = vst [vmem:[#allocation22_spill] sm:$0xff] %v6189_v20  ;;  %v788_v26 = vpop.f32.mrf.mxu1  ;;  %v672_v43 = vadd.f32 %v6155_v36, %v671_v25 }
 0x10a   : > { %1691 = vrot.lane.b32.xlu2 %v6191_v21, %s5913_s19  ;;  %v1044_v27 = vsel %vm1009_vm0, %v6191_v21, 0  ;;  %1689 = vrot.lane.b32.xlu1 %v6189_v20, %s5913_s19  ;;  %v966_v29 = vpack.c.bf16 %v816_v24, %v816_v24  ;;  %v789_v31 = vadd.f32 %v6149_v34, %v788_v26 }
 0x10b   : > { %1053 = vmatpush.bf16.xpose.msra.mxu3 %v1044_v27  ;;  %v939_v49 = vpack.c.bf16 %v672_v43, %v672_v43 }
 0x10c   : > { %v1218_v30 = vunpack.c.l.b16 %v966_v29  ;;  %v955_v40 = vpack.c.bf16 %v789_v31, %v789_v31 }
 0x10d   : > { %v1062_v61 = vunpack.c.l.b16 %v939_v49 }
 0x10e   : > { %v6208_v33 = vpack.c.b16 %v1218_v30, %v1217_v28  ;;  %v1067_v46 = vunpack.c.l.b16 %v955_v40 }
 0x110   : > { %8022 = vst [vmem:[#allocation23_spill] sm:$0xff] %v6208_v33  ;;  %v905_v35 = vpop.f32.mrf.mxu2  ;;  %v673_v37 = vpop.f32.mrf.mxu0 }
 0x111   : > { %v790_v39 = vpop.f32.mrf.mxu1  ;;  %v906_v42 = vadd.f32 %v6206_v32, %v905_v35  ;;  %v674_v44 = vadd.f32 %v6155_v36, %v673_v37 }
 0x112   : > { %v791_v41 = vadd.f32 %v6149_v34, %v790_v39  ;;  %1835 = vrot.lane.b32.xlu2 %v6208_v33, %s5913_s19  ;;  %4968 = vmatmul.msk.bf16.vlgmr.msra.gmra.mxu3 %vm1009_vm0, %v6189_v20 }
 0x113   : > { %v971_v48 = vpack.c.bf16 %v906_v42, %v906_v42  ;;  %v940_v50 = vpack.c.bf16 %v674_v44, %v674_v44 }
 0x114   : > { %v956_v45 = vpack.c.bf16 %v791_v41, %v791_v41 }
 0x115   : > { %v1496_v59 = vunpack.c.l.b16 %v971_v48  ;;  %v1063_v62 = vunpack.c.l.b16 %v940_v50 }
 0x116   : > { %v1068_v47 = vunpack.c.l.b16 %v956_v45 }
 0x117   : > { %v6229_v5 = vpack.c.b16 %v1063_v62, %v1062_v61 }
 0x118   : > { %v6218_v51 = vpack.c.b16 %v1068_v47, %v1067_v46  ;;  %v907_v53 = vpop.f32.mrf.mxu2  ;;  %v676_v56 = vpop.f32.mrf.mxu0 }
 0x119   : > { %v908_v55 = vadd.f32 %v6206_v32, %v907_v53  ;;  %v793_v57 = vpop.f32.mrf.mxu1  ;;  %v677_v63 = vadd.f32 %v6155_v36, %v676_v56  ;;  %8025 = vst [vmem:[#allocation26_spill] sm:$0xff] %v6229_v5 }
 0x11a   : > { %8023 = vst [vmem:[#allocation24_spill] sm:$0xff] %v6218_v51  ;;  %1715 = vrot.lane.b32.xlu2 %v6218_v51, %s5913_s19  ;;  %v1074_v58 = vsel %vm1009_vm0, %v6218_v51, 0  ;;  %v794_v1 = vadd.f32 %v6149_v34, %v793_v57 }
 0x11b   : > { %v972_v60 = vpack.c.bf16 %v908_v55, %v908_v55  ;;  %1083 = vmatpush.bf16.xpose.msrb.mxu3 %v1074_v58  ;;  %v941_v7 = vpack.c.bf16 %v677_v63, %v677_v63 }
 0x11c   : > { %v957_v11 = vpack.c.bf16 %v794_v1, %v794_v1 }
 0x11d   : > { %v1497_v0 = vunpack.c.l.b16 %v972_v60  ;;  %v1092_v15 = vunpack.c.l.b16 %v941_v7 }
 0x11e   : > { %v1097_v18 = vunpack.c.l.b16 %v957_v11 }
 0x11f   : > { %v6227_v4 = vpack.c.b16 %v1497_v0, %v1496_v59 }
 0x120   : > { %v910_v8 = vpop.f32.mrf.mxu2  ;;  %v678_v9 = vpop.f32.mrf.mxu0 }
 0x121   : > { %8024 = vst [vmem:[#allocation25_spill] sm:$0xff] %v6227_v4  ;;  %v795_v10 = vpop.f32.mrf.mxu1  ;;  %2104 = vrot.lane.b32.xlu1 %v6227_v4, %s5913_s19  ;;  %1510 = vmatpush.bf16.msrb.mxu2 %v6227_v4  ;;  %v679_v12 = vadd.f32 %v6155_v36, %v678_v9  ;;  %v911_v14 = vadd.f32 %v6206_v32, %v910_v8 }
 0x122   : > { %v796_v13 = vadd.f32 %v6149_v34, %v795_v10  ;;  %4969 = vmatmul.msk.bf16.vlgmr.msrb.gmra.mxu3 %vm1009_vm0, %v6229_v5  ;;  %1713 = vrot.lane.b32.xlu2 %v6229_v5, %s5913_s19 }
 0x123   : > { %v942_v16 = vpack.c.bf16 %v679_v12, %v679_v12  ;;  %v973_v24 = vpack.c.bf16 %v911_v14, %v911_v14 }
 0x124   : > { %v958_v17 = vpack.c.bf16 %v796_v13, %v796_v13 }
 0x125   : > { %v1093_v19 = vunpack.c.l.b16 %v942_v16  ;;  %v1524_v35 = vunpack.c.l.b16 %v973_v24 }
 0x126   : > { %v1098_v22 = vunpack.c.l.b16 %v958_v17 }
 0x127   : > { %v6241_v25 = vpack.c.b16 %v1093_v19, %v1092_v15 }
 0x128   : > { %v6243_v26 = vpack.c.b16 %v1098_v22, %v1097_v18  ;;  %v912_v27 = vpop.f32.mrf.mxu2  ;;  %v681_v29 = vpop.f32.mrf.mxu0 }
 0x129   : > { %8026 = vst [vmem:[#allocation27_spill] sm:$0xff] %v6241_v25  ;;  %v913_v28 = vadd.f32 %v6206_v32, %v912_v27  ;;  %v798_v30 = vpop.f32.mrf.mxu1  ;;  %v682_v47 = vadd.f32 %v6155_v36, %v681_v29 }
 0x12a   : > { %8027 = vst [vmem:[#allocation28_spill] sm:$0xff] %v6243_v26  ;;  %v1104_v31 = vsel %vm1009_vm0, %v6243_v26, 0  ;;  %1739 = vrot.lane.b32.xlu1 %v6243_v26, %s5913_s19  ;;  %1737 = vrot.lane.b32.xlu2 %v6241_v25, %s5913_s19  ;;  %v799_v40 = vadd.f32 %v6149_v34, %v798_v30 }
 0x12b   : > { %v974_v37 = vpack.c.bf16 %v913_v28, %v913_v28  ;;  %1113 = vmatpush.bf16.xpose.msra.mxu3 %v1104_v31  ;;  %v943_v55 = vpack.c.bf16 %v682_v47, %v682_v47  ;;  %v896_v47 = vadd.f32 %v6206_v32, %v6157_v38 }
 0x12c   : > { %v959_v45 = vpack.c.bf16 %v799_v40, %v799_v40 }
 0x12d   : > { %v1525_v39 = vunpack.c.l.b16 %v974_v37  ;;  %v1122_v62 = vunpack.c.l.b16 %v943_v55 }
 0x12e   : > { %v1127_v50 = vunpack.c.l.b16 %v959_v45 }
 0x12f   : > { %v6253_v41 = vpack.c.b16 %v1525_v39, %v1524_v35  ;;  %v1224_v39 = vsel %vm1009_vm0, %v6208_v33, 0 }
 0x130   : > { %v6255_v42 = vpop.f32.mrf.mxu2  ;;  %v683_v43 = vpop.f32.mrf.mxu0 }
 0x131   : > { %8028 = vst [vmem:[#allocation29_spill] sm:$0xff] %v6253_v41  ;;  %v800_v44 = vpop.f32.mrf.mxu1  ;;  %2129 = vrot.lane.b32.xlu0 %v6253_v41, %s5913_s19  ;;  %1538 = vmatpush.bf16.msra.mxu2 %v6253_v41  ;;  %v684_v48 = vadd.f32 %v6155_v36, %v683_v43 }
 0x132   : > { %v801_v46 = vadd.f32 %v6149_v34, %v800_v44  ;;  %4970 = vmatmul.msk.bf16.vlgmr.msra.gmra.mxu3 %vm1009_vm0, %v6241_v25 }
 0x133   : > { %v944_v56 = vpack.c.bf16 %v684_v48, %v684_v48  ;;  %v898_v48 = vadd.f32 %v6206_v32, %v6165_v54 }
 0x134   : > { %v960_v49 = vpack.c.bf16 %v801_v46, %v801_v46 }
 0x135   : > { %v1123_v63 = vunpack.c.l.b16 %v944_v56  ;;  %v967_v56 = vpack.c.bf16 %v896_v47, %v896_v47 }
 0x136   : > { %v1128_v53 = vunpack.c.l.b16 %v960_v49 }
 0x137   : > { %v6273_v7 = vpack.c.b16 %v1123_v63, %v1122_v62 }
 0x138   : > { %v6265_v57 = vpack.c.b16 %v1128_v53, %v1127_v50  ;;  %v6267_v58 = vpop.f32.mrf.mxu2  ;;  %v686_v59 = vpop.f32.mrf.mxu0 }
 0x139   : > { %v803_v60 = vpop.f32.mrf.mxu1  ;;  %v687_v0 = vadd.f32 %v6155_v36, %v686_v59  ;;  %v968_v59 = vpack.c.bf16 %v898_v48, %v898_v48 }
 0x13a   : > { %8029 = vst [vmem:[#allocation30_spill] sm:$0xff] %v6265_v57  ;;  %v1134_v61 = vsel %vm1009_vm0, %v6265_v57, 0  ;;  %v804_v1 = vadd.f32 %v6149_v34, %v803_v60 }
 0x13b   : > { %1143 = vmatpush.bf16.xpose.msrb.mxu3 %v1134_v61  ;;  %v945_v8 = vpack.c.bf16 %v687_v0, %v687_v0  ;;  %v1440_v0 = vunpack.c.l.b16 %v967_v56 }
 0x13c   : > { %v961_v12 = vpack.c.bf16 %v804_v1, %v804_v1  ;;  %v1441_v1 = vunpack.c.l.b16 %v968_v59 }
 0x13d   : > { %v1152_v15 = vunpack.c.l.b16 %v945_v8 }
 0x13e   : > { %v1157_v18 = vunpack.c.l.b16 %v961_v12  ;;  %v6314_v12 = vpack.c.b16 %v1441_v1, %v1440_v0 }
 0x140   : > { %v6275_v9 = vpop.f32.mrf.mxu2  ;;  %v688_v10 = vpop.f32.mrf.mxu0  ;;  %8030 = vst [vmem:[#allocation31_spill] sm:$0xff] %v6314_v12 }
 0x141   : > { %v805_v11 = vpop.f32.mrf.mxu1  ;;  %v689_v13 = vadd.f32 %v6155_v36, %v688_v10 }
 0x142   : > { %v806_v14 = vadd.f32 %v6149_v34, %v805_v11  ;;  %4971 = vmatmul.msk.bf16.vlgmr.msrb.gmra.mxu3 %vm1009_vm0, %v6273_v7  ;;  %v1194_v34 = vsel %vm1009_vm0, %v6174_v2, 0 }
 0x143   : > { %v946_v16 = vpack.c.bf16 %v689_v13, %v689_v13 }
 0x144   : > { %v962_v17 = vpack.c.bf16 %v806_v14, %v806_v14 }
 0x145   : > { %v1153_v19 = vunpack.c.l.b16 %v946_v16 }
 0x146   : > { %v1158_v22 = vunpack.c.l.b16 %v962_v17 }
 0x147   : > { %v6281_v24 = vpack.c.b16 %v1153_v19, %v1152_v15  ;;  %v901_v19 = vadd.f32 %v6206_v32, %v6178_v6 }
 0x148   : > { %v6283_v27 = vpack.c.b16 %v1158_v22, %v1157_v18  ;;  %v6285_v28 = vpop.f32.mrf.mxu2  ;;  %v691_v29 = vpop.f32.mrf.mxu0  ;;  %v903_v22 = vadd.f32 %v6206_v32, %v6193_v23 }
 0x149   : > { %1785 = vrot.lane.b32.xlu2 %v6281_v24, %s5913_s19  ;;  %v692_v31 = vadd.f32 %v6155_v36, %v691_v29 }
 0x14a   : > { %v1164_v30 = vsel %vm1009_vm0, %v6283_v27, 0  ;;  %1787 = vrot.lane.b32.xlu0 %v6283_v27, %s5913_s19 }
 0x14b   : > { %1173 = vmatpush.bf16.xpose.msra.mxu3 %v1164_v30  ;;  %v947_v35 = vpack.c.bf16 %v692_v31, %v692_v31  ;;  %v969_v31 = vpack.c.bf16 %v901_v19, %v901_v19 }
 0x14d   : > { %v1182_v45 = vunpack.c.l.b16 %v947_v35  ;;  %v970_v35 = vpack.c.bf16 %v903_v22, %v903_v22  ;;  %v1468_v6 = vunpack.c.l.b16 %v969_v31 }
 0x150   : > { %v925_v37 = vpop.f32.mrf.mxu2  ;;  %v693_v40 = vpop.f32.mrf.mxu0 }
 0x151   : > { %v694_v43 = vadd.f32 %v6155_v36, %v693_v40  ;;  %v926_v44 = vadd.f32 %v6206_v32, %v925_v37 }
 0x152   : > { %4972 = vmatmul.msk.bf16.vlgmr.msra.gmra.mxu3 %vm1009_vm0, %v6281_v24 }
 0x153   : > { %1203 = vmatpush.bf16.xpose.msrb.mxu3 %v1194_v34  ;;  %v948_v46 = vpack.c.bf16 %v694_v43, %v694_v43  ;;  %v979_v50 = vpack.c.bf16 %v926_v44, %v926_v44  ;;  %v1469_v44 = vunpack.c.l.b16 %v970_v35 }
 0x155   : > { %v1183_v49 = vunpack.c.l.b16 %v948_v46  ;;  %v1608_v62 = vunpack.c.l.b16 %v979_v50  ;;  %v6338_v46 = vpack.c.b16 %v1469_v44, %v1468_v6 }
 0x157   : > { %v6306_v53 = vpack.c.b16 %v1183_v49, %v1182_v45 }
 0x158   : > { %v927_v55 = vpop.f32.mrf.mxu2  ;;  %v696_v61 = vpop.f32.mrf.mxu0 }
 0x159   : > { %v928_v60 = vadd.f32 %v6206_v32, %v927_v55  ;;  %1809 = vrot.lane.b32.xlu2 %v6306_v53, %s5913_s19  ;;  %v697_v38 = vadd.f32 %v6155_v36, %v696_v61 }
 0x15b   : > { %1233 = vmatpush.bf16.xpose.msra.mxu3 %v1224_v39  ;;  %v980_v63 = vpack.c.bf16 %v928_v60, %v928_v60  ;;  %v949_v10 = vpack.c.bf16 %v697_v38, %v697_v38 }
 0x15d   : > { %v1609_v54 = vunpack.c.l.b16 %v980_v63  ;;  %v1212_v16 = vunpack.c.l.b16 %v949_v10 }
 0x15f   : > { %v6312_v8 = vpack.c.b16 %v1609_v54, %v1608_v62 }
 0x160   : > { %v930_v11 = vpop.f32.mrf.mxu2  ;;  %v698_v13 = vpop.f32.mrf.mxu0 }
 0x161   : > { %v699_v14 = vadd.f32 %v6155_v36, %v698_v13  ;;  %2204 = vrot.lane.b32.xlu2 %v6312_v8, %s5913_s19  ;;  %v931_v15 = vadd.f32 %v6206_v32, %v930_v11 }
 0x162   : > { %4973 = vmatmul.msk.bf16.vlgmr.msrb.gmra.mxu3 %vm1009_vm0, %v6306_v53 }
 0x163   : > { %1454 = vmatpush.bf16.msrb.mxu3 %v6314_v12  ;;  %v950_v18 = vpack.c.bf16 %v699_v14, %v699_v14  ;;  %v981_v30 = vpack.c.bf16 %v931_v15, %v931_v15 }
 0x164   : > { %v6323_v17 = vpop.permute.xlu2 %1691 }
 0x165   : > { %v1213_v29 = vunpack.c.l.b16 %v950_v18  ;;  %v1636_v39 = vunpack.c.l.b16 %v981_v30 }
 0x167   : > { %v6329_v36 = vpack.c.b16 %v1213_v29, %v1212_v16 }
 0x168   : > { %v932_v34 = vpop.f32.mrf.mxu2 }
 0x169   : > { %8031 = vst [vmem:[#allocation32_spill] sm:$0xff] %v6329_v36  ;;  %v933_v37 = vadd.f32 %v6206_v32, %v932_v34  ;;  %1833 = vrot.lane.b32.xlu0 %v6329_v36, %s5913_s19 }
 0x16b   : > { %v982_v40 = vpack.c.bf16 %v933_v37, %v933_v37 }
 0x16c   : > { %v6334_v43 = vpop.permute.xlu2 %1835  ;;  %v6348_v55 = vpop.permute.xlu1 %2429 }
 0x16d   : > { %v1637_v45 = vunpack.c.l.b16 %v982_v40 }
 0x16f   : > { %v6336_v23 = vpack.c.b16 %v1637_v45, %v1636_v39 }
 0x171   : > { %8032 = vst [vmem:[#allocation33_spill] sm:$0xff] %v6336_v23  ;;  %2229 = vrot.lane.b32.xlu2 %v6336_v23, %s5913_s19  ;;  %1650 = vmatpush.bf16.msrb.mxu1 %v6336_v23 }
 0x172   : > { %4974 = vmatmul.msk.bf16.vlgmr.msra.gmra.mxu3 %vm1009_vm0, %v6329_v36  ;;  %v1812_v47 = vpop.permute.xlu0 %1811 }
 0x173   : > { %1482 = vmatpush.bf16.msra.mxu3 %v6338_v46  ;;  %v1817_v48 = vsel %vm1009_vm0, %v1812_v47, 0 }
 0x174   : > { %v1716_v49 = vpop.permute.xlu2 %1715  ;;  %v6351_v59 = vpop.permute.xlu1 %2427 }
 0x175   : > { %v1721_v50 = vsel %vm1009_vm0, %v1716_v49, 0 }
 0x176   : > { %1730 = vmatpush.bf16.xpose.msrb.mxu0 %v1721_v50 }
 0x17c   : > { %v1714_v56 = vpop.permute.xlu2 %1713  ;;  %v6355_v61 = vpop.permute.xlu1 %1689 }
 0x17d   : > { %4985 = vmatmul.msk.bf16.vlgmr.msrb.gmra.mxu0 %vm1009_vm0, %v1714_v56 }
 0x17e   : > { %1826 = vmatpush.bf16.xpose.msra.mxu0 %v1817_v48 }
 0x184   : > { %v6366_v15 = vpop.permute.xlu2 %1737 }
 0x185   : > { %v6353_v60 = vpop.f32.mrf.mxu3 }
 0x186   : > { %v1241_v54 = vsel %vm1240_vm1, %v6353_v60, -inf }
 0x18d   : > { %v1027_v62 = vpop.f32.mrf.mxu3 }
 0x18e   : > { %v1244_v63 = vsel %vm1240_vm1, %v1027_v62, -inf }
 0x18f   : > { %1245 = vmax.xlane.f32.xlu1 %v1244_v63 }
 0x193   : > { %v2105_v38 = vpop.permute.xlu1 %2104 }
 0x194   : > { %2117 = vmatpush.bf16.msrb.mxu0 %v2105_v38 }
 0x195   : > { %v6358_v0 = vpop.f32.mrf.mxu3 }
 0x196   : > { %v1247_v1 = vsel %vm1240_vm1, %v6358_v0, -inf }
 0x197   : > { %1248 = vmax.xlane.f32.xlu0 %v1247_v1 }
 0x19a   : > { %1242 = vmax.xlane.f32.xlu2 %v1241_v54 }
 0x19c   : > { %v1740_v10 = vpop.permute.xlu1 %1739 }
 0x19d   : > { %v1057_v11 = vpop.f32.mrf.mxu3  ;;  %v1745_v13 = vsel %vm1009_vm0, %v1740_v10, 0 }
 0x19e   : > { %1754 = vmatpush.bf16.xpose.msra.mxu1 %v1745_v13  ;;  %v1250_v14 = vsel %vm1240_vm1, %v1057_v11, -inf }
 0x1a2   : > { %1251 = vmax.xlane.f32.xlu2 %v1250_v14 }
 0x1a3   : > { %v6372_v19 = vpop.permute.xlu2 %1785 }
 0x1a5   : > { %v6368_v16 = vpop.f32.mrf.mxu3 }
 0x1a6   : > { %v1253_v18 = vsel %vm1240_vm1, %v6368_v16, -inf }
 0x1a7   : > { %1254 = vmax.xlane.f32.xlu0 %v1253_v18 }
 0x1ad   : > { %v6374_v22 = vpop.f32.mrf.mxu3 }
 0x1ae   : > { %v1256_v29 = vsel %vm1240_vm1, %v6374_v22, -inf }
 0x1af   : > { %1257 = vmax.xlane.f32.xlu1 %v1256_v29 }
 0x1b3   : > { %v1810_v30 = vpop.permute.xlu2 %1809 }
 0x1b4   : > { %4989 = vmatmul.msk.bf16.vlgmr.msra.gmra.mxu0 %vm1009_vm0, %v1810_v30 }
 0x1b5   : > { %v6378_v34 = vpop.f32.mrf.mxu3 }
 0x1b6   : > { %v1259_v31 = vsel %vm1240_vm1, %v6378_v34, -inf }
 0x1b7   : > { %1260 = vmax.xlane.f32.xlu2 %v1259_v31 }
 0x1bb   : > { %v2205_v40 = vpop.permute.xlu2 %2204 }
 0x1bc   : > { %2217 = vmatpush.bf16.msra.mxu0 %v2205_v40 }
 0x1bd   : > { %v6383_v35 = vpop.f32.mrf.mxu3 }
 0x1be   : > { %v1262_v37 = vsel %vm1240_vm1, %v6383_v35, -inf }
 0x1bf   : > { %1263 = vmax.xlane.f32.xlu0 %v1262_v37 }
 0x1c5   : > { %v6387_v39 = vpop.f32.mrf.mxu3 }
 0x1cb   : > { %v6411_v14 = vpop.permute.xlu2 %2229 }
 0x1cd   : > { %v6389_v6 = vpop.f32.mrf.mxu3 }
 0x1d5   : > { %v6391_v44 = vpop.f32.mrf.mxu3 }
 0x1d6   : > { %v1271_v45 = vsel %vm1240_vm1, %v6391_v44, -inf }
 0x1d7   : > { %1272 = vmax.xlane.f32.xlu1 %v1271_v45 }
 0x1dd   : > { %v6395_v47 = vpop.f32.mrf.mxu3 }
 0x1de   : > { %v1274_v48 = vsel %vm1240_vm1, %v6395_v47, -inf }
 0x1df   : > { %1275 = vmax.xlane.f32.xlu0 %v1274_v48  ;;  %v6424_v48 = vpop.permute.xlu0 %2129 }
 0x1e5   : > { %v6399_v49 = vpop.f32.mrf.mxu3 }
 0x1ed   : > { %v6401_v50 = vpop.f32.mrf.mxu3 }
 0x1f5   : > { %v6403_v56 = vpop.f32.mrf.mxu3 }
 0x1f6   : > { %v1283_v63 = vsel %vm1240_vm1, %v6403_v56, -inf }
 0x1f7   : > { %1284 = vmax.xlane.f32.xlu0 %v1283_v63 }
 0x1fa   : > { %v6413_v18 = vpop.f32.mrf.mxu0 }
 0x1fd   : > { %v6407_v38 = vpop.f32.mrf.mxu3 }
 0x1fe   : > { %v1286_v1 = vsel %vm1240_vm1, %v6407_v38, -inf }
 0x1ff   : > { %1287 = vmax.xlane.f32.xlu0 %v1286_v1 }
 0x202   : > { %v1246_v54 = vpop.xlane.xlu1 %1245  ;;  %v6420_v45 = vpop.f32.mrf.mxu0 }
 0x203   : > { %v1290_v10 = vsub.f32 %v1027_v62, %v1246_v54  ;;  %v1872_v1 = vsel %vm1240_vm1, %v6420_v45, -inf }
 0x205   : > { %v1307_v13 = vmul.f32 1.442695, %v1290_v10 }
 0x207   : > { %5309 = vpow2.f32 %v1307_v13 }
 0x20d   : > { %v6415_v29 = vpop.eup %5309  ;;  %v1243_v30 = vpop.xlane.xlu2 %1242 }
 0x20e   : > { %v1289_v31 = vsub.f32 %v6353_v60, %v1243_v30  ;;  %v1340_v37 = vsel %vm1240_vm1, %v6415_v29, 0.0  ;;  %v6434_v30 = vpop.permute.xlu0 %1787 }
 0x20f   : > { %1341 = vadd.xlane.f32.xlu1 %v1340_v37 }
 0x210   : > { %v1305_v40 = vmul.f32 1.442695, %v1289_v31 }
 0x212   : > { %5311 = vpow2.f32 %v1305_v40 }
 0x213   : > { %2477 = vrot.lane.b32.xlu0 %v6218_v51, %s5912_s17  ;;  %v1869_v51 = vsel %vm1240_vm1, %v6413_v18, -inf }
 0x215   : > { %v1252_v62 = vpop.xlane.xlu2 %1251 }
 0x216   : > { %v1292_v63 = vsub.f32 %v1057_v11, %v1252_v62  ;;  %v6438_v11 = vpop.permute.xlu0 %1833 }
 0x217   : > { %1873 = vmax.xlane.f32.xlu1 %v1872_v1 }
 0x218   : > { %v6428_v60 = vpop.eup %5311  ;;  %v1311_v54 = vmul.f32 1.442695, %v1292_v63 }
 0x219   : > { %v1337_v10 = vsel %vm1240_vm1, %v6428_v60, 0.0 }
 0x21a   : > { %5313 = vpow2.f32 %v1311_v54  ;;  %1338 = vadd.xlane.f32.xlu2 %v1337_v10 }
 0x21e   : > { %v1249_v40 = vpop.xlane.xlu0 %1248 }
 0x21f   : > { %v1291_v1 = vsub.f32 %v6358_v0, %v1249_v40 }
 0x220   : > { %v6432_v13 = vpop.eup %5313 }
 0x221   : > { %v1346_v31 = vsel %vm1240_vm1, %v6432_v13, 0.0  ;;  %v1309_v23 = vmul.f32 1.442695, %v1291_v1 }
 0x222   : > { %1347 = vadd.xlane.f32.xlu2 %v1346_v31  ;;  %v1258_v37 = vpop.xlane.xlu1 %1257  ;;  %v1268_v31 = vsel %vm1240_vm1, %v6389_v6, -inf }
 0x223   : > { %v1294_v62 = vsub.f32 %v6374_v22, %v1258_v37 }
 0x225   : > { %v1315_v10 = vmul.f32 1.442695, %v1294_v62 }
 0x226   : > { %v6454_v0 = vpop.xlane.xlu0 %1254 }
 0x227   : > { %5315 = vpow2.f32 %v1315_v10 }
 0x228   : > { %5317 = vpow2.f32 %v1309_v23 }
 0x22d   : > { %v6450_v22 = vpop.eup %5315 }
 0x22e   : > { %v6452_v37 = vpop.eup %5317  ;;  %v1352_v40 = vsel %vm1240_vm1, %v6450_v22, 0.0 }
 0x22f   : > { %v1343_v23 = vsel %vm1240_vm1, %v6452_v37, 0.0 }
 0x231   : > { %v6441_v63 = vpop.f32.mrf.mxu0 }
 0x232   : > { %v1893_v54 = vsel %vm1240_vm1, %v6441_v63, -inf  ;;  %v1264_v1 = vpop.xlane.xlu0 %1263 }
 0x233   : > { %1894 = vmax.xlane.f32.xlu2 %v1893_v54 }
 0x239   : > { %v6460_v62 = vpop.f32.mrf.mxu0 }
 0x23a   : > { %v1896_v10 = vsel %vm1240_vm1, %v6460_v62, -inf }
 0x23b   : > { %1269 = vmax.xlane.f32.xlu2 %v1268_v31 }
 0x23d   : > { %1870 = vmax.xlane.f32.xlu0 %v1869_v51 }
 0x243   : > { %1353 = vadd.xlane.f32.xlu2 %v1352_v40 }
 0x245   : > { %1344 = vadd.xlane.f32.xlu0 %v1343_v23 }
 0x24a   : > { %v1273_v54 = vpop.xlane.xlu1 %1272 }
 0x24b   : > { %v1299_v51 = vsub.f32 %v6391_v44, %v1273_v54 }
 0x24d   : > { %v1325_v31 = vmul.f32 1.442695, %v1299_v51  ;;  %1897 = vmax.xlane.f32.xlu0 %v1896_v10 }
 0x24f   : > { %5319 = vpow2.f32 %v1325_v31 }
 0x252   : > { %v1276_v41 = vpop.xlane.xlu0 %1275 }
 0x253   : > { %v1300_v12 = vsub.f32 %v6395_v47, %v1276_v41 }
 0x255   : > { %v6466_v40 = vpop.eup %5319  ;;  %v1327_v4 = vmul.f32 1.442695, %v1300_v12 }
 0x256   : > { %v1367_v23 = vsel %vm1240_vm1, %v6466_v40, 0.0 }
 0x257   : > { %5321 = vpow2.f32 %v1327_v4  ;;  %1368 = vadd.xlane.f32.xlu1 %v1367_v23 }
 0x25b   : > { %2499 = vrot.lane.b32.xlu2 %v6241_v25, %s5912_s17 }
 0x25d   : > { %v6472_v44 = vpop.eup %5321 }
 0x25e   : > { %v1370_v54 = vsel %vm1240_vm1, %v6472_v44, 0.0 }
 0x25f   : > { %1371 = vadd.xlane.f32.xlu0 %v1370_v54  ;;  %v1296_v54 = vsub.f32 %v6383_v35, %v1264_v1 }
 0x26a   : > { %v1285_v51 = vpop.xlane.xlu0 %1284 }
 0x26b   : > { %v1303_v41 = vsub.f32 %v6403_v56, %v1285_v51  ;;  %v1319_v51 = vmul.f32 1.442695, %v1296_v54  ;;  %v923_v54 = vadd.f32 %v6206_v32, %v6285_v28  ;;  %v1293_v28 = vsub.f32 %v6368_v16, %v6454_v0 }
 0x26d   : > { %v1333_v47 = vmul.f32 1.442695, %v1303_v41  ;;  %v1277_v41 = vsel %vm1240_vm1, %v6399_v49, -inf }
 0x26f   : > { %5323 = vpow2.f32 %v1333_v47  ;;  %v6495_v47 = vpop.xlane.xlu2 %1260 }
 0x272   : > { %v1288_v12 = vpop.xlane.xlu0 %1287 }
 0x273   : > { %v1304_v10 = vsub.f32 %v6407_v38, %v1288_v12  ;;  %2475 = vrot.lane.b32.xlu0 %v6229_v5, %s5912_s17 }
 0x275   : > { %v6480_v4 = vpop.eup %5323  ;;  %v1335_v31 = vmul.f32 1.442695, %v1304_v10 }
 0x276   : > { %v1379_v23 = vsel %vm1240_vm1, %v6480_v4, 0.0 }
 0x277   : > { %5325 = vpow2.f32 %v1335_v31  ;;  %1380 = vadd.xlane.f32.xlu1 %v1379_v23  ;;  %v921_v23 = vadd.f32 %v6206_v32, %v6275_v9 }
 0x278   : > { %5327 = vpow2.f32 %v1319_v51 }
 0x27b   : > { %2451 = vrot.lane.b32.xlu0 %v6189_v20, %s5912_s17 }
 0x27d   : > { %v6487_v56 = vpop.eup %5325 }
 0x27e   : > { %v1382_v38 = vsel %vm1240_vm1, %v6487_v56, 0.0  ;;  %v6497_v1 = vpop.eup %5327 }
 0x27f   : > { %1383 = vadd.xlane.f32.xlu1 %v1382_v38  ;;  %v1358_v12 = vsel %vm1240_vm1, %v6497_v1, 0.0 }
 0x282   : > { %v1342_v35 = vpop.xlane.xlu1 %1341 }
 0x283   : > { %2525 = vrot.lane.b32.xlu0 %v6265_v57, %s5912_s17  ;;  %5329 = vrcp.f32 %v1342_v35  ;;  %v978_v35 = vpack.c.bf16 %v923_v54, %v923_v54 }
 0x284   : > { %1278 = vmax.xlane.f32.xlu2 %v1277_v41  ;;  %v977_v41 = vpack.c.bf16 %v921_v23, %v921_v23 }
 0x285   : > { %v1581_v57 = vunpack.c.l.b16 %v978_v35  ;;  %v1265_v35 = vsel %vm1240_vm1, %v6387_v39, -inf }
 0x286   : > { %v1580_v20 = vunpack.c.l.b16 %v977_v41 }
 0x288   : > { %v6511_v52 = vpack.c.b16 %v1581_v57, %v1580_v20 }
 0x289   : > { %v5330_v31 = vpop.eup %5329 }
 0x28a   : > { %v1402_v38 = vmul.f32 %v5330_v31, %v6415_v29  ;;  %v6519_v29 = vpop.permute.xlu0 %2477 }
 0x28b   : > { %2501 = vrot.lane.b32.xlu0 %v6243_v26, %s5912_s17 }
 0x28c   : > { %1359 = vadd.xlane.f32.xlu2 %v1358_v12  ;;  %v1418_v25 = vpack.c.bf16 %v1402_v38, %v1402_v38 }
 0x28d   : > { %v1339_v10 = vpop.xlane.xlu2 %1338 }
 0x28e   : > { %5331 = vrcp.f32 %v1339_v10  ;;  %v1436_v12 = vunpack.c.l.b16 %v1418_v25 }
 0x294   : > { %v5332_v51 = vpop.eup %5331 }
 0x295   : > { %v1401_v26 = vmul.f32 %v5332_v51, %v6428_v60  ;;  %v1348_v60 = vpop.xlane.xlu2 %1347 }
 0x297   : > { %v1417_v5 = vpack.c.bf16 %v1401_v26, %v1401_v26  ;;  %v1313_v26 = vmul.f32 1.442695, %v1293_v28 }
 0x298   : > { %2453 = vrot.lane.b32.xlu1 %v6191_v21, %s5912_s17 }
 0x299   : > { %v1435_v10 = vunpack.c.l.b16 %v1417_v5  ;;  %5333 = vpow2.f32 %v1313_v26 }
 0x29a   : > { %5335 = vrcp.f32 %v1348_v60 }
 0x29b   : > { %v1437_v9 = vpack.c.b16 %v1436_v12, %v1435_v10  ;;  %v6530_v12 = vpop.xlane.xlu1 %1873 }
 0x29d   : > { %4975 = vmatmul.msk.bf16.vlgmr.msrb.gmra.mxu3 %vm1240_vm1, %v1437_v9 }
 0x29e   : > { %1594 = vmatpush.bf16.msrb.mxu3 %v6511_v52 }
 0x29f   : > { %v6521_v5 = vpop.eup %5333 }
 0x2a0   : > { %v1349_v20 = vsel %vm1240_vm1, %v6521_v5, 0.0  ;;  %v5336_v31 = vpop.eup %5335 }
 0x2a1   : > { %v1404_v16 = vmul.f32 %v5336_v31, %v6432_v13 }
 0x2a3   : > { %v1420_v54 = vpack.c.bf16 %v1404_v16, %v1404_v16 }
 0x2a4   : > { %2597 = vrot.lane.b32.xlu2 %v6208_v33, %s5912_s17 }
 0x2a5   : > { %v1464_v9 = vunpack.c.l.b16 %v1420_v54 }
 0x2a6   : > { %v1895_v41 = vpop.xlane.xlu2 %1894 }
 0x2a7   : > { %v1917_v28 = vsub.f32 %v6441_v63, %v1895_v41 }
 0x2a9   : > { %v1945_v60 = vmul.f32 1.442695, %v1917_v28  ;;  %v1793_v28 = vsel %vm1009_vm0, %v6434_v30, 0 }
 0x2b0   : > { %v1871_v25 = vpop.xlane.xlu0 %1870 }
 0x2b1   : > { %v1909_v0 = vsub.f32 %v6413_v18, %v1871_v25  ;;  %v1697_v18 = vsel %vm1009_vm0, %v6323_v17, 0 }
 0x2b3   : > { %v1929_v38 = vmul.f32 1.442695, %v1909_v0 }
 0x2b5   : > { %1350 = vadd.xlane.f32.xlu0 %v1349_v20 }
 0x2b8   : > { %v1345_v57 = vpop.xlane.xlu0 %1344 }
 0x2b9   : > { %5337 = vrcp.f32 %v1345_v57 }
 0x2ba   : > { %5339 = vpow2.f32 %v1929_v38 }
 0x2bb   : > { %5341 = vpow2.f32 %v1945_v60 }
 0x2bf   : > { %v5338_v23 = vpop.eup %5337 }
 0x2c0   : > { %v1403_v51 = vmul.f32 %v5338_v23, %v6452_v37  ;;  %v6538_v37 = vpop.eup %5339  ;;  %v6540_v25 = vpop.xlane.xlu0 %1897 }
 0x2c1   : > { %v1965_v63 = vsel %vm1240_vm1, %v6538_v37, 0.0  ;;  %v6544_v57 = vpop.eup %5341 }
 0x2c2   : > { %v1419_v10 = vpack.c.bf16 %v1403_v51, %v1403_v51  ;;  %1266 = vmax.xlane.f32.xlu1 %v1265_v35  ;;  %v1989_v16 = vsel %vm1240_vm1, %v6544_v57, 0.0 }
 0x2c4   : > { %v1463_v13 = vunpack.c.l.b16 %v1419_v10 }
 0x2c6   : > { %v1465_v26 = vpack.c.b16 %v1464_v9, %v1463_v13  ;;  %v1295_v9 = vsub.f32 %v6378_v34, %v6495_v47 }
 0x2c8   : > { %4976 = vmatmul.msk.bf16.vlgmr.msra.gmra.mxu3 %vm1240_vm1, %v1465_v26 }
 0x2c9   : > { %1706 = vmatpush.bf16.xpose.msra.mxu3 %v1697_v18  ;;  %2571 = vrot.lane.b32.xlu0 %v6306_v53, %s5912_s17 }
 0x2ca   : > { %v1369_v20 = vpop.xlane.xlu1 %1368 }
 0x2cb   : > { %5343 = vrcp.f32 %v1369_v20 }
 0x2cd   : > { %1966 = vadd.xlane.f32.xlu2 %v1965_v63 }
 0x2d1   : > { %v5344_v31 = vpop.eup %5343 }
 0x2d2   : > { %v1372_v17 = vpop.xlane.xlu0 %1371  ;;  %v1411_v0 = vmul.f32 %v5344_v31, %v6466_v40  ;;  %v1317_v40 = vmul.f32 1.442695, %v1295_v9 }
 0x2d3   : > { %5345 = vrcp.f32 %v1372_v17 }
 0x2d4   : > { %v1427_v54 = vpack.c.bf16 %v1411_v0, %v1411_v0  ;;  %5347 = vpow2.f32 %v1317_v40  ;;  %v1841_v0 = vsel %vm1009_vm0, %v6334_v43, 0  ;;  %v1270_v43 = vpop.xlane.xlu2 %1269 }
 0x2d5   : > { %1990 = vadd.xlane.f32.xlu2 %v1989_v16 }
 0x2d6   : > { %v1575_v41 = vunpack.c.l.b16 %v1427_v54 }
 0x2d9   : > { %v5346_v23 = vpop.eup %5345 }
 0x2da   : > { %v1412_v38 = vmul.f32 %v5346_v23, %v6472_v44  ;;  %v6561_v13 = vpop.eup %5347 }
 0x2db   : > { %2523 = vrot.lane.b32.xlu1 %v6273_v7, %s5912_s17  ;;  %v1355_v34 = vsel %vm1240_vm1, %v6561_v13, 0.0 }
 0x2dc   : > { %v1428_v51 = vpack.c.bf16 %v1412_v38, %v1412_v38  ;;  %v1354_v54 = vpop.xlane.xlu2 %1353 }
 0x2de   : > { %v1576_v35 = vunpack.c.l.b16 %v1428_v51  ;;  %v918_v51 = vadd.f32 %v6206_v32, %v6267_v58 }
 0x2e0   : > { %v1577_v10 = vpack.c.b16 %v1576_v35, %v1575_v41  ;;  %v976_v9 = vpack.c.bf16 %v918_v51, %v918_v51 }
 0x2e2   : > { %4980 = vmatmul.msk.bf16.vlgmr.msrb.gmra.mxu3 %vm1240_vm1, %v1577_v10 }
 0x2e3   : > { %1802 = vmatpush.bf16.xpose.msrb.mxu3 %v1793_v28  ;;  %2573 = vrot.lane.b32.xlu1 %v6174_v2, %s5912_s17 }
 0x2ea   : > { %v1381_v44 = vpop.xlane.xlu1 %1380 }
 0x2eb   : > { %2549 = vrot.lane.b32.xlu1 %v6283_v27, %s5912_s17  ;;  %5349 = vrcp.f32 %v1381_v44 }
 0x2f1   : > { %v5350_v30 = vpop.eup %5349 }
 0x2f2   : > { %v1384_v26 = vpop.xlane.xlu1 %1383  ;;  %4984 = vmatmul.msk.bf16.vlgmr.msra.gmra.mxu3 %vm1009_vm0, %v6355_v61  ;;  %v1415_v47 = vmul.f32 %v5350_v30, %v6480_v4  ;;  %v6571_v61 = vpop.permute.xlu0 %2475 }
 0x2f3   : > { %5351 = vrcp.f32 %v1384_v26  ;;  %1356 = vadd.xlane.f32.xlu0 %v1355_v34  ;;  %v1553_v26 = vunpack.c.l.b16 %v976_v9 }
 0x2f4   : > { %v1431_v60 = vpack.c.bf16 %v1415_v47, %v1415_v47  ;;  %5353 = vrcp.f32 %v1354_v54  ;;  %v1910_v47 = vsub.f32 %v6420_v45, %v6530_v12 }
 0x2f6   : > { %v1631_v17 = vunpack.c.l.b16 %v1431_v60 }
 0x2f9   : > { %v5352_v18 = vpop.eup %5351 }
 0x2fa   : > { %v1416_v20 = vmul.f32 %v5352_v18, %v6487_v56  ;;  %v6576_v4 = vpop.permute.xlu0 %2451  ;;  %v1280_v56 = vsel %vm1240_vm1, %v6401_v50, -inf }
 0x2fc   : > { %v1432_v63 = vpack.c.bf16 %v1416_v20, %v1416_v20  ;;  %v1918_v20 = vsub.f32 %v6460_v62, %v6540_v25  ;;  %v6622_v62 = vpop.permute.xlu2 %2499 }
 0x2fe   : > { %v1632_v31 = vunpack.c.l.b16 %v1432_v63  ;;  %v1947_v45 = vmul.f32 1.442695, %v1918_v20 }
 0x300   : > { %v1633_v16 = vpack.c.b16 %v1632_v31, %v1631_v17  ;;  %v1298_v17 = vsub.f32 %v6389_v6, %v1270_v43 }
 0x302   : > { %4982 = vmatmul.msk.bf16.vlgmr.msrb.gmra.mxu1 %vm1240_vm1, %v1633_v16  ;;  %4988 = vmatmul.msk.bf16.vlgmr.msrb.gmra.mxu3 %vm1009_vm0, %v6372_v19  ;;  %v6583_v23 = vpop.permute.xlu0 %2525  ;;  %v1323_v16 = vmul.f32 1.442695, %v1298_v17 }
 0x303   : > { %1850 = vmatpush.bf16.xpose.msrb.mxu1 %v1841_v0 }
 0x304   : > { %v1279_v43 = vpop.xlane.xlu2 %1278 }
 0x30a   : > { %v6585_v38 = vpop.permute.xlu0 %2501  ;;  %v6595_v35 = vpop.permute.xlu1 %2453 }
 0x312   : > { %4986 = vmatmul.msk.bf16.vlgmr.msra.gmra.mxu1 %vm1009_vm0, %v6366_v15  ;;  %v5354_v15 = vpop.eup %5353 }
 0x313   : > { %2142 = vmatpush.bf16.msra.mxu1 %v6424_v48  ;;  %v916_v48 = vadd.f32 %v6206_v32, %v6255_v42  ;;  %v1406_v41 = vmul.f32 %v5354_v15, %v6450_v22 }
 0x315   : > { %1281 = vmax.xlane.f32.xlu1 %v1280_v56  ;;  %v975_v10 = vpack.c.bf16 %v916_v48, %v916_v48  ;;  %v1360_v48 = vpop.xlane.xlu2 %1359 }
 0x317   : > { %v1552_v44 = vunpack.c.l.b16 %v975_v10 }
 0x319   : > { %v6601_v22 = vpack.c.b16 %v1553_v26, %v1552_v44 }
 0x322   : > { %4990 = vmatmul.msk.bf16.vlgmr.msrb.gmra.mxu1 %vm1009_vm0, %v6438_v11 }
 0x323   : > { %2242 = vmatpush.bf16.msrb.mxu1 %v6411_v14  ;;  %v1422_v14 = vpack.c.bf16 %v1406_v41, %v1406_v41 }
 0x325   : > { %v1492_v34 = vunpack.c.l.b16 %v1422_v14 }
 0x328   : > { %v1351_v19 = vpop.xlane.xlu0 %1350 }
 0x329   : > { %5355 = vrcp.f32 %v1351_v19 }
 0x32e   : > { %2547 = vrot.lane.b32.xlu1 %v6281_v24, %s5912_s17 }
 0x32f   : > { %v5356_v11 = vpop.eup %5355 }
 0x330   : > { %v1405_v28 = vmul.f32 %v5356_v11, %v6521_v5  ;;  %v1931_v5 = vmul.f32 1.442695, %v1910_v47 }
 0x332   : > { %v1421_v40 = vpack.c.bf16 %v1405_v28, %v1405_v28 }
 0x334   : > { %v1491_v42 = vunpack.c.l.b16 %v1421_v40 }
 0x335   : > { %v1267_v30 = vpop.xlane.xlu1 %1266 }
 0x336   : > { %v1297_v32 = vsub.f32 %v6387_v39, %v1267_v30  ;;  %v1493_v58 = vpack.c.b16 %v1492_v34, %v1491_v42  ;;  %v6611_v39 = vpop.f32.mrf.mxu3 }
 0x338   : > { %v1321_v18 = vmul.f32 1.442695, %v1297_v32  ;;  %4977 = vmatmul.msk.bf16.vlgmr.msrb.gmra.mxu2 %vm1240_vm1, %v1493_v58 }
 0x339   : > { %1566 = vmatpush.bf16.msrb.mxu2 %v6601_v22 }
 0x33a   : > { %5357 = vpow2.f32 %v1321_v18 }
 0x33b   : > { %5359 = vpow2.f32 %v1931_v5  ;;  %v6636_v51 = vpop.permute.xlu0 %2571 }
 0x33c   : > { %5361 = vpow2.f32 %v1947_v45 }
 0x33d   : > { %5363 = vpow2.f32 %v1323_v16 }
 0x33e   : > { %v6620_v0 = vpop.f32.mrf.mxu3  ;;  %5365 = vrcp.f32 %v1360_v48 }
 0x340   : > { %v6607_v60 = vpop.eup %5357 }
 0x341   : > { %v1361_v63 = vsel %vm1240_vm1, %v6607_v60, 0.0  ;;  %v6615_v12 = vpop.eup %5359 }
 0x342   : > { %1362 = vadd.xlane.f32.xlu0 %v1361_v63  ;;  %v1968_v31 = vsel %vm1240_vm1, %v6615_v12, 0.0  ;;  %v6624_v25 = vpop.eup %5361 }
 0x343   : > { %v1992_v56 = vsel %vm1240_vm1, %v6624_v25, 0.0  ;;  %v6630_v6 = vpop.eup %5363 }
 0x344   : > { %v1364_v19 = vsel %vm1240_vm1, %v6630_v6, 0.0  ;;  %v5366_v10 = vpop.eup %5365 }
 0x345   : > { %v1408_v9 = vmul.f32 %v5366_v10, %v6497_v1 }
 0x347   : > { %v1424_v40 = vpack.c.bf16 %v1408_v9, %v1408_v9 }
 0x349   : > { %v1520_v42 = vunpack.c.l.b16 %v1424_v40 }
 0x34a   : > { %1969 = vadd.xlane.f32.xlu0 %v1968_v31 }
 0x34b   : > { %v6628_v54 = vpop.f32.mrf.mxu3 }
 0x34d   : > { %v6658_v5 = vpop.permute.xlu1 %2523 }
 0x352   : > { %1993 = vadd.xlane.f32.xlu0 %v1992_v56 }
 0x353   : > { %v6634_v15 = vpop.f32.mrf.mxu3 }
 0x355   : > { %v6664_v45 = vpop.permute.xlu1 %2573 }
 0x358   : > { %1365 = vadd.xlane.f32.xlu1 %v1364_v19  ;;  %v1301_v19 = vsub.f32 %v6399_v49, %v1279_v43 }
 0x35a   : > { %v1329_v9 = vmul.f32 1.442695, %v1301_v19 }
 0x35d   : > { %v6670_v16 = vpop.permute.xlu1 %2549 }
 0x365   : > { %v6638_v41 = vpop.f32.mrf.mxu3 }
 0x366   : > { %v1357_v11 = vpop.xlane.xlu0 %1356 }
 0x367   : > { %5367 = vrcp.f32 %v1357_v11 }
 0x368   : > { %5369 = vpow2.f32 %v1329_v9 }
 0x36d   : > { %v5368_v14 = vpop.eup %5367  ;;  %v6641_v28 = vpop.f32.mrf.mxu3 }
 0x36e   : > { %v1407_v44 = vmul.f32 %v5368_v14, %v6561_v13 }
 0x370   : > { %v1423_v26 = vpack.c.bf16 %v1407_v44, %v1407_v44 }
 0x372   : > { %v1519_v34 = vunpack.c.l.b16 %v1423_v26  ;;  %v6686_v26 = vpop.eup %5369 }
 0x374   : > { %v1521_v30 = vpack.c.b16 %v1520_v42, %v1519_v34  ;;  %v6688_v42 = vpop.permute.xlu2 %2597  ;;  %v1373_v34 = vsel %vm1240_vm1, %v6686_v26, 0.0 }
 0x375   : > { %v6644_v32 = vpop.f32.mrf.mxu3 }
 0x376   : > { %4978 = vmatmul.msk.bf16.vlgmr.msra.gmra.mxu2 %vm1240_vm1, %v1521_v30  ;;  %v1863_v58 = vsel %vm1240_vm1, %v6644_v32, -inf }
 0x377   : > { %1622 = vmatpush.bf16.msra.mxu2 %v6312_v8  ;;  %1864 = vmax.xlane.f32.xlu2 %v1863_v58 }
 0x37c   : > { %v1967_v58 = vpop.xlane.xlu2 %1966 }
 0x37d   : > { %v6650_v1 = vpop.f32.mrf.mxu3 }
 0x37e   : > { %v1866_v47 = vsel %vm1240_vm1, %v6650_v1, -inf }
 0x37f   : > { %v6654_v13 = vpop.f32.mrf.mxu1  ;;  %1867 = vmax.xlane.f32.xlu2 %v1866_v47 }
 0x385   : > { %v6672_v56 = vpop.f32.mrf.mxu3 }
 0x386   : > { %v1887_v10 = vsel %vm1240_vm1, %v6672_v56, -inf }
 0x387   : > { %v6656_v18 = vpop.f32.mrf.mxu1 }
 0x388   : > { %v1282_v14 = vpop.xlane.xlu1 %1281 }
 0x389   : > { %v1302_v40 = vsub.f32 %v6401_v50, %v1282_v14  ;;  %v1991_v14 = vpop.xlane.xlu2 %1990 }
 0x38b   : > { %v1331_v43 = vmul.f32 1.442695, %v1302_v40 }
 0x38d   : > { %5371 = vpow2.f32 %v1331_v43 }
 0x38e   : > { %5373 = vrcp.f32 %v1967_v58 }
 0x38f   : > { %v6660_v20 = vpop.f32.mrf.mxu1 }
 0x390   : > { %v1875_v63 = vsel %vm1240_vm1, %v6660_v20, -inf }
 0x391   : > { %1876 = vmax.xlane.f32.xlu1 %v1875_v63 }
 0x393   : > { %v6692_v30 = vpop.eup %5371 }
 0x394   : > { %v1376_v47 = vsel %vm1240_vm1, %v6692_v30, 0.0 }
 0x397   : > { %v6666_v17 = vpop.f32.mrf.mxu1 }
 0x398   : > { %v1878_v31 = vsel %vm1240_vm1, %v6666_v17, -inf }
 0x399   : > { %1879 = vmax.xlane.f32.xlu2 %v1878_v31  ;;  %v5374_v31 = vpop.eup %5373 }
 0x39a   : > { %v2021_v19 = vmul.f32 %v5374_v31, %v6538_v37  ;;  %v2435_v37 = vsel %vm1009_vm0, %v6348_v55, 0 }
 0x39c   : > { %v2037_v9 = vpack.c.bf16 %v2021_v19, %v2021_v19 }
 0x39f   : > { %v6675_v48 = vpop.f32.mrf.mxu1 }
 0x3a0   : > { %v1899_v11 = vsel %vm1240_vm1, %v6675_v48, -inf }
 0x3a1   : > { %1900 = vmax.xlane.f32.xlu0 %v1899_v11  ;;  %1888 = vmax.xlane.f32.xlu2 %v1887_v10  ;;  %v6699_v11 = vpop.permute.xlu1 %2547 }
 0x3a7   : > { %v6682_v44 = vpop.f32.mrf.mxu1 }
 0x3a8   : > { %v1902_v49 = vsel %vm1240_vm1, %v6682_v44, -inf }
 0x3a9   : > { %1903 = vmax.xlane.f32.xlu1 %v1902_v49 }
 0x3b1   : > { %1374 = vadd.xlane.f32.xlu1 %v1373_v34  ;;  %v2101_v34 = vunpack.c.l.b16 %v2037_v9 }
 0x3b5   : > { %2595 = vrot.lane.b32.xlu0 %v6329_v36, %s5912_s17  ;;  %v1363_v50 = vpop.xlane.xlu0 %1362 }
 0x3b9   : > { %1377 = vadd.xlane.f32.xlu1 %v1376_v47 }
 0x3bd   : > { %v1970_v63 = vpop.xlane.xlu0 %1969 }
 0x3be   : > { %5375 = vrcp.f32 %v1970_v63 }
 0x3bf   : > { %5377 = vrcp.f32 %v1363_v50 }
 0x3c4   : > { %v5376_v10 = vpop.eup %5375 }
 0x3c5   : > { %v2022_v40 = vmul.f32 %v5376_v10, %v6615_v12  ;;  %v1994_v49 = vpop.xlane.xlu0 %1993  ;;  %v5378_v47 = vpop.eup %5377 }
 0x3c6   : > { %5379 = vrcp.f32 %v1994_v49  ;;  %v1409_v12 = vmul.f32 %v5378_v47, %v6607_v60  ;;  %v2483_v60 = vsel %vm1009_vm0, %v6519_v29, 0 }
 0x3c7   : > { %v2038_v43 = vpack.c.bf16 %v2022_v40, %v2022_v40  ;;  %5381 = vrcp.f32 %v1991_v14 }
 0x3c8   : > { %v1425_v9 = vpack.c.bf16 %v1409_v12, %v1409_v12 }
 0x3c9   : > { %v2102_v58 = vunpack.c.l.b16 %v2038_v43 }
 0x3ca   : > { %v1547_v43 = vunpack.c.l.b16 %v1425_v9 }
 0x3cb   : > { %v2103_v33 = vpack.c.b16 %v2102_v58, %v2101_v34  ;;  %v1366_v36 = vpop.xlane.xlu1 %1365 }
 0x3cc   : > { %v5380_v63 = vpop.eup %5379  ;;  %5383 = vrcp.f32 %v1366_v36 }
 0x3cd   : > { %4993 = vmatmul.msk.bf16.vlgmr.msrb.gmra.mxu0 %vm1240_vm1, %v2103_v33  ;;  %v5382_v31 = vpop.eup %5381  ;;  %v2030_v50 = vmul.f32 %v5380_v63, %v6624_v25 }
 0x3ce   : > { %2444 = vmatpush.bf16.xpose.msrb.mxu0 %v2435_v37  ;;  %v2029_v19 = vmul.f32 %v5382_v31, %v6544_v57 }
 0x3cf   : > { %v2046_v14 = vpack.c.bf16 %v2030_v50, %v2030_v50 }
 0x3d0   : > { %v2045_v49 = vpack.c.bf16 %v2029_v19, %v2029_v19 }
 0x3d1   : > { %v2202_v34 = vunpack.c.l.b16 %v2046_v14 }
 0x3d2   : > { %v5384_v10 = vpop.eup %5383  ;;  %v2201_v58 = vunpack.c.l.b16 %v2045_v49 }
 0x3d3   : > { %v1410_v40 = vmul.f32 %v5384_v10, %v6630_v6  ;;  %v2531_v6 = vsel %vm1009_vm0, %v6583_v23, 0 }
 0x3d4   : > { %v2203_v2 = vpack.c.b16 %v2202_v34, %v2201_v58 }
 0x3d5   : > { %v1426_v36 = vpack.c.bf16 %v1410_v40, %v1410_v40 }
 0x3d7   : > { %v1548_v55 = vunpack.c.l.b16 %v1426_v36 }
 0x3d9   : > { %v1549_v33 = vpack.c.b16 %v1548_v55, %v1547_v43  ;;  %v6748_v43 = vpop.f32.mrf.mxu3 }
 0x3db   : > { %4979 = vmatmul.msk.bf16.vlgmr.msrb.gmra.mxu2 %vm1240_vm1, %v1549_v33  ;;  %v1890_v33 = vsel %vm1240_vm1, %v6748_v43, -inf }
 0x3dd   : > { %4997 = vmatmul.msk.bf16.vlgmr.msra.gmra.mxu0 %vm1240_vm1, %v2203_v2  ;;  %v2579_v2 = vsel %vm1009_vm0, %v6664_v45, 0 }
 0x3de   : > { %2492 = vmatpush.bf16.xpose.msra.mxu0 %v2483_v60 }
 0x3ea   : > { %v1865_v57 = vpop.xlane.xlu2 %1864 }
 0x3eb   : > { %v1907_v25 = vsub.f32 %v6644_v32, %v1865_v57 }
 0x3ed   : > { %v1925_v47 = vmul.f32 1.442695, %v1907_v25  ;;  %5031 = vmatmul.msk.bf16.vlgmr.msrb.gmra.mxu0 %vm1009_vm0, %v6351_v59 }
 0x3ee   : > { %2540 = vmatpush.bf16.xpose.msrb.mxu0 %v2531_v6 }
 0x3ef   : > { %5385 = vpow2.f32 %v1925_v47 }
 0x3f2   : > { %v1868_v23 = vpop.xlane.xlu2 %1867 }
 0x3f3   : > { %v1908_v59 = vsub.f32 %v6650_v1, %v1868_v23 }
 0x3f5   : > { %v6718_v63 = vpop.eup %5385  ;;  %v1927_v12 = vmul.f32 1.442695, %v1908_v59 }
 0x3f6   : > { %v1959_v29 = vsel %vm1240_vm1, %v6718_v63, 0.0 }
 0x3f7   : > { %1960 = vadd.xlane.f32.xlu1 %v1959_v29 }
 0x3fd   : > { %5033 = vmatmul.msk.bf16.vlgmr.msra.gmra.mxu0 %vm1009_vm0, %v6571_v61 }
 0x3fe   : > { %2588 = vmatpush.bf16.xpose.msra.mxu0 %v2579_v2 }
 0x404   : > { %v1877_v32 = vpop.xlane.xlu1 %1876 }
 0x405   : > { %v1911_v37 = vsub.f32 %v6660_v20, %v1877_v32 }
 0x407   : > { %v1933_v31 = vmul.f32 1.442695, %v1911_v37 }
 0x409   : > { %5387 = vpow2.f32 %v1933_v31 }
 0x40a   : > { %5389 = vpow2.f32 %v1927_v12 }
 0x40c   : > { %v1880_v50 = vpop.xlane.xlu2 %1879 }
 0x40d   : > { %v1912_v19 = vsub.f32 %v6666_v17, %v1880_v50  ;;  %5035 = vmatmul.msk.bf16.vlgmr.msrb.gmra.mxu0 %vm1009_vm0, %v6658_v5 }
 0x40f   : > { %v6731_v45 = vpop.eup %5387  ;;  %v1935_v61 = vmul.f32 1.442695, %v1912_v19  ;;  %v8033_v19 = vld [vmem:[#allocation20_spill] sm:$0xff] }
 0x410   : > { %2079 = vrot.lane.b32.xlu1 %v6338_v46, %s5913_s19  ;;  %v1971_v20 = vsel %vm1240_vm1, %v6731_v45, 0.0  ;;  %v6737_v10 = vpop.eup %5389 }
 0x411   : > { %5391 = vpow2.f32 %v1935_v61  ;;  %1972 = vadd.xlane.f32.xlu2 %v1971_v20  ;;  %v1962_v40 = vsel %vm1240_vm1, %v6737_v10, 0.0 }
 0x414   : > { %v1901_v1 = vpop.xlane.xlu0 %1900  ;;  %v1889_v49 = vpop.xlane.xlu2 %1888 }
 0x415   : > { %v1919_v17 = vsub.f32 %v6675_v48, %v1901_v1  ;;  %v1915_v34 = vsub.f32 %v6672_v56, %v1889_v49 }
 0x417   : > { %v6740_v9 = vpop.eup %5391  ;;  %v1949_v5 = vmul.f32 1.442695, %v1919_v17  ;;  %v1941_v57 = vmul.f32 1.442695, %v1915_v34 }
 0x418   : > { %1665 = vrot.lane.b32.xlu1 %v6176_v3, %s5913_s19  ;;  %v1974_v14 = vsel %vm1240_vm1, %v6740_v9, 0.0 }
 0x419   : > { %1975 = vadd.xlane.f32.xlu0 %v1974_v14  ;;  %1963 = vadd.xlane.f32.xlu2 %v1962_v40  ;;  %5393 = vpow2.f32 %v1949_v5 }
 0x41c   : > { %v1904_v36 = vpop.xlane.xlu1 %1903 }
 0x41d   : > { %v1920_v48 = vsub.f32 %v6682_v44, %v1904_v36  ;;  %5037 = vmatmul.msk.bf16.vlgmr.msra.gmra.mxu0 %vm1009_vm0, %v6636_v51 }
 0x41f   : > { %v1951_v55 = vmul.f32 1.442695, %v1920_v48  ;;  %v6754_v58 = vpop.eup %5393 }
 0x420   : > { %v1995_v60 = vsel %vm1240_vm1, %v6754_v58, 0.0 }
 0x421   : > { %5395 = vpow2.f32 %v1951_v55  ;;  %1891 = vmax.xlane.f32.xlu0 %v1890_v33  ;;  %1996 = vadd.xlane.f32.xlu2 %v1995_v60 }
 0x422   : > { %5397 = vpow2.f32 %v1941_v57 }
 0x424   : > { %v1375_v25 = vpop.xlane.xlu1 %1374 }
 0x425   : > { %5399 = vrcp.f32 %v1375_v25 }
 0x427   : > { %v6760_v44 = vpop.eup %5395  ;;  %v6795_v55 = vpop.permute.xlu0 %2595 }
 0x428   : > { %v1998_v51 = vsel %vm1240_vm1, %v6760_v44, 0.0  ;;  %v6764_v56 = vpop.eup %5397 }
 0x429   : > { %1999 = vadd.xlane.f32.xlu0 %v1998_v51  ;;  %v1983_v2 = vsel %vm1240_vm1, %v6764_v56, 0.0 }
 0x42b   : > { %v5400_v47 = vpop.eup %5399 }
 0x42c   : > { %v1378_v6 = vpop.xlane.xlu1 %1377  ;;  %v1413_v29 = vmul.f32 %v5400_v47, %v6686_v26 }
 0x42d   : > { %5401 = vrcp.f32 %v1378_v6 }
 0x42e   : > { %v1429_v32 = vpack.c.bf16 %v1413_v29, %v1413_v29 }
 0x430   : > { %v1603_v31 = vunpack.c.l.b16 %v1429_v32 }
 0x431   : > { %1984 = vadd.xlane.f32.xlu0 %v1983_v2 }
 0x433   : > { %v5402_v23 = vpop.eup %5401 }
 0x434   : > { %v1414_v37 = vmul.f32 %v5402_v23, %v6692_v30 }
 0x436   : > { %v1430_v59 = vpack.c.bf16 %v1414_v37, %v1414_v37 }
 0x438   : > { %v1604_v12 = vunpack.c.l.b16 %v1430_v59 }
 0x43a   : > { %v1605_v50 = vpack.c.b16 %v1604_v12, %v1603_v31 }
 0x43c   : > { %4981 = vmatmul.msk.bf16.vlgmr.msra.gmra.mxu2 %vm1240_vm1, %v1605_v50 }
 0x445   : > { %1667 = vrot.lane.b32.xlu0 %v8033_v19, %s5913_s19 }
 0x44a   : > { %v6773_v61 = vpop.f32.mrf.mxu0 }
 0x452   : > { %v6775_v26 = vpop.f32.mrf.mxu0 }
 0x45a   : > { %v6777_v20 = vpop.f32.mrf.mxu0 }
 0x462   : > { %v6779_v1 = vpop.f32.mrf.mxu0 }
 0x46a   : > { %v6781_v17 = vpop.f32.mrf.mxu0  ;;  %v1961_v40 = vpop.xlane.xlu1 %1960 }
 0x46b   : > { %v2619_v30 = vsel %vm1240_vm1, %v6781_v17, -inf  ;;  %5403 = vrcp.f32 %v1961_v40 }
 0x46f   : > { %2620 = vmax.xlane.f32.xlu0 %v2619_v30 }
 0x471   : > { %v5404_v6 = vpop.eup %5403 }
 0x472   : > { %v6785_v5 = vpop.f32.mrf.mxu0  ;;  %v2019_v29 = vmul.f32 %v5404_v6, %v6718_v63 }
 0x473   : > { %v2622_v14 = vsel %vm1240_vm1, %v6785_v5, -inf }
 0x474   : > { %2623 = vmax.xlane.f32.xlu1 %v2622_v14  ;;  %v2035_v37 = vpack.c.bf16 %v2019_v29, %v2019_v29 }
 0x47a   : > { %v6789_v49 = vpop.f32.mrf.mxu0 }
 0x482   : > { %v2080_v36 = vpop.permute.xlu1 %2079  ;;  %v6791_v48 = vpop.f32.mrf.mxu0 }
 0x483   : > { %2092 = vmatpush.bf16.msra.mxu3 %v2080_v36  ;;  %v2634_v34 = vsel %vm1240_vm1, %v6791_v48, -inf }
 0x484   : > { %v1973_v33 = vpop.xlane.xlu2 %1972  ;;  %2635 = vmax.xlane.f32.xlu0 %v2634_v34 }
 0x485   : > { %5405 = vrcp.f32 %v1973_v33  ;;  %v2076_v33 = vunpack.c.l.b16 %v2035_v37 }
 0x48a   : > { %v6797_v60 = vpop.f32.mrf.mxu0 }
 0x48b   : > { %v2643_v57 = vsel %vm1240_vm1, %v6797_v60, -inf  ;;  %v5406_v47 = vpop.eup %5405 }
 0x48c   : > { %v1964_v25 = vpop.xlane.xlu2 %1963  ;;  %2644 = vmax.xlane.f32.xlu1 %v2643_v57  ;;  %v1976_v51 = vpop.xlane.xlu0 %1975  ;;  %v2023_v2 = vmul.f32 %v5406_v47, %v6731_v45  ;;  %v8034_v45 = vld [vmem:[#allocation30_spill] sm:$0xff] }
 0x48d   : > { %5407 = vrcp.f32 %v1964_v25 }
 0x48e   : > { %5409 = vrcp.f32 %v1976_v51  ;;  %v2039_v12 = vpack.c.bf16 %v2023_v2, %v2023_v2 }
 0x490   : > { %v2126_v57 = vunpack.c.l.b16 %v2039_v12  ;;  %v2507_v12 = vsel %vm1009_vm0, %v6585_v38, 0  ;;  %v2555_v38 = vsel %vm1009_vm0, %v6670_v16, 0 }
 0x492   : > { %v6853_v16 = vpop.f32.mrf.mxu0 }
 0x493   : > { %v5408_v23 = vpop.eup %5407 }
 0x494   : > { %v5410_v32 = vpop.eup %5409  ;;  %v2020_v59 = vmul.f32 %v5408_v23, %v6737_v10  ;;  %v1892_v31 = vpop.xlane.xlu0 %1891 }
 0x495   : > { %v2024_v50 = vmul.f32 %v5410_v32, %v6740_v9  ;;  %v1997_v30 = vpop.xlane.xlu2 %1996  ;;  %v1916_v14 = vsub.f32 %v6748_v43, %v1892_v31  ;;  %v2459_v43 = vsel %vm1009_vm0, %v6595_v35, 0 }
 0x496   : > { %v2036_v40 = vpack.c.bf16 %v2020_v59, %v2020_v59  ;;  %5411 = vrcp.f32 %v1997_v30 }
 0x497   : > { %v2040_v36 = vpack.c.bf16 %v2024_v50, %v2024_v50  ;;  %v1943_v34 = vmul.f32 1.442695, %v1916_v14  ;;  %v8035_v50 = vld [vmem:[#allocation25_spill] sm:$0xff] }
 0x498   : > { %v2077_v63 = vunpack.c.l.b16 %v2036_v40  ;;  %1763 = vrot.lane.b32.xlu0 %v8034_v45, %s5913_s19  ;;  %v1666_v40 = vpop.permute.xlu1 %1665 }
 0x499   : > { %v2127_v25 = vunpack.c.l.b16 %v2040_v36  ;;  %5413 = vpow2.f32 %v1943_v34  ;;  %v8036_v36 = vld [vmem:[#allocation22_spill] sm:$0xff] }
 0x49a   : > { %v2078_v10 = vpack.c.b16 %v2077_v63, %v2076_v33 }
 0x49b   : > { %v2128_v51 = vpack.c.b16 %v2127_v25, %v2126_v57 }
 0x49c   : > { %4992 = vmatmul.msk.bf16.vlgmr.msra.gmra.mxu3 %vm1240_vm1, %v2078_v10  ;;  %v2000_v9 = vpop.xlane.xlu0 %1999  ;;  %v5412_v6 = vpop.eup %5411 }
 0x49d   : > { %4994 = vmatmul.msk.bf16.vlgmr.msra.gmra.mxu1 %vm1240_vm1, %v2128_v51  ;;  %5415 = vrcp.f32 %v2000_v9  ;;  %v2031_v29 = vmul.f32 %v5412_v6, %v6754_v58 }
 0x49e   : > { %2468 = vmatpush.bf16.xpose.msra.mxu1 %v2459_v43 }
 0x49f   : > { %v6812_v47 = vpop.eup %5413  ;;  %v2047_v32 = vpack.c.bf16 %v2031_v29, %v2031_v29  ;;  %v8037_v29 = vld [vmem:[#allocation31_spill] sm:$0xff] }
 0x4a0   : > { %2841 = vrot.lane.b32.xlu0 %v6338_v46, %s5912_s17  ;;  %v1986_v2 = vsel %vm1240_vm1, %v6812_v47, 0.0 }
 0x4a1   : > { %1987 = vadd.xlane.f32.xlu2 %v1986_v2  ;;  %v2226_v59 = vunpack.c.l.b16 %v2047_v32 }
 0x4a3   : > { %v5416_v23 = vpop.eup %5415 }
 0x4a4   : > { %v2032_v37 = vmul.f32 %v5416_v23, %v6760_v44  ;;  %v1985_v44 = vpop.xlane.xlu0 %1984 }
 0x4a5   : > { %1761 = vrot.lane.b32.xlu1 %v6273_v7, %s5913_s19 }
 0x4a6   : > { %v2048_v35 = vpack.c.bf16 %v2032_v37, %v2032_v37 }
 0x4a8   : > { %v2227_v31 = vunpack.c.l.b16 %v2048_v35  ;;  %2916 = vrot.lane.b32.xlu0 %v6601_v22, %s5912_s17 }
 0x4aa   : > { %v2228_v58 = vpack.c.b16 %v2227_v31, %v2226_v59  ;;  %v8038_v31 = vld [vmem:[#allocation29_spill] sm:$0xff] }
 0x4ad   : > { %4998 = vmatmul.msk.bf16.vlgmr.msrb.gmra.mxu1 %vm1240_vm1, %v2228_v58  ;;  %2866 = vrot.lane.b32.xlu1 %v8035_v50, %s5912_s17  ;;  %v5174_v58 = vld [vmem:[#allocation10 + $0x8] sm:$0xff] }
 0x4ae   : > { %2516 = vmatpush.bf16.xpose.msrb.mxu1 %v2507_v12 }
 0x4b0   : > { %2941 = vrot.lane.b32.xlu0 %v6511_v52, %s5912_s17 }
 0x4b5   : > { %2966 = vrot.lane.b32.xlu1 %v6312_v8, %s5912_s17 }
 0x4b7   : > { %v1668_v30 = vpop.permute.xlu0 %1667 }
 0x4b8   : > { %v1673_v14 = vsel %vm1009_vm0, %v1668_v30, 0  ;;  %3146 = vrot.lane.b32.xlu0 %v6191_v21, %s5914_s27  ;;  %v2603_v21 = vsel %vm1009_vm0, %v6688_v42, 0  ;;  %v2646_v42 = vsel %vm1240_vm1, %v6853_v16, -inf }
 0x4b9   : > { %2179 = vrot.lane.b32.xlu2 %v6511_v52, %s5913_s19  ;;  %1682 = vmatpush.bf16.xpose.msrb.mxu2 %v1673_v14 }
 0x4bd   : > { %5032 = vmatmul.msk.bf16.vlgmr.msra.gmra.mxu1 %vm1009_vm0, %v6576_v4  ;;  %v2631_v4 = vsel %vm1240_vm1, %v6789_v49, -inf }
 0x4be   : > { %2564 = vmatpush.bf16.xpose.msra.mxu1 %v2555_v38 }
 0x4c0   : > { %3144 = vrot.lane.b32.xlu0 %v8036_v36, %s5914_s27  ;;  %4983 = vmatmul.msk.bf16.vlgmr.msrb.gmra.mxu2 %vm1009_vm0, %v1666_v40  ;;  %v5173_v40 = vld [vmem:[#allocation10] sm:$0xff] }
 0x4cd   : > { %5034 = vmatmul.msk.bf16.vlgmr.msrb.gmra.mxu1 %vm1009_vm0, %v6622_v62  ;;  %v6858_v62 = vpop.f32.mrf.mxu0 }
 0x4ce   : > { %2612 = vmatpush.bf16.xpose.msrb.mxu1 %v2603_v21 }
 0x4d5   : > { %v6868_v25 = vpop.f32.mrf.mxu0 }
 0x4d6   : > { %v2658_v10 = vsel %vm1240_vm1, %v6868_v25, -inf }
 0x4dd   : > { %5036 = vmatmul.msk.bf16.vlgmr.msra.gmra.mxu1 %vm1009_vm0, %v6699_v11 }
 0x4e2   : > { %2632 = vmax.xlane.f32.xlu2 %v2631_v4  ;;  %v2621_v34 = vpop.xlane.xlu0 %2620 }
 0x4e3   : > { %v2667_v33 = vsub.f32 %v6781_v17, %v2621_v34  ;;  %v2655_v17 = vsel %vm1240_vm1, %v6858_v62, -inf  ;;  %v1512_v34 = vpop.f32.mrf.mxu2 }
 0x4e5   : > { %v2683_v63 = vmul.f32 1.442695, %v2667_v33 }
 0x4e7   : > { %5417 = vpow2.f32 %v2683_v63  ;;  %v2624_v9 = vpop.xlane.xlu1 %2623  ;;  %v1657_v63 = vpack.c.bf16 %v6620_v0, %v6611_v39 }
 0x4e8   : > { %5419 = vrcp.f32 %v1985_v44 }
 0x4ea   : > { %2647 = vmax.xlane.f32.xlu2 %v2646_v42 }
 0x4ed   : > { %v6860_v57 = vpop.eup %5417  ;;  %5038 = vmatmul.msk.bf16.vlgmr.msrb.gmra.mxu1 %vm1009_vm0, %v6795_v55 }
 0x4ee   : > { %v2715_v11 = vsel %vm1240_vm1, %v6860_v57, 0.0  ;;  %v5420_v32 = vpop.eup %5419 }
 0x4ef   : > { %2716 = vadd.xlane.f32.xlu1 %v2715_v11  ;;  %v2027_v35 = vmul.f32 %v5420_v32, %v6764_v56 }
 0x4f1   : > { %v2043_v44 = vpack.c.bf16 %v2027_v35, %v2027_v35 }
 0x4f2   : > { %2656 = vmax.xlane.f32.xlu2 %v2655_v17 }
 0x4f3   : > { %v2176_v36 = vunpack.c.l.b16 %v2043_v44 }
 0x4f7   : > { %v6872_v51 = vpop.xlane.xlu0 %2635 }
 0x4f8   : > { %v2672_v35 = vsub.f32 %v6791_v48, %v6872_v51 }
 0x4fa   : > { %2659 = vmax.xlane.f32.xlu2 %v2658_v10  ;;  %v2668_v10 = vsub.f32 %v6785_v5, %v2624_v9 }
 0x4fc   : > { %v2685_v39 = vmul.f32 1.442695, %v2668_v10 }
 0x4ff   : > { %v6875_v43 = vpop.xlane.xlu1 %2644 }
 0x50a   : > { %v1764_v6 = vpop.permute.xlu0 %1763 }
 0x50b   : > { %v1769_v55 = vsel %vm1009_vm0, %v1764_v6, 0 }
 0x50c   : > { %1778 = vmatpush.bf16.xpose.msra.mxu2 %v1769_v55 }
 0x512   : > { %2816 = vrot.lane.b32.xlu2 %v8037_v29, %s5912_s17  ;;  %v2842_v2 = vpop.permute.xlu0 %2841 }
 0x513   : > { %2854 = vmatpush.bf16.msra.mxu1 %v2842_v2 }
 0x514   : > { %v1988_v23 = vpop.xlane.xlu2 %1987 }
 0x515   : > { %5421 = vrcp.f32 %v1988_v23 }
 0x516   : > { %5423 = vpow2.f32 %v2685_v39 }
 0x517   : > { %v1762_v37 = vpop.permute.xlu1 %1761 }
 0x518   : > { %4987 = vmatmul.msk.bf16.vlgmr.msra.gmra.mxu2 %vm1009_vm0, %v1762_v37 }
 0x51a   : > { %v6881_v59 = vpop.f32.mrf.mxu1  ;;  %2891 = vrot.lane.b32.xlu2 %v8038_v31, %s5912_s17 }
 0x51b   : > { %v5422_v12 = vpop.eup %5421 }
 0x51c   : > { %v2028_v30 = vmul.f32 %v5422_v12, %v6812_v47  ;;  %v2180_v14 = vpop.permute.xlu2 %2179  ;;  %v1514_v47 = vpop.f32.mrf.mxu2 }
 0x51d   : > { %2192 = vmatpush.bf16.msrb.mxu3 %v2180_v14  ;;  %v6912_v23 = vpop.eup %5423  ;;  %v1659_v32 = vpack.c.bf16 %v1514_v47, %v1512_v34 }
 0x51e   : > { %v2044_v38 = vpack.c.bf16 %v2028_v30, %v2028_v30  ;;  %v2718_v5 = vsel %vm1240_vm1, %v6912_v23, 0.0  ;;  %v2693_v30 = vmul.f32 1.442695, %v2672_v35 }
 0x520   : > { %v2177_v21 = vunpack.c.l.b16 %v2044_v38 }
 0x521   : > { %2384 = vmatpush.bf16.msra.mxu3 %v5174_v58 }
 0x522   : > { %v2178_v56 = vpack.c.b16 %v2177_v21, %v2176_v36  ;;  %v6886_v4 = vpop.f32.mrf.mxu1  ;;  %3122 = vrot.lane.b32.xlu2 %v8033_v19, %s5914_s27 }
 0x524   : > { %4996 = vmatmul.msk.bf16.vlgmr.msrb.gmra.mxu3 %vm1240_vm1, %v2178_v56  ;;  %v1540_v11 = vpop.f32.mrf.mxu2 }
 0x525   : > { %2385 = vmatpush.bf16.msra.mxu3 %v5173_v40  ;;  %v2675_v40 = vsub.f32 %v6797_v60, %v6875_v43 }
 0x527   : > { %v2699_v48 = vmul.f32 1.442695, %v2675_v40 }
 0x52a   : > { %v6891_v33 = vpop.f32.mrf.mxu1  ;;  %3120 = vrot.lane.b32.xlu2 %v6176_v3, %s5914_s27  ;;  %v1658_v3 = vpack.c.bf16 %v6634_v15, %v6628_v54 }
 0x52c   : > { %v1542_v6 = vpop.f32.mrf.mxu2 }
 0x52d   : > { %v1660_v36 = vpack.c.bf16 %v1542_v6, %v1540_v11 }
 0x532   : > { %v6897_v42 = vpop.f32.mrf.mxu1 }
 0x534   : > { %5023 = vmatmul.msk.bf16.vlgmr.msra.gmra.mxu3 %vm1009_vm0, %v1657_v63  ;;  %v1568_v0 = vpop.f32.mrf.mxu2 }
 0x53a   : > { %v6900_v17 = vpop.f32.mrf.mxu1 }
 0x53b   : > { %v2625_v19 = vsel %vm1240_vm1, %v6900_v17, -inf }
 0x53c   : > { %2626 = vmax.xlane.f32.xlu1 %v2625_v19  ;;  %v1570_v54 = vpop.f32.mrf.mxu2 }
 0x542   : > { %v6907_v55 = vpop.f32.mrf.mxu1 }
 0x544   : > { %5024 = vmatmul.msk.bf16.gmra.mxu3 %vm1009_vm0, %v1658_v3  ;;  %v6924_v44 = vpop.f32.mrf.mxu2 }
 0x54a   : > { %v6910_v2 = vpop.f32.mrf.mxu1 }
 0x54c   : > { %v1626_v34 = vpop.f32.mrf.mxu2 }
 0x552   : > { %v6914_v37 = vpop.f32.mrf.mxu1 }
 0x553   : > { %2719 = vadd.xlane.f32.xlu2 %v2718_v5  ;;  %v1661_v5 = vpack.c.bf16 %v1570_v54, %v1568_v0  ;;  %v2628_v0 = vsel %vm1240_vm1, %v6907_v55, -inf }
 0x554   : > { %5025 = vmatmul.msk.bf16.gmra.mxu3 %vm1009_vm0, %v1659_v32  ;;  %v6945_v6 = vpop.f32.mrf.mxu2 }
 0x555   : > { %v2633_v15 = vpop.xlane.xlu2 %2632 }
 0x556   : > { %v2671_v9 = vsub.f32 %v6789_v49, %v2633_v15 }
 0x558   : > { %v2691_v58 = vmul.f32 1.442695, %v2671_v9 }
 0x55a   : > { %5425 = vpow2.f32 %v2691_v58  ;;  %v6922_v12 = vpop.f32.mrf.mxu1 }
 0x55b   : > { %5427 = vpow2.f32 %v2693_v30  ;;  %v2867_v30 = vpop.permute.xlu1 %2866 }
 0x55c   : > { %5429 = vpow2.f32 %v2699_v48  ;;  %v2637_v48 = vsel %vm1240_vm1, %v6910_v2, -inf }
 0x55d   : > { %v2648_v14 = vpop.xlane.xlu2 %2647 }
 0x55e   : > { %v2676_v63 = vsub.f32 %v6853_v16, %v2648_v14  ;;  %v6961_v14 = vpop.f32.mrf.mxu2 }
 0x55f   : > { %v1860_v40 = vsel %vm1240_vm1, %v6961_v14, -inf }
 0x560   : > { %v6926_v38 = vpop.eup %5425  ;;  %v2701_v19 = vmul.f32 1.442695, %v2676_v63 }
 0x561   : > { %v2727_v49 = vsel %vm1240_vm1, %v6926_v38, 0.0  ;;  %v6935_v56 = vpop.eup %5427 }
 0x562   : > { %v6932_v21 = vpop.f32.mrf.mxu1  ;;  %2728 = vadd.xlane.f32.xlu0 %v2727_v49  ;;  %v2730_v43 = vsel %vm1240_vm1, %v6935_v56, 0.0  ;;  %v6943_v3 = vpop.eup %5429 }
 0x563   : > { %v2739_v32 = vsel %vm1240_vm1, %v6943_v3, 0.0 }
 0x564   : > { %5026 = vmatmul.msk.bf16.gmra.mxu3 %vm1009_vm0, %v1660_v36 }
 0x565   : > { %v2657_v51 = vpop.xlane.xlu2 %2656 }
 0x566   : > { %v2679_v47 = vsub.f32 %v6858_v62, %v2657_v51 }
 0x568   : > { %v2707_v60 = vmul.f32 1.442695, %v2679_v47  ;;  %v1662_v47 = vpack.c.bf16 %v6641_v28, %v6638_v41  ;;  %v1663_v28 = vpack.c.bf16 %v1626_v34, %v6924_v44 }
 0x56a   : > { %5431 = vpow2.f32 %v2707_v60  ;;  %v6941_v11 = vpop.f32.mrf.mxu1  ;;  %2731 = vadd.xlane.f32.xlu0 %v2730_v43  ;;  %v2649_v43 = vsel %vm1240_vm1, %v6922_v12, -inf }
 0x56b   : > { %5433 = vpow2.f32 %v2701_v19  ;;  %v2640_v19 = vsel %vm1240_vm1, %v6914_v37, -inf  ;;  %v2661_v41 = vsel %vm1240_vm1, %v6941_v11, -inf }
 0x56d   : > { %v2660_v10 = vpop.xlane.xlu2 %2659 }
 0x56e   : > { %v2680_v62 = vsub.f32 %v6868_v25, %v2660_v10  ;;  %v2652_v10 = vsel %vm1240_vm1, %v6932_v21, -inf }
 0x570   : > { %v6947_v39 = vpop.eup %5431  ;;  %v2709_v35 = vmul.f32 1.442695, %v2680_v62  ;;  %v8039_v62 = vld [vmem:[#allocation26_spill] sm:$0xff] }
 0x571   : > { %v2751_v16 = vsel %vm1240_vm1, %v6947_v39, 0.0  ;;  %v6959_v25 = vpop.eup %5433 }
 0x572   : > { %v6954_v15 = vpop.f32.mrf.mxu1  ;;  %2752 = vadd.xlane.f32.xlu2 %v2751_v16  ;;  %2740 = vadd.xlane.f32.xlu0 %v2739_v32  ;;  %5435 = vpow2.f32 %v2709_v35  ;;  %v2742_v54 = vsel %vm1240_vm1, %v6959_v25, 0.0  ;;  %v2967_v16 = vpop.permute.xlu1 %2966  ;;  %v1664_v32 = vpack.c.bf16 %v6656_v18, %v6654_v13 }
 0x573   : > { %v2664_v9 = vsel %vm1240_vm1, %v6954_v15, -inf }
 0x574   : > { %2665 = vmax.xlane.f32.xlu1 %v2664_v9  ;;  %5027 = vmatmul.msk.bf16.gmra.mxu3 %vm1009_vm0, %v1661_v5  ;;  %v2917_v9 = vpop.permute.xlu0 %2916 }
 0x575   : > { %v2817_v58 = vpop.permute.xlu2 %2816 }
 0x576   : > { %2829 = vmatpush.bf16.msrb.mxu0 %v2817_v58 }
 0x578   : > { %v6969_v36 = vpop.eup %5435 }
 0x579   : > { %v2754_v51 = vsel %vm1240_vm1, %v6969_v36, 0.0 }
 0x57a   : > { %2879 = vmatpush.bf16.msra.mxu0 %v2867_v30  ;;  %2629 = vmax.xlane.f32.xlu2 %v2628_v0  ;;  %v2717_v5 = vpop.xlane.xlu1 %2716 }
 0x57b   : > { %2743 = vadd.xlane.f32.xlu0 %v2742_v54 }
 0x57c   : > { %1861 = vmax.xlane.f32.xlu1 %v1860_v40  ;;  %v6996_v34 = vpop.permute.xlu0 %2941 }
 0x57d   : > { %v2892_v49 = vpop.permute.xlu2 %2891 }
 0x57e   : > { %2904 = vmatpush.bf16.msrb.mxu1 %v2892_v49 }
 0x582   : > { %2638 = vmax.xlane.f32.xlu2 %v2637_v48 }
 0x583   : > { %2755 = vadd.xlane.f32.xlu0 %v2754_v51 }
 0x584   : > { %5028 = vmatmul.msk.bf16.gmra.mxu3 %vm1009_vm0, %v1662_v47  ;;  %v7002_v13 = vpop.permute.xlu0 %3146 }
 0x585   : > { %v3123_v63 = vpop.permute.xlu2 %3122 }
 0x586   : > { %v3128_v60 = vsel %vm1009_vm0, %v3123_v63, 0 }
 0x587   : > { %3137 = vmatpush.bf16.xpose.msrb.mxu3 %v3128_v60 }
 0x58a   : > { %2650 = vmax.xlane.f32.xlu2 %v2649_v43 }
 0x58b   : > { %2641 = vmax.xlane.f32.xlu0 %v2640_v19 }
 0x58c   : > { %v7005_v48 = vpop.permute.xlu0 %3144 }
 0x58d   : > { %v3121_v44 = vpop.permute.xlu2 %3120 }
 0x592   : > { %2653 = vmax.xlane.f32.xlu2 %v2652_v10  ;;  %v8040_v10 = vld [vmem:[#allocation24_spill] sm:$0xff] }
 0x593   : > { %2662 = vmax.xlane.f32.xlu0 %v2661_v41 }
 0x594   : > { %5029 = vmatmul.msk.bf16.gmra.mxu3 %vm1009_vm0, %v1663_v28 }
 0x595   : > { %3168 = vrot.lane.b32.xlu1 %v8039_v62, %s5914_s27 }
 0x5a4   : > { %5030 = vmatmul.msk.bf16.gmra.mxu3 %vm1009_vm0, %v1664_v32 }
 0x5af   : > { %v2627_v35 = vpop.xlane.xlu1 %2626 }
 0x5b0   : > { %v2669_v58 = vsub.f32 %v6900_v17, %v2627_v35 }
 0x5b2   : > { %v2687_v30 = vmul.f32 1.442695, %v2669_v58 }
 0x5b4   : > { %5437 = vpow2.f32 %v2687_v30  ;;  %5063 = vmatmul.msk.bf16.vlgmr.msrb.gmra.mxu3 %vm1009_vm0, %v3121_v44 }
 0x5b5   : > { %5439 = vrcp.f32 %v2717_v5  ;;  %v8042_v5 = vld [vmem:[#allocation27_spill] sm:$0xff] }
 0x5ba   : > { %v6998_v0 = vpop.eup %5437 }
 0x5bb   : > { %v2721_v54 = vsel %vm1240_vm1, %v6998_v0, 0.0  ;;  %v5440_v40 = vpop.eup %5439 }
 0x5bc   : > { %2722 = vadd.xlane.f32.xlu2 %v2721_v54  ;;  %v2779_v17 = vmul.f32 %v5440_v40, %v6860_v57  ;;  %v8041_v57 = vld [vmem:[#allocation28_spill] sm:$0xff] }
 0x5be   : > { %v2795_v51 = vpack.c.bf16 %v2779_v17, %v2779_v17 }
 0x5c0   : > { %v2813_v60 = vunpack.c.l.b16 %v2795_v51 }
 0x5c6   : > { %v2720_v18 = vpop.xlane.xlu2 %2719 }
 0x5c7   : > { %5441 = vrcp.f32 %v2720_v18 }
 0x5cd   : > { %v5442_v49 = vpop.eup %5441 }
 0x5ce   : > { %v2780_v47 = vmul.f32 %v5442_v49, %v6912_v23 }
 0x5d0   : > { %v2796_v63 = vpack.c.bf16 %v2780_v47, %v2780_v47 }
 0x5d2   : > { %v2814_v43 = vunpack.c.l.b16 %v2796_v63 }
 0x5d4   : > { %v2815_v19 = vpack.c.b16 %v2814_v43, %v2813_v60  ;;  %3170 = vrot.lane.b32.xlu2 %v8040_v10, %s5914_s27 }
 0x5d5   : > { %v2729_v41 = vpop.xlane.xlu0 %2728 }
 0x5d6   : > { %5039 = vmatmul.msk.bf16.vlgmr.msrb.gmra.mxu0 %vm1240_vm1, %v2815_v19  ;;  %5443 = vrcp.f32 %v2729_v41 }
 0x5d7   : > { %2929 = vmatpush.bf16.msrb.mxu0 %v2917_v9 }
 0x5dc   : > { %3194 = vrot.lane.b32.xlu2 %v8041_v57, %s5914_s27  ;;  %v5444_v62 = vpop.eup %5443 }
 0x5dd   : > { %v2732_v28 = vpop.xlane.xlu0 %2731  ;;  %v2783_v23 = vmul.f32 %v5444_v62, %v6926_v38 }
 0x5de   : > { %5445 = vrcp.f32 %v2732_v28 }
 0x5df   : > { %v2799_v35 = vpack.c.bf16 %v2783_v23, %v2783_v23  ;;  %v7026_v23 = vpop.f32.mrf.mxu3 }
 0x5e1   : > { %v2863_v9 = vunpack.c.l.b16 %v2799_v35 }
 0x5e4   : > { %v5446_v32 = vpop.eup %5445  ;;  %3192 = vrot.lane.b32.xlu2 %v8042_v5, %s5914_s27 }
 0x5e5   : > { %v2784_v58 = vmul.f32 %v5446_v32, %v6935_v56  ;;  %v2753_v30 = vpop.xlane.xlu2 %2752  ;;  %v2741_v44 = vpop.xlane.xlu0 %2740 }
 0x5e6   : > { %5447 = vrcp.f32 %v2741_v44 }
 0x5e7   : > { %v2800_v54 = vpack.c.bf16 %v2784_v58, %v2784_v58 }
 0x5e9   : > { %v2864_v18 = vunpack.c.l.b16 %v2800_v54 }
 0x5eb   : > { %v2865_v40 = vpack.c.b16 %v2864_v18, %v2863_v9 }
 0x5ec   : > { %v5448_v51 = vpop.eup %5447 }
 0x5ed   : > { %v2630_v17 = vpop.xlane.xlu2 %2629  ;;  %5041 = vmatmul.msk.bf16.vlgmr.msra.gmra.mxu0 %vm1240_vm1, %v2865_v40  ;;  %v2787_v63 = vmul.f32 %v5448_v51, %v6943_v3 }
 0x5ee   : > { %v2744_v49 = vpop.xlane.xlu0 %2743  ;;  %v2670_v38 = vsub.f32 %v6907_v55, %v2630_v17  ;;  %2979 = vmatpush.bf16.msra.mxu0 %v2967_v16 }
 0x5ef   : > { %5449 = vrcp.f32 %v2744_v49  ;;  %v2803_v60 = vpack.c.bf16 %v2787_v63, %v2787_v63 }
 0x5f0   : > { %v2689_v47 = vmul.f32 1.442695, %v2670_v38 }
 0x5f1   : > { %v2913_v16 = vunpack.c.l.b16 %v2803_v60 }
 0x5f2   : > { %5451 = vpow2.f32 %v2689_v47 }
 0x5f5   : > { %v5450_v56 = vpop.eup %5449  ;;  %v2639_v19 = vpop.xlane.xlu2 %2638 }
 0x5f6   : > { %v2788_v43 = vmul.f32 %v5450_v56, %v6959_v25  ;;  %v2756_v10 = vpop.xlane.xlu0 %2755  ;;  %v2673_v41 = vsub.f32 %v6910_v2, %v2639_v19  ;;  %v3152_v2 = vsel %vm1009_vm0, %v7002_v13, 0  ;;  %v7038_v13 = vpop.f32.mrf.mxu3 }
 0x5f7   : > { %5453 = vrcp.f32 %v2756_v10 }
 0x5f8   : > { %v2804_v57 = vpack.c.bf16 %v2788_v43, %v2788_v43  ;;  %v7022_v28 = vpop.eup %5451  ;;  %5455 = vrcp.f32 %v2753_v30  ;;  %v2695_v55 = vmul.f32 1.442695, %v2673_v41 }
 0x5f9   : > { %v2724_v3 = vsel %vm1240_vm1, %v7022_v28, 0.0 }
 0x5fa   : > { %v2914_v62 = vunpack.c.l.b16 %v2804_v57  ;;  %5457 = vpow2.f32 %v2695_v55  ;;  %2725 = vadd.xlane.f32.xlu0 %v2724_v3 }
 0x5fc   : > { %v2915_v25 = vpack.c.b16 %v2914_v62, %v2913_v16 }
 0x5fd   : > { %v5454_v32 = vpop.eup %5453  ;;  %v2651_v56 = vpop.xlane.xlu2 %2650 }
 0x5fe   : > { %5043 = vmatmul.msk.bf16.vlgmr.msrb.gmra.mxu0 %vm1240_vm1, %v2915_v25  ;;  %v2642_v5 = vpop.xlane.xlu0 %2641  ;;  %v5456_v35 = vpop.eup %5455  ;;  %v2792_v30 = vmul.f32 %v5454_v32, %v6969_v36  ;;  %v2677_v41 = vsub.f32 %v6922_v12, %v2651_v56 }
 0x5ff   : > { %3161 = vmatpush.bf16.xpose.msrb.mxu0 %v3152_v2  ;;  %v2674_v58 = vsub.f32 %v6914_v37, %v2642_v5  ;;  %v2791_v9 = vmul.f32 %v5456_v35, %v6947_v39  ;;  %v7042_v36 = vpop.f32.mrf.mxu3  ;;  %v8043_v39 = vld [vmem:[#allocation33_spill] sm:$0xff]  ;;  %v2666_v12 = vpop.xlane.xlu1 %2665 }
 0x600   : > { %v7033_v44 = vpop.eup %5457  ;;  %v2808_v40 = vpack.c.bf16 %v2792_v30, %v2792_v30  ;;  %v2703_v55 = vmul.f32 1.442695, %v2677_v41  ;;  %v8052_v41 = vld [vmem:[#allocation21_spill] sm:$0xff] }
 0x601   : > { %v2697_v54 = vmul.f32 1.442695, %v2674_v58  ;;  %v2733_v18 = vsel %vm1240_vm1, %v7033_v44, 0.0  ;;  %v2807_v17 = vpack.c.bf16 %v2791_v9, %v2791_v9  ;;  %v2682_v58 = vsub.f32 %v6954_v15, %v2666_v12  ;;  %v7113_v12 = vpop.f32.mrf.mxu2 }
 0x602   : > { %2734 = vadd.xlane.f32.xlu1 %v2733_v18  ;;  %v2964_v49 = vunpack.c.l.b16 %v2808_v40 }
 0x603   : > { %5459 = vpow2.f32 %v2697_v54  ;;  %v2963_v37 = vunpack.c.l.b16 %v2807_v17 }
 0x604   : > { %5461 = vpow2.f32 %v2703_v55 }
 0x605   : > { %v2965_v38 = vpack.c.b16 %v2964_v49, %v2963_v37  ;;  %v2654_v43 = vpop.xlane.xlu2 %2653 }
 0x606   : > { %v2678_v62 = vsub.f32 %v6932_v21, %v2654_v43 }
 0x607   : > { %v7049_v63 = vpop.f32.mrf.mxu3 }
 0x608   : > { %v2705_v25 = vmul.f32 1.442695, %v2678_v62 }
 0x609   : > { %v7040_v51 = vpop.eup %5459 }
 0x60a   : > { %v2736_v47 = vsel %vm1240_vm1, %v7040_v51, 0.0  ;;  %v7073_v35 = vpop.eup %5461  ;;  %5463 = vpow2.f32 %v2705_v25 }
 0x60b   : > { %v2745_v21 = vsel %vm1240_vm1, %v7073_v35, 0.0 }
 0x60d   : > { %2737 = vadd.xlane.f32.xlu2 %v2736_v47  ;;  %v1862_v47 = vpop.xlane.xlu1 %1861 }
 0x60e   : > { %5045 = vmatmul.msk.bf16.vlgmr.msra.gmra.mxu0 %vm1240_vm1, %v2965_v38  ;;  %2991 = vrot.lane.b32.xlu0 %v8043_v39, %s5912_s17 }
 0x60f   : > { %v7055_v60 = vpop.f32.mrf.mxu3 }
 0x610   : > { %8044 = vst [vmem:[#allocation20_spill] sm:$0xff] %v7055_v60  ;;  %v7081_v9 = vpop.eup %5463 }
 0x611   : > { %v2748_v15 = vsel %vm1240_vm1, %v7081_v9, 0.0 }
 0x615   : > { %v7109_v55 = vpop.permute.xlu1 %3168 }
 0x617   : > { %v7059_v19 = vpop.f32.mrf.mxu3 }
 0x618   : > { %8045 = vst [vmem:[#allocation30_spill] sm:$0xff] %v7059_v19 }
 0x61b   : > { %3242 = vrot.lane.b32.xlu1 %v6283_v27, %s5914_s27  ;;  %v1857_v27 = vsel %vm1240_vm1, %v6945_v6, -inf }
 0x61e   : > { %5064 = vmatmul.msk.bf16.vlgmr.msrb.gmra.mxu0 %vm1009_vm0, %v7005_v48  ;;  %v2663_v48 = vpop.xlane.xlu0 %2662 }
 0x61f   : > { %v7062_v57 = vpop.f32.mrf.mxu3 }
 0x620   : > { %8046 = vst [vmem:[#allocation25_spill] sm:$0xff] %v7062_v57 }
 0x625   : > { %3218 = vrot.lane.b32.xlu2 %v8034_v45, %s5914_s27  ;;  %v2681_v45 = vsub.f32 %v6941_v11, %v2663_v48  ;;  %v2713_v11 = vmul.f32 1.442695, %v2682_v58  ;;  %v1881_v58 = vsel %vm1240_vm1, %v7113_v12, -inf }
 0x627   : > { %v7070_v3 = vpop.f32.mrf.mxu3  ;;  %v2711_v2 = vmul.f32 1.442695, %v2681_v45 }
 0x628   : > { %8047 = vst [vmem:[#allocation22_spill] sm:$0xff] %v7070_v3 }
 0x629   : > { %5465 = vpow2.f32 %v2711_v2 }
 0x62a   : > { %5467 = vpow2.f32 %v2713_v11 }
 0x62f   : > { %v2723_v10 = vpop.xlane.xlu2 %2722  ;;  %v7078_v54 = vpop.f32.mrf.mxu3 }
 0x630   : > { %8048 = vst [vmem:[#allocation31_spill] sm:$0xff] %v7078_v54  ;;  %v7083_v18 = vpop.eup %5465  ;;  %5469 = vrcp.f32 %v2723_v10 }
 0x631   : > { %v2757_v40 = vsel %vm1240_vm1, %v7083_v18, 0.0  ;;  %v7091_v17 = vpop.eup %5467 }
 0x632   : > { %v2760_v37 = vsel %vm1240_vm1, %v7091_v17, 0.0 }
 0x636   : > { %v5470_v43 = vpop.eup %5469 }
 0x637   : > { %v7064_v16 = vpop.permute.xlu2 %3170  ;;  %v7093_v49 = vpop.f32.mrf.mxu3 }
 0x638   : > { %1858 = vmax.xlane.f32.xlu0 %v1857_v27  ;;  %8049 = vst [vmem:[#allocation29_spill] sm:$0xff] %v7093_v49  ;;  %v2781_v27 = vmul.f32 %v5470_v43, %v6998_v0 }
 0x63a   : > { %v2797_v62 = vpack.c.bf16 %v2781_v27, %v2781_v27 }
 0x63f   : > { %v3195_v32 = vpop.permute.xlu2 %3194 }
 0x640   : > { %v3200_v5 = vsel %vm1009_vm0, %v3195_v32, 0  ;;  %v2838_v32 = vunpack.c.l.b16 %v2797_v62 }
 0x641   : > { %3209 = vmatpush.bf16.xpose.msra.mxu3 %v3200_v5 }
 0x645   : > { %2746 = vadd.xlane.f32.xlu1 %v2745_v21 }
 0x647   : > { %v3193_v30 = vpop.permute.xlu2 %3192 }
 0x648   : > { %5066 = vmatmul.msk.bf16.vlgmr.msra.gmra.mxu3 %vm1009_vm0, %v3193_v30  ;;  %v1906_v30 = vsub.f32 %v6961_v14, %v1862_v47  ;;  %v8057_v14 = vld [vmem:[#allocation32_spill] sm:$0xff] }
 0x64c   : > { %3216 = vrot.lane.b32.xlu0 %v6273_v7, %s5914_s27  ;;  %v7099_v7 = vpop.f32.mrf.mxu3 }
 0x64d   : > { %2749 = vadd.xlane.f32.xlu1 %v2748_v15  ;;  %8050 = vst [vmem:[#allocation26_spill] sm:$0xff] %v7099_v7 }
 0x64e   : > { %2758 = vadd.xlane.f32.xlu2 %v2757_v40 }
 0x654   : > { %3264 = vrot.lane.b32.xlu0 %v6306_v53, %s5914_s27  ;;  %v7101_v38 = vpop.f32.mrf.mxu3 }
 0x655   : > { %2761 = vadd.xlane.f32.xlu1 %v2760_v37  ;;  %8051 = vst [vmem:[#allocation24_spill] sm:$0xff] %v7101_v38 }
 0x65c   : > { %v7107_v53 = vpop.f32.mrf.mxu3 }
 0x65d   : > { %8053 = vst [vmem:[#allocation28_spill] sm:$0xff] %v7107_v53 }
 0x664   : > { %v7115_v2 = vpop.f32.mrf.mxu3 }
 0x665   : > { %8054 = vst [vmem:[#allocation27_spill] sm:$0xff] %v7115_v2 }
 0x666   : > { %3240 = vrot.lane.b32.xlu2 %v6281_v24, %s5914_s27 }
 0x66c   : > { %v7121_v21 = vpop.f32.mrf.mxu3 }
 0x66d   : > { %v2726_v56 = vpop.xlane.xlu0 %2725  ;;  %8055 = vst [vmem:[#allocation33_spill] sm:$0xff] %v7121_v21 }
 0x66e   : > { %5471 = vrcp.f32 %v2726_v56  ;;  %3266 = vrot.lane.b32.xlu1 %v8052_v41, %s5914_s27  ;;  %v1923_v41 = vmul.f32 1.442695, %v1906_v30 }
 0x674   : > { %v5472_v48 = vpop.eup %5471  ;;  %v7127_v62 = vpop.f32.mrf.mxu3 }
 0x675   : > { %v2782_v45 = vmul.f32 %v5472_v48, %v7022_v28  ;;  %v2735_v24 = vpop.xlane.xlu1 %2734  ;;  %8056 = vst [vmem:[#allocation21_spill] sm:$0xff] %v7127_v62 }
 0x676   : > { %5473 = vrcp.f32 %v2735_v24 }
 0x677   : > { %v2798_v25 = vpack.c.bf16 %v2782_v45, %v2782_v45 }
 0x679   : > { %v2839_v10 = vunpack.c.l.b16 %v2798_v25 }
 0x67b   : > { %v2840_v5 = vpack.c.b16 %v2839_v10, %v2838_v32 }
 0x67c   : > { %v5474_v28 = vpop.eup %5473  ;;  %v7136_v47 = vpop.f32.mrf.mxu3 }
 0x67d   : > { %5040 = vmatmul.msk.bf16.vlgmr.msra.gmra.mxu1 %vm1240_vm1, %v2840_v5  ;;  %v2785_v11 = vmul.f32 %v5474_v28, %v7033_v44  ;;  %8058 = vst [vmem:[#allocation32_spill] sm:$0xff] %v7136_v47  ;;  %v7147_v28 = vpop.f32.mrf.mxu0 }
 0x67e   : > { %2954 = vmatpush.bf16.msra.mxu1 %v6996_v34  ;;  %1882 = vmax.xlane.f32.xlu0 %v1881_v58 }
 0x67f   : > { %v2801_v40 = vpack.c.bf16 %v2785_v11, %v2785_v11 }
 0x680   : > { %v2738_v0 = vpop.xlane.xlu2 %2737  ;;  %v2992_v25 = vpop.permute.xlu0 %2991 }
 0x681   : > { %5475 = vrcp.f32 %v2738_v0  ;;  %v2888_v34 = vunpack.c.l.b16 %v2801_v40 }
 0x682   : > { %5477 = vpow2.f32 %v1923_v41 }
 0x684   : > { %v7140_v24 = vpop.f32.mrf.mxu3 }
 0x685   : > { %8059 = vst [vmem:[#allocation34_spill] sm:$0xff] %v7140_v24 }
 0x687   : > { %v5476_v15 = vpop.eup %5475 }
 0x688   : > { %v2786_v37 = vmul.f32 %v5476_v15, %v7040_v51  ;;  %v3219_v56 = vpop.permute.xlu2 %3218  ;;  %v7132_v44 = vpop.eup %5477 }
 0x689   : > { %v3224_v43 = vsel %vm1009_vm0, %v3219_v56, 0  ;;  %v1956_v51 = vsel %vm1240_vm1, %v7132_v44, 0.0 }
 0x68a   : > { %v2802_v27 = vpack.c.bf16 %v2786_v37, %v2786_v37  ;;  %3233 = vmatpush.bf16.xpose.msra.mxu0 %v3224_v43  ;;  %v7155_v37 = vpop.f32.mrf.mxu2 }
 0x68b   : > { %v1884_v43 = vsel %vm1240_vm1, %v7155_v37, -inf }
 0x68c   : > { %v2889_v48 = vunpack.c.l.b16 %v2802_v27  ;;  %v7142_v10 = vpop.f32.mrf.mxu3 }
 0x68d   : > { %8060 = vst [vmem:[#allocation35_spill] sm:$0xff] %v7142_v10  ;;  %v3243_v0 = vpop.permute.xlu1 %3242 }
 0x68e   : > { %v2890_v45 = vpack.c.b16 %v2889_v48, %v2888_v34 }
 0x690   : > { %5042 = vmatmul.msk.bf16.vlgmr.msrb.gmra.mxu1 %vm1240_vm1, %v2890_v45 }
 0x691   : > { %3004 = vmatpush.bf16.msrb.mxu1 %v2992_v25 }
 0x692   : > { %3288 = vrot.lane.b32.xlu0 %v8057_v14, %s5914_s27 }
 0x694   : > { %v7151_v30 = vpop.f32.mrf.mxu3 }
 0x695   : > { %8061 = vst [vmem:[#allocation36_spill] sm:$0xff] %v7151_v30  ;;  %v3176_v30 = vsel %vm1009_vm0, %v7064_v16, 0 }
 0x698   : > { %1957 = vadd.xlane.f32.xlu1 %v1956_v51 }
 0x69a   : > { %2154 = vrot.lane.b32.xlu0 %v6601_v22, %s5913_s19 }
 0x69c   : > { %v7162_v41 = vpop.f32.mrf.mxu3 }
 0x69d   : > { %v3312_v48 = vsel %vm1240_vm1, %v7162_v41, -inf }
 0x6ab   : > { %v1859_v32 = vpop.xlane.xlu0 %1858 }
 0x6ac   : > { %v1905_v5 = vsub.f32 %v6945_v6, %v1859_v32  ;;  %v7157_v6 = vpop.f32.mrf.mxu0 }
 0x6ae   : > { %v1921_v58 = vmul.f32 1.442695, %v1905_v5 }
 0x6b0   : > { %5479 = vpow2.f32 %v1921_v58 }
 0x6b1   : > { %2054 = vrot.lane.b32.xlu1 %v8037_v29, %s5913_s19  ;;  %s4696_s19 = scalar_lea.hbm %s7977_s12, %s5136_s7 }
 0x6b2   : > { %s4700_s20 = sshll.u32 %s4696_s19, 4  ;;  %s4701_s20 = int_to_ptr.hbm [resolvable:$true] %s4700_s20 }
 0x6b3   : > { %s5839_s26 = sshra.s32 %s4701_s20, 4  ;;  %s5840_s26 = int_to_ptr.hbm [resolvable:$true] %s5839_s26 }
 0x6b4   : > { %v7167_v25 = vpop.f32.mrf.mxu0  ;;  %s5841_s16 = scalar_lea.hbm %s5840_s26, 8  ;;  %p5846_p12 = scmp.lt.s32.totalorder %s5840_s26, %s7977_s12 }
 0x6b5   : > { %p5842_p1 = scmp.ne.s32.totalorder %s5840_s26, %s5841_s16  ;;  %p5847_p8 = scmp.lt.s32.totalorder %s5845_s30, %s5841_s16 }
 0x6b6   : > { %v7149_v11 = vpop.eup %5479 }
 0x6b7   : > { %v1953_v15 = vsel %vm1240_vm1, %v7149_v11, 0.0  ;;  %p5843_p3 = pnand %p5842_p1, %p6082_p13  ;;  %p5848_p7 = por %p5847_p8, %p5846_p12 }
 0x6b8   : > { %v2747_v40 = vpop.xlane.xlu1 %2746  ;;  %1954 = vadd.xlane.f32.xlu2 %v1953_v15 }
 0x6b9   : > { %5481 = vrcp.f32 %v2747_v40  ;;  %p5844_p5 = pneg %p5843_p3 }
 0x6bb   : > { %p5849_p9 = pnand %p5848_p7, %p5844_p5 }
 0x6be   : > { %v3217_v56 = vpop.permute.xlu0 %3216 }
 0x6bf   : > { %5067 = vmatmul.msk.bf16.vlgmr.msra.gmra.mxu0 %vm1009_vm0, %v3217_v56  ;;  %v5482_v34 = vpop.eup %5481 }
 0x6c0   : > { %v2750_v27 = vpop.xlane.xlu1 %2749  ;;  %1885 = vmax.xlane.f32.xlu2 %v1884_v43  ;;  %v2789_v45 = vmul.f32 %v5482_v34, %v7073_v35  ;;  %v7172_v35 = vpop.f32.mrf.mxu0 }
 0x6c1   : > { %5483 = vrcp.f32 %v2750_v27  ;;  %v2759_v5 = vpop.xlane.xlu2 %2758 }
 0x6c2   : > { %v2805_v51 = vpack.c.bf16 %v2789_v45, %v2789_v45 }
 0x6c4   : > { %3313 = vmax.xlane.f32.xlu0 %v3312_v48  ;;  %v2938_v40 = vunpack.c.l.b16 %v2805_v51  ;;  %v8062_v51 = vld [vmem:[#allocation23_spill] sm:$0xff] }
 0x6c7   : > { %v5484_v14 = vpop.eup %5483 }
 0x6c8   : > { %v2790_v32 = vmul.f32 %v5484_v14, %v7081_v9  ;;  %v2762_v58 = vpop.xlane.xlu1 %2761 }
 0x6c9   : > { %5485 = vrcp.f32 %v2762_v58 }
 0x6ca   : > { %v2806_v15 = vpack.c.bf16 %v2790_v32, %v2790_v32  ;;  %5487 = vrcp.f32 %v2759_v5  ;;  %v7179_v32 = vpop.f32.mrf.mxu0 }
 0x6cc   : > { %v2939_v56 = vunpack.c.l.b16 %v2806_v15  ;;  %v3248_v15 = vsel %vm1009_vm0, %v3243_v0, 0 }
 0x6ce   : > { %v2940_v43 = vpack.c.b16 %v2939_v56, %v2938_v40 }
 0x6cf   : > { %v5486_v27 = vpop.eup %5485 }
 0x6d0   : > { %5044 = vmatmul.msk.bf16.vlgmr.msra.gmra.mxu1 %vm1240_vm1, %v2940_v43  ;;  %v5488_v34 = vpop.eup %5487  ;;  %v2794_v9 = vmul.f32 %v5486_v27, %v7091_v17  ;;  %v3265_v17 = vpop.permute.xlu0 %3264 }
 0x6d1   : > { %3185 = vmatpush.bf16.xpose.msra.mxu1 %v3176_v30  ;;  %v2793_v48 = vmul.f32 %v5488_v34, %v7083_v18  ;;  %v7192_v34 = vpop.f32.mrf.mxu3 }
 0x6d2   : > { %v2810_v45 = vpack.c.bf16 %v2794_v9, %v2794_v9  ;;  %v7184_v18 = vpop.f32.mrf.mxu0 }
 0x6d3   : > { %v2809_v14 = vpack.c.bf16 %v2793_v48, %v2793_v48 }
 0x6d4   : > { %v2989_v5 = vunpack.c.l.b16 %v2810_v45 }
 0x6d5   : > { %v2988_v58 = vunpack.c.l.b16 %v2809_v14  ;;  %v3241_v14 = vpop.permute.xlu2 %3240 }
 0x6d7   : > { %v2990_v16 = vpack.c.b16 %v2989_v5, %v2988_v58 }
 0x6d8   : > { %3290 = vrot.lane.b32.xlu2 %v8062_v51, %s5914_s27 }
 0x6d9   : > { %v7200_v51 = vpop.f32.mrf.mxu3 }
 0x6da   : > { %v7187_v56 = vpop.f32.mrf.mxu0 }
 0x6e0   : > { %v3267_v40 = vpop.permute.xlu1 %3266  ;;  %5046 = vmatmul.msk.bf16.vlgmr.msrb.gmra.mxu1 %vm1240_vm1, %v2990_v16 }
 0x6e1   : > { %v3272_v30 = vsel %vm1009_vm0, %v3267_v40, 0  ;;  %3257 = vmatpush.bf16.xpose.msrb.mxu1 %v3248_v15  ;;  %v7207_v5 = vpop.f32.mrf.mxu3 }
 0x6e2   : > { %3281 = vmatpush.bf16.xpose.msrb.mxu3 %v3272_v30  ;;  %v7194_v9 = vpop.f32.mrf.mxu0  ;;  %v3333_v58 = vsel %vm1240_vm1, %v7207_v5, -inf }
 0x6e9   : > { %5069 = vmatmul.msk.bf16.vlgmr.msrb.gmra.mxu3 %vm1009_vm0, %v3265_v17 }
 0x6f0   : > { %5065 = vmatmul.msk.bf16.vlgmr.msra.gmra.mxu1 %vm1009_vm0, %v7109_v55  ;;  %v7203_v55 = vpop.f32.mrf.mxu0 }
 0x6f1   : > { %v1883_v43 = vpop.xlane.xlu0 %1882 }
 0x6f2   : > { %v1913_v0 = vsub.f32 %v7113_v12, %v1883_v43  ;;  %v3318_v12 = vsel %vm1240_vm1, %v7203_v55, -inf }
 0x6f4   : > { %v1937_v27 = vmul.f32 1.442695, %v1913_v0 }
 0x6f6   : > { %5489 = vpow2.f32 %v1937_v27 }
 0x6f8   : > { %v7217_v24 = vpop.f32.mrf.mxu0 }
 0x6fa   : > { %v7211_v17 = vpop.f32.mrf.mxu1 }
 0x6fc   : > { %v7196_v48 = vpop.eup %5489 }
 0x6fd   : > { %v1977_v45 = vsel %vm1240_vm1, %v7196_v48, 0.0 }
 0x6fe   : > { %1978 = vadd.xlane.f32.xlu1 %v1977_v45 }
 0x700   : > { %5068 = vmatmul.msk.bf16.vlgmr.msrb.gmra.mxu1 %vm1009_vm0, %v3241_v14 }
 0x702   : > { %v7214_v14 = vpop.f32.mrf.mxu1 }
 0x704   : > { %v3289_v16 = vpop.permute.xlu0 %3288 }
 0x706   : > { %3319 = vmax.xlane.f32.xlu1 %v3318_v12 }
 0x70b   : > { %v1958_v15 = vpop.xlane.xlu1 %1957 }
 0x70c   : > { %v2155_v30 = vpop.permute.xlu0 %2154  ;;  %5491 = vrcp.f32 %v1958_v15 }
 0x70d   : > { %v7220_v2 = vpop.f32.mrf.mxu1 }
 0x70e   : > { %3334 = vmax.xlane.f32.xlu1 %v3333_v58 }
 0x712   : > { %v5492_v0 = vpop.eup %5491 }
 0x713   : > { %v2018_v27 = vmul.f32 %v5492_v0, %v7132_v44 }
 0x715   : > { %v2034_v12 = vpack.c.bf16 %v2018_v27, %v2018_v27 }
 0x717   : > { %v2052_v47 = vunpack.c.l.b16 %v2034_v12  ;;  %v3315_v12 = vsel %vm1240_vm1, %v7192_v34, -inf }
 0x723   : > { %v2055_v40 = vpop.permute.xlu1 %2054 }
 0x724   : > { %2067 = vmatpush.bf16.msrb.mxu2 %v2055_v40 }
 0x728   : > { %2167 = vmatpush.bf16.msra.mxu2 %v2155_v30 }
 0x72b   : > { %v1955_v43 = vpop.xlane.xlu2 %1954 }
 0x72c   : > { %5493 = vrcp.f32 %v1955_v43 }
 0x732   : > { %v5494_v45 = vpop.eup %5493 }
 0x733   : > { %v2017_v58 = vmul.f32 %v5494_v45, %v7149_v11  ;;  %v1886_v10 = vpop.xlane.xlu2 %1885 }
 0x734   : > { %v1914_v40 = vsub.f32 %v7155_v37, %v1886_v10 }
 0x735   : > { %v2033_v30 = vpack.c.bf16 %v2017_v58, %v2017_v58 }
 0x736   : > { %v1939_v15 = vmul.f32 1.442695, %v1914_v40 }
 0x737   : > { %v2051_v62 = vunpack.c.l.b16 %v2033_v30  ;;  %v3314_v43 = vpop.xlane.xlu0 %3313 }
 0x738   : > { %5495 = vpow2.f32 %v1939_v15  ;;  %v3360_v0 = vsub.f32 %v7162_v41, %v3314_v43  ;;  %v3330_v43 = vsel %vm1240_vm1, %v7200_v51, -inf }
 0x739   : > { %v2053_v21 = vpack.c.b16 %v2052_v47, %v2051_v62 }
 0x73a   : > { %v3376_v47 = vmul.f32 1.442695, %v3360_v0 }
 0x73b   : > { %4991 = vmatmul.msk.bf16.vlgmr.msrb.gmra.mxu2 %vm1240_vm1, %v2053_v21  ;;  %v3291_v44 = vpop.permute.xlu2 %3290  ;;  %v7233_v21 = vpop.f32.mrf.mxu1 }
 0x73c   : > { %v3296_v11 = vsel %vm1009_vm0, %v3291_v44, 0  ;;  %v7225_v27 = vpop.f32.mrf.mxu0  ;;  %5497 = vpow2.f32 %v3376_v47 }
 0x73d   : > { %3305 = vmatpush.bf16.xpose.msrb.mxu0 %v3296_v11  ;;  %v3336_v10 = vsel %vm1240_vm1, %v7225_v27, -inf }
 0x73e   : > { %v5496_v37 = vpop.eup %5495  ;;  %3337 = vmax.xlane.f32.xlu1 %v3336_v10 }
 0x73f   : > { %v1980_v62 = vsel %vm1240_vm1, %v5496_v37, 0.0 }
 0x740   : > { %1981 = vadd.xlane.f32.xlu2 %v1980_v62 }
 0x742   : > { %v7239_v58 = vpop.eup %5497 }
 0x743   : > { %v3408_v30 = vsel %vm1240_vm1, %v7239_v58, 0.0 }
 0x744   : > { %v7230_v45 = vpop.f32.mrf.mxu0  ;;  %5070 = vmatmul.msk.bf16.vlgmr.msrb.gmra.mxu0 %vm1009_vm0, %v3289_v16  ;;  %v3321_v16 = vsel %vm1240_vm1, %v7217_v24, -inf }
 0x745   : > { %v3339_v41 = vsel %vm1240_vm1, %v7230_v45, -inf }
 0x746   : > { %3340 = vmax.xlane.f32.xlu0 %v3339_v41  ;;  %v5176_v41 = vld [vmem:[#allocation10 + $0x18] sm:$0xff] }
 0x747   : > { %2299 = vmatpush.bf16.msrb.mxu2 %v5176_v41 }
 0x748   : > { %3316 = vmax.xlane.f32.xlu2 %v3315_v12  ;;  %v5175_v12 = vld [vmem:[#allocation10 + $0x10] sm:$0xff] }
 0x74b   : > { %2300 = vmatpush.bf16.msrb.mxu2 %v5175_v12 }
 0x74d   : > { %v7241_v40 = vpop.f32.mrf.mxu1 }
 0x74e   : > { %3409 = vadd.xlane.f32.xlu0 %v3408_v30 }
 0x750   : > { %3322 = vmax.xlane.f32.xlu2 %v3321_v16 }
 0x755   : > { %v7247_v15 = vpop.f32.mrf.mxu1 }
 0x758   : > { %3331 = vmax.xlane.f32.xlu2 %v3330_v43 }
 0x75d   : > { %v7251_v44 = vpop.f32.mrf.mxu1 }
 0x765   : > { %v7253_v0 = vpop.f32.mrf.mxu1 }
 0x76d   : > { %v7255_v11 = vpop.f32.mrf.mxu1 }
 0x771   : > { %v1979_v47 = vpop.xlane.xlu1 %1978 }
 0x772   : > { %5499 = vrcp.f32 %v1979_v47 }
 0x775   : > { %v7257_v10 = vpop.f32.mrf.mxu1 }
 0x776   : > { %v3327_v62 = vsel %vm1240_vm1, %v7257_v10, -inf }
 0x777   : > { %3328 = vmax.xlane.f32.xlu0 %v3327_v62 }
 0x778   : > { %v5500_v16 = vpop.eup %5499 }
 0x779   : > { %v2025_v43 = vmul.f32 %v5500_v16, %v7196_v48  ;;  %v3320_v7 = vpop.xlane.xlu1 %3319 }
 0x77b   : > { %v2041_v38 = vpack.c.bf16 %v2025_v43, %v2025_v43 }
 0x77d   : > { %v2151_v47 = vunpack.c.l.b16 %v2041_v38  ;;  %v7280_v38 = vpop.f32.mrf.mxu3 }
 0x78b   : > { %3509 = vrot.lane.b32.xlu0 %v8037_v29, %s5914_s27  ;;  %v3362_v29 = vsub.f32 %v7203_v55, %v3320_v7 }
 0x78d   : > { %v3380_v19 = vmul.f32 1.442695, %v3362_v29  ;;  %v2251_v29 = vpack.c.bf16 %v6775_v26, %v6773_v61  ;;  %v3348_v61 = vsel %vm1240_vm1, %v7280_v38, -inf }
 0x7b3   : > { %v1982_v30 = vpop.xlane.xlu2 %1981 }
 0x7b4   : > { %5501 = vrcp.f32 %v1982_v30 }
 0x7b9   : > { %v7291_v43 = vpop.xlane.xlu0 %3340 }
 0x7ba   : > { %v5502_v53 = vpop.eup %5501 }
 0x7bb   : > { %v2026_v49 = vmul.f32 %v5502_v53, %v5496_v37  ;;  %v3317_v54 = vpop.xlane.xlu2 %3316  ;;  %v2250_v37 = vpack.c.bf16 %v7038_v13, %v7026_v23  ;;  %v2252_v23 = vpack.c.bf16 %v6886_v4, %v6881_v59  ;;  %v7304_v13 = vpop.xlane.xlu1 %3334 }
 0x7bc   : > { %v3361_v62 = vsub.f32 %v7192_v34, %v3317_v54  ;;  %v7285_v34 = vpop.f32.mrf.mxu3  ;;  %v7315_v4 = vpop.f32.mrf.mxu1 }
 0x7bd   : > { %v2042_v3 = vpack.c.bf16 %v2026_v49, %v2026_v49  ;;  %v3351_v55 = vsel %vm1240_vm1, %v7285_v34, -inf }
 0x7be   : > { %v3378_v57 = vmul.f32 1.442695, %v3361_v62  ;;  %v2069_v48 = vpop.f32.mrf.mxu2 }
 0x7bf   : > { %v2152_v41 = vunpack.c.l.b16 %v2042_v3 }
 0x7c0   : > { %5503 = vpow2.f32 %v3378_v57 }
 0x7c1   : > { %v2153_v12 = vpack.c.b16 %v2152_v41, %v2151_v47  ;;  %5505 = vpow2.f32 %v3380_v19  ;;  %v3410_v62 = vpop.xlane.xlu0 %3409 }
 0x7c3   : > { %v3323_v60 = vpop.xlane.xlu2 %3322  ;;  %4995 = vmatmul.msk.bf16.vlgmr.msra.gmra.mxu2 %vm1240_vm1, %v2153_v12 }
 0x7c4   : > { %v3363_v30 = vsub.f32 %v7217_v24, %v3323_v60  ;;  %v3324_v24 = vsel %vm1240_vm1, %v7255_v11, -inf }
 0x7c6   : > { %v7268_v16 = vpop.eup %5503  ;;  %v3382_v53 = vmul.f32 1.442695, %v3363_v30  ;;  %v2071_v3 = vpop.f32.mrf.mxu2 }
 0x7c7   : > { %v3411_v54 = vsel %vm1240_vm1, %v7268_v16, 0.0  ;;  %v7272_v49 = vpop.eup %5505  ;;  %v2249_v19 = vpack.c.bf16 %v2071_v3, %v2069_v48  ;;  %v7309_v48 = vpop.f32.mrf.mxu0 }
 0x7c8   : > { %5507 = vpow2.f32 %v3382_v53  ;;  %3412 = vadd.xlane.f32.xlu2 %v3411_v54  ;;  %v3414_v60 = vsel %vm1240_vm1, %v7272_v49, 0.0  ;;  %v3342_v53 = vsel %vm1240_vm1, %v7315_v4, -inf }
 0x7cb   : > { %v3332_v3 = vpop.xlane.xlu2 %3331 }
 0x7ce   : > { %v7274_v57 = vpop.eup %5507 }
 0x7cf   : > { %v3417_v7 = vsel %vm1240_vm1, %v7274_v57, 0.0 }
 0x7d0   : > { %3418 = vadd.xlane.f32.xlu1 %v3417_v7  ;;  %3415 = vadd.xlane.f32.xlu2 %v3414_v60  ;;  %v7322_v7 = vpop.f32.mrf.mxu1  ;;  %v3366_v60 = vsub.f32 %v7200_v51, %v3332_v3 }
 0x7d3   : > { %5007 = vmatmul.msk.bf16.vlgmr.msrb.gmra.mxu2 %vm1009_vm0, %v2249_v19  ;;  %v3345_v19 = vsel %vm1240_vm1, %v7322_v7, -inf }
 0x7d8   : > { %3325 = vmax.xlane.f32.xlu1 %v3324_v24  ;;  %v3388_v24 = vmul.f32 1.442695, %v3366_v60 }
 0x7e0   : > { %3352 = vmax.xlane.f32.xlu1 %v3351_v55 }
 0x7e3   : > { %5008 = vmatmul.msk.bf16.gmra.mxu2 %vm1009_vm0, %v2250_v37 }
 0x7e8   : > { %3534 = vrot.lane.b32.xlu2 %v6338_v46, %s5914_s27  ;;  %v3338_v46 = vpop.xlane.xlu1 %3337 }
 0x7e9   : > { %v3368_v12 = vsub.f32 %v7225_v27, %v3338_v46 }
 0x7ea   : > { %v3329_v47 = vpop.xlane.xlu0 %3328 }
 0x7eb   : > { %v3392_v26 = vmul.f32 1.442695, %v3368_v12  ;;  %v3365_v27 = vsub.f32 %v7257_v10, %v3329_v47 }
 0x7ed   : > { %5509 = vpow2.f32 %v3392_v26  ;;  %v3386_v54 = vmul.f32 1.442695, %v3365_v27 }
 0x7ef   : > { %5511 = vpow2.f32 %v3386_v54 }
 0x7f0   : > { %5513 = vpow2.f32 %v3388_v24  ;;  %v3367_v24 = vsub.f32 %v7207_v5, %v7304_v13 }
 0x7f1   : > { %5515 = vrcp.f32 %v3410_v62 }
 0x7f3   : > { %5009 = vmatmul.msk.bf16.gmra.mxu2 %vm1009_vm0, %v2251_v29  ;;  %v7313_v59 = vpop.eup %5509 }
 0x7f4   : > { %v3432_v30 = vsel %vm1240_vm1, %v7313_v59, 0.0 }
 0x7f5   : > { %v7327_v55 = vpop.eup %5511 }
 0x7f6   : > { %v3423_v10 = vsel %vm1240_vm1, %v7327_v55, 0.0  ;;  %v7331_v37 = vpop.eup %5513 }
 0x7f7   : > { %v3426_v51 = vsel %vm1240_vm1, %v7331_v37, 0.0  ;;  %v5516_v47 = vpop.eup %5515 }
 0x7f9   : > { %3559 = vrot.lane.b32.xlu1 %v8035_v50, %s5914_s27  ;;  %v3354_v50 = vsel %vm1240_vm1, %v7309_v48, -inf }
 0x7fd   : > { %v3510_v41 = vpop.permute.xlu0 %3509 }
 0x7fe   : > { %3522 = vmatpush.bf16.msra.mxu1 %v3510_v41  ;;  %v3472_v41 = vmul.f32 %v5516_v47, %v7239_v58 }
 0x800   : > { %v3488_v46 = vpack.c.bf16 %v3472_v41, %v3472_v41 }
 0x803   : > { %5010 = vmatmul.msk.bf16.gmra.mxu2 %vm1009_vm0, %v2252_v23 }
 0x811   : > { %3349 = vmax.xlane.f32.xlu2 %v3348_v61 }
 0x819   : > { %3355 = vmax.xlane.f32.xlu2 %v3354_v50  ;;  %v3506_v50 = vunpack.c.l.b16 %v3488_v46 }
 0x821   : > { %3433 = vadd.xlane.f32.xlu2 %v3432_v30 }
 0x823   : > { %3343 = vmax.xlane.f32.xlu1 %v3342_v53 }
 0x82b   : > { %3346 = vmax.xlane.f32.xlu1 %v3345_v19 }
 0x833   : > { %3424 = vadd.xlane.f32.xlu1 %v3423_v10 }
 0x839   : > { %3584 = vrot.lane.b32.xlu2 %v8038_v31, %s5914_s27 }
 0x83b   : > { %v3413_v29 = vpop.xlane.xlu2 %3412  ;;  %3427 = vadd.xlane.f32.xlu1 %v3426_v51 }
 0x83c   : > { %5517 = vrcp.f32 %v3413_v29 }
 0x841   : > { %3634 = vrot.lane.b32.xlu2 %v6511_v52, %s5914_s27 }
 0x842   : > { %v5518_v23 = vpop.eup %5517 }
 0x843   : > { %v3473_v62 = vmul.f32 %v5518_v23, %v7268_v16  ;;  %v3416_v12 = vpop.xlane.xlu2 %3415  ;;  %v3419_v61 = vpop.xlane.xlu1 %3418 }
 0x844   : > { %5519 = vrcp.f32 %v3416_v12 }
 0x845   : > { %v3489_v31 = vpack.c.bf16 %v3473_v62, %v3473_v62  ;;  %5521 = vrcp.f32 %v3419_v61  ;;  %v3369_v61 = vsub.f32 %v7230_v45, %v7291_v43 }
 0x846   : > { %v2169_v26 = vpop.f32.mrf.mxu2 }
 0x847   : > { %v3507_v30 = vunpack.c.l.b16 %v3489_v31  ;;  %v2254_v31 = vpack.c.bf16 %v7049_v63, %v7042_v36  ;;  %v5178_v63 = vld [vmem:[#allocation10 + $0x28] sm:$0xff] }
 0x848   : > { %3061 = vmatpush.bf16.msra.mxu2 %v5178_v63 }
 0x849   : > { %v3508_v27 = vpack.c.b16 %v3507_v30, %v3506_v50  ;;  %v3394_v50 = vmul.f32 1.442695, %v3369_v61  ;;  %v7363_v30 = vpop.f32.mrf.mxu0 }
 0x84a   : > { %v5520_v53 = vpop.eup %5519 }
 0x84b   : > { %v5522_v54 = vpop.eup %5521  ;;  %v3474_v58 = vmul.f32 %v5520_v53, %v7272_v49  ;;  %v3535_v3 = vpop.permute.xlu2 %3534  ;;  %5071 = vmatmul.msk.bf16.vlgmr.msra.gmra.mxu1 %vm1240_vm1, %v3508_v27  ;;  %v3390_v49 = vmul.f32 1.442695, %v3367_v24  ;;  %v3357_v27 = vsel %vm1240_vm1, %v7363_v30, -inf  ;;  %v5177_v53 = vld [vmem:[#allocation10 + $0x20] sm:$0xff]  ;;  %v3011_v24 = vpack.c.bf16 %v7157_v6, %v7147_v28 }
 0x84c   : > { %v3326_v60 = vpop.xlane.xlu1 %3325  ;;  %v3475_v52 = vmul.f32 %v5522_v54, %v7274_v57  ;;  %3547 = vmatpush.bf16.msra.mxu3 %v3535_v3  ;;  %v2255_v54 = vpack.c.bf16 %v6779_v1, %v6777_v20  ;;  %3062 = vmatpush.bf16.msra.mxu2 %v5177_v53  ;;  %v2256_v3 = vpack.c.bf16 %v6897_v42, %v6891_v33 }
 0x84d   : > { %v3364_v16 = vsub.f32 %v7255_v11, %v3326_v60  ;;  %v3490_v19 = vpack.c.bf16 %v3474_v58, %v3474_v58  ;;  %v3012_v6 = vpack.c.bf16 %v7214_v14, %v7211_v17  ;;  %v3014_v14 = vpack.c.bf16 %v7233_v21, %v7220_v2 }
 0x84e   : > { %v3491_v10 = vpack.c.bf16 %v3475_v52, %v3475_v52  ;;  %v2171_v29 = vpop.f32.mrf.mxu2 }
 0x84f   : > { %v3384_v51 = vmul.f32 1.442695, %v3364_v16  ;;  %v3531_v47 = vunpack.c.l.b16 %v3490_v19  ;;  %v2253_v41 = vpack.c.bf16 %v2171_v29, %v2169_v26 }
 0x850   : > { %v3532_v23 = vunpack.c.l.b16 %v3491_v10 }
 0x851   : > { %5523 = vpow2.f32 %v3384_v51  ;;  %5011 = vmatmul.msk.bf16.gmra.mxu2 %vm1009_vm0, %v2253_v41 }
 0x852   : > { %v3533_v46 = vpack.c.b16 %v3532_v23, %v3531_v47  ;;  %5525 = vpow2.f32 %v3390_v49 }
 0x854   : > { %5072 = vmatmul.msk.bf16.vlgmr.msra.gmra.mxu3 %vm1240_vm1, %v3533_v46  ;;  %v3353_v57 = vpop.xlane.xlu1 %3352  ;;  %v3013_v46 = vpack.c.bf16 %v7172_v35, %v7167_v25  ;;  %v3015_v25 = vpack.c.bf16 %v7184_v18, %v7179_v32 }
 0x855   : > { %v3373_v13 = vsub.f32 %v7285_v34, %v3353_v57 }
 0x856   : > { %v7409_v17 = vpop.f32.mrf.mxu2 }
 0x857   : > { %v7349_v11 = vpop.eup %5523  ;;  %v3402_v12 = vmul.f32 1.442695, %v3373_v13 }
 0x858   : > { %v3420_v5 = vsel %vm1240_vm1, %v7349_v11, 0.0  ;;  %v7354_v62 = vpop.eup %5525 }
 0x859   : > { %3421 = vadd.xlane.f32.xlu0 %v3420_v5  ;;  %v3429_v26 = vsel %vm1240_vm1, %v7354_v62, 0.0  ;;  %5527 = vpow2.f32 %v3402_v12 }
 0x85a   : > { %5529 = vpow2.f32 %v3394_v50 }
 0x85e   : > { %v7416_v57 = vpop.f32.mrf.mxu2 }
 0x85f   : > { %v7365_v34 = vpop.eup %5527 }
 0x860   : > { %v3447_v36 = vsel %vm1240_vm1, %v7365_v34, 0.0  ;;  %v7371_v43 = vpop.eup %5529 }
 0x861   : > { %3430 = vadd.xlane.f32.xlu0 %v3429_v26  ;;  %5012 = vmatmul.msk.bf16.gmra.mxu2 %vm1009_vm0, %v2254_v31  ;;  %v3435_v58 = vsel %vm1240_vm1, %v7371_v43, 0.0 }
 0x866   : > { %v7420_v35 = vpop.f32.mrf.mxu2 }
 0x869   : > { %3358 = vmax.xlane.f32.xlu0 %v3357_v27 }
 0x86a   : > { %3448 = vadd.xlane.f32.xlu2 %v3447_v36 }
 0x86b   : > { %v3560_v45 = vpop.permute.xlu1 %3559 }
 0x86c   : > { %3572 = vmatpush.bf16.msra.mxu0 %v3560_v45 }
 0x86e   : > { %v7426_v45 = vpop.f32.mrf.mxu2 }
 0x871   : > { %3436 = vadd.xlane.f32.xlu0 %v3435_v58  ;;  %5013 = vmatmul.msk.bf16.gmra.mxu2 %vm1009_vm0, %v2255_v54 }
 0x881   : > { %5014 = vmatmul.msk.bf16.gmra.mxu2 %vm1009_vm0, %v2256_v3 }
 0x884   : > { %v3350_v60 = vpop.xlane.xlu2 %3349 }
 0x885   : > { %3609 = vrot.lane.b32.xlu0 %v6601_v22, %s5914_s27  ;;  %v3372_v52 = vsub.f32 %v7280_v38, %v3350_v60 }
 0x887   : > { %v3400_v16 = vmul.f32 1.442695, %v3372_v52 }
 0x889   : > { %5531 = vpow2.f32 %v3400_v16 }
 0x88c   : > { %v3356_v20 = vpop.xlane.xlu2 %3355 }
 0x88d   : > { %v3374_v1 = vsub.f32 %v7309_v48, %v3356_v20 }
 0x88f   : > { %v7385_v19 = vpop.eup %5531  ;;  %v3404_v10 = vmul.f32 1.442695, %v3374_v1 }
 0x890   : > { %v3444_v33 = vsel %vm1240_vm1, %v7385_v19, 0.0 }
 0x891   : > { %5533 = vpow2.f32 %v3404_v10  ;;  %5055 = vmatmul.msk.bf16.vlgmr.msra.gmra.mxu2 %vm1009_vm0, %v3011_v24  ;;  %3445 = vadd.xlane.f32.xlu1 %v3444_v33 }
 0x894   : > { %v7392_v22 = vpop.xlane.xlu2 %3433 }
 0x896   : > { %v3344_v42 = vpop.xlane.xlu1 %3343 }
 0x897   : > { %v7394_v38 = vpop.eup %5533  ;;  %v3370_v3 = vsub.f32 %v7315_v4, %v3344_v42 }
 0x898   : > { %v3450_v48 = vsel %vm1240_vm1, %v7394_v38, 0.0 }
 0x899   : > { %3451 = vadd.xlane.f32.xlu1 %v3450_v48  ;;  %v3396_v1 = vmul.f32 1.442695, %v3370_v3 }
 0x89c   : > { %v3585_v51 = vpop.permute.xlu2 %3584 }
 0x89d   : > { %3597 = vmatpush.bf16.msrb.mxu1 %v3585_v51  ;;  %v3017_v51 = vpack.c.bf16 %v7194_v9, %v7187_v56 }
 0x89e   : > { %v3347_v28 = vpop.xlane.xlu1 %3346 }
 0x89f   : > { %v3371_v29 = vsub.f32 %v7322_v7, %v3347_v28 }
 0x8a1   : > { %v3398_v47 = vmul.f32 1.442695, %v3371_v29  ;;  %5056 = vmatmul.msk.bf16.gmra.mxu2 %vm1009_vm0, %v3012_v6 }
 0x8a3   : > { %5535 = vpow2.f32 %v3398_v47 }
 0x8a4   : > { %v3635_v41 = vpop.permute.xlu2 %3634 }
 0x8a5   : > { %3647 = vmatpush.bf16.msrb.mxu0 %v3635_v41 }
 0x8a6   : > { %v3425_v7 = vpop.xlane.xlu1 %3424 }
 0x8a7   : > { %5537 = vrcp.f32 %v3425_v7 }
 0x8a9   : > { %v7402_v23 = vpop.eup %5535 }
 0x8aa   : > { %v3441_v49 = vsel %vm1240_vm1, %v7402_v23, 0.0 }
 0x8ad   : > { %v5538_v12 = vpop.eup %5537 }
 0x8ae   : > { %v3428_v5 = vpop.xlane.xlu1 %3427  ;;  %v3477_v2 = vmul.f32 %v5538_v12, %v7327_v55  ;;  %v5180_v12 = vld [vmem:[#allocation10 + $0x38] sm:$0xff] }
 0x8af   : > { %3442 = vadd.xlane.f32.xlu0 %v3441_v49 }
 0x8b0   : > { %v3493_v61 = vpack.c.bf16 %v3477_v2, %v3477_v2 }
 0x8b1   : > { %5057 = vmatmul.msk.bf16.gmra.mxu2 %vm1009_vm0, %v3013_v46 }
 0x8b2   : > { %v3557_v27 = vunpack.c.l.b16 %v3493_v61 }
 0x8c1   : > { %5058 = vmatmul.msk.bf16.gmra.mxu2 %vm1009_vm0, %v3014_v14 }
 0x8c3   : > { %3684 = vrot.lane.b32.xlu0 %v8043_v39, %s5914_s27 }
 0x8cc   : > { %v3422_v13 = vpop.xlane.xlu0 %3421 }
 0x8cd   : > { %5539 = vrcp.f32 %v3422_v13 }
 0x8ce   : > { %5541 = vrcp.f32 %v3428_v5 }
 0x8d1   : > { %5059 = vmatmul.msk.bf16.gmra.mxu2 %vm1009_vm0, %v3015_v25 }
 0x8d3   : > { %v5540_v21 = vpop.eup %5539 }
 0x8d4   : > { %v3476_v39 = vmul.f32 %v5540_v21, %v7349_v11  ;;  %v3431_v31 = vpop.xlane.xlu0 %3430  ;;  %v5542_v26 = vpop.eup %5541 }
 0x8d5   : > { %5543 = vrcp.f32 %v3431_v31  ;;  %v3478_v36 = vmul.f32 %v5542_v26, %v7331_v37  ;;  %v3016_v37 = vpack.c.bf16 %v7247_v15, %v7241_v40 }
 0x8d6   : > { %v3492_v50 = vpack.c.bf16 %v3476_v39, %v3476_v39 }
 0x8d7   : > { %v3494_v53 = vpack.c.bf16 %v3478_v36, %v3478_v36 }
 0x8d8   : > { %v3556_v63 = vunpack.c.l.b16 %v3492_v50 }
 0x8d9   : > { %v3581_v52 = vunpack.c.l.b16 %v3494_v53 }
 0x8da   : > { %v3558_v32 = vpack.c.b16 %v3557_v27, %v3556_v63 }
 0x8db   : > { %v5544_v18 = vpop.eup %5543 }
 0x8dc   : > { %v3479_v55 = vmul.f32 %v5544_v18, %v7354_v62  ;;  %5073 = vmatmul.msk.bf16.vlgmr.msra.gmra.mxu0 %vm1240_vm1, %v3558_v32  ;;  %v3359_v54 = vpop.xlane.xlu0 %3358  ;;  %v7435_v62 = vpop.f32.mrf.mxu2 }
 0x8dd   : > { %v3375_v11 = vsub.f32 %v7363_v30, %v3359_v54  ;;  %3754 = vmatpush.bf16.msra.mxu0 %v5180_v12  ;;  %v3449_v31 = vpop.xlane.xlu2 %3448  ;;  %v5185_v12 = vld [vmem:[#allocation11 + $0x20] sm:$0xff] }
 0x8de   : > { %v3495_v58 = vpack.c.bf16 %v3479_v55, %v3479_v55 }
 0x8df   : > { %v3406_v60 = vmul.f32 1.442695, %v3375_v11 }
 0x8e0   : > { %v3582_v16 = vunpack.c.l.b16 %v3495_v58 }
 0x8e1   : > { %5545 = vpow2.f32 %v3406_v60  ;;  %5060 = vmatmul.msk.bf16.gmra.mxu2 %vm1009_vm0, %v3016_v37 }
 0x8e2   : > { %v3583_v20 = vpack.c.b16 %v3582_v16, %v3581_v52 }
 0x8e4   : > { %5074 = vmatmul.msk.bf16.vlgmr.msrb.gmra.mxu1 %vm1240_vm1, %v3583_v20  ;;  %v3437_v24 = vpop.xlane.xlu0 %3436  ;;  %v7441_v42 = vpop.f32.mrf.mxu2 }
 0x8e5   : > { %5547 = vrcp.f32 %v3437_v24 }
 0x8e6   : > { %5549 = vrcp.f32 %v7392_v22 }
 0x8e7   : > { %v5546_v4 = vpop.eup %5545  ;;  %5551 = vpow2.f32 %v3396_v1 }
 0x8e8   : > { %v3453_v30 = vsel %vm1240_vm1, %v5546_v4, 0.0 }
 0x8e9   : > { %3454 = vadd.xlane.f32.xlu1 %v3453_v30 }
 0x8eb   : > { %v5548_v40 = vpop.eup %5547 }
 0x8ec   : > { %v5550_v15 = vpop.eup %5549  ;;  %v3481_v33 = vmul.f32 %v5548_v40, %v7371_v43  ;;  %v7448_v49 = vpop.f32.mrf.mxu2 }
 0x8ed   : > { %v5552_v10 = vpop.eup %5551  ;;  %v3480_v48 = vmul.f32 %v5550_v15, %v7313_v59  ;;  %v3018_v59 = vpack.c.bf16 %v7253_v0, %v7251_v44  ;;  %v5179_v0 = vld [vmem:[#allocation10 + $0x30] sm:$0xff] }
 0x8ee   : > { %v3438_v28 = vsel %vm1240_vm1, %v5552_v10, 0.0  ;;  %v3497_v22 = vpack.c.bf16 %v3481_v33, %v3481_v33  ;;  %3755 = vmatpush.bf16.msra.mxu0 %v5179_v0  ;;  %v5184_v0 = vld [vmem:[#allocation11 + $0x18] sm:$0xff] }
 0x8ef   : > { %v3496_v6 = vpack.c.bf16 %v3480_v48, %v3480_v48 }
 0x8f0   : > { %v3607_v29 = vunpack.c.l.b16 %v3497_v22 }
 0x8f1   : > { %3439 = vadd.xlane.f32.xlu1 %v3438_v28  ;;  %5061 = vmatmul.msk.bf16.gmra.mxu2 %vm1009_vm0, %v3017_v51  ;;  %v3606_v47 = vunpack.c.l.b16 %v3496_v6 }
 0x8f3   : > { %v3608_v43 = vpack.c.b16 %v3607_v29, %v3606_v47 }
 0x8f4   : > { %v7453_v56 = vpop.f32.mrf.mxu2 }
 0x8f7   : > { %v3610_v41 = vpop.permute.xlu0 %3609 }
 0x8f8   : > { %3622 = vmatpush.bf16.msrb.mxu3 %v3610_v41 }
 0x8fb   : > { %5075 = vmatmul.msk.bf16.vlgmr.msrb.gmra.mxu3 %vm1240_vm1, %v3608_v43 }
 0x901   : > { %5062 = vmatmul.msk.bf16.gmra.mxu2 %vm1009_vm0, %v3018_v59 }
 0x904   : > { %v3446_v14 = vpop.xlane.xlu1 %3445 }
 0x90a   : > { %3659 = vrot.lane.b32.xlu1 %v6312_v8, %s5914_s27  ;;  %s4686_s27 = scalar_lea.sflag [#allocation4], %s6116_s15 }
 0x90c   : > { %v3452_v7 = vpop.xlane.xlu1 %3451 }
 0x90d   : > { %5553 = vrcp.f32 %v3452_v7  ;;  %v5187_v7 = vld [vmem:[#allocation11 + $0x30] sm:$0xff] }
 0x913   : > { %v5554_v13 = vpop.eup %5553 }
 0x914   : > { %v3486_v44 = vmul.f32 %v5554_v13, %v7394_v38  ;;  %v5186_v13 = vld [vmem:[#allocation11 + $0x28] sm:$0xff] }
 0x916   : > { %v3502_v2 = vpack.c.bf16 %v3486_v44, %v3486_v44 }
 0x918   : > { %v3681_v26 = vunpack.c.l.b16 %v3502_v2  ;;  %v5182_v2 = vld [vmem:[#allocation11 + $0x8] sm:$0xff] }
 0x922   : > { %v3443_v9 = vpop.xlane.xlu0 %3442 }
 0x935   : > { %v3685_v46 = vpop.permute.xlu0 %3684 }
 0x936   : > { %3697 = vmatpush.bf16.msra.mxu3 %v3685_v46 }
 0x95c   : > { %v3455_v5 = vpop.xlane.xlu1 %3454 }
 0x95d   : > { %5555 = vrcp.f32 %v3455_v5 }
 0x95e   : > { %5557 = vrcp.f32 %v3443_v9 }
 0x963   : > { %v5556_v25 = vpop.eup %5555 }
 0x964   : > { %v3487_v21 = vmul.f32 %v5556_v25, %v5546_v4  ;;  %v3440_v8 = vpop.xlane.xlu1 %3439  ;;  %v5558_v61 = vpop.eup %5557  ;;  %v5183_v25 = vld [vmem:[#allocation11 + $0x10] sm:$0xff] }
 0x965   : > { %5559 = vrcp.f32 %v3440_v8  ;;  %v3483_v50 = vmul.f32 %v5558_v61, %v7402_v23  ;;  %v3524_v23 = vpop.f32.mrf.mxu1  ;;  %v5181_v8 = vld [vmem:[#allocation11] sm:$0xff] }
 0x966   : > { %v3503_v39 = vpack.c.bf16 %v3487_v21, %v3487_v21  ;;  %5561 = vrcp.f32 %v3446_v14  ;;  %v5188_v14 = vld [vmem:[#allocation11 + $0x38] sm:$0xff] }
 0x967   : > { %5563 = vrcp.f32 %v3449_v31  ;;  %v3499_v32 = vpack.c.bf16 %v3483_v50, %v3483_v50 }
 0x968   : > { %v3682_v27 = vunpack.c.l.b16 %v3503_v39 }
 0x969   : > { %v3632_v55 = vunpack.c.l.b16 %v3499_v32 }
 0x96a   : > { %v3683_v36 = vpack.c.b16 %v3682_v27, %v3681_v26 }
 0x96b   : > { %v5560_v63 = vpop.eup %5559 }
 0x96c   : > { %v3482_v38 = vmul.f32 %v5560_v63, %v5552_v10  ;;  %5078 = vmatmul.msk.bf16.vlgmr.msra.gmra.mxu3 %vm1240_vm1, %v3683_v36  ;;  %v5562_v53 = vpop.eup %5561  ;;  %v7467_v10 = vpop.f32.mrf.mxu2  ;;  %v8063_v63 = vld [vmem:[#allocation20_spill] sm:$0xff] }
 0x96d   : > { %v5564_v11 = vpop.eup %5563  ;;  %v3484_v58 = vmul.f32 %v5562_v53, %v7385_v19  ;;  %v3526_v4 = vpop.f32.mrf.mxu1  ;;  %v2388_v32 = vadd.f32 %v8063_v63, %v7409_v17 }
 0x96e   : > { %v3498_v18 = vpack.c.bf16 %v3482_v38, %v3482_v38  ;;  %v3485_v60 = vmul.f32 %v5564_v11, %v7365_v34  ;;  %v3704_v30 = vpack.c.bf16 %v3526_v4, %v3524_v23  ;;  %v3549_v19 = vpop.f32.mrf.mxu3  ;;  %v3574_v34 = vpop.f32.mrf.mxu0  ;;  %v8064_v38 = vld [vmem:[#allocation30_spill] sm:$0xff] }
 0x96f   : > { %v3500_v37 = vpack.c.bf16 %v3484_v58, %v3484_v58  ;;  %v7494_v58 = vld [vmem:[%s7973_s8] ss:$0 sm:$0xff] }
 0x970   : > { %v3631_v54 = vunpack.c.l.b16 %v3498_v18  ;;  %v3501_v52 = vpack.c.bf16 %v3485_v60, %v3485_v60  ;;  %v2390_v18 = vadd.f32 %v8064_v38, %v7416_v57 }
 0x971   : > { %v3656_v16 = vunpack.c.l.b16 %v3500_v37 }
 0x972   : > { %v3633_v3 = vpack.c.b16 %v3632_v55, %v3631_v54  ;;  %v3657_v20 = vunpack.c.l.b16 %v3501_v52 }
 0x974   : > { %5076 = vmatmul.msk.bf16.vlgmr.msrb.gmra.mxu0 %vm1240_vm1, %v3633_v3  ;;  %v3658_v24 = vpack.c.b16 %v3657_v20, %v3656_v16  ;;  %v7470_v51 = vpop.f32.mrf.mxu2 }
 0x975   : > { %v3599_v28 = vpop.f32.mrf.mxu1 }
 0x976   : > { %v3551_v40 = vpop.f32.mrf.mxu3  ;;  %v3576_v33 = vpop.f32.mrf.mxu0 }
 0x977   : > { %v3705_v15 = vpack.c.bf16 %v3551_v40, %v3549_v19  ;;  %v3706_v48 = vpack.c.bf16 %v3576_v33, %v3574_v34 }
 0x97c   : > { %v3660_v1 = vpop.permute.xlu1 %3659  ;;  %v7472_v22 = vpop.f32.mrf.mxu2 }
 0x97d   : > { %3672 = vmatpush.bf16.msra.mxu1 %v3660_v1  ;;  %v3601_v6 = vpop.f32.mrf.mxu1 }
 0x97e   : > { %v3707_v29 = vpack.c.bf16 %v3601_v6, %v3599_v28  ;;  %v3624_v47 = vpop.f32.mrf.mxu3 }
 0x980   : > { %5077 = vmatmul.msk.bf16.vlgmr.msra.gmra.mxu1 %vm1240_vm1, %v3658_v24  ;;  %v8065_v24 = vld [vmem:[#allocation25_spill] sm:$0xff] }
 0x981   : > { %3909 = vmatpush.bf16.msrb.mxu1 %v5188_v14  ;;  %v2393_v4 = vadd.f32 %v8065_v24, %v7420_v35 }
 0x984   : > { %5087 = vmatmul.msk.bf16.vlgmr.msra.gmra.mxu0 %vm1009_vm0, %v3704_v30  ;;  %v7475_v41 = vpop.f32.mrf.mxu2  ;;  %v8066_v30 = vld [vmem:[#allocation22_spill] sm:$0xff] }
 0x985   : > { %3910 = vmatpush.bf16.msrb.mxu1 %v5187_v7  ;;  %v2395_v19 = vadd.f32 %v8066_v30, %v7426_v45  ;;  %v8067_v45 = vld [vmem:[#allocation31_spill] sm:$0xff]  ;;  %v8068_v7 = vld [vmem:[#allocation29_spill] sm:$0xff] }
 0x986   : > { %v3626_v43 = vpop.f32.mrf.mxu3  ;;  %v2398_v14 = vadd.f32 %v8067_v45, %v7435_v62 }
 0x987   : > { %v3708_v59 = vpack.c.bf16 %v3626_v43, %v3624_v47 }
 0x989   : > { %3911 = vmatpush.bf16.msrb.mxu1 %v5186_v13  ;;  %v2400_v13 = vadd.f32 %v8068_v7, %v7441_v42  ;;  %v8069_v42 = vld [vmem:[#allocation26_spill] sm:$0xff] }
 0x98c   : > { %v7477_v9 = vpop.f32.mrf.mxu2 }
 0x98d   : > { %3912 = vmatpush.bf16.msrb.mxu1 %v5185_v12 }
 0x991   : > { %3913 = vmatpush.bf16.msrb.mxu1 %v5184_v0 }
 0x994   : > { %5088 = vmatmul.msk.bf16.gmra.mxu0 %vm1009_vm0, %v3705_v15  ;;  %v7480_v46 = vpop.f32.mrf.mxu2 }
 0x995   : > { %3914 = vmatpush.bf16.msrb.mxu1 %v5183_v25 }
 0x999   : > { %3915 = vmatpush.bf16.msrb.mxu1 %v5182_v2 }
 0x99c   : > { %v7482_v5 = vpop.f32.mrf.mxu2 }
 0x99d   : > { %3916 = vmatpush.bf16.msrb.mxu1 %v5181_v8 }
 0x9a4   : > { %5089 = vmatmul.msk.bf16.gmra.mxu0 %vm1009_vm0, %v3706_v48  ;;  %v7484_v44 = vpop.f32.mrf.mxu2 }
 0x9ac   : > { %v3064_v21 = vpop.f32.mrf.mxu2 }
 0x9ad   : > { %v3104_v53 = vadd.f32 %v3064_v21, %v2388_v32 }
 0x9b4   : > { %5090 = vmatmul.msk.bf16.gmra.mxu0 %vm1009_vm0, %v3707_v29  ;;  %v3066_v39 = vpop.f32.mrf.mxu2 }
 0x9b5   : > { %v3105_v54 = vadd.f32 %v3066_v39, %v2390_v18 }
 0x9bc   : > { %v3069_v27 = vpop.f32.mrf.mxu2 }
 0x9bd   : > { %v3106_v40 = vadd.f32 %v3069_v27, %v2393_v4  ;;  %v8070_v27 = vld [vmem:[#allocation24_spill] sm:$0xff] }
 0x9c4   : > { %5091 = vmatmul.msk.bf16.gmra.mxu0 %vm1009_vm0, %v3708_v59  ;;  %v3071_v3 = vpop.f32.mrf.mxu2 }
 0x9c5   : > { %v3107_v34 = vadd.f32 %v3071_v3, %v2395_v19 }
 0x9cc   : > { %v3074_v1 = vpop.f32.mrf.mxu2 }
 0x9cd   : > { %v3108_v12 = vadd.f32 %v3074_v1, %v2398_v14 }
 0x9d4   : > { %v3076_v43 = vpop.f32.mrf.mxu2 }
 0x9d5   : > { %v3109_v25 = vadd.f32 %v3076_v43, %v2400_v13 }
 0x9dc   : > { %v3079_v0 = vpop.f32.mrf.mxu2 }
 0x9e4   : > { %v3081_v62 = vpop.f32.mrf.mxu2 }
 0x9ef   : > { %v3699_v57 = vpop.f32.mrf.mxu3 }
 0x9f1   : > { %v3649_v61 = vpop.f32.mrf.mxu0 }
 0x9f7   : > { %v3701_v15 = vpop.f32.mrf.mxu3 }
 0x9f8   : > { %v3711_v28 = vpack.c.bf16 %v3701_v15, %v3699_v57 }
 0x9f9   : > { %v3651_v31 = vpop.f32.mrf.mxu0 }
 0x9fa   : > { %v3709_v26 = vpack.c.bf16 %v3651_v31, %v3649_v61 }
 0x9fc   : > { %5092 = vmatmul.msk.bf16.gmra.mxu0 %vm1009_vm0, %v3709_v26 }
 0x9fd   : > { %v3674_v50 = vpop.f32.mrf.mxu1 }
 0xa01   : > { %v3757_v36 = vpop.f32.mrf.mxu0 }
 0xa02   : > { %v3797_v11 = vadd.f32 %v3757_v36, %v3104_v53  ;;  %v2405_v36 = vadd.f32 %v8070_v27, %v7453_v56  ;;  %v8072_v56 = vld [vmem:[#allocation27_spill] sm:$0xff] }
 0xa04   : > { %v3817_v52 = vadd.f32 %v7494_v58, %v3797_v11  ;;  %v3111_v32 = vadd.f32 %v3081_v62, %v2405_v36 }
 0xa05   : > { %v3676_v55 = vpop.f32.mrf.mxu1 }
 0xa06   : > { %v3710_v23 = vpack.c.bf16 %v3676_v55, %v3674_v50  ;;  %v2403_v50 = vadd.f32 %v8069_v42, %v7448_v49  ;;  %v3084_v55 = vpop.f32.mrf.mxu2  ;;  %v8071_v49 = vld [vmem:[#allocation28_spill] sm:$0xff] }
 0xa08   : > { %v3110_v63 = vadd.f32 %v3079_v0, %v2403_v50  ;;  %v8076_v0 = vld [vmem:[#allocation34_spill] sm:$0xff] }
 0xa09   : > { %v3759_v60 = vpop.f32.mrf.mxu0  ;;  %v7555_v50 = vld [vmem:[%s7976_s11] ss:$0 sm:$0xff] }
 0xa0a   : > { %v3798_v37 = vadd.f32 %v3759_v60, %v3105_v54 }
 0xa0c   : > { %v3818_v17 = vadd.f32 %v7494_v58, %v3798_v37  ;;  %5093 = vmatmul.msk.bf16.gmra.mxu0 %vm1009_vm0, %v3710_v23  ;;  %v2408_v23 = vadd.f32 %v8071_v49, %v7467_v10 }
 0xa0e   : > { %v3833_v16 = vpack.c.bf16 %v3818_v17, %v3817_v52  ;;  %4424 = vmatpush.msrb.mxu3 %v3818_v17  ;;  %v3086_v37 = vpop.f32.mrf.mxu2  ;;  %v3112_v17 = vadd.f32 %v3084_v55, %v2408_v23 }
 0xa10   : > { %3917 = vmatmul.bf16.vlgmr.msrb.gmra.mxu1 %v3833_v16  ;;  %4425 = vmatpush.msrb.mxu3 %v3817_v52  ;;  %v2410_v52 = vadd.f32 %v8072_v56, %v7470_v51  ;;  %v8073_v51 = vld [vmem:[#allocation33_spill] sm:$0xff] }
 0xa11   : > { %v3762_v20 = vpop.f32.mrf.mxu0  ;;  %v2413_v15 = vadd.f32 %v8073_v51, %v7472_v22  ;;  %v7545_v22 = vld [vmem:[%s7975_s10] ss:$0 sm:$0xff] }
 0xa12   : > { %v3799_v33 = vadd.f32 %v3762_v20, %v3106_v40  ;;  %v3113_v57 = vadd.f32 %v3086_v37, %v2410_v52 }
 0xa14   : > { %v3819_v29 = vadd.f32 %v7494_v58, %v3799_v33 }
 0xa16   : > { %v3089_v10 = vpop.f32.mrf.mxu2 }
 0xa19   : > { %v3764_v48 = vpop.f32.mrf.mxu0 }
 0xa1a   : > { %v3800_v6 = vadd.f32 %v3764_v48, %v3107_v34  ;;  %v8074_v34 = vld [vmem:[#allocation21_spill] sm:$0xff]  ;;  %v3114_v48 = vadd.f32 %v3089_v10, %v2413_v15 }
 0xa1b   : > { %v2415_v33 = vadd.f32 %v8074_v34, %v7475_v41  ;;  %v8075_v41 = vld [vmem:[#allocation32_spill] sm:$0xff] }
 0xa1c   : > { %v3820_v47 = vadd.f32 %v7494_v58, %v3800_v6  ;;  %5094 = vmatmul.msk.bf16.gmra.mxu0 %vm1009_vm0, %v3711_v28  ;;  %v2418_v13 = vadd.f32 %v8075_v41, %v7477_v9 }
 0xa1e   : > { %4457 = vmatpush.msra.mxu3 %v3820_v47  ;;  %v3834_v59 = vpack.c.bf16 %v3820_v47, %v3819_v29  ;;  %v3091_v19 = vpop.f32.mrf.mxu2 }
 0xa1f   : > { %v3115_v6 = vadd.f32 %v3091_v19, %v2415_v33 }
 0xa20   : > { %3922 = vmatmul.bf16.gmra.mxu1 %v3834_v59  ;;  %4458 = vmatpush.msra.mxu3 %v3819_v29 }
 0xa21   : > { %v3767_v35 = vpop.f32.mrf.mxu0 }
 0xa22   : > { %v3801_v2 = vadd.f32 %v3767_v35, %v3108_v12 }
 0xa24   : > { %v7511_v61 = vadd.f32 %v7494_v58, %v3801_v2 }
 0xa26   : > { %v3094_v28 = vpop.f32.mrf.mxu2 }
 0xa27   : > { %v3116_v2 = vadd.f32 %v3094_v28, %v2418_v13 }
 0xa29   : > { %v3769_v21 = vpop.f32.mrf.mxu0 }
 0xa2a   : > { %v3802_v8 = vadd.f32 %v3769_v21, %v3109_v25  ;;  %v2420_v25 = vadd.f32 %v8076_v0, %v7480_v46 }
 0xa2c   : > { %v7514_v39 = vadd.f32 %v7494_v58, %v3802_v8 }
 0xa2e   : > { %v3835_v31 = vpack.c.bf16 %v7514_v39, %v7511_v61  ;;  %v3096_v14 = vpop.f32.mrf.mxu2 }
 0xa2f   : > { %v3117_v8 = vadd.f32 %v3096_v14, %v2420_v25 }
 0xa30   : > { %3927 = vmatmul.bf16.gmra.mxu1 %v3835_v31 }
 0xa31   : > { %v3772_v26 = vpop.f32.mrf.mxu0 }
 0xa32   : > { %v3803_v38 = vadd.f32 %v3772_v26, %v3110_v63 }
 0xa34   : > { %v3823_v54 = vadd.f32 %v7494_v58, %v3803_v38 }
 0xa36   : > { %v3099_v42 = vpop.f32.mrf.mxu2 }
 0xa39   : > { %v3774_v18 = vpop.f32.mrf.mxu0 }
 0xa3a   : > { %v3804_v53 = vadd.f32 %v3774_v18, %v3111_v32 }
 0xa3c   : > { %v3824_v11 = vadd.f32 %v7494_v58, %v3804_v53  ;;  %v8077_v53 = vld [vmem:[#allocation35_spill] sm:$0xff] }
 0xa3d   : > { %v2423_v55 = vadd.f32 %v8077_v53, %v7482_v5 }
 0xa3e   : > { %4523 = vmatpush.msrb.mxu2 %v3824_v11  ;;  %v3836_v3 = vpack.c.bf16 %v3824_v11, %v3823_v54 }
 0xa3f   : > { %v3118_v23 = vadd.f32 %v3099_v42, %v2423_v55 }
 0xa40   : > { %3932 = vmatmul.bf16.gmra.mxu1 %v3836_v3  ;;  %4524 = vmatpush.msrb.mxu2 %v3823_v54  ;;  %v3101_v54 = vpop.f32.mrf.mxu2 }
 0xa41   : > { %v3777_v60 = vpop.f32.mrf.mxu0 }
 0xa42   : > { %v3805_v16 = vadd.f32 %v3777_v60, %v3112_v17  ;;  %v8078_v60 = vld [vmem:[#allocation36_spill] sm:$0xff] }
 0xa43   : > { %v2425_v49 = vadd.f32 %v8078_v60, %v7484_v44 }
 0xa44   : > { %v7529_v24 = vadd.f32 %v7494_v58, %v3805_v16 }
 0xa45   : > { %v3119_v52 = vadd.f32 %v3101_v54, %v2425_v49 }
 0xa49   : > { %v3779_v20 = vpop.f32.mrf.mxu0 }
 0xa4a   : > { %v3806_v1 = vadd.f32 %v3779_v20, %v3113_v57 }
 0xa4c   : > { %v7532_v4 = vadd.f32 %v7494_v58, %v3806_v1 }
 0xa4e   : > { %v3837_v30 = vpack.c.bf16 %v7532_v4, %v7529_v24 }
 0xa50   : > { %3937 = vmatmul.bf16.gmra.mxu1 %v3837_v30 }
 0xa79   : > { %v3782_v40 = vpop.f32.mrf.mxu0 }
 0xa7a   : > { %v3807_v29 = vadd.f32 %v3782_v40, %v3114_v48 }
 0xa7c   : > { %v3827_v59 = vadd.f32 %v7494_v58, %v3807_v29 }
 0xa81   : > { %v3784_v47 = vpop.f32.mrf.mxu0 }
 0xa82   : > { %v3808_v43 = vadd.f32 %v3784_v47, %v3115_v6 }
 0xa84   : > { %v3828_v35 = vadd.f32 %v7494_v58, %v3808_v43 }
 0xa86   : > { %4589 = vmatpush.msra.mxu2 %v3828_v35  ;;  %v3838_v45 = vpack.c.bf16 %v3828_v35, %v3827_v59 }
 0xa88   : > { %3942 = vmatmul.bf16.gmra.mxu1 %v3838_v45  ;;  %4590 = vmatpush.msra.mxu2 %v3827_v59 }
 0xa89   : > { %v3787_v7 = vpop.f32.mrf.mxu0 }
 0xa8a   : > { %v3809_v31 = vadd.f32 %v3787_v7, %v3116_v2 }
 0xa8c   : > { %v7558_v9 = vadd.f32 %v7494_v58, %v3809_v31 }
 0xa8d   : > { %v3918_v12 = vpop.f32.mrf.mxu1 }
 0xa8e   : > { %v3919_v21 = vadd.f32 %v7545_v22, %v3918_v12 }
 0xa90   : > { %5565 = vtanh.f32 %v3919_v21 }
 0xa91   : > { %v3789_v62 = vpop.f32.mrf.mxu0 }
 0xa92   : > { %v3810_v26 = vadd.f32 %v3789_v62, %v3117_v8 }
 0xa94   : > { %v7561_v27 = vadd.f32 %v7494_v58, %v3810_v26 }
 0xa95   : > { %v3920_v46 = vpop.f32.mrf.mxu1 }
 0xa96   : > { %v5566_v36 = vpop.eup %5565  ;;  %v3921_v63 = vadd.f32 %v7545_v22, %v3920_v46  ;;  %v3839_v32 = vpack.c.bf16 %v7561_v27, %v7558_v9 }
 0xa97   : > { %v3978_v38 = vmul.f32 %v5566_v36, %v7555_v50 }
 0xa98   : > { %5567 = vtanh.f32 %v3921_v63  ;;  %3947 = vmatmul.bf16.gmra.mxu1 %v3839_v32 }
 0xa99   : > { %3994 = vadd.xlane.f32.xlu2 %v3978_v38  ;;  %v3792_v18 = vpop.f32.mrf.mxu0 }
 0xa9a   : > { %v3811_v17 = vadd.f32 %v3792_v18, %v3118_v23 }
 0xa9c   : > { %v7574_v20 = vadd.f32 %v7494_v58, %v3811_v17 }
 0xa9d   : > { %v3923_v11 = vpop.f32.mrf.mxu1 }
 0xa9e   : > { %v5568_v3 = vpop.eup %5567  ;;  %v3924_v37 = vadd.f32 %v7545_v22, %v3923_v11 }
 0xa9f   : > { %v3979_v56 = vmul.f32 %v5568_v3, %v7555_v50 }
 0xaa0   : > { %5569 = vtanh.f32 %v3924_v37 }
 0xaa1   : > { %3996 = vadd.xlane.f32.xlu1 %v3979_v56  ;;  %v3794_v57 = vpop.f32.mrf.mxu0 }
 0xaa2   : > { %v3812_v16 = vadd.f32 %v3794_v57, %v3119_v52 }
 0xaa4   : > { %v7577_v5 = vadd.f32 %v7494_v58, %v3812_v16 }
 0xaa5   : > { %v3925_v1 = vpop.f32.mrf.mxu1 }
 0xaa6   : > { %v5570_v30 = vpop.eup %5569  ;;  %v3926_v44 = vadd.f32 %v7545_v22, %v3925_v1  ;;  %v3840_v10 = vpack.c.bf16 %v7577_v5, %v7574_v20 }
 0xaa7   : > { %v3980_v19 = vmul.f32 %v5570_v30, %v7555_v50 }
 0xaa8   : > { %5571 = vtanh.f32 %v3926_v44  ;;  %3952 = vmatmul.bf16.gmra.mxu1 %v3840_v10 }
 0xaa9   : > { %3998 = vadd.xlane.f32.xlu2 %v3980_v19 }
 0xaad   : > { %v3928_v40 = vpop.f32.mrf.mxu1 }
 0xaae   : > { %v5572_v51 = vpop.eup %5571  ;;  %v3929_v15 = vadd.f32 %v7545_v22, %v3928_v40 }
 0xaaf   : > { %v3981_v34 = vmul.f32 %v5572_v51, %v7555_v50 }
 0xab0   : > { %5573 = vtanh.f32 %v3929_v15 }
 0xab1   : > { %4000 = vadd.xlane.f32.xlu0 %v3981_v34 }
 0xab5   : > { %v3930_v58 = vpop.f32.mrf.mxu1 }
 0xab6   : > { %v5574_v33 = vpop.eup %5573  ;;  %v3931_v48 = vadd.f32 %v7545_v22, %v3930_v58 }
 0xab7   : > { %v3982_v28 = vmul.f32 %v5574_v33, %v7555_v50 }
 0xab8   : > { %5575 = vtanh.f32 %v3931_v48 }
 0xab9   : > { %4002 = vadd.xlane.f32.xlu2 %v3982_v28 }
 0xabd   : > { %v3933_v6 = vpop.f32.mrf.mxu1 }
 0xabe   : > { %v5576_v29 = vpop.eup %5575  ;;  %v3934_v47 = vadd.f32 %v7545_v22, %v3933_v6 }
 0xabf   : > { %v3983_v43 = vmul.f32 %v5576_v29, %v7555_v50 }
 0xac0   : > { %5577 = vtanh.f32 %v3934_v47 }
 0xac1   : > { %4004 = vadd.xlane.f32.xlu2 %v3983_v43 }
 0xac5   : > { %v3935_v59 = vpop.f32.mrf.mxu1 }
 0xac6   : > { %v5578_v35 = vpop.eup %5577  ;;  %v3936_v45 = vadd.f32 %v7545_v22, %v3935_v59 }
 0xac7   : > { %v3984_v14 = vmul.f32 %v5578_v35, %v7555_v50 }
 0xac8   : > { %5579 = vtanh.f32 %v3936_v45 }
 0xac9   : > { %4006 = vadd.xlane.f32.xlu2 %v3984_v14 }
 0xacd   : > { %v3938_v7 = vpop.f32.mrf.mxu1 }
 0xace   : > { %v5580_v41 = vpop.eup %5579  ;;  %v3939_v13 = vadd.f32 %v7545_v22, %v3938_v7 }
 0xacf   : > { %v3985_v12 = vmul.f32 %v5580_v41, %v7555_v50 }
 0xad0   : > { %5581 = vtanh.f32 %v3939_v13 }
 0xad1   : > { %4008 = vadd.xlane.f32.xlu2 %v3985_v12 }
 0xad5   : > { %v3940_v0 = vpop.f32.mrf.mxu1 }
 0xad6   : > { %v5582_v25 = vpop.eup %5581  ;;  %v3941_v2 = vadd.f32 %v7545_v22, %v3940_v0 }
 0xad7   : > { %v3986_v21 = vmul.f32 %v5582_v25, %v7555_v50 }
 0xad8   : > { %5583 = vtanh.f32 %v3941_v2 }
 0xad9   : > { %4010 = vadd.xlane.f32.xlu1 %v3986_v21 }
 0xade   : > { %v5584_v8 = vpop.eup %5583 }
 0xadf   : > { %v3987_v31 = vmul.f32 %v5584_v8, %v7555_v50 }
 0xae1   : > { %4012 = vadd.xlane.f32.xlu2 %v3987_v31 }
 0xb05   : > { %v3943_v62 = vpop.f32.mrf.mxu1 }
 0xb06   : > { %v3944_v26 = vadd.f32 %v7545_v22, %v3943_v62 }
 0xb08   : > { %5585 = vtanh.f32 %v3944_v26 }
 0xb0c   : > { %v7608_v30 = vpop.xlane.xlu2 %3994 }
 0xb0d   : > { %v3945_v42 = vpop.f32.mrf.mxu1 }
 0xb0e   : > { %v5586_v46 = vpop.eup %5585  ;;  %v3946_v36 = vadd.f32 %v7545_v22, %v3945_v42 }
 0xb0f   : > { %v3988_v63 = vmul.f32 %v5586_v46, %v7555_v50 }
 0xb10   : > { %5587 = vtanh.f32 %v3946_v36 }
 0xb11   : > { %4014 = vadd.xlane.f32.xlu0 %v3988_v63 }
 0xb14   : > { %v7618_v51 = vpop.xlane.xlu1 %3996 }
 0xb15   : > { %v3948_v32 = vpop.f32.mrf.mxu1 }
 0xb16   : > { %v5588_v38 = vpop.eup %5587  ;;  %v3949_v18 = vadd.f32 %v7545_v22, %v3948_v32 }
 0xb17   : > { %v3989_v53 = vmul.f32 %v5588_v38, %v7555_v50 }
 0xb18   : > { %5589 = vtanh.f32 %v3949_v18 }
 0xb19   : > { %4016 = vadd.xlane.f32.xlu1 %v3989_v53 }
 0xb1c   : > { %v7610_v44 = vpop.xlane.xlu2 %3998 }
 0xb1d   : > { %v3950_v55 = vpop.f32.mrf.mxu1 }
 0xb1e   : > { %v5590_v54 = vpop.eup %5589  ;;  %v3951_v11 = vadd.f32 %v7545_v22, %v3950_v55 }
 0xb1f   : > { %v3990_v3 = vmul.f32 %v5590_v54, %v7555_v50 }
 0xb20   : > { %5591 = vtanh.f32 %v3951_v11 }
 0xb21   : > { %4018 = vadd.xlane.f32.xlu2 %v3990_v3 }
 0xb24   : > { %v7622_v15 = vpop.xlane.xlu0 %4000 }
 0xb25   : > { %v3953_v60 = vpop.f32.mrf.mxu1 }
 0xb26   : > { %v5592_v49 = vpop.eup %5591  ;;  %v3954_v23 = vadd.f32 %v7545_v22, %v3953_v60 }
 0xb27   : > { %v3991_v37 = vmul.f32 %v5592_v49, %v7555_v50 }
 0xb28   : > { %5593 = vtanh.f32 %v3954_v23 }
 0xb29   : > { %4020 = vadd.xlane.f32.xlu0 %v3991_v37 }
 0xb2c   : > { %v7612_v10 = vpop.xlane.xlu2 %4002 }
 0xb2d   : > { %v3955_v56 = vpop.f32.mrf.mxu1 }
 0xb2e   : > { %v5594_v52 = vpop.eup %5593  ;;  %v3956_v17 = vadd.f32 %v7545_v22, %v3955_v56 }
 0xb2f   : > { %v3992_v57 = vmul.f32 %v5594_v52, %v7555_v50  ;;  %v5915_v52 = vmov 0  }
 0xb30   : > { %5595 = vtanh.f32 %v3956_v17  ;;  %5302 = vset.pattern.permute.xlu0 %v5915_v52  ;;  %5301 = vset.pattern.permute.xlu2 %v5915_v52 }
 0xb31   : > { %4022 = vadd.xlane.f32.xlu1 %v3992_v57 }
 0xb32   : > { %5300 = vset.pattern.permute.xlu1 %v5915_v52 }
 0xb34   : > { %v7614_v19 = vpop.xlane.xlu2 %4004 }
 0xb36   : > { %v5596_v16 = vpop.eup %5595 }
 0xb37   : > { %v3993_v1 = vmul.f32 %v5596_v16, %v7555_v50  ;;  %v4042_v50 = vlaneseq }
 0xb39   : > { %4024 = vadd.xlane.f32.xlu2 %v3993_v1  ;;  %v7630_v48 = vand.u32 127, %v4042_v50 }
 0xb3b   : > { %v7633_v28 = vadd.s32 4294967288, %v7630_v48  ;;  %v4049_v35 = vperm.slane %v7610_v44, %v7630_v48  ;;  %v4052_v7 = vperm.slane %v7612_v10, %v7630_v48  ;;  %v4044_v13 = vperm.slane %v7608_v30, %v7630_v48 }
 0xb3c   : > { %v7616_v40 = vpop.xlane.xlu2 %4006 }
 0xb3d   : > { %v4050_v29 = vperm.slane %v7622_v15, %v7633_v28  ;;  %v4053_v47 = vperm.slane %v7614_v19, %v7633_v28  ;;  %v4046_v59 = vperm.slane %v7618_v51, %v7633_v28  ;;  %v4055_v0 = vperm.slane %v7616_v40, %v7630_v48 }
 0xb3f   : > { %v4051_v12 = vsel %vm4047_vm2, %v4050_v29, %v4049_v35  ;;  %v4054_v2 = vsel %vm4047_vm2, %v4053_v47, %v4052_v7  ;;  %v4048_v31 = vsel %vm4047_vm2, %v4046_v59, %v4044_v13 }
 0xb40   : > { %v4071_v42 = vsel %vm4070_vm3, %v4051_v12, %v4048_v31 }
 0xb41   : > { %v4073_v32 = vsel %vm4072_vm4, %v4054_v2, %v4071_v42 }
 0xb44   : > { %v7620_v22 = vpop.xlane.xlu2 %4008 }
 0xb45   : > { %v4056_v45 = vperm.slane %v7620_v22, %v7633_v28 }
 0xb47   : > { %v4057_v62 = vsel %vm4047_vm2, %v4056_v45, %v4055_v0 }
 0xb48   : > { %v4075_v18 = vsel %vm4074_vm5, %v4057_v62, %v4073_v32 }
 0xb4c   : > { %v7624_v34 = vpop.xlane.xlu1 %4010 }
 0xb4d   : > { %v4058_v21 = vperm.slane %v7624_v34, %v7630_v48 }
 0xb54   : > { %v7626_v58 = vpop.xlane.xlu2 %4012 }
 0xb55   : > { %v4059_v41 = vperm.slane %v7626_v58, %v7633_v28 }
 0xb57   : > { %v4060_v46 = vsel %vm4047_vm2, %v4059_v41, %v4058_v21 }
 0xb58   : > { %v4077_v54 = vsel %vm4076_vm6, %v4060_v46, %v4075_v18 }
 0xb84   : > { %v7628_v33 = vpop.xlane.xlu0 %4014 }
 0xb85   : > { %v4061_v26 = vperm.slane %v7628_v33, %v7630_v48 }
 0xb8c   : > { %v7635_v6 = vpop.xlane.xlu1 %4016 }
 0xb8d   : > { %v4062_v25 = vperm.slane %v7635_v6, %v7633_v28 }
 0xb8f   : > { %v4063_v38 = vsel %vm4047_vm2, %v4062_v25, %v4061_v26 }
 0xb90   : > { %v4079_v60 = vsel %vm4078_vm7, %v4063_v38, %v4077_v54 }
 0xb94   : > { %v7641_v43 = vpop.xlane.xlu2 %4018 }
 0xb95   : > { %v4064_v36 = vperm.slane %v7641_v43, %v7630_v48 }
 0xb9c   : > { %v7649_v14 = vpop.xlane.xlu0 %4020 }
 0xb9d   : > { %v4065_v8 = vperm.slane %v7649_v14, %v7633_v28 }
 0xb9f   : > { %v4066_v53 = vsel %vm4047_vm2, %v4065_v8, %v4064_v36 }
 0xba0   : > { %v4081_v23 = vsel %vm4080_vm8, %v4066_v53, %v4079_v60 }
 0xba4   : > { %v7675_v63 = vpop.xlane.xlu1 %4022 }
 0xba5   : > { %v4067_v11 = vperm.slane %v7675_v63, %v7630_v48 }
 0xbac   : > { %v7681_v55 = vpop.xlane.xlu2 %4024 }
 0xbad   : > { %v4068_v3 = vperm.slane %v7681_v55, %v7633_v28 }
 0xbaf   : > { %v4069_v49 = vsel %vm4047_vm2, %v4068_v3, %v4067_v11 }
 0xbb0   : > { %v4083_v37 = vsel %vm4082_vm9, %v4069_v49, %v4081_v23 }
 0xbb1   : > { %v4085_v56 = vsel %vm1240_vm1, %v4083_v37, -inf }
 0xbb2   : > { %4086 = vmax.xlane.f32.xlu0 %v4085_v56 }
 0xc25   : > { %v7693_v17 = vpop.xlane.xlu0 %4086 }
 0xc26   : > { %v4089_v57 = vperm.slane %v7693_v17, 0  ;;  %v4090_v16 = vperm.slane %v7693_v17, 1  ;;  %v4091_v47 = vperm.slane %v7693_v17, 2  ;;  %v4093_v59 = vperm.slane %v7693_v17, 4 }
 0xc27   : > { %v4095_v25 = vperm.slane %v7693_v17, 6  ;;  %v4096_v42 = vperm.slane %v7693_v17, 7  ;;  %v4094_v38 = vperm.slane %v7693_v17, 5 }
 0xc28   : > { %v4105_v1 = vsub.f32 %v7608_v30, %v4089_v57  ;;  %v4106_v50 = vsub.f32 %v7618_v51, %v4089_v57  ;;  %v4107_v29 = vsub.f32 %v7610_v44, %v4090_v16  ;;  %v4108_v41 = vsub.f32 %v7622_v15, %v4090_v16 }
 0xc29   : > { %v4109_v13 = vsub.f32 %v7612_v10, %v4091_v47  ;;  %v4114_v12 = vsub.f32 %v7626_v58, %v4093_v59  ;;  %v4092_v51 = vperm.slane %v7693_v17, 3  ;;  %v4110_v10 = vsub.f32 %v7614_v19, %v4091_v47 }
 0xc2a   : > { %v4121_v35 = vmul.f32 1.442695, %v4105_v1  ;;  %v4123_v45 = vmul.f32 1.442695, %v4106_v50  ;;  %v4125_v7 = vmul.f32 1.442695, %v4107_v29  ;;  %v4117_v8 = vsub.f32 %v7641_v43, %v4095_v25 }
 0xc2b   : > { %v4127_v30 = vmul.f32 1.442695, %v4108_v41  ;;  %v4129_v44 = vmul.f32 1.442695, %v4109_v13  ;;  %v4139_v2 = vmul.f32 1.442695, %v4114_v12  ;;  %v4111_v58 = vsub.f32 %v7616_v40, %v4092_v51 }
 0xc2c   : > { %5597 = vpow2.f32 %v4121_v35  ;;  %v4131_v31 = vmul.f32 1.442695, %v4110_v10  ;;  %v4145_v46 = vmul.f32 1.442695, %v4117_v8  ;;  %v4112_v40 = vsub.f32 %v7620_v22, %v4092_v51 }
 0xc2d   : > { %5599 = vpow2.f32 %v4123_v45  ;;  %v4133_v62 = vmul.f32 1.442695, %v4111_v58  ;;  %v4113_v43 = vsub.f32 %v7624_v34, %v4093_v59  ;;  %v4120_v32 = vsub.f32 %v7681_v55, %v4096_v42 }
 0xc2e   : > { %5601 = vpow2.f32 %v4125_v7  ;;  %v4135_v18 = vmul.f32 1.442695, %v4112_v40  ;;  %v4115_v34 = vsub.f32 %v7628_v33, %v4094_v38  ;;  %v4116_v55 = vsub.f32 %v7635_v6, %v4094_v38 }
 0xc2f   : > { %5603 = vpow2.f32 %v4127_v30  ;;  %v4137_v53 = vmul.f32 1.442695, %v4113_v43  ;;  %v4151_v11 = vmul.f32 1.442695, %v4120_v32  ;;  %v4118_v33 = vsub.f32 %v7649_v14, %v4095_v25 }
 0xc30   : > { %5605 = vpow2.f32 %v4129_v44  ;;  %v4141_v60 = vmul.f32 1.442695, %v4115_v34  ;;  %v4143_v49 = vmul.f32 1.442695, %v4116_v55  ;;  %v4119_v6 = vsub.f32 %v7675_v63, %v4096_v42 }
 0xc31   : > { %5607 = vpow2.f32 %v4139_v2  ;;  %v4147_v52 = vmul.f32 1.442695, %v4118_v33 }
 0xc32   : > { %v7706_v0 = vpop.eup %5597  ;;  %5609 = vpow2.f32 %v4131_v31  ;;  %v4149_v17 = vmul.f32 1.442695, %v4119_v6 }
 0xc33   : > { %v7709_v21 = vpop.eup %5599  ;;  %4170 = vperm.xlu1 %5300, %v7706_v0   ;;  %5611 = vpow2.f32 %v4133_v62 }
 0xc34   : > { %v7712_v15 = vpop.eup %5601  ;;  %4173 = vperm.xlu2 %5301, %v7709_v21   ;;  %5613 = vpow2.f32 %v4145_v46 }
 0xc35   : > { %4176 = vperm.xlu0 %5302, %v7712_v15   ;;  %v7719_v26 = vpop.eup %5603  ;;  %5615 = vpow2.f32 %v4135_v18 }
 0xc36   : > { %v7722_v36 = vpop.eup %5605  ;;  %5617 = vpow2.f32 %v4137_v53 }
 0xc37   : > { %v7725_v19 = vpop.eup %5607  ;;  %5619 = vpow2.f32 %v4151_v11 }
 0xc38   : > { %v7733_v54 = vpop.eup %5609  ;;  %5621 = vpow2.f32 %v4141_v60 }
 0xc39   : > { %v7735_v3 = vpop.eup %5611  ;;  %5623 = vpow2.f32 %v4143_v49 }
 0xc3a   : > { %v7738_v22 = vpop.eup %5613  ;;  %5625 = vpow2.f32 %v4147_v52 }
 0xc3b   : > { %4179 = vperm.xlu1 %5300, %v7719_v26   ;;  %v7744_v23 = vpop.eup %5615  ;;  %5627 = vpow2.f32 %v4149_v17 }
 0xc3c   : > { %4182 = vperm.xlu2 %5301, %v7722_v36   ;;  %v7746_v37 = vpop.eup %5617 }
 0xc3d   : > { %4197 = vperm.xlu0 %5302, %v7725_v19   ;;  %v7749_v56 = vpop.eup %5619 }
 0xc3e   : > { %v7755_v57 = vpop.eup %5621 }
 0xc3f   : > { %v7757_v16 = vpop.eup %5623 }
 0xc40   : > { %v7761_v14 = vpop.eup %5625 }
 0xc41   : > { %v7763_v1 = vpop.eup %5627 }
 0xc43   : > { %4185 = vperm.xlu1 %5300, %v7733_v54  }
 0xc44   : > { %4188 = vperm.xlu2 %5301, %v7735_v3  }
 0xc45   : > { %4206 = vperm.xlu0 %5302, %v7738_v22  }
 0xc4b   : > { %4191 = vperm.xlu1 %5300, %v7744_v23  }
 0xc4c   : > { %4194 = vperm.xlu2 %5301, %v7746_v37  }
 0xc4d   : > { %4215 = vperm.xlu0 %5302, %v7749_v56  }
 0xc53   : > { %4200 = vperm.xlu1 %5300, %v7755_v57  }
 0xc54   : > { %4203 = vperm.xlu2 %5301, %v7757_v16  }
 0xc5b   : > { %4209 = vperm.xlu1 %5300, %v7761_v14  }
 0xc5c   : > { %4212 = vperm.xlu2 %5301, %v7763_v1  }
 0xc8e   : > { %v4174_v63 = vpop.permute.xlu2 %4173 }
 0xc8f   : > { %v4218_v31 = vperm.slane %v4174_v63, %v7633_v28 }
 0xc96   : > { %v4183_v50 = vpop.permute.xlu2 %4182 }
 0xc97   : > { %v4223_v8 = vperm.slane %v4183_v50, %v7630_v48 }
 0xc9e   : > { %v4189_v35 = vpop.permute.xlu2 %4188 }
 0xc9f   : > { %v4226_v62 = vperm.slane %v4189_v35, %v7630_v48 }
 0xca5   : > { %v4171_v29 = vpop.permute.xlu1 %4170 }
 0xca6   : > { %v4195_v41 = vpop.permute.xlu2 %4194  ;;  %v4217_v2 = vperm.slane %v4171_v29, %v7630_v48 }
 0xca7   : > { %v4177_v47 = vpop.permute.xlu0 %4176  ;;  %v4229_v55 = vperm.slane %v4195_v41, %v7630_v48 }
 0xca8   : > { %v4220_v25 = vperm.slane %v4177_v47, %v7630_v48  ;;  %v4219_v40 = vsel %vm4047_vm2, %v4218_v31, %v4217_v2 }
 0xcad   : > { %v4180_v59 = vpop.permute.xlu1 %4179 }
 0xcae   : > { %v4204_v30 = vpop.permute.xlu2 %4203  ;;  %v4221_v51 = vperm.slane %v4180_v59, %v7633_v28 }
 0xcaf   : > { %v4198_v7 = vpop.permute.xlu0 %4197  ;;  %v4233_v11 = vperm.slane %v4204_v30, %v7633_v28 }
 0xcb0   : > { %v4222_v42 = vsel %vm4047_vm2, %v4221_v51, %v4220_v25  ;;  %v4230_v38 = vperm.slane %v4198_v7, %v7633_v28 }
 0xcb1   : > { %v4241_v18 = vsel %vm4070_vm3, %v4222_v42, %v4219_v40 }
 0xcb2   : > { %v4231_v17 = vsel %vm4047_vm2, %v4230_v38, %v4229_v55 }
 0xcb5   : > { %v4186_v45 = vpop.permute.xlu1 %4185 }
 0xcb6   : > { %v4224_v44 = vperm.slane %v4186_v45, %v7633_v28  ;;  %v4213_v60 = vpop.permute.xlu2 %4212 }
 0xcb7   : > { %v4207_v12 = vpop.permute.xlu0 %4206  ;;  %v4238_v29 = vperm.slane %v4213_v60, %v7630_v48 }
 0xcb8   : > { %v4225_v46 = vsel %vm4047_vm2, %v4224_v44, %v4223_v8  ;;  %v4235_v63 = vperm.slane %v4207_v12, %v7630_v48 }
 0xcb9   : > { %v4242_v34 = vsel %vm4072_vm4, %v4225_v46, %v4241_v18 }
 0xcbd   : > { %v4192_v13 = vpop.permute.xlu1 %4191 }
 0xcbe   : > { %v4227_v10 = vperm.slane %v4192_v13, %v7633_v28 }
 0xcbf   : > { %v4216_v53 = vpop.permute.xlu0 %4215 }
 0xcc0   : > { %v4228_v43 = vsel %vm4047_vm2, %v4227_v10, %v4226_v62  ;;  %v4239_v33 = vperm.slane %v4216_v53, %v7633_v28 }
 0xcc1   : > { %v4243_v49 = vsel %vm4074_vm5, %v4228_v43, %v4242_v34 }
 0xcc2   : > { %v4244_v47 = vsel %vm4076_vm6, %v4231_v17, %v4243_v49  ;;  %v4240_v45 = vsel %vm4047_vm2, %v4239_v33, %v4238_v29 }
 0xcc5   : > { %v4201_v58 = vpop.permute.xlu1 %4200 }
 0xcc6   : > { %v4232_v32 = vperm.slane %v4201_v58, %v7630_v48 }
 0xcc8   : > { %v4234_v6 = vsel %vm4047_vm2, %v4233_v11, %v4232_v32 }
 0xcc9   : > { %v4245_v35 = vsel %vm4078_vm7, %v4234_v6, %v4244_v47 }
 0xccd   : > { %v4210_v52 = vpop.permute.xlu1 %4209 }
 0xcce   : > { %v4236_v50 = vperm.slane %v4210_v52, %v7633_v28 }
 0xcd0   : > { %v4237_v59 = vsel %vm4047_vm2, %v4236_v50, %v4235_v63 }
 0xcd1   : > { %v4246_v7 = vsel %vm4080_vm8, %v4237_v59, %v4245_v35 }
 0xcd2   : > { %v4247_v41 = vsel %vm4082_vm9, %v4240_v45, %v4246_v7 }
 0xcd3   : > { %v4249_v13 = vsel %vm1240_vm1, %v4247_v41, 0.0 }
 0xcd4   : > { %4250 = vadd.xlane.f32.xlu1 %v4249_v13 }
 0xd47   : > { %v7799_v12 = vpop.xlane.xlu1 %4250 }
 0xd48   : > { %v4253_v30 = vperm.slane %v7799_v12, 0  ;;  %v4254_v51 = vperm.slane %v7799_v12, 1  ;;  %v7804_v44 = vperm.slane %v7799_v12, 2  ;;  %v4258_v25 = vperm.slane %v7799_v12, 5 }
 0xd49   : > { %v7809_v10 = vperm.slane %v7799_v12, 3  ;;  %v7817_v34 = vperm.slane %v7799_v12, 4 }
 0xd4a   : > { %5629 = vrcp.f32 %v4253_v30  ;;  %v4278_v46 = vand.u32 2147483647, %v4253_v30  ;;  %v4280_v40 = vand.u32 2147483648, %v4253_v30  ;;  %v4358_v55 = vand.u32 2147483647, %v4258_v25 }
 0xd4b   : > { %5631 = vrcp.f32 %v4254_v51  ;;  %vm4274_vm11 = vweird.f32 %v4253_v30  ;;  %v4360_v33 = vand.u32 2147483648, %v4258_v25  ;;  %v4296_v59 = vand.u32 2147483648, %v4254_v51 }
 0xd4c   : > { %5633 = vrcp.f32 %v7804_v44  ;;  %vm4279_vm13 = vcmp.eq.f32.partialorder %v4278_v46, 8.507059e+37  ;;  %v4281_v6 = vor.u32 1.1754944e-38, %v4280_v40  ;;  %vm4290_vm0 = vweird.f32 %v4254_v51 }
 0xd4d   : > { %5635 = vrcp.f32 %v4258_v25  ;;  %v4294_v7 = vand.u32 2147483647, %v4254_v51 }
 0xd4e   : > { %5637 = vrcp.f32 %v7809_v10 }
 0xd4f   : > { %5639 = vrcp.f32 %v7817_v34 }
 0xd50   : > { %v5630_v2 = vpop.eup %5629 }
 0xd51   : > { %v5632_v58 = vpop.eup %5631  ;;  %v4270_v8 = vmul.f32 %v5630_v2, %v4253_v30  ;;  %vm4275_vm10 = vweird.f32 %v5630_v2  ;;  %v4361_v30 = vor.u32 1.1754944e-38, %v4360_v33 }
 0xd52   : > { %v7811_v31 = vpop.eup %5633  ;;  %v4286_v62 = vmul.f32 %v5632_v58, %v4254_v51  ;;  %vm4276_vm12 = vmor %vm4274_vm11, %vm4275_vm10  ;;  %vm4291_vm14 = vweird.f32 %v5632_v58  ;;  %vm4354_vm10 = vweird.f32 %v4258_v25 }
 0xd53   : > { %v4271_v42 = vsub.f32 1.0, %v4270_v8  ;;  %v5636_v32 = vpop.eup %5635  ;;  %v4302_v18 = vmul.f32 %v7811_v31, %v7804_v44  ;;  %vm7824_vm11 = vmor %vm4290_vm0, %vm4291_vm14  ;;  %v4297_v8 = vor.u32 1.1754944e-38, %v4296_v59  ;;  %vm4295_vm14 = vcmp.eq.f32.partialorder %v4294_v7, 8.507059e+37 }
 0xd54   : > { %v4287_v43 = vsub.f32 1.0, %v4286_v62  ;;  %v4350_v53 = vmul.f32 %v5636_v32, %v4258_v25  ;;  %v7819_v50 = vpop.eup %5637  ;;  %vm4355_vm15 = vweird.f32 %v5636_v32  ;;  %v7836_v62 = vperm.slane %v7799_v12, 6 }
 0xd55   : > { %v4272_v38 = vmul.f32 %v5630_v2, %v4271_v42  ;;  %v4303_v63 = vsub.f32 1.0, %v4302_v18  ;;  %vm4306_vm0 = vweird.f32 %v7804_v44 }
 0xd56   : > { %v4288_v11 = vmul.f32 %v5632_v58, %v4287_v43  ;;  %v4351_v49 = vsub.f32 1.0, %v4350_v53  ;;  %v5640_v43 = vpop.eup %5639  ;;  %v4310_v53 = vand.u32 2147483647, %v7804_v44  ;;  %5641 = vrcp.f32 %v7836_v62 }
 0xd57   : > { %v4273_v60 = vadd.f32 %v5630_v2, %v4272_v38 }
 0xd58   : > { %v4289_v17 = vadd.f32 %v5632_v58, %v4288_v11  ;;  %v4352_v29 = vmul.f32 %v5636_v32, %v4351_v49 }
 0xd59   : > { %v4277_v52 = vsel %vm4276_vm12, %v5630_v2, %v4273_v60  ;;  %vm4356_vm12 = vmor %vm4354_vm10, %vm4355_vm15  ;;  %vm4307_vm15 = vweird.f32 %v7811_v31 }
 0xd5a   : > { %v4282_v47 = vsel %vm4279_vm13, %v4281_v6, %v4277_v52  ;;  %v4353_v41 = vadd.f32 %v5636_v32, %v4352_v29  ;;  %v4293_v2 = vsel %vm7824_vm11, %v5632_v58, %v4289_v17  ;;  %vm4359_vm13 = vcmp.eq.f32.partialorder %v4358_v55, 8.507059e+37  ;;  %vm4308_vm10 = vmor %vm4306_vm0, %vm4307_vm15 }
 0xd5b   : > { %v4284_v35 = vmul.f32 %v7709_v21, %v4282_v47  ;;  %v4283_v45 = vmul.f32 %v7706_v0, %v4282_v47  ;;  %v4304_v21 = vmul.f32 %v7811_v31, %v4303_v63  ;;  %v4318_v0 = vmul.f32 %v7819_v50, %v7809_v10 }
 0xd5c   : > { %v4357_v51 = vsel %vm4356_vm12, %v5636_v32, %v4353_v41  ;;  %v4298_v46 = vsel %vm4295_vm14, %v4297_v8, %v4293_v2  ;;  %v4312_v32 = vand.u32 2147483648, %v7804_v44  ;;  %v4334_v55 = vmul.f32 %v5640_v43, %v7817_v34  ;;  %v5642_v33 = vpop.eup %5641 }
 0xd5d   : > { %4403 = vperm.xlu0 %5302, %v4284_v35   ;;  %4400 = vperm.xlu2 %5301, %v4283_v45   ;;  %v7833_v25 = vsel %vm4359_vm13, %v4361_v30, %v4357_v51  ;;  %v4305_v58 = vadd.f32 %v7811_v31, %v4304_v21  ;;  %v4319_v40 = vsub.f32 1.0, %v4318_v0  ;;  %v4300_v38 = vmul.f32 %v7719_v26, %v4298_v46 }
 0xd5e   : > { %v4363_v42 = vmul.f32 %v7755_v57, %v7833_v25  ;;  %v4299_v18 = vmul.f32 %v7712_v15, %v4298_v46  ;;  %v4313_v60 = vor.u32 1.1754944e-38, %v4312_v32  ;;  %vm4311_vm11 = vcmp.eq.f32.partialorder %v4310_v53, 8.507059e+37 }
 0xd5f   : > { %v4309_v57 = vsel %vm4308_vm10, %v7811_v31, %v4305_v58  ;;  %v4320_v11 = vmul.f32 %v7819_v50, %v4319_v40  ;;  %v7852_v26 = vperm.slane %v7799_v12, 7  ;;  %vm4323_vm12 = vweird.f32 %v7819_v50 }
 0xd60   : > { %4565 = vperm.xlu1 %5300, %v4363_v42   ;;  %v4314_v15 = vsel %vm4311_vm11, %v4313_v60, %v4309_v57  ;;  %v4335_v44 = vsub.f32 1.0, %v4334_v55  ;;  %v4328_v6 = vand.u32 2147483648, %v7809_v10  ;;  %vm4322_vm13 = vweird.f32 %v7809_v10 }
 0xd61   : > { %v4321_v49 = vadd.f32 %v7819_v50, %v4320_v11  ;;  %v4316_v31 = vmul.f32 %v7733_v54, %v4314_v15  ;;  %v4315_v52 = vmul.f32 %v7722_v36, %v4314_v15  ;;  %v4326_v17 = vand.u32 2147483647, %v7809_v10  ;;  %vm4324_vm14 = vmor %vm4322_vm13, %vm4323_vm12 }
 0xd62   : > { %5643 = vrcp.f32 %v7852_v26  ;;  %v4336_v63 = vmul.f32 %v5640_v43, %v4335_v44  ;;  %v4366_v29 = vmul.f32 %v5642_v33, %v7836_v62  ;;  %v4329_v47 = vor.u32 1.1754944e-38, %v4328_v6 }
 0xd63   : > { %v4325_v12 = vsel %vm4324_vm14, %v7819_v50, %v4321_v49  ;;  %vm4327_vm15 = vcmp.eq.f32.partialorder %v4326_v17, 8.507059e+37  ;;  %vm4339_vm0 = vweird.f32 %v5640_v43  ;;  %v4344_v45 = vand.u32 2147483648, %v7817_v34 }
 0xd64   : > { %v4330_v59 = vsel %vm4327_vm15, %v4329_v47, %v4325_v12  ;;  %v4337_v54 = vadd.f32 %v5640_v43, %v4336_v63  ;;  %v4367_v36 = vsub.f32 1.0, %v4366_v29  ;;  %vm4338_vm10 = vweird.f32 %v7817_v34 }
 0xd65   : > { %4436 = vperm.xlu0 %5302, %v4300_v38   ;;  %4433 = vperm.xlu2 %5301, %v4299_v18   ;;  %v4332_v10 = vmul.f32 %v7744_v23, %v4330_v59  ;;  %v4331_v7 = vmul.f32 %v7735_v3, %v4330_v59  ;;  %v4342_v50 = vand.u32 2147483647, %v7817_v34  ;;  %vm4340_vm11 = vmor %vm4338_vm10, %vm4339_vm0  ;;  %v4345_v2 = vor.u32 1.1754944e-38, %v4344_v45 }
 0xd66   : > { %v4341_v41 = vsel %vm4340_vm11, %v5640_v43, %v4337_v54  ;;  %v4368_v13 = vmul.f32 %v5642_v33, %v4367_v36  ;;  %vm4371_vm13 = vweird.f32 %v5642_v33  ;;  %v4376_v23 = vand.u32 2147483648, %v7836_v62 }
 0xd67   : > { %vm4343_vm12 = vcmp.eq.f32.partialorder %v4342_v50, 8.507059e+37  ;;  %vm4370_vm14 = vweird.f32 %v7836_v62  ;;  %v4374_v34 = vand.u32 2147483647, %v7836_v62  ;;  %v4392_v32 = vand.u32 2147483648, %v7852_v26 }
 0xd68   : > { %v5644_v35 = vpop.eup %5643  ;;  %v4346_v21 = vsel %vm4343_vm12, %v4345_v2, %v4341_v41  ;;  %v4369_v0 = vadd.f32 %v5642_v33, %v4368_v13  ;;  %vm4372_vm15 = vmor %vm4370_vm14, %vm4371_vm13  ;;  %v4377_v58 = vor.u32 1.1754944e-38, %v4376_v23  ;;  %vm4386_vm11 = vweird.f32 %v7852_v26 }
 0xd69   : > { %v4382_v30 = vmul.f32 %v5644_v35, %v7852_v26  ;;  %v4348_v3 = vmul.f32 %v7725_v19, %v4346_v21  ;;  %v4347_v8 = vmul.f32 %v7746_v37, %v4346_v21  ;;  %vm4375_vm0 = vcmp.eq.f32.partialorder %v4374_v34, 8.507059e+37 }
 0xd6a   : > { %v4373_v42 = vsel %vm4372_vm15, %v5642_v33, %v4369_v0  ;;  %vm4387_vm10 = vweird.f32 %v5644_v35  ;;  %v4364_v37 = vmul.f32 %v7757_v16, %v7833_v25  ;;  %v4390_v62 = vand.u32 2147483647, %v7852_v26 }
 0xd6b   : > { %v4383_v51 = vsub.f32 1.0, %v4382_v30  ;;  %v4378_v40 = vsel %vm4375_vm0, %v4377_v58, %v4373_v42  ;;  %vm4388_vm12 = vmor %vm4386_vm11, %vm4387_vm10  ;;  %v4393_v18 = vor.u32 1.1754944e-38, %v4392_v32 }
 0xd6c   : > { %v4379_v19 = vmul.f32 %v7738_v22, %v4378_v40  ;;  %vm4391_vm13 = vcmp.eq.f32.partialorder %v4390_v62, 8.507059e+37  ;;  %v4380_v11 = vmul.f32 %v7761_v14, %v4378_v40 }
 0xd6d   : > { %4469 = vperm.xlu0 %5302, %v4316_v31   ;;  %4466 = vperm.xlu2 %5301, %v4315_v52   ;;  %v4384_v46 = vmul.f32 %v5644_v35, %v4383_v51 }
 0xd6f   : > { %v4385_v43 = vadd.f32 %v5644_v35, %v4384_v46 }
 0xd71   : > { %v4389_v38 = vsel %vm4388_vm12, %v5644_v35, %v4385_v43 }
 0xd72   : > { %v4394_v53 = vsel %vm4391_vm13, %v4393_v18, %v4389_v38 }
 0xd73   : > { %v4395_v57 = vmul.f32 %v7763_v1, %v4394_v53  ;;  %v4396_v22 = vmul.f32 %v7749_v56, %v4394_v53 }
 0xd75   : > { %4502 = vperm.xlu0 %5302, %v4332_v10   ;;  %4499 = vperm.xlu2 %5301, %v4331_v7  }
 0xd7d   : > { %4535 = vperm.xlu0 %5302, %v4348_v3   ;;  %4532 = vperm.xlu2 %5301, %v4347_v8  }
 0xd85   : > { %4598 = vperm.xlu0 %5302, %v4379_v19   ;;  %4568 = vperm.xlu2 %5301, %v4364_v37  }
 0xd8d   : > { %4631 = vperm.xlu0 %5302, %v4395_v57   ;;  %4601 = vperm.xlu2 %5301, %v4380_v11  }
 0xd95   : > { %4634 = vperm.xlu2 %5301, %v4396_v22  }
 0xdb7   : > { %v4401_v16 = vpop.permute.xlu2 %4400 }
 0xdb8   : > { %v4405_v26 = vperm.slane %v4401_v16, %v7630_v48 }
 0xdbf   : > { %v4434_v25 = vpop.permute.xlu2 %4433 }
 0xdc0   : > { %v4438_v56 = vperm.slane %v4434_v25, %v7630_v48 }
 0xdc7   : > { %v4467_v55 = vpop.permute.xlu2 %4466 }
 0xdcf   : > { %v4404_v60 = vpop.permute.xlu0 %4403  ;;  %v4500_v14 = vpop.permute.xlu2 %4499 }
 0xdd0   : > { %v4406_v15 = vperm.slane %v4404_v60, %v7633_v28  ;;  %v4504_v12 = vperm.slane %v4500_v14, %v7630_v48 }
 0xdd2   : > { %v4407_v49 = vsel %vm4047_vm2, %v4406_v15, %v4405_v26  ;;  %v4566_v29 = vpop.permute.xlu1 %4565 }
 0xdd3   : > { %5127 = vmatmul.msk.f32.vlgmr.msrb.gmra.mxu3 %vm1240_vm1, %v4407_v49 }
 0xdd4   : > { %4490 = vmatpush.msrb.mxu3 %v7514_v39  ;;  %v4471_v39 = vperm.slane %v4467_v55, %v7630_v48 }
 0xdd6   : > { %4491 = vmatpush.msrb.mxu3 %v7511_v61 }
 0xdd7   : > { %v4437_v1 = vpop.permute.xlu0 %4436  ;;  %v4533_v6 = vpop.permute.xlu2 %4532 }
 0xdd8   : > { %v4439_v44 = vperm.slane %v4437_v1, %v7633_v28  ;;  %v4537_v59 = vperm.slane %v4533_v6, %v7630_v48 }
 0xdda   : > { %v4440_v33 = vsel %vm4047_vm2, %v4439_v44, %v4438_v56 }
 0xddb   : > { %5128 = vmatmul.msk.f32.vlgmr.msra.gmra.mxu3 %vm1240_vm1, %v4440_v33 }
 0xddc   : > { %4556 = vmatpush.msra.mxu3 %v7532_v4 }
 0xdde   : > { %4557 = vmatpush.msra.mxu3 %v7529_v24 }
 0xddf   : > { %v4470_v31 = vpop.permute.xlu0 %4469  ;;  %v4569_v24 = vpop.permute.xlu2 %4568 }
 0xde0   : > { %v4472_v52 = vperm.slane %v4470_v31, %v7633_v28  ;;  %v4571_v47 = vperm.slane %v4569_v24, %v7633_v28 }
 0xde2   : > { %v4473_v61 = vsel %vm4047_vm2, %v4472_v52, %v4471_v39 }
 0xde3   : > { %5129 = vmatmul.msk.f32.vlgmr.msrb.gmra.mxu3 %vm1240_vm1, %v4473_v61 }
 0xde4   : > { %4622 = vmatpush.msrb.mxu3 %v7561_v27 }
 0xde6   : > { %4623 = vmatpush.msrb.mxu3 %v7558_v9  ;;  %v4570_v9 = vperm.slane %v4566_v29, %v7630_v48 }
 0xde7   : > { %v4503_v17 = vpop.permute.xlu0 %4502  ;;  %v4602_v45 = vpop.permute.xlu2 %4601 }
 0xde8   : > { %v4505_v4 = vperm.slane %v4503_v17, %v7633_v28  ;;  %v4572_v36 = vsel %vm4047_vm2, %v4571_v47, %v4570_v9  ;;  %v4604_v10 = vperm.slane %v4602_v45, %v7633_v28 }
 0xdea   : > { %v4506_v63 = vsel %vm4047_vm2, %v4505_v4, %v4504_v12 }
 0xdeb   : > { %5130 = vmatmul.msk.f32.vlgmr.msrb.gmra.mxu2 %vm1240_vm1, %v4506_v63 }
 0xdec   : > { %4655 = vmatpush.msrb.mxu2 %v7577_v5 }
 0xdee   : > { %4656 = vmatpush.msrb.mxu2 %v7574_v20 }
 0xdef   : > { %v4536_v27 = vpop.permute.xlu0 %4535  ;;  %v4635_v50 = vpop.permute.xlu2 %4634 }
 0xdf0   : > { %v4538_v54 = vperm.slane %v4536_v27, %v7633_v28  ;;  %v4637_v13 = vperm.slane %v4635_v50, %v7633_v28 }
 0xdf2   : > { %v4539_v35 = vsel %vm4047_vm2, %v4538_v54, %v4537_v59 }
 0xdf3   : > { %5131 = vmatmul.msk.f32.vlgmr.msra.gmra.mxu3 %vm1240_vm1, %v4539_v35  ;;  %5132 = vmatmul.msk.f32.vlgmr.msra.gmra.mxu2 %vm1240_vm1, %v4572_v36 }
 0xdf7   : > { %v4599_v5 = vpop.permute.xlu0 %4598 }
 0xdf8   : > { %v4603_v20 = vperm.slane %v4599_v5, %v7630_v48 }
 0xdfa   : > { %v4605_v7 = vsel %vm4047_vm2, %v4604_v10, %v4603_v20 }
 0xdfb   : > { %5133 = vmatmul.msk.f32.vlgmr.msrb.gmra.mxu3 %vm1240_vm1, %v4605_v7 }
 0xdff   : > { %v4632_v41 = vpop.permute.xlu0 %4631 }
 0xe00   : > { %v4636_v30 = vperm.slane %v4632_v41, %v7630_v48 }
 0xe02   : > { %v4638_v2 = vsel %vm4047_vm2, %v4637_v13, %v4636_v30 }
 0xe03   : > { %5134 = vmatmul.msk.f32.vlgmr.msrb.gmra.mxu2 %vm1240_vm1, %v4638_v2 }
 0xe56   : > { %v4427_v21 = vpop.f32.mrf.mxu3 }
 0xe5e   : > { %v4460_v0 = vpop.f32.mrf.mxu3 }
 0xe5f   : > { %v4669_v8 = vrot.slane %v4460_v0, 7 }
 0xe61   : > { %v4670_v28 = vsel %vm4070_vm3, %v4669_v8, %v4427_v21 }
 0xe66   : > { %v4493_v51 = vpop.f32.mrf.mxu3 }
 0xe67   : > { %v4671_v34 = vrot.slane %v4493_v51, 6 }
 0xe69   : > { %v4672_v48 = vsel %vm4072_vm4, %v4671_v34, %v4670_v28 }
 0xe6e   : > { %v4526_v23 = vpop.f32.mrf.mxu2 }
 0xe6f   : > { %v4673_v46 = vrot.slane %v4526_v23, 5 }
 0xe71   : > { %v4674_v43 = vsel %vm4074_vm5, %v4673_v46, %v4672_v48 }
 0xe76   : > { %v4559_v3 = vpop.f32.mrf.mxu3  ;;  %v4592_v42 = vpop.f32.mrf.mxu2 }
 0xe77   : > { %v4675_v58 = vrot.slane %v4559_v3, 4  ;;  %v4677_v32 = vrot.slane %v4592_v42, 3 }
 0xe79   : > { %v4676_v19 = vsel %vm4076_vm6, %v4675_v58, %v4674_v43 }
 0xe7a   : > { %v4678_v38 = vsel %vm4078_vm7, %v4677_v32, %v4676_v19 }
 0xe7e   : > { %v4625_v40 = vpop.f32.mrf.mxu3 }
 0xe7f   : > { %v4679_v37 = vrot.slane %v4625_v40, 2 }
 0xe81   : > { %v4680_v53 = vsel %vm4080_vm8, %v4679_v37, %v4678_v38 }
 0xe86   : > { %v4658_v62 = vpop.f32.mrf.mxu2 }
 0xe87   : > { %v4681_v18 = vrot.slane %v4658_v62, 1 }
 0xe89   : > { %v4682_v57 = vsel %vm4082_vm9, %v4681_v18, %v4680_v53 }
 0xe8a   : > { %4684 = vst [vmem:[%s517_s3] sm:$0xff] %v4682_v57 }
 0xe8b   : > { %5852 = shalt.err (!%p5849_p9)
}
 0xe8c   : > { %5219 = dma.vmem_to_hbm [thread:$0]  (%p6082_p13), %s4699_s28, 128, %s4701_s20, %s4686_s27  }
 0xe8d PF: > { %s4712_s15 = sand.u32 1, %s5891_s21   ;;  %p8081_p10 = scmp.ge.s32.totalorder %s5903_s24, 2 }
 0xe8e   : > { %s4713_s7 = scalar_lea.sflag [#allocation4], %s4712_s15 }
 0xe8f   : > { %p5242_p11 = pnand %p8081_p10, %p6087_p4 }
 0xe91   : > { %p5243_p0 = pneg %p5242_p11 }
 0xe93   : > { %5886 = dma.done.wait (%p5243_p0), %s4713_s7, 128  }
 0xe94   : > { %5888 = vsyncadd (%p5243_p0), %s4713_s7, 4294967168  ;;  %s8082_s29 = sld [smem:[#allocation19_spill]]  ;;  %p28_p2 = scmp.ge.s32.totalorder %s6062_s25, 4  }
 0xe95   : > { %s8083_s21 = smov %s5895_s22  ;;  %s8084_s22 = smov %s5899_s23 }
 0xe96   : > { %s8086_s24 = smov %s6062_s25  ;;  %30 = sbr.rel (!%p28_p2) target bundleno = 14 (0xe), region = 133 }
 0xe9a   : > { %s8085_s23 = smov %s8082_s29 }
 0xe9b   :  { %4719 = vsyncpa [#allocation3], 1 }
 0xe9c   :  { %4721 = vsyncpa [#allocation3 + $0x1], 1 }
 0xe9d   :  { %4722 = vsyncpa [#allocation6], 1 }
 0xe9e   :  { %4723 = vsyncpa [#allocation9], 1 }
 0xe9f   :  { %4724 = vsyncpa [#allocation12], 1 }
 0xea0   :  { %4725 = vsyncpa [#allocation4], 1 }
 0xea1   :  { %4727 = vsyncpa [#allocation4 + $0x1], 1 }

</bundles_post_ra>
